<compile_context>
chip_gen: v7x
topology: tpu7x:2x2x1
jax: 0.10.0
libtpu: 0.0.40
codegen_flags: <defaults>
</compile_context>

<pallas_src>
import functools

import numpy as np
import jax
import jax.numpy as jnp
from jax.experimental import pallas as pl
from jax.experimental.pallas import tpu as pltpu

LEAKY = 0.2
IN_EPS = 1e-5


def _lrelu(x):
    return jnp.where(x >= 0, x, LEAKY * x)


def _zero_map(n):
    return lambda *args: (0,) * n


# --------------------------- in-kernel helpers ------------------------------

def _linres(x, w0, b0, w1, b1, ws=None):
    # LinearResidualBlock: shortcut(x) + w1 @ lrelu(w0 @ lrelu(x))
    h = jnp.dot(_lrelu(x), w0, preferred_element_type=jnp.float32) + b0
    dx = jnp.dot(_lrelu(h), w1, preferred_element_type=jnp.float32) + b1
    xs = x if ws is None else jnp.dot(x, ws, preferred_element_type=jnp.float32)
    return xs + dx


def _conv3x3_row(x, mcat, brow, adown, aup):
    """'same' 3x3 conv in the (B, H, W*Cin) row layout.

    mcat: (W*Cin, 3*W*Cout) precomputed row-tap operator [dy=0|dy=1|dy=2].
    The vertical (H) shift is done with tiny batched matmuls against the
    precomputed shift matrices adown/aup -> no unaligned sublane slicing.
    """
    b, h, lin = x.shape
    lout = brow.shape[-1]
    p = jnp.dot(x.reshape(b * h, lin), mcat,
                preferred_element_type=jnp.float32).reshape(b, h, 3 * lout)
    p0 = p[:, :, :lout]            # lands one row below  (i = r + 1)
    p1 = p[:, :, lout:2 * lout]    # same row
    p2 = p[:, :, 2 * lout:]        # lands one row above  (i = r - 1)
    y = p1
    y = y + jnp.einsum('bik,bkl->bil', adown, p0,
                       preferred_element_type=jnp.float32)
    y = y + jnp.einsum('bik,bkl->bil', aup, p2,
                       preferred_element_type=jnp.float32)
    return y + brow


# ------------------------------ Pallas kernels -------------------------------

def _cond_kernel(oh_ref,
                 a_w0, a_b0, a_w1, a_b1, a_ws,
                 b_w0, b_b0, b_w1, b_b1,
                 c_w0, c_b0, c_w1, c_b1,
                 d_w0, d_b0, d_w1, d_b1, d_ws,
                 w0c_ref, wsc_ref,
                 cb0_ref, cws_ref):
    """labs_encoder + inj_cond + hoisted cond-factor projections (one call)."""
    x = oh_ref[...]
    x = _linres(x, a_w0[...], a_b0[...], a_w1[...], a_b1[...], a_ws[...])
    x = _linres(x, b_w0[...], b_b0[...], b_w1[...], b_b1[...])
    x = _linres(x, c_w0[...], c_b0[...], c_w1[...], c_b1[...])
    cf = _linres(x, d_w0[...], d_b0[...], d_w1[...], d_b1[...], d_ws[...])
    # cond half of frac_conv[0]: conv0 sees lrelu(concat) -> lrelu(cf) part;
    # shortcut sees raw concat -> cf part (bias-free).
    cb0_ref[...] = jnp.dot(_lrelu(cf), w0c_ref[...],
                           preferred_element_type=jnp.float32)
    cws_ref[...] = jnp.dot(cf, wsc_ref[...],
                           preferred_element_type=jnp.float32)


def _conv_img_kernel(x_ref, mimg_ref, bimg_ref, m0_ref, b0_ref, m1_ref, b1_ref,
                     ad_ref, au_ref, o_ref):
    """conv_img: Conv2d(C, F, 3,1,1) + ResidualBlock(F, F, None, 3,1,1)."""
    ad = ad_ref[...]
    au = au_ref[...]
    h = _conv3x3_row(x_ref[...], mimg_ref[...], bimg_ref[...], ad, au)
    t = _conv3x3_row(_lrelu(h), m0_ref[...], b0_ref[...], ad, au)
    t = _conv3x3_row(_lrelu(t), m1_ref[...], b1_ref[...], ad, au)
    o_ref[...] = h + t


def _frac_loop_kernel(out0_ref, cb0_ref, cws_ref,
                      w0x_ref, b0_ref, w1_ref, b1_ref, wsx_ref,
                      m0_ref, bm0_ref, m1_ref, bm1_ref,
                      ssum_ref, sbc_ref, ad_ref, au_ref, leak_ref,
                      emb_ref, acc_ref, *, hw):
    """One grid step == one of the n_calls iterations; `out` stays in VMEM."""
    step = pl.program_id(0)

    @pl.when(step == 0)
    def _():
        acc_ref[...] = out0_ref[...]

    out = acc_ref[...]                                  # (B, H, W*F)
    b, h, wf = out.shape
    inv_hw = 1.0 / hw

    # --- InstanceNorm2d(F): biased var, eps=1e-5, no affine --------------------
    ssum = ssum_ref[...]                                # (W*F, F) channel-sum
    sbc = sbc_ref[...]                                  # (F, W*F) channel-bcast
    mean_c = jnp.dot(jnp.sum(out, axis=1), ssum,
                     preferred_element_type=jnp.float32) * inv_hw      # (B, F)
    xc = out - jnp.dot(mean_c, sbc,
                       preferred_element_type=jnp.float32)[:, None, :]
    var_c = jnp.dot(jnp.sum(xc * xc, axis=1), ssum,
                    preferred_element_type=jnp.float32) * inv_hw        # (B, F)
    inv_std = jax.lax.rsqrt(var_c + IN_EPS)
    on = xc * jnp.dot(inv_std, sbc,
                      preferred_element_type=jnp.float32)[:, None, :]

    # --- frac_conv[0]: 1x1 ResidualBlock(2F, F, 4F) with hoisted cond part ----
    on2 = on.reshape(b * h, wf)
    h0 = jnp.dot(_lrelu(on2), w0x_ref[...],
                 preferred_element_type=jnp.float32).reshape(b, h, -1)
    h0 = h0 + b0_ref[...] + cb0_ref[...][:, None, :]
    d0 = jnp.dot(_lrelu(h0).reshape(b * h, -1), w1_ref[...],
                 preferred_element_type=jnp.float32).reshape(b, h, wf)
    d0 = d0 + b1_ref[...]
    xs = jnp.dot(on2, wsx_ref[...],
                 preferred_element_type=jnp.float32).reshape(b, h, wf)
    xs = xs + cws_ref[...][:, None, :]
    y0 = xs + d0

    # --- frac_conv[1]: 3x3 ResidualBlock(F, F) (identity shortcut) ------------
    ad = ad_ref[...]
    au = au_ref[...]
    t = _conv3x3_row(_lrelu(y0), m0_ref[...], bm0_ref[...], ad, au)
    t = _conv3x3_row(_lrelu(t), m1_ref[...], bm1_ref[...], ad, au)
    y1 = y0 + t

    new_out = out + leak_ref[...] * y1                  # leak fused (no extra pass)
    acc_ref[...] = new_out
    emb_ref[0] = new_out


def _outconv_kernel(x_ref, w0_ref, b0_ref, w1_ref, b1_ref, ws_ref,
                    sf_ref, sfh_ref, sfw_ref, shw_ref,
                    mf_ref, mfh_ref, mfw_ref, xhw_ref, *, h, w):
    """out_conv (1x1 RB, F -> 3F+1) fused with the multi_cut reductions."""
    x = x_ref[...]                                      # (B, H, W*F)
    b = x.shape[0]
    x2 = x.reshape(b * h, x.shape[2])
    hh = jnp.dot(_lrelu(x2), w0_ref[...],
                 preferred_element_type=jnp.float32) + b0_ref[...]
    dx = jnp.dot(_lrelu(hh), w1_ref[...],
                 preferred_element_type=jnp.float32) + b1_ref[...]
    xs = jnp.dot(x2, ws_ref[...], preferred_element_type=jnp.float32)
    y = xs + dx                                         # (B*H, W*(3F+1))
    y3 = y.reshape(b, h, -1)
    ysum = jnp.sum(y3, axis=1)                          # (B, W*(3F+1))
    mf_ref[...] = jnp.dot(ysum, sf_ref[...],
                          preferred_element_type=jnp.float32) * (1.0 / (h * w))
    mfw_ref[...] = jnp.dot(ysum, sfw_ref[...],
                           preferred_element_type=jnp.float32) * (1.0 / h)
    mfh_ref[...] = (jnp.dot(y, sfh_ref[...],
                            preferred_element_type=jnp.float32)
                    .reshape(b, h, -1)) * (1.0 / w)
    xhw_ref[...] = jnp.dot(y, shw_ref[...],
                           preferred_element_type=jnp.float32).reshape(b, h, -1)


def _lat_kernel(cs_ref,
                a_w0, a_b0, a_w1, a_b1, a_ws,
                b_w0, b_b0, b_w1, b_b1,
                wf_ref, bf_ref, o_ref):
    """out_to_lat: LRB(csz, lat, 2lat) -> LRB(lat, lat) -> Linear(lat, lat)."""
    x = cs_ref[...]
    x = _linres(x, a_w0[...], a_b0[...], a_w1[...], a_b1[...], a_ws[...])
    x = _linres(x, b_w0[...], b_b0[...], b_w1[...], b_b1[...])
    o_ref[...] = jnp.dot(x, wf_ref[...],
                         preferred_element_type=jnp.float32) + bf_ref[...]


# ------------------------------ pallas_call glue -----------------------------

_MOSAIC = pltpu.CompilerParams(dimension_semantics=("arbitrary",))


def _run_single(kernel, inputs, out_shapes):
    single = not isinstance(out_shapes, (tuple, list))
    outs = (out_shapes,) if single else tuple(out_shapes)
    res = pl.pallas_call(
        kernel,
        out_shape=outs,
        grid=(1,),
        in_specs=[pl.BlockSpec(a.shape, _zero_map(a.ndim)) for a in inputs],
        out_specs=tuple(pl.BlockSpec(o.shape, _zero_map(len(o.shape))) for o in outs),
        compiler_params=_MOSAIC,
    )(*inputs)
    return res[0] if single else res


def cond_stage(kp, onehot):
    labs, inj = kp['cond']['labs'], kp['cond']['inj']
    B = onehot.shape[0]
    F = kp['cond']['wsc'].shape[0]
    inputs = [onehot,
              labs[0]['w0'], labs[0]['b0'], labs[0]['w1'], labs[0]['b1'], labs[0]['ws'],
              labs[1]['w0'], labs[1]['b0'], labs[1]['w1'], labs[1]['b1'],
              inj[0]['w0'], inj[0]['b0'], inj[0]['w1'], inj[0]['b1'],
              inj[1]['w0'], inj[1]['b0'], inj[1]['w1'], inj[1]['b1'], inj[1]['ws'],
              kp['cond']['w0c'], kp['cond']['wsc']]
    out_shapes = (jax.ShapeDtypeStruct((B, 4 * F), jnp.float32),
                  jax.ShapeDtypeStruct((B, F), jnp.float32))
    return _run_single(_cond_kernel, inputs, out_shapes)


def conv_img_stage(kp, x_row, adown, aup):
    ci = kp['conv_img']
    B, H, _ = x_row.shape
    WF = ci['bimg'].shape[1]
    inputs = [x_row, ci['mimg'], ci['bimg'], ci['m0'], ci['b0'],
              ci['m1'], ci['b1'], adown, aup]
    return _run_single(_conv_img_kernel, inputs,
                       jax.ShapeDtypeStruct((B, H, WF), jnp.float32))


def frac_loop_stage(kp, out0, cb0_row, cws_row, leak_row, adown, aup, *, n_calls, hw):
    fr = kp['frac']
    B, H, WF = out0.shape
    inputs = [out0, cb0_row, cws_row,
              fr['w0x'], fr['b0'], fr['w1'], fr['b1'], fr['wsx'],
              fr['m0'], fr['bm0'], fr['m1'], fr['bm1'],
              kp['ssum'], kp['sbc'], adown, aup, leak_row]
    return pl.pallas_call(
        functools.partial(_frac_loop_kernel, hw=hw),
        out_shape=jax.ShapeDtypeStruct((n_calls, B, H, WF), jnp.float32),
        grid=(n_calls,),
        in_specs=[pl.BlockSpec(a.shape, _zero_map(a.ndim)) for a in inputs],
        out_specs=pl.BlockSpec((1, B, H, WF), lambda s: (s, 0, 0, 0)),
        scratch_shapes=[pltpu.VMEM((B, H, WF), jnp.float32)],
        compiler_params=_MOSAIC,
    )(*inputs)


def outconv_stage(kp, out_row, *, h, w, n_filter):
    oc = kp['outconv']
    B = out_row.shape[0]
    F = n_filter
    inputs = [out_row, oc['w0'], oc['b0'], oc['w1'], oc['b1'], oc['ws'],
              kp['ssel_f'], kp['ssel_fh'], kp['ssel_fw'], kp['ssel_hw']]
    out_shapes = (jax.ShapeDtypeStruct((B, F), jnp.float32),
                  jax.ShapeDtypeStruct((B, h, F), jnp.float32),
                  jax.ShapeDtypeStruct((B, F * w), jnp.float32),
                  jax.ShapeDtypeStruct((B, h, w), jnp.float32))
    return _run_single(functools.partial(_outconv_kernel, h=h, w=w),
                       inputs, out_shapes)


def lat_stage(kp, conv_state):
    ol = kp['out_to_lat']
    wf, bf = kp['final']
    B = conv_state.shape[0]
    lat = wf.shape[1]
    inputs = [conv_state,
              ol[0]['w0'], ol[0]['b0'], ol[0]['w1'], ol[0]['b1'], ol[0]['ws'],
              ol[1]['w0'], ol[1]['b0'], ol[1]['w1'], ol[1]['b1'],
              wf, bf]
    return _run_single(_lat_kernel, inputs,
                       jax.ShapeDtypeStruct((B, lat), jnp.float32))


# --------------------------- parameter construction --------------------------

def _init_linear(key, fin, fout):
    kw_, kb = jax.random.split(key)
    w = jax.random.normal(kw_, (fin, fout), jnp.float32) / jnp.sqrt(float(fin))
    b = 0.01 * jax.random.normal(kb, (1, fout), jnp.float32)
    return w, b


def _init_conv(key, k, cin, cout):
    kw_, kb = jax.random.split(key)
    w = jax.random.normal(kw_, (k, k, cin, cout), jnp.float32) / jnp.sqrt(float(k * k * cin))
    b = 0.01 * jax.random.normal(kb, (1, cout), jnp.float32)
    return w, b


def _init_res_block(key, fin, fout, fhidden, k):
    fh = min(fin, fout) if fhidden is None else fhidden
    k0, k1, ks = jax.random.split(key, 3)
    p = {}
    p['w0'], p['b0'] = _init_conv(k0, k, fin, fh)
    p['w1'], p['b1'] = _init_conv(k1, k, fh, fout)
    if fin != fout:   # bias-free 1x1 shortcut
        p['ws'] = jax.random.normal(ks, (1, 1, fin, fout), jnp.float32) / jnp.sqrt(float(fin))
    return p


def _init_lin_res_block(key, fin, fout, fhidden=None):
    fh = min(fin, fout) if fhidden is None else fhidden
    k0, k1, ks = jax.random.split(key, 3)
    p = {}
    p['w0'], p['b0'] = _init_linear(k0, fin, fh)
    p['w1'], p['b1'] = _init_linear(k1, fh, fout)
    if fin != fout:   # bias-free shortcut
        p['ws'] = jax.random.normal(ks, (fin, fout), jnp.float32) / jnp.sqrt(float(fin))
    return p


def init_params(key, *, n_labels, lat_size, image_size, ds_size, channels,
                n_filter, n_calls):
    assert ds_size == image_size, "ds_size == image_size chosen (no DownScale stage)"
    keys = jax.random.split(key, 12)
    params = {}
    params['conv_img_w'], params['conv_img_b'] = _init_conv(keys[0], 3, channels, n_filter)
    params['conv_img_rb'] = _init_res_block(keys[1], n_filter, n_filter, None, 3)
    params['inj_cond'] = [
        _init_lin_res_block(keys[2], lat_size, lat_size),
        _init_lin_res_block(keys[3], lat_size, n_filter, lat_size * 2),
    ]
    params['frac_conv'] = [
        _init_res_block(keys[4], 2 * n_filter, n_filter, 4 * n_filter, 1),
        _init_res_block(keys[5], n_filter, n_filter, None, 3),
    ]
    params['out_conv'] = _init_res_block(keys[6], n_filter, 3 * n_filter + 1, None, 1)
    conv_state_size = n_filter + 2 * n_filter * ds_size + ds_size ** 2
    params['out_to_lat'] = [
        _init_lin_res_block(keys[7], conv_state_size, lat_size, lat_size * 2),
        _init_lin_res_block(keys[8], lat_size, lat_size),
    ]
    params['out_to_lat_final'] = _init_linear(keys[9], lat_size, lat_size)
    params['labs_encoder'] = [
        _init_lin_res_block(keys[10], n_labels, lat_size, lat_size * 2),
        _init_lin_res_block(keys[11], lat_size, lat_size),
    ]
    params['leak_factor'] = jnp.float32(0.1)
    return params


# ---------------- weight pre-expansion into the lane-dense row layout --------

def _block_diag_1x1(w, W):
    # 1x1 conv (Cin, Cout) -> row operator (W*Cin, W*Cout), block diagonal.
    cin, cout = w.shape
    eye = jnp.eye(W, dtype=w.dtype)
    return jnp.einsum('jk,io->jiko', eye, w).reshape(W * cin, W * cout)


def _conv3_rowmat(w, W):
    # 3x3 'same' conv (3,3,Cin,Cout) -> (W*Cin, 3*W*Cout), [dy=0|dy=1|dy=2].
    _, _, cin, cout = w.shape
    sel = np.zeros((3, W, W), np.float32)
    for dx in range(3):
        for k in range(W):
            j = k + dx - 1
            if 0 <= j < W:
                sel[dx, j, k] = 1.0
    m = jnp.einsum('yxio,xjk->yjiko', w, jnp.asarray(sel)).reshape(3, W * cin, W * cout)
    return jnp.concatenate([m[0], m[1], m[2]], axis=1)


def _chan_sum_mat(W, C):
    m = np.zeros((W * C, C), np.float32)
    for j in range(W):
        for c in range(C):
            m[j * C + c, c] = 1.0
    return jnp.asarray(m)


def _multicut_mats(W, F):
    co = 3 * F + 1
    sf = np.zeros((W * co, F), np.float32)      # channels [0:F],  sum over w
    sfh = np.zeros((W * co, F), np.float32)     # channels [F:2F], per-row mean over w
    sfw = np.zeros((W * co, F * W), np.float32)  # channels [2F:3F], NCHW (c, w) order
    shw = np.zeros((W * co, W), np.float32)     # channel 3F
    for j in range(W):
        for c in range(F):
            sf[j * co + c, c] = 1.0
            sfh[j * co + F + c, c] = 1.0
            sfw[j * co + 2 * F + c, c * W + j] = 1.0
        shw[j * co + 3 * F, j] = 1.0
    return tuple(jnp.asarray(a) for a in (sf, sfh, sfw, shw))


def _shift_mats(B, H):
    ad = np.tile(np.eye(H, k=-1, dtype=np.float32), (B, 1, 1))
    au = np.tile(np.eye(H, k=1, dtype=np.float32), (B, 1, 1))
    return jnp.asarray(ad), jnp.asarray(au)


def prepare_kernel_params(params, *, n_filter, ds_size, batch):
    F = n_filter
    W = H = ds_size
    kp = {}
    rb = params['conv_img_rb']
    kp['conv_img'] = dict(
        mimg=_conv3_rowmat(params['conv_img_w'], W),
        bimg=jnp.tile(params['conv_img_b'], (1, W)),
        m0=_conv3_rowmat(rb['w0'], W), b0=jnp.tile(rb['b0'], (1, W)),
        m1=_conv3_rowmat(rb['w1'], W), b1=jnp.tile(rb['b1'], (1, W)),
    )
    fc0, fc1 = params['frac_conv']
    w0 = fc0['w0'][0, 0]   # (2F, 4F)  -- rows [0:F] act on out, [F:2F] on cond
    w1 = fc0['w1'][0, 0]   # (4F, F)
    ws = fc0['ws'][0, 0]   # (2F, F)
    kp['frac'] = dict(
        w0x=_block_diag_1x1(w0[:F], W), b0=jnp.tile(fc0['b0'], (1, W)),
        w1=_block_diag_1x1(w1, W), b1=jnp.tile(fc0['b1'], (1, W)),
        wsx=_block_diag_1x1(ws[:F], W),
        m0=_conv3_rowmat(fc1['w0'], W), bm0=jnp.tile(fc1['b0'], (1, W)),
        m1=_conv3_rowmat(fc1['w1'], W), bm1=jnp.tile(fc1['b1'], (1, W)),
    )
    kp['cond'] = dict(labs=params['labs_encoder'], inj=params['inj_cond'],
                      w0c=w0[F:], wsc=ws[F:])
    oc = params['out_conv']
    kp['outconv'] = dict(
        w0=_block_diag_1x1(oc['w0'][0, 0], W), b0=jnp.tile(oc['b0'], (1, W)),
        w1=_block_diag_1x1(oc['w1'][0, 0], W), b1=jnp.tile(oc['b1'], (1, W)),
        ws=_block_diag_1x1(oc['ws'][0, 0], W),
    )
    kp['ssum'] = _chan_sum_mat(W, F)
    kp['sbc'] = jnp.transpose(kp['ssum'])
    kp['ssel_f'], kp['ssel_fh'], kp['ssel_fw'], kp['ssel_hw'] = _multicut_mats(W, F)
    kp['adown'], kp['aup'] = _shift_mats(batch, H)
    kp['out_to_lat'] = params['out_to_lat']
    kp['final'] = params['out_to_lat_final']
    kp['leak'] = params['leak_factor']
    return kp


# ---------------------------------- forward ----------------------------------

def labs_injected_encoder_forward(kparams, x_nchw, labels, *, n_labels, n_filter,
                                  n_calls, ds_size):
    B = x_nchw.shape[0]
    C = x_nchw.shape[1]
    F = n_filter
    H = W = ds_size
    WF = W * F

    # NCHW -> lane-dense row layout (B, H, W*C)
    x_row = jnp.transpose(x_nchw, (0, 2, 3, 1)).reshape(B, H, W * C)
    onehot = jax.nn.one_hot(labels, n_labels, dtype=jnp.float32)
    adown, aup = kparams['adown'], kparams['aup']

    # labels -> inj_lat -> cond_factor -> hoisted per-batch biases (one kernel)
    cb0, cws = cond_stage(kparams, onehot)
    cb0_row = jnp.tile(cb0, (1, W))          # (B, W*4F), lane index j*4F + c
    cws_row = jnp.tile(cws, (1, W))          # (B, W*F)

    # conv_img (one kernel)
    out0 = conv_img_stage(kparams, x_row, adown, aup)      # (B, H, W*F)

    # n_calls loop fully fused, `out` resident in VMEM across the grid
    leak = jnp.clip(kparams['leak'], 0.001, 1000.0)
    leak_row = jnp.broadcast_to(leak, (1, WF)).astype(jnp.float32)
    embs = frac_loop_stage(kparams, out0, cb0_row, cws_row, leak_row, adown, aup,
                           n_calls=n_calls, hw=H * W)       # (n_calls, B, H, W*F)

    # out_conv + multi_cut reductions (one kernel), tiny reorder glue on host
    out_fin = embs[n_calls - 1]
    m_f, m_fh, m_fw, x_hw = outconv_stage(kparams, out_fin, h=H, w=W, n_filter=F)
    conv_state = jnp.concatenate(
        [m_f,                                                   # (B, F)
         jnp.transpose(m_fh, (0, 2, 1)).reshape(B, -1),         # (B, F*H) c-major
         m_fw,                                                  # (B, F*W) c-major
         x_hw.reshape(B, -1)],                                  # (B, H*W) h-major
        axis=1)

    lat = lat_stage(kparams, conv_state)

    def to_nchw(r):
        return jnp.transpose(r.reshape(B, H, W, F), (0, 3, 1, 2))

    out_embs = [to_nchw(out0)] + [to_nchw(embs[i]) for i in range(n_calls)]
    return lat, out_embs, None


# ------------------------------------ main ------------------------------------

if __name__ == "__main__":
    cfg = dict(n_labels=10, lat_size=32, image_size=16, ds_size=16,
               channels=4, n_filter=8, n_calls=2)
    B = 2
    key = jax.random.PRNGKey(0)
    k_par, k_x, k_l = jax.random.split(key, 3)
    params = init_params(k_par, **cfg)
    kparams = prepare_kernel_params(params, n_filter=cfg['n_filter'],
                                    ds_size=cfg['ds_size'], batch=B)

    x = jax.random.normal(k_x, (B, cfg['channels'], cfg['image_size'], cfg['image_size']),
                          dtype=jnp.float32)
    labels = jax.random.randint(k_l, (B,), 0, cfg['n_labels'])

    fwd = jax.jit(functools.partial(
        labs_injected_encoder_forward,
        n_labels=cfg['n_labels'], n_filter=cfg['n_filter'],
        n_calls=cfg['n_calls'], ds_size=cfg['ds_size']))

    lat, out_embs, _ = fwd(kparams, x, labels)
    jax.block_until_ready(lat)
    jax.block_until_ready(out_embs)

    assert lat.shape == (B, cfg['lat_size'])
    assert len(out_embs) == cfg['n_calls'] + 1
    assert out_embs[0].shape == (B, cfg['n_filter'], cfg['image_size'], cfg['image_size'])
    print("KERNEL_OK")
</pallas_src>

<mosaic_0001>
module attributes {stable_mosaic.version = 11 : i64} {
  func.func @_cond_kernel(%arg0: i32, %arg1: memref<2x10xf32, #tpu.memory_space<vmem>>, %arg2: memref<10x64xf32, #tpu.memory_space<vmem>>, %arg3: memref<1x64xf32, #tpu.memory_space<vmem>>, %arg4: memref<64x32xf32, #tpu.memory_space<vmem>>, %arg5: memref<1x32xf32, #tpu.memory_space<vmem>>, %arg6: memref<10x32xf32, #tpu.memory_space<vmem>>, %arg7: memref<32x32xf32, #tpu.memory_space<vmem>>, %arg8: memref<1x32xf32, #tpu.memory_space<vmem>>, %arg9: memref<32x32xf32, #tpu.memory_space<vmem>>, %arg10: memref<1x32xf32, #tpu.memory_space<vmem>>, %arg11: memref<32x32xf32, #tpu.memory_space<vmem>>, %arg12: memref<1x32xf32, #tpu.memory_space<vmem>>, %arg13: memref<32x32xf32, #tpu.memory_space<vmem>>, %arg14: memref<1x32xf32, #tpu.memory_space<vmem>>, %arg15: memref<32x64xf32, #tpu.memory_space<vmem>>, %arg16: memref<1x64xf32, #tpu.memory_space<vmem>>, %arg17: memref<64x8xf32, #tpu.memory_space<vmem>>, %arg18: memref<1x8xf32, #tpu.memory_space<vmem>>, %arg19: memref<32x8xf32, #tpu.memory_space<vmem>>, %arg20: memref<8x32xf32, #tpu.memory_space<vmem>>, %arg21: memref<8x8xf32, #tpu.memory_space<vmem>>, %arg22: memref<2x32xf32, #tpu.memory_space<vmem>>, %arg23: memref<2x8xf32, #tpu.memory_space<vmem>>) attributes {dimension_semantics = [#tpu.dimension_semantics<arbitrary>], iteration_bounds = array<i64: 1>, scalar_prefetch = 0 : i64, scratch_operands = 0 : i64, tpu.core_type = #tpu.core_type<tc>, window_params = [{pipeline_mode = #tpu.pipeline_mode<synchronous>, transform_indices = @transform_0, window_bounds = array<i64: 2, 10>}, {pipeline_mode = #tpu.pipeline_mode<synchronous>, transform_indices = @transform_1, window_bounds = array<i64: 10, 64>}, {pipeline_mode = #tpu.pipeline_mode<synchronous>, transform_indices = @transform_2, window_bounds = array<i64: 1, 64>}, {pipeline_mode = #tpu.pipeline_mode<synchronous>, transform_indices = @transform_3, window_bounds = array<i64: 64, 32>}, {pipeline_mode = #tpu.pipeline_mode<synchronous>, transform_indices = @transform_4, window_bounds = array<i64: 1, 32>}, {pipeline_mode = #tpu.pipeline_mode<synchronous>, transform_indices = @transform_5, window_bounds = array<i64: 10, 32>}, {pipeline_mode = #tpu.pipeline_mode<synchronous>, transform_indices = @transform_6, window_bounds = array<i64: 32, 32>}, {pipeline_mode = #tpu.pipeline_mode<synchronous>, transform_indices = @transform_7, window_bounds = array<i64: 1, 32>}, {pipeline_mode = #tpu.pipeline_mode<synchronous>, transform_indices = @transform_8, window_bounds = array<i64: 32, 32>}, {pipeline_mode = #tpu.pipeline_mode<synchronous>, transform_indices = @transform_9, window_bounds = array<i64: 1, 32>}, {pipeline_mode = #tpu.pipeline_mode<synchronous>, transform_indices = @transform_10, window_bounds = array<i64: 32, 32>}, {pipeline_mode = #tpu.pipeline_mode<synchronous>, transform_indices = @transform_11, window_bounds = array<i64: 1, 32>}, {pipeline_mode = #tpu.pipeline_mode<synchronous>, transform_indices = @transform_12, window_bounds = array<i64: 32, 32>}, {pipeline_mode = #tpu.pipeline_mode<synchronous>, transform_indices = @transform_13, window_bounds = array<i64: 1, 32>}, {pipeline_mode = #tpu.pipeline_mode<synchronous>, transform_indices = @transform_14, window_bounds = array<i64: 32, 64>}, {pipeline_mode = #tpu.pipeline_mode<synchronous>, transform_indices = @transform_15, window_bounds = array<i64: 1, 64>}, {pipeline_mode = #tpu.pipeline_mode<synchronous>, transform_indices = @transform_16, window_bounds = array<i64: 64, 8>}, {pipeline_mode = #tpu.pipeline_mode<synchronous>, transform_indices = @transform_17, window_bounds = array<i64: 1, 8>}, {pipeline_mode = #tpu.pipeline_mode<synchronous>, transform_indices = @transform_18, window_bounds = array<i64: 32, 8>}, {pipeline_mode = #tpu.pipeline_mode<synchronous>, transform_indices = @transform_19, window_bounds = array<i64: 8, 32>}, {pipeline_mode = #tpu.pipeline_mode<synchronous>, transform_indices = @transform_20, window_bounds = array<i64: 8, 8>}, {pipeline_mode = #tpu.pipeline_mode<synchronous>, transform_indices = @transform_21, window_bounds = array<i64: 2, 32>}, {pipeline_mode = #tpu.pipeline_mode<synchronous>, transform_indices = @transform_22, window_bounds = array<i64: 2, 8>}]} {
    %c0 = arith.constant 0 : index
    %c0_0 = arith.constant 0 : index
    %0 = vector.load %arg1[%c0, %c0_0] : memref<2x10xf32, #tpu.memory_space<vmem>>, vector<2x10xf32>
    %c0_1 = arith.constant 0 : index
    %c0_2 = arith.constant 0 : index
    %1 = vector.load %arg2[%c0_1, %c0_2] : memref<10x64xf32, #tpu.memory_space<vmem>>, vector<10x64xf32>
    %c0_3 = arith.constant 0 : index
    %c0_4 = arith.constant 0 : index
    %2 = vector.load %arg3[%c0_3, %c0_4] : memref<1x64xf32, #tpu.memory_space<vmem>>, vector<1x64xf32>
    %c0_5 = arith.constant 0 : index
    %c0_6 = arith.constant 0 : index
    %3 = vector.load %arg4[%c0_5, %c0_6] : memref<64x32xf32, #tpu.memory_space<vmem>>, vector<64x32xf32>
    %c0_7 = arith.constant 0 : index
    %c0_8 = arith.constant 0 : index
    %4 = vector.load %arg5[%c0_7, %c0_8] : memref<1x32xf32, #tpu.memory_space<vmem>>, vector<1x32xf32>
    %c0_9 = arith.constant 0 : index
    %c0_10 = arith.constant 0 : index
    %5 = vector.load %arg6[%c0_9, %c0_10] : memref<10x32xf32, #tpu.memory_space<vmem>>, vector<10x32xf32>
    %cst = arith.constant 0.000000e+00 : f32
    %6 = vector.broadcast %cst : f32 to vector<2x10xf32>
    %7 = arith.cmpf oge, %0, %6 : vector<2x10xf32>
    %cst_11 = arith.constant 2.000000e-01 : f32
    %8 = vector.broadcast %cst_11 : f32 to vector<2x10xf32>
    %9 = arith.mulf %8, %0 : vector<2x10xf32>
    %10 = arith.select %7, %0, %9 : vector<2x10xi1>, vector<2x10xf32>
    %cst_12 = arith.constant dense<0.000000e+00> : vector<2x64xf32>
    %11 = tpu.matmul %10, %1, %cst_12 {dimension_numbers = #tpu.dot_dimension_numbers<[1], [0], [0], [1], [0, 0, 1, 1], [], []>} : vector<2x10xf32>, vector<10x64xf32>, vector<2x64xf32> -> vector<2x64xf32>
    %12 = vector.broadcast %2 : vector<1x64xf32> to vector<2x64xf32>
    %13 = arith.addf %11, %12 : vector<2x64xf32>
    %cst_13 = arith.constant 0.000000e+00 : f32
    %14 = vector.broadcast %cst_13 : f32 to vector<2x64xf32>
    %15 = arith.cmpf oge, %13, %14 : vector<2x64xf32>
    %cst_14 = arith.constant 2.000000e-01 : f32
    %16 = vector.broadcast %cst_14 : f32 to vector<2x64xf32>
    %17 = arith.mulf %16, %13 : vector<2x64xf32>
    %18 = arith.select %15, %13, %17 : vector<2x64xi1>, vector<2x64xf32>
    %cst_15 = arith.constant dense<0.000000e+00> : vector<2x32xf32>
    %19 = tpu.matmul %18, %3, %cst_15 {dimension_numbers = #tpu.dot_dimension_numbers<[1], [0], [0], [1], [0, 0, 1, 1], [], []>} : vector<2x64xf32>, vector<64x32xf32>, vector<2x32xf32> -> vector<2x32xf32>
    %20 = vector.broadcast %4 : vector<1x32xf32> to vector<2x32xf32>
    %21 = arith.addf %19, %20 : vector<2x32xf32>
    %cst_16 = arith.constant dense<0.000000e+00> : vector<2x32xf32>
    %22 = tpu.matmul %0, %5, %cst_16 {dimension_numbers = #tpu.dot_dimension_numbers<[1], [0], [0], [1], [0, 0, 1, 1], [], []>} : vector<2x10xf32>, vector<10x32xf32>, vector<2x32xf32> -> vector<2x32xf32>
    %23 = arith.addf %22, %21 : vector<2x32xf32>
    %c0_17 = arith.constant 0 : index
    %c0_18 = arith.constant 0 : index
    %24 = vector.load %arg7[%c0_17, %c0_18] : memref<32x32xf32, #tpu.memory_space<vmem>>, vector<32x32xf32>
    %c0_19 = arith.constant 0 : index
    %c0_20 = arith.constant 0 : index
    %25 = vector.load %arg8[%c0_19, %c0_20] : memref<1x32xf32, #tpu.memory_space<vmem>>, vector<1x32xf32>
    %c0_21 = arith.constant 0 : index
    %c0_22 = arith.constant 0 : index
    %26 = vector.load %arg9[%c0_21, %c0_22] : memref<32x32xf32, #tpu.memory_space<vmem>>, vector<32x32xf32>
    %c0_23 = arith.constant 0 : index
    %c0_24 = arith.constant 0 : index
    %27 = vector.load %arg10[%c0_23, %c0_24] : memref<1x32xf32, #tpu.memory_space<vmem>>, vector<1x32xf32>
    %cst_25 = arith.constant 0.000000e+00 : f32
    %28 = vector.broadcast %cst_25 : f32 to vector<2x32xf32>
    %29 = arith.cmpf oge, %23, %28 : vector<2x32xf32>
    %cst_26 = arith.constant 2.000000e-01 : f32
    %30 = vector.broadcast %cst_26 : f32 to vector<2x32xf32>
    %31 = arith.mulf %30, %23 : vector<2x32xf32>
    %32 = arith.select %29, %23, %31 : vector<2x32xi1>, vector<2x32xf32>
    %cst_27 = arith.constant dense<0.000000e+00> : vector<2x32xf32>
    %33 = tpu.matmul %32, %24, %cst_27 {dimension_numbers = #tpu.dot_dimension_numbers<[1], [0], [0], [1], [0, 0, 1, 1], [], []>} : vector<2x32xf32>, vector<32x32xf32>, vector<2x32xf32> -> vector<2x32xf32>
    %34 = vector.broadcast %25 : vector<1x32xf32> to vector<2x32xf32>
    %35 = arith.addf %33, %34 : vector<2x32xf32>
    %cst_28 = arith.constant 0.000000e+00 : f32
    %36 = vector.broadcast %cst_28 : f32 to vector<2x32xf32>
    %37 = arith.cmpf oge, %35, %36 : vector<2x32xf32>
    %cst_29 = arith.constant 2.000000e-01 : f32
    %38 = vector.broadcast %cst_29 : f32 to vector<2x32xf32>
    %39 = arith.mulf %38, %35 : vector<2x32xf32>
    %40 = arith.select %37, %35, %39 : vector<2x32xi1>, vector<2x32xf32>
    %cst_30 = arith.constant dense<0.000000e+00> : vector<2x32xf32>
    %41 = tpu.matmul %40, %26, %cst_30 {dimension_numbers = #tpu.dot_dimension_numbers<[1], [0], [0], [1], [0, 0, 1, 1], [], []>} : vector<2x32xf32>, vector<32x32xf32>, vector<2x32xf32> -> vector<2x32xf32>
    %42 = vector.broadcast %27 : vector<1x32xf32> to vector<2x32xf32>
    %43 = arith.addf %41, %42 : vector<2x32xf32>
    %44 = arith.addf %23, %43 : vector<2x32xf32>
    %c0_31 = arith.constant 0 : index
    %c0_32 = arith.constant 0 : index
    %45 = vector.load %arg11[%c0_31, %c0_32] : memref<32x32xf32, #tpu.memory_space<vmem>>, vector<32x32xf32>
    %c0_33 = arith.constant 0 : index
    %c0_34 = arith.constant 0 : index
    %46 = vector.load %arg12[%c0_33, %c0_34] : memref<1x32xf32, #tpu.memory_space<vmem>>, vector<1x32xf32>
    %c0_35 = arith.constant 0 : index
    %c0_36 = arith.constant 0 : index
    %47 = vector.load %arg13[%c0_35, %c0_36] : memref<32x32xf32, #tpu.memory_space<vmem>>, vector<32x32xf32>
    %c0_37 = arith.constant 0 : index
    %c0_38 = arith.constant 0 : index
    %48 = vector.load %arg14[%c0_37, %c0_38] : memref<1x32xf32, #tpu.memory_space<vmem>>, vector<1x32xf32>
    %cst_39 = arith.constant 0.000000e+00 : f32
    %49 = vector.broadcast %cst_39 : f32 to vector<2x32xf32>
    %50 = arith.cmpf oge, %44, %49 : vector<2x32xf32>
    %cst_40 = arith.constant 2.000000e-01 : f32
    %51 = vector.broadcast %cst_40 : f32 to vector<2x32xf32>
    %52 = arith.mulf %51, %44 : vector<2x32xf32>
    %53 = arith.select %50, %44, %52 : vector<2x32xi1>, vector<2x32xf32>
    %cst_41 = arith.constant dense<0.000000e+00> : vector<2x32xf32>
    %54 = tpu.matmul %53, %45, %cst_41 {dimension_numbers = #tpu.dot_dimension_numbers<[1], [0], [0], [1], [0, 0, 1, 1], [], []>} : vector<2x32xf32>, vector<32x32xf32>, vector<2x32xf32> -> vector<2x32xf32>
    %55 = vector.broadcast %46 : vector<1x32xf32> to vector<2x32xf32>
    %56 = arith.addf %54, %55 : vector<2x32xf32>
    %cst_42 = arith.constant 0.000000e+00 : f32
    %57 = vector.broadcast %cst_42 : f32 to vector<2x32xf32>
    %58 = arith.cmpf oge, %56, %57 : vector<2x32xf32>
    %cst_43 = arith.constant 2.000000e-01 : f32
    %59 = vector.broadcast %cst_43 : f32 to vector<2x32xf32>
    %60 = arith.mulf %59, %56 : vector<2x32xf32>
    %61 = arith.select %58, %56, %60 : vector<2x32xi1>, vector<2x32xf32>
    %cst_44 = arith.constant dense<0.000000e+00> : vector<2x32xf32>
    %62 = tpu.matmul %61, %47, %cst_44 {dimension_numbers = #tpu.dot_dimension_numbers<[1], [0], [0], [1], [0, 0, 1, 1], [], []>} : vector<2x32xf32>, vector<32x32xf32>, vector<2x32xf32> -> vector<2x32xf32>
    %63 = vector.broadcast %48 : vector<1x32xf32> to vector<2x32xf32>
    %64 = arith.addf %62, %63 : vector<2x32xf32>
    %65 = arith.addf %44, %64 : vector<2x32xf32>
    %c0_45 = arith.constant 0 : index
    %c0_46 = arith.constant 0 : index
    %66 = vector.load %arg15[%c0_45, %c0_46] : memref<32x64xf32, #tpu.memory_space<vmem>>, vector<32x64xf32>
    %c0_47 = arith.constant 0 : index
    %c0_48 = arith.constant 0 : index
    %67 = vector.load %arg16[%c0_47, %c0_48] : memref<1x64xf32, #tpu.memory_space<vmem>>, vector<1x64xf32>
    %c0_49 = arith.constant 0 : index
    %c0_50 = arith.constant 0 : index
    %68 = vector.load %arg17[%c0_49, %c0_50] : memref<64x8xf32, #tpu.memory_space<vmem>>, vector<64x8xf32>
    %c0_51 = arith.constant 0 : index
    %c0_52 = arith.constant 0 : index
    %69 = vector.load %arg18[%c0_51, %c0_52] : memref<1x8xf32, #tpu.memory_space<vmem>>, vector<1x8xf32>
    %c0_53 = arith.constant 0 : index
    %c0_54 = arith.constant 0 : index
    %70 = vector.load %arg19[%c0_53, %c0_54] : memref<32x8xf32, #tpu.memory_space<vmem>>, vector<32x8xf32>
    %cst_55 = arith.constant 0.000000e+00 : f32
    %71 = vector.broadcast %cst_55 : f32 to vector<2x32xf32>
    %72 = arith.cmpf oge, %65, %71 : vector<2x32xf32>
    %cst_56 = arith.constant 2.000000e-01 : f32
    %73 = vector.broadcast %cst_56 : f32 to vector<2x32xf32>
    %74 = arith.mulf %73, %65 : vector<2x32xf32>
    %75 = arith.select %72, %65, %74 : vector<2x32xi1>, vector<2x32xf32>
    %cst_57 = arith.constant dense<0.000000e+00> : vector<2x64xf32>
    %76 = tpu.matmul %75, %66, %cst_57 {dimension_numbers = #tpu.dot_dimension_numbers<[1], [0], [0], [1], [0, 0, 1, 1], [], []>} : vector<2x32xf32>, vector<32x64xf32>, vector<2x64xf32> -> vector<2x64xf32>
    %77 = vector.broadcast %67 : vector<1x64xf32> to vector<2x64xf32>
    %78 = arith.addf %76, %77 : vector<2x64xf32>
    %cst_58 = arith.constant 0.000000e+00 : f32
    %79 = vector.broadcast %cst_58 : f32 to vector<2x64xf32>
    %80 = arith.cmpf oge, %78, %79 : vector<2x64xf32>
    %cst_59 = arith.constant 2.000000e-01 : f32
    %81 = vector.broadcast %cst_59 : f32 to vector<2x64xf32>
    %82 = arith.mulf %81, %78 : vector<2x64xf32>
    %83 = arith.select %80, %78, %82 : vector<2x64xi1>, vector<2x64xf32>
    %cst_60 = arith.constant dense<0.000000e+00> : vector<2x8xf32>
    %84 = tpu.matmul %83, %68, %cst_60 {dimension_numbers = #tpu.dot_dimension_numbers<[1], [0], [0], [1], [0, 0, 1, 1], [], []>} : vector<2x64xf32>, vector<64x8xf32>, vector<2x8xf32> -> vector<2x8xf32>
    %85 = vector.broadcast %69 : vector<1x8xf32> to vector<2x8xf32>
    %86 = arith.addf %84, %85 : vector<2x8xf32>
    %cst_61 = arith.constant dense<0.000000e+00> : vector<2x8xf32>
    %87 = tpu.matmul %65, %70, %cst_61 {dimension_numbers = #tpu.dot_dimension_numbers<[1], [0], [0], [1], [0, 0, 1, 1], [], []>} : vector<2x32xf32>, vector<32x8xf32>, vector<2x8xf32> -> vector<2x8xf32>
    %88 = arith.addf %87, %86 : vector<2x8xf32>
    %cst_62 = arith.constant 0.000000e+00 : f32
    %89 = vector.broadcast %cst_62 : f32 to vector<2x8xf32>
    %90 = arith.cmpf oge, %88, %89 : vector<2x8xf32>
    %cst_63 = arith.constant 2.000000e-01 : f32
    %91 = vector.broadcast %cst_63 : f32 to vector<2x8xf32>
    %92 = arith.mulf %91, %88 : vector<2x8xf32>
    %93 = arith.select %90, %88, %92 : vector<2x8xi1>, vector<2x8xf32>
    %c0_64 = arith.constant 0 : index
    %c0_65 = arith.constant 0 : index
    %94 = vector.load %arg20[%c0_64, %c0_65] : memref<8x32xf32, #tpu.memory_space<vmem>>, vector<8x32xf32>
    %cst_66 = arith.constant dense<0.000000e+00> : vector<2x32xf32>
    %95 = tpu.matmul %93, %94, %cst_66 {dimension_numbers = #tpu.dot_dimension_numbers<[1], [0], [0], [1], [0, 0, 1, 1], [], []>} : vector<2x8xf32>, vector<8x32xf32>, vector<2x32xf32> -> vector<2x32xf32>
    %c0_67 = arith.constant 0 : index
    %c0_68 = arith.constant 0 : index
    %96 = vector.load %arg22[%c0_67, %c0_68] : memref<2x32xf32, #tpu.memory_space<vmem>>, vector<2x32xf32>
    tpu.vector_store %arg22[%c0_67, %c0_68], %95 {strides = array<i32>} : memref<2x32xf32, #tpu.memory_space<vmem>>, vector<2x32xf32>,
    %c0_69 = arith.constant 0 : index
    %c0_70 = arith.constant 0 : index
    %97 = vector.load %arg21[%c0_69, %c0_70] : memref<8x8xf32, #tpu.memory_space<vmem>>, vector<8x8xf32>
    %cst_71 = arith.constant dense<0.000000e+00> : vector<2x8xf32>
    %98 = tpu.matmul %88, %97, %cst_71 {dimension_numbers = #tpu.dot_dimension_numbers<[1], [0], [0], [1], [0, 0, 1, 1], [], []>} : vector<2x8xf32>, vector<8x8xf32>, vector<2x8xf32> -> vector<2x8xf32>
    %c0_72 = arith.constant 0 : index
    %c0_73 = arith.constant 0 : index
    %99 = vector.load %arg23[%c0_72, %c0_73] : memref<2x8xf32, #tpu.memory_space<vmem>>, vector<2x8xf32>
    tpu.vector_store %arg23[%c0_72, %c0_73], %98 {strides = array<i32>} : memref<2x8xf32, #tpu.memory_space<vmem>>, vector<2x8xf32>,
    return
  }
  func.func @transform_0(%arg0: i32) -> (i32, i32) {
    %c0_i32 = arith.constant 0 : i32
    %c0_i32_0 = arith.constant 0 : i32
    %c0_i32_1 = arith.constant 0 : i32
    return %c0_i32, %c0_i32_0 : i32, i32
  }
  func.func @transform_1(%arg0: i32) -> (i32, i32) {
    %c0_i32 = arith.constant 0 : i32
    %c0_i32_0 = arith.constant 0 : i32
    %c0_i32_1 = arith.constant 0 : i32
    return %c0_i32, %c0_i32_0 : i32, i32
  }
  func.func @transform_2(%arg0: i32) -> (i32, i32) {
    %c0_i32 = arith.constant 0 : i32
    %c0_i32_0 = arith.constant 0 : i32
    %c0_i32_1 = arith.constant 0 : i32
    return %c0_i32, %c0_i32_0 : i32, i32
  }
  func.func @transform_3(%arg0: i32) -> (i32, i32) {
    %c0_i32 = arith.constant 0 : i32
    %c0_i32_0 = arith.constant 0 : i32
    %c0_i32_1 = arith.constant 0 : i32
    return %c0_i32, %c0_i32_0 : i32, i32
  }
  func.func @transform_4(%arg0: i32) -> (i32, i32) {
    %c0_i32 = arith.constant 0 : i32
    %c0_i32_0 = arith.constant 0 : i32
    %c0_i32_1 = arith.constant 0 : i32
    return %c0_i32, %c0_i32_0 : i32, i32
  }
  func.func @transform_5(%arg0: i32) -> (i32, i32) {
    %c0_i32 = arith.constant 0 : i32
    %c0_i32_0 = arith.constant 0 : i32
    %c0_i32_1 = arith.constant 0 : i32
    return %c0_i32, %c0_i32_0 : i32, i32
  }
  func.func @transform_6(%arg0: i32) -> (i32, i32) {
    %c0_i32 = arith.constant 0 : i32
    %c0_i32_0 = arith.constant 0 : i32
    %c0_i32_1 = arith.constant 0 : i32
    return %c0_i32, %c0_i32_0 : i32, i32
  }
  func.func @transform_7(%arg0: i32) -> (i32, i32) {
    %c0_i32 = arith.constant 0 : i32
    %c0_i32_0 = arith.constant 0 : i32
    %c0_i32_1 = arith.constant 0 : i32
    return %c0_i32, %c0_i32_0 : i32, i32
  }
  func.func @transform_8(%arg0: i32) -> (i32, i32) {
    %c0_i32 = arith.constant 0 : i32
    %c0_i32_0 = arith.constant 0 : i32
    %c0_i32_1 = arith.constant 0 : i32
    return %c0_i32, %c0_i32_0 : i32, i32
  }
  func.func @transform_9(%arg0: i32) -> (i32, i32) {
    %c0_i32 = arith.constant 0 : i32
    %c0_i32_0 = arith.constant 0 : i32
    %c0_i32_1 = arith.constant 0 : i32
    return %c0_i32, %c0_i32_0 : i32, i32
  }
  func.func @transform_10(%arg0: i32) -> (i32, i32) {
    %c0_i32 = arith.constant 0 : i32
    %c0_i32_0 = arith.constant 0 : i32
    %c0_i32_1 = arith.constant 0 : i32
    return %c0_i32, %c0_i32_0 : i32, i32
  }
  func.func @transform_11(%arg0: i32) -> (i32, i32) {
    %c0_i32 = arith.constant 0 : i32
    %c0_i32_0 = arith.constant 0 : i32
    %c0_i32_1 = arith.constant 0 : i32
    return %c0_i32, %c0_i32_0 : i32, i32
  }
  func.func @transform_12(%arg0: i32) -> (i32, i32) {
    %c0_i32 = arith.constant 0 : i32
    %c0_i32_0 = arith.constant 0 : i32
    %c0_i32_1 = arith.constant 0 : i32
    return %c0_i32, %c0_i32_0 : i32, i32
  }
  func.func @transform_13(%arg0: i32) -> (i32, i32) {
    %c0_i32 = arith.constant 0 : i32
    %c0_i32_0 = arith.constant 0 : i32
    %c0_i32_1 = arith.constant 0 : i32
    return %c0_i32, %c0_i32_0 : i32, i32
  }
  func.func @transform_14(%arg0: i32) -> (i32, i32) {
    %c0_i32 = arith.constant 0 : i32
    %c0_i32_0 = arith.constant 0 : i32
    %c0_i32_1 = arith.constant 0 : i32
    return %c0_i32, %c0_i32_0 : i32, i32
  }
  func.func @transform_15(%arg0: i32) -> (i32, i32) {
    %c0_i32 = arith.constant 0 : i32
    %c0_i32_0 = arith.constant 0 : i32
    %c0_i32_1 = arith.constant 0 : i32
    return %c0_i32, %c0_i32_0 : i32, i32
  }
  func.func @transform_16(%arg0: i32) -> (i32, i32) {
    %c0_i32 = arith.constant 0 : i32
    %c0_i32_0 = arith.constant 0 : i32
    %c0_i32_1 = arith.constant 0 : i32
    return %c0_i32, %c0_i32_0 : i32, i32
  }
  func.func @transform_17(%arg0: i32) -> (i32, i32) {
    %c0_i32 = arith.constant 0 : i32
    %c0_i32_0 = arith.constant 0 : i32
    %c0_i32_1 = arith.constant 0 : i32
    return %c0_i32, %c0_i32_0 : i32, i32
  }
  func.func @transform_18(%arg0: i32) -> (i32, i32) {
    %c0_i32 = arith.constant 0 : i32
    %c0_i32_0 = arith.constant 0 : i32
    %c0_i32_1 = arith.constant 0 : i32
    return %c0_i32, %c0_i32_0 : i32, i32
  }
  func.func @transform_19(%arg0: i32) -> (i32, i32) {
    %c0_i32 = arith.constant 0 : i32
    %c0_i32_0 = arith.constant 0 : i32
    %c0_i32_1 = arith.constant 0 : i32
    return %c0_i32, %c0_i32_0 : i32, i32
  }
  func.func @transform_20(%arg0: i32) -> (i32, i32) {
    %c0_i32 = arith.constant 0 : i32
    %c0_i32_0 = arith.constant 0 : i32
    %c0_i32_1 = arith.constant 0 : i32
    return %c0_i32, %c0_i32_0 : i32, i32
  }
  func.func @transform_21(%arg0: i32) -> (i32, i32) {
    %c0_i32 = arith.constant 0 : i32
    %c0_i32_0 = arith.constant 0 : i32
    %c0_i32_1 = arith.constant 0 : i32
    return %c0_i32, %c0_i32_0 : i32, i32
  }
  func.func @transform_22(%arg0: i32) -> (i32, i32) {
    %c0_i32 = arith.constant 0 : i32
    %c0_i32_0 = arith.constant 0 : i32
    %c0_i32_1 = arith.constant 0 : i32
    return %c0_i32, %c0_i32_0 : i32, i32
  }
}

module attributes {stable_mosaic.version = 11 : i64} {
  func.func @_conv_img_kernel(%arg0: i32, %arg1: memref<2x16x64xf32, #tpu.memory_space<vmem>>, %arg2: memref<64x384xf32, #tpu.memory_space<vmem>>, %arg3: memref<1x128xf32, #tpu.memory_space<vmem>>, %arg4: memref<128x384xf32, #tpu.memory_space<vmem>>, %arg5: memref<1x128xf32, #tpu.memory_space<vmem>>, %arg6: memref<128x384xf32, #tpu.memory_space<vmem>>, %arg7: memref<1x128xf32, #tpu.memory_space<vmem>>, %arg8: memref<2x16x16xf32, #tpu.memory_space<vmem>>, %arg9: memref<2x16x16xf32, #tpu.memory_space<vmem>>, %arg10: memref<2x16x128xf32, #tpu.memory_space<vmem>>) attributes {dimension_semantics = [#tpu.dimension_semantics<arbitrary>], iteration_bounds = array<i64: 1>, scalar_prefetch = 0 : i64, scratch_operands = 0 : i64, tpu.core_type = #tpu.core_type<tc>, window_params = [{pipeline_mode = #tpu.pipeline_mode<synchronous>, transform_indices = @transform_0, window_bounds = array<i64: 2, 16, 64>}, {pipeline_mode = #tpu.pipeline_mode<synchronous>, transform_indices = @transform_1, window_bounds = array<i64: 64, 384>}, {pipeline_mode = #tpu.pipeline_mode<synchronous>, transform_indices = @transform_2, window_bounds = array<i64: 1, 128>}, {pipeline_mode = #tpu.pipeline_mode<synchronous>, transform_indices = @transform_3, window_bounds = array<i64: 128, 384>}, {pipeline_mode = #tpu.pipeline_mode<synchronous>, transform_indices = @transform_4, window_bounds = array<i64: 1, 128>}, {pipeline_mode = #tpu.pipeline_mode<synchronous>, transform_indices = @transform_5, window_bounds = array<i64: 128, 384>}, {pipeline_mode = #tpu.pipeline_mode<synchronous>, transform_indices = @transform_6, window_bounds = array<i64: 1, 128>}, {pipeline_mode = #tpu.pipeline_mode<synchronous>, transform_indices = @transform_7, window_bounds = array<i64: 2, 16, 16>}, {pipeline_mode = #tpu.pipeline_mode<synchronous>, transform_indices = @transform_8, window_bounds = array<i64: 2, 16, 16>}, {pipeline_mode = #tpu.pipeline_mode<synchronous>, transform_indices = @transform_9, window_bounds = array<i64: 2, 16, 128>}]} {
    %c0 = arith.constant 0 : index
    %c0_0 = arith.constant 0 : index
    %c0_1 = arith.constant 0 : index
    %0 = vector.load %arg8[%c0, %c0_0, %c0_1] : memref<2x16x16xf32, #tpu.memory_space<vmem>>, vector<2x16x16xf32>
    %c0_2 = arith.constant 0 : index
    %c0_3 = arith.constant 0 : index
    %c0_4 = arith.constant 0 : index
    %1 = vector.load %arg9[%c0_2, %c0_3, %c0_4] : memref<2x16x16xf32, #tpu.memory_space<vmem>>, vector<2x16x16xf32>
    %c0_5 = arith.constant 0 : index
    %c0_6 = arith.constant 0 : index
    %c0_7 = arith.constant 0 : index
    %2 = vector.load %arg1[%c0_5, %c0_6, %c0_7] : memref<2x16x64xf32, #tpu.memory_space<vmem>>, vector<2x16x64xf32>
    %c0_8 = arith.constant 0 : index
    %c0_9 = arith.constant 0 : index
    %3 = vector.load %arg2[%c0_8, %c0_9] : memref<64x384xf32, #tpu.memory_space<vmem>>, vector<64x384xf32>
    %c0_10 = arith.constant 0 : index
    %c0_11 = arith.constant 0 : index
    %4 = vector.load %arg3[%c0_10, %c0_11] : memref<1x128xf32, #tpu.memory_space<vmem>>, vector<1x128xf32>
    %5 = vector.shape_cast %2 : vector<2x16x64xf32> to vector<32x64xf32>
    %cst = arith.constant dense<0.000000e+00> : vector<32x384xf32>
    %6 = tpu.matmul %5, %3, %cst {dimension_numbers = #tpu.dot_dimension_numbers<[1], [0], [0], [1], [0, 0, 1, 1], [], []>} : vector<32x64xf32>, vector<64x384xf32>, vector<32x384xf32> -> vector<32x384xf32>
    %7 = vector.shape_cast %6 : vector<32x384xf32> to vector<2x16x384xf32>
    %8 = vector.extract_strided_slice %7 {offsets = [0, 0, 0], sizes = [2, 16, 128], strides = [1, 1, 1]} : vector<2x16x384xf32> to vector<2x16x128xf32>
    %9 = vector.extract_strided_slice %7 {offsets = [0, 0, 128], sizes = [2, 16, 128], strides = [1, 1, 1]} : vector<2x16x384xf32> to vector<2x16x128xf32>
    %10 = vector.extract_strided_slice %7 {offsets = [0, 0, 256], sizes = [2, 16, 128], strides = [1, 1, 1]} : vector<2x16x384xf32> to vector<2x16x128xf32>
    "tpu.trace_start"() <{level = 10 : i32, message = "bik,bkl->bil"}> : () -> ()
    %cst_12 = arith.constant dense<0.000000e+00> : vector<2x16x128xf32>
    %11 = tpu.matmul %0, %8, %cst_12 {dimension_numbers = #tpu.dot_dimension_numbers<[2], [1], [1], [2], [0, 0, 0, 1, 1, 2], [0], [0]>} : vector<2x16x16xf32>, vector<2x16x128xf32>, vector<2x16x128xf32> -> vector<2x16x128xf32>
    "tpu.trace_stop"() : () -> ()
    %12 = arith.addf %9, %11 : vector<2x16x128xf32>
    "tpu.trace_start"() <{level = 10 : i32, message = "bik,bkl->bil"}> : () -> ()
    %cst_13 = arith.constant dense<0.000000e+00> : vector<2x16x128xf32>
    %13 = tpu.matmul %1, %10, %cst_13 {dimension_numbers = #tpu.dot_dimension_numbers<[2], [1], [1], [2], [0, 0, 0, 1, 1, 2], [0], [0]>} : vector<2x16x16xf32>, vector<2x16x128xf32>, vector<2x16x128xf32> -> vector<2x16x128xf32>
    "tpu.trace_stop"() : () -> ()
    %14 = arith.addf %12, %13 : vector<2x16x128xf32>
    %15 = vector.shape_cast %4 : vector<1x128xf32> to vector<1x1x128xf32>
    %16 = vector.broadcast %15 : vector<1x1x128xf32> to vector<2x16x128xf32>
    %17 = arith.addf %14, %16 : vector<2x16x128xf32>
    %cst_14 = arith.constant 0.000000e+00 : f32
    %18 = vector.broadcast %cst_14 : f32 to vector<2x16x128xf32>
    %19 = arith.cmpf oge, %17, %18 : vector<2x16x128xf32>
    %cst_15 = arith.constant 2.000000e-01 : f32
    %20 = vector.broadcast %cst_15 : f32 to vector<2x16x128xf32>
    %21 = arith.mulf %20, %17 : vector<2x16x128xf32>
    %22 = arith.select %19, %17, %21 : vector<2x16x128xi1>, vector<2x16x128xf32>
    %c0_16 = arith.constant 0 : index
    %c0_17 = arith.constant 0 : index
    %23 = vector.load %arg4[%c0_16, %c0_17] : memref<128x384xf32, #tpu.memory_space<vmem>>, vector<128x384xf32>
    %c0_18 = arith.constant 0 : index
    %c0_19 = arith.constant 0 : index
    %24 = vector.load %arg5[%c0_18, %c0_19] : memref<1x128xf32, #tpu.memory_space<vmem>>, vector<1x128xf32>
    %25 = vector.shape_cast %22 : vector<2x16x128xf32> to vector<32x128xf32>
    %cst_20 = arith.constant dense<0.000000e+00> : vector<32x384xf32>
    %26 = tpu.matmul %25, %23, %cst_20 {dimension_numbers = #tpu.dot_dimension_numbers<[1], [0], [0], [1], [0, 0, 1, 1], [], []>} : vector<32x128xf32>, vector<128x384xf32>, vector<32x384xf32> -> vector<32x384xf32>
    %27 = vector.shape_cast %26 : vector<32x384xf32> to vector<2x16x384xf32>
    %28 = vector.extract_strided_slice %27 {offsets = [0, 0, 0], sizes = [2, 16, 128], strides = [1, 1, 1]} : vector<2x16x384xf32> to vector<2x16x128xf32>
    %29 = vector.extract_strided_slice %27 {offsets = [0, 0, 128], sizes = [2, 16, 128], strides = [1, 1, 1]} : vector<2x16x384xf32> to vector<2x16x128xf32>
    %30 = vector.extract_strided_slice %27 {offsets = [0, 0, 256], sizes = [2, 16, 128], strides = [1, 1, 1]} : vector<2x16x384xf32> to vector<2x16x128xf32>
    "tpu.trace_start"() <{level = 10 : i32, message = "bik,bkl->bil"}> : () -> ()
    %cst_21 = arith.constant dense<0.000000e+00> : vector<2x16x128xf32>
    %31 = tpu.matmul %0, %28, %cst_21 {dimension_numbers = #tpu.dot_dimension_numbers<[2], [1], [1], [2], [0, 0, 0, 1, 1, 2], [0], [0]>} : vector<2x16x16xf32>, vector<2x16x128xf32>, vector<2x16x128xf32> -> vector<2x16x128xf32>
    "tpu.trace_stop"() : () -> ()
    %32 = arith.addf %29, %31 : vector<2x16x128xf32>
    "tpu.trace_start"() <{level = 10 : i32, message = "bik,bkl->bil"}> : () -> ()
    %cst_22 = arith.constant dense<0.000000e+00> : vector<2x16x128xf32>
    %33 = tpu.matmul %1, %30, %cst_22 {dimension_numbers = #tpu.dot_dimension_numbers<[2], [1], [1], [2], [0, 0, 0, 1, 1, 2], [0], [0]>} : vector<2x16x16xf32>, vector<2x16x128xf32>, vector<2x16x128xf32> -> vector<2x16x128xf32>
    "tpu.trace_stop"() : () -> ()
    %34 = arith.addf %32, %33 : vector<2x16x128xf32>
    %35 = vector.shape_cast %24 : vector<1x128xf32> to vector<1x1x128xf32>
    %36 = vector.broadcast %35 : vector<1x1x128xf32> to vector<2x16x128xf32>
    %37 = arith.addf %34, %36 : vector<2x16x128xf32>
    %cst_23 = arith.constant 0.000000e+00 : f32
    %38 = vector.broadcast %cst_23 : f32 to vector<2x16x128xf32>
    %39 = arith.cmpf oge, %37, %38 : vector<2x16x128xf32>
    %cst_24 = arith.constant 2.000000e-01 : f32
    %40 = vector.broadcast %cst_24 : f32 to vector<2x16x128xf32>
    %41 = arith.mulf %40, %37 : vector<2x16x128xf32>
    %42 = arith.select %39, %37, %41 : vector<2x16x128xi1>, vector<2x16x128xf32>
    %c0_25 = arith.constant 0 : index
    %c0_26 = arith.constant 0 : index
    %43 = vector.load %arg6[%c0_25, %c0_26] : memref<128x384xf32, #tpu.memory_space<vmem>>, vector<128x384xf32>
    %c0_27 = arith.constant 0 : index
    %c0_28 = arith.constant 0 : index
    %44 = vector.load %arg7[%c0_27, %c0_28] : memref<1x128xf32, #tpu.memory_space<vmem>>, vector<1x128xf32>
    %45 = vector.shape_cast %42 : vector<2x16x128xf32> to vector<32x128xf32>
    %cst_29 = arith.constant dense<0.000000e+00> : vector<32x384xf32>
    %46 = tpu.matmul %45, %43, %cst_29 {dimension_numbers = #tpu.dot_dimension_numbers<[1], [0], [0], [1], [0, 0, 1, 1], [], []>} : vector<32x128xf32>, vector<128x384xf32>, vector<32x384xf32> -> vector<32x384xf32>
    %47 = vector.shape_cast %46 : vector<32x384xf32> to vector<2x16x384xf32>
    %48 = vector.extract_strided_slice %47 {offsets = [0, 0, 0], sizes = [2, 16, 128], strides = [1, 1, 1]} : vector<2x16x384xf32> to vector<2x16x128xf32>
    %49 = vector.extract_strided_slice %47 {offsets = [0, 0, 128], sizes = [2, 16, 128], strides = [1, 1, 1]} : vector<2x16x384xf32> to vector<2x16x128xf32>
    %50 = vector.extract_strided_slice %47 {offsets = [0, 0, 256], sizes = [2, 16, 128], strides = [1, 1, 1]} : vector<2x16x384xf32> to vector<2x16x128xf32>
    "tpu.trace_start"() <{level = 10 : i32, message = "bik,bkl->bil"}> : () -> ()
    %cst_30 = arith.constant dense<0.000000e+00> : vector<2x16x128xf32>
    %51 = tpu.matmul %0, %48, %cst_30 {dimension_numbers = #tpu.dot_dimension_numbers<[2], [1], [1], [2], [0, 0, 0, 1, 1, 2], [0], [0]>} : vector<2x16x16xf32>, vector<2x16x128xf32>, vector<2x16x128xf32> -> vector<2x16x128xf32>
    "tpu.trace_stop"() : () -> ()
    %52 = arith.addf %49, %51 : vector<2x16x128xf32>
    "tpu.trace_start"() <{level = 10 : i32, message = "bik,bkl->bil"}> : () -> ()
    %cst_31 = arith.constant dense<0.000000e+00> : vector<2x16x128xf32>
    %53 = tpu.matmul %1, %50, %cst_31 {dimension_numbers = #tpu.dot_dimension_numbers<[2], [1], [1], [2], [0, 0, 0, 1, 1, 2], [0], [0]>} : vector<2x16x16xf32>, vector<2x16x128xf32>, vector<2x16x128xf32> -> vector<2x16x128xf32>
    "tpu.trace_stop"() : () -> ()
    %54 = arith.addf %52, %53 : vector<2x16x128xf32>
    %55 = vector.shape_cast %44 : vector<1x128xf32> to vector<1x1x128xf32>
    %56 = vector.broadcast %55 : vector<1x1x128xf32> to vector<2x16x128xf32>
    %57 = arith.addf %54, %56 : vector<2x16x128xf32>
    %58 = arith.addf %17, %57 : vector<2x16x128xf32>
    %c0_32 = arith.constant 0 : index
    %c0_33 = arith.constant 0 : index
    %c0_34 = arith.constant 0 : index
    %59 = vector.load %arg10[%c0_32, %c0_33, %c0_34] : memref<2x16x128xf32, #tpu.memory_space<vmem>>, vector<2x16x128xf32>
    tpu.vector_store %arg10[%c0_32, %c0_33, %c0_34], %58 {strides = array<i32>} : memref<2x16x128xf32, #tpu.memory_space<vmem>>, vector<2x16x128xf32>,
    return
  }
  func.func @transform_0(%arg0: i32) -> (i32, i32, i32) {
    %c0_i32 = arith.constant 0 : i32
    %c0_i32_0 = arith.constant 0 : i32
    %c0_i32_1 = arith.constant 0 : i32
    %c0_i32_2 = arith.constant 0 : i32
    return %c0_i32, %c0_i32_0, %c0_i32_1 : i32, i32, i32
  }
  func.func @transform_1(%arg0: i32) -> (i32, i32) {
    %c0_i32 = arith.constant 0 : i32
    %c0_i32_0 = arith.constant 0 : i32
    %c0_i32_1 = arith.constant 0 : i32
    return %c0_i32, %c0_i32_0 : i32, i32
  }
  func.func @transform_2(%arg0: i32) -> (i32, i32) {
    %c0_i32 = arith.constant 0 : i32
    %c0_i32_0 = arith.constant 0 : i32
    %c0_i32_1 = arith.constant 0 : i32
    return %c0_i32, %c0_i32_0 : i32, i32
  }
  func.func @transform_3(%arg0: i32) -> (i32, i32) {
    %c0_i32 = arith.constant 0 : i32
    %c0_i32_0 = arith.constant 0 : i32
    %c0_i32_1 = arith.constant 0 : i32
    return %c0_i32, %c0_i32_0 : i32, i32
  }
  func.func @transform_4(%arg0: i32) -> (i32, i32) {
    %c0_i32 = arith.constant 0 : i32
    %c0_i32_0 = arith.constant 0 : i32
    %c0_i32_1 = arith.constant 0 : i32
    return %c0_i32, %c0_i32_0 : i32, i32
  }
  func.func @transform_5(%arg0: i32) -> (i32, i32) {
    %c0_i32 = arith.constant 0 : i32
    %c0_i32_0 = arith.constant 0 : i32
    %c0_i32_1 = arith.constant 0 : i32
    return %c0_i32, %c0_i32_0 : i32, i32
  }
  func.func @transform_6(%arg0: i32) -> (i32, i32) {
    %c0_i32 = arith.constant 0 : i32
    %c0_i32_0 = arith.constant 0 : i32
    %c0_i32_1 = arith.constant 0 : i32
    return %c0_i32, %c0_i32_0 : i32, i32
  }
  func.func @transform_7(%arg0: i32) -> (i32, i32, i32) {
    %c0_i32 = arith.constant 0 : i32
    %c0_i32_0 = arith.constant 0 : i32
    %c0_i32_1 = arith.constant 0 : i32
    %c0_i32_2 = arith.constant 0 : i32
    return %c0_i32, %c0_i32_0, %c0_i32_1 : i32, i32, i32
  }
  func.func @transform_8(%arg0: i32) -> (i32, i32, i32) {
    %c0_i32 = arith.constant 0 : i32
    %c0_i32_0 = arith.constant 0 : i32
    %c0_i32_1 = arith.constant 0 : i32
    %c0_i32_2 = arith.constant 0 : i32
    return %c0_i32, %c0_i32_0, %c0_i32_1 : i32, i32, i32
  }
  func.func @transform_9(%arg0: i32) -> (i32, i32, i32) {
    %c0_i32 = arith.constant 0 : i32
    %c0_i32_0 = arith.constant 0 : i32
    %c0_i32_1 = arith.constant 0 : i32
    %c0_i32_2 = arith.constant 0 : i32
    return %c0_i32, %c0_i32_0, %c0_i32_1 : i32, i32, i32
  }
}

module attributes {stable_mosaic.version = 11 : i64} {
  func.func @_frac_loop_kernel(%arg0: i32, %arg1: memref<2x16x128xf32, #tpu.memory_space<vmem>>, %arg2: memref<2x512xf32, #tpu.memory_space<vmem>>, %arg3: memref<2x128xf32, #tpu.memory_space<vmem>>, %arg4: memref<128x512xf32, #tpu.memory_space<vmem>>, %arg5: memref<1x512xf32, #tpu.memory_space<vmem>>, %arg6: memref<512x128xf32, #tpu.memory_space<vmem>>, %arg7: memref<1x128xf32, #tpu.memory_space<vmem>>, %arg8: memref<128x128xf32, #tpu.memory_space<vmem>>, %arg9: memref<128x384xf32, #tpu.memory_space<vmem>>, %arg10: memref<1x128xf32, #tpu.memory_space<vmem>>, %arg11: memref<128x384xf32, #tpu.memory_space<vmem>>, %arg12: memref<1x128xf32, #tpu.memory_space<vmem>>, %arg13: memref<128x8xf32, #tpu.memory_space<vmem>>, %arg14: memref<8x128xf32, #tpu.memory_space<vmem>>, %arg15: memref<2x16x16xf32, #tpu.memory_space<vmem>>, %arg16: memref<2x16x16xf32, #tpu.memory_space<vmem>>, %arg17: memref<1x128xf32, #tpu.memory_space<vmem>>, %arg18: memref<1x2x16x128xf32, #tpu.memory_space<vmem>>, %arg19: memref<2x16x128xf32, #tpu.memory_space<vmem>>) attributes {dimension_semantics = [#tpu.dimension_semantics<arbitrary>], iteration_bounds = array<i64: 2>, scalar_prefetch = 0 : i64, scratch_operands = 1 : i64, tpu.core_type = #tpu.core_type<tc>, window_params = [{pipeline_mode = #tpu.pipeline_mode<synchronous>, transform_indices = @transform_0, window_bounds = array<i64: 2, 16, 128>}, {pipeline_mode = #tpu.pipeline_mode<synchronous>, transform_indices = @transform_1, window_bounds = array<i64: 2, 512>}, {pipeline_mode = #tpu.pipeline_mode<synchronous>, transform_indices = @transform_2, window_bounds = array<i64: 2, 128>}, {pipeline_mode = #tpu.pipeline_mode<synchronous>, transform_indices = @transform_3, window_bounds = array<i64: 128, 512>}, {pipeline_mode = #tpu.pipeline_mode<synchronous>, transform_indices = @transform_4, window_bounds = array<i64: 1, 512>}, {pipeline_mode = #tpu.pipeline_mode<synchronous>, transform_indices = @transform_5, window_bounds = array<i64: 512, 128>}, {pipeline_mode = #tpu.pipeline_mode<synchronous>, transform_indices = @transform_6, window_bounds = array<i64: 1, 128>}, {pipeline_mode = #tpu.pipeline_mode<synchronous>, transform_indices = @transform_7, window_bounds = array<i64: 128, 128>}, {pipeline_mode = #tpu.pipeline_mode<synchronous>, transform_indices = @transform_8, window_bounds = array<i64: 128, 384>}, {pipeline_mode = #tpu.pipeline_mode<synchronous>, transform_indices = @transform_9, window_bounds = array<i64: 1, 128>}, {pipeline_mode = #tpu.pipeline_mode<synchronous>, transform_indices = @transform_10, window_bounds = array<i64: 128, 384>}, {pipeline_mode = #tpu.pipeline_mode<synchronous>, transform_indices = @transform_11, window_bounds = array<i64: 1, 128>}, {pipeline_mode = #tpu.pipeline_mode<synchronous>, transform_indices = @transform_12, window_bounds = array<i64: 128, 8>}, {pipeline_mode = #tpu.pipeline_mode<synchronous>, transform_indices = @transform_13, window_bounds = array<i64: 8, 128>}, {pipeline_mode = #tpu.pipeline_mode<synchronous>, transform_indices = @transform_14, window_bounds = array<i64: 2, 16, 16>}, {pipeline_mode = #tpu.pipeline_mode<synchronous>, transform_indices = @transform_15, window_bounds = array<i64: 2, 16, 16>}, {pipeline_mode = #tpu.pipeline_mode<synchronous>, transform_indices = @transform_16, window_bounds = array<i64: 1, 128>}, {transform_indices = @transform_17, window_bounds = array<i64: 1, 2, 16, 128>}]} {
    %c0_i32 = arith.constant 0 : i32
    %0 = arith.cmpi eq, %arg0, %c0_i32 : i32
    %1 = arith.extui %0 : i1 to i32
    %c0_i32_0 = arith.constant 0 : i32
    %2 = arith.cmpi ne, %1, %c0_i32_0 : i32
    scf.if %2 {
      %c0_69 = arith.constant 0 : index
      %c0_70 = arith.constant 0 : index
      %c0_71 = arith.constant 0 : index
      %116 = vector.load %arg1[%c0_69, %c0_70, %c0_71] : memref<2x16x128xf32, #tpu.memory_space<vmem>>, vector<2x16x128xf32>
      %c0_72 = arith.constant 0 : index
      %c0_73 = arith.constant 0 : index
      %c0_74 = arith.constant 0 : index
      %117 = vector.load %arg19[%c0_72, %c0_73, %c0_74] : memref<2x16x128xf32, #tpu.memory_space<vmem>>, vector<2x16x128xf32>
      tpu.vector_store %arg19[%c0_72, %c0_73, %c0_74], %116 {strides = array<i32>} : memref<2x16x128xf32, #tpu.memory_space<vmem>>, vector<2x16x128xf32>,
    } else {
    }
    %c0 = arith.constant 0 : index
    %c0_1 = arith.constant 0 : index
    %c0_2 = arith.constant 0 : index
    %3 = vector.load %arg19[%c0, %c0_1, %c0_2] : memref<2x16x128xf32, #tpu.memory_space<vmem>>, vector<2x16x128xf32>
    %c0_3 = arith.constant 0 : index
    %c0_4 = arith.constant 0 : index
    %4 = vector.load %arg13[%c0_3, %c0_4] : memref<128x8xf32, #tpu.memory_space<vmem>>, vector<128x8xf32>
    %c0_5 = arith.constant 0 : index
    %c0_6 = arith.constant 0 : index
    %5 = vector.load %arg14[%c0_5, %c0_6] : memref<8x128xf32, #tpu.memory_space<vmem>>, vector<8x128xf32>
    %cst = arith.constant dense<0.000000e+00> : vector<2x128xf32>
    %6 = vector.multi_reduction <add>, %3, %cst [1] : vector<2x16x128xf32> to vector<2x128xf32>
    %cst_7 = arith.constant dense<0.000000e+00> : vector<2x8xf32>
    %7 = tpu.matmul %6, %4, %cst_7 {dimension_numbers = #tpu.dot_dimension_numbers<[1], [0], [0], [1], [0, 0, 1, 1], [], []>} : vector<2x128xf32>, vector<128x8xf32>, vector<2x8xf32> -> vector<2x8xf32>
    %cst_8 = arith.constant 3.906250e-03 : f32
    %8 = vector.broadcast %cst_8 : f32 to vector<2x8xf32>
    %9 = arith.mulf %7, %8 : vector<2x8xf32>
    %cst_9 = arith.constant dense<0.000000e+00> : vector<2x128xf32>
    %10 = tpu.matmul %9, %5, %cst_9 {dimension_numbers = #tpu.dot_dimension_numbers<[1], [0], [0], [1], [0, 0, 1, 1], [], []>} : vector<2x8xf32>, vector<8x128xf32>, vector<2x128xf32> -> vector<2x128xf32>
    %11 = vector.shape_cast %10 : vector<2x128xf32> to vector<2x1x128xf32>
    %12 = vector.broadcast %11 : vector<2x1x128xf32> to vector<2x16x128xf32>
    %13 = arith.subf %3, %12 : vector<2x16x128xf32>
    %14 = arith.mulf %13, %13 : vector<2x16x128xf32>
    %cst_10 = arith.constant dense<0.000000e+00> : vector<2x128xf32>
    %15 = vector.multi_reduction <add>, %14, %cst_10 [1] : vector<2x16x128xf32> to vector<2x128xf32>
    %cst_11 = arith.constant dense<0.000000e+00> : vector<2x8xf32>
    %16 = tpu.matmul %15, %4, %cst_11 {dimension_numbers = #tpu.dot_dimension_numbers<[1], [0], [0], [1], [0, 0, 1, 1], [], []>} : vector<2x128xf32>, vector<128x8xf32>, vector<2x8xf32> -> vector<2x8xf32>
    %cst_12 = arith.constant 3.906250e-03 : f32
    %17 = vector.broadcast %cst_12 : f32 to vector<2x8xf32>
    %18 = arith.mulf %16, %17 : vector<2x8xf32>
    %cst_13 = arith.constant 9.99999974E-6 : f32
    %19 = vector.broadcast %cst_13 : f32 to vector<2x8xf32>
    %20 = arith.addf %18, %19 : vector<2x8xf32>
    %21 = math.rsqrt %20 : vector<2x8xf32>
    %cst_14 = arith.constant dense<0.000000e+00> : vector<2x128xf32>
    %22 = tpu.matmul %21, %5, %cst_14 {dimension_numbers = #tpu.dot_dimension_numbers<[1], [0], [0], [1], [0, 0, 1, 1], [], []>} : vector<2x8xf32>, vector<8x128xf32>, vector<2x128xf32> -> vector<2x128xf32>
    %23 = vector.shape_cast %22 : vector<2x128xf32> to vector<2x1x128xf32>
    %24 = vector.broadcast %23 : vector<2x1x128xf32> to vector<2x16x128xf32>
    %25 = arith.mulf %13, %24 : vector<2x16x128xf32>
    %26 = vector.shape_cast %25 : vector<2x16x128xf32> to vector<32x128xf32>
    %cst_15 = arith.constant 0.000000e+00 : f32
    %27 = vector.broadcast %cst_15 : f32 to vector<32x128xf32>
    %28 = arith.cmpf oge, %26, %27 : vector<32x128xf32>
    %cst_16 = arith.constant 2.000000e-01 : f32
    %29 = vector.broadcast %cst_16 : f32 to vector<32x128xf32>
    %30 = arith.mulf %29, %26 : vector<32x128xf32>
    %31 = arith.select %28, %26, %30 : vector<32x128xi1>, vector<32x128xf32>
    %c0_17 = arith.constant 0 : index
    %c0_18 = arith.constant 0 : index
    %32 = vector.load %arg4[%c0_17, %c0_18] : memref<128x512xf32, #tpu.memory_space<vmem>>, vector<128x512xf32>
    %cst_19 = arith.constant dense<0.000000e+00> : vector<32x512xf32>
    %33 = tpu.matmul %31, %32, %cst_19 {dimension_numbers = #tpu.dot_dimension_numbers<[1], [0], [0], [1], [0, 0, 1, 1], [], []>} : vector<32x128xf32>, vector<128x512xf32>, vector<32x512xf32> -> vector<32x512xf32>
    %34 = vector.shape_cast %33 : vector<32x512xf32> to vector<2x16x512xf32>
    %c0_20 = arith.constant 0 : index
    %c0_21 = arith.constant 0 : index
    %35 = vector.load %arg5[%c0_20, %c0_21] : memref<1x512xf32, #tpu.memory_space<vmem>>, vector<1x512xf32>
    %36 = vector.shape_cast %35 : vector<1x512xf32> to vector<1x1x512xf32>
    %37 = vector.broadcast %36 : vector<1x1x512xf32> to vector<2x16x512xf32>
    %38 = arith.addf %34, %37 : vector<2x16x512xf32>
    %c0_22 = arith.constant 0 : index
    %c0_23 = arith.constant 0 : index
    %39 = vector.load %arg2[%c0_22, %c0_23] : memref<2x512xf32, #tpu.memory_space<vmem>>, vector<2x512xf32>
    %40 = vector.shape_cast %39 : vector<2x512xf32> to vector<2x1x512xf32>
    %41 = vector.broadcast %40 : vector<2x1x512xf32> to vector<2x16x512xf32>
    %42 = arith.addf %38, %41 : vector<2x16x512xf32>
    %cst_24 = arith.constant 0.000000e+00 : f32
    %43 = vector.broadcast %cst_24 : f32 to vector<2x16x512xf32>
    %44 = arith.cmpf oge, %42, %43 : vector<2x16x512xf32>
    %cst_25 = arith.constant 2.000000e-01 : f32
    %45 = vector.broadcast %cst_25 : f32 to vector<2x16x512xf32>
    %46 = arith.mulf %45, %42 : vector<2x16x512xf32>
    %47 = arith.select %44, %42, %46 : vector<2x16x512xi1>, vector<2x16x512xf32>
    %48 = vector.shape_cast %47 : vector<2x16x512xf32> to vector<32x512xf32>
    %c0_26 = arith.constant 0 : index
    %c0_27 = arith.constant 0 : index
    %49 = vector.load %arg6[%c0_26, %c0_27] : memref<512x128xf32, #tpu.memory_space<vmem>>, vector<512x128xf32>
    %cst_28 = arith.constant dense<0.000000e+00> : vector<32x128xf32>
    %50 = tpu.matmul %48, %49, %cst_28 {dimension_numbers = #tpu.dot_dimension_numbers<[1], [0], [0], [1], [0, 0, 1, 1], [], []>} : vector<32x512xf32>, vector<512x128xf32>, vector<32x128xf32> -> vector<32x128xf32>
    %51 = vector.shape_cast %50 : vector<32x128xf32> to vector<2x16x128xf32>
    %c0_29 = arith.constant 0 : index
    %c0_30 = arith.constant 0 : index
    %52 = vector.load %arg7[%c0_29, %c0_30] : memref<1x128xf32, #tpu.memory_space<vmem>>, vector<1x128xf32>
    %53 = vector.shape_cast %52 : vector<1x128xf32> to vector<1x1x128xf32>
    %54 = vector.broadcast %53 : vector<1x1x128xf32> to vector<2x16x128xf32>
    %55 = arith.addf %51, %54 : vector<2x16x128xf32>
    %c0_31 = arith.constant 0 : index
    %c0_32 = arith.constant 0 : index
    %56 = vector.load %arg8[%c0_31, %c0_32] : memref<128x128xf32, #tpu.memory_space<vmem>>, vector<128x128xf32>
    %cst_33 = arith.constant dense<0.000000e+00> : vector<32x128xf32>
    %57 = tpu.matmul %26, %56, %cst_33 {dimension_numbers = #tpu.dot_dimension_numbers<[1], [0], [0], [1], [0, 0, 1, 1], [], []>} : vector<32x128xf32>, vector<128x128xf32>, vector<32x128xf32> -> vector<32x128xf32>
    %58 = vector.shape_cast %57 : vector<32x128xf32> to vector<2x16x128xf32>
    %c0_34 = arith.constant 0 : index
    %c0_35 = arith.constant 0 : index
    %59 = vector.load %arg3[%c0_34, %c0_35] : memref<2x128xf32, #tpu.memory_space<vmem>>, vector<2x128xf32>
    %60 = vector.shape_cast %59 : vector<2x128xf32> to vector<2x1x128xf32>
    %61 = vector.broadcast %60 : vector<2x1x128xf32> to vector<2x16x128xf32>
    %62 = arith.addf %58, %61 : vector<2x16x128xf32>
    %63 = arith.addf %62, %55 : vector<2x16x128xf32>
    %c0_36 = arith.constant 0 : index
    %c0_37 = arith.constant 0 : index
    %c0_38 = arith.constant 0 : index
    %64 = vector.load %arg15[%c0_36, %c0_37, %c0_38] : memref<2x16x16xf32, #tpu.memory_space<vmem>>, vector<2x16x16xf32>
    %c0_39 = arith.constant 0 : index
    %c0_40 = arith.constant 0 : index
    %c0_41 = arith.constant 0 : index
    %65 = vector.load %arg16[%c0_39, %c0_40, %c0_41] : memref<2x16x16xf32, #tpu.memory_space<vmem>>, vector<2x16x16xf32>
    %cst_42 = arith.constant 0.000000e+00 : f32
    %66 = vector.broadcast %cst_42 : f32 to vector<2x16x128xf32>
    %67 = arith.cmpf oge, %63, %66 : vector<2x16x128xf32>
    %cst_43 = arith.constant 2.000000e-01 : f32
    %68 = vector.broadcast %cst_43 : f32 to vector<2x16x128xf32>
    %69 = arith.mulf %68, %63 : vector<2x16x128xf32>
    %70 = arith.select %67, %63, %69 : vector<2x16x128xi1>, vector<2x16x128xf32>
    %c0_44 = arith.constant 0 : index
    %c0_45 = arith.constant 0 : index
    %71 = vector.load %arg9[%c0_44, %c0_45] : memref<128x384xf32, #tpu.memory_space<vmem>>, vector<128x384xf32>
    %c0_46 = arith.constant 0 : index
    %c0_47 = arith.constant 0 : index
    %72 = vector.load %arg10[%c0_46, %c0_47] : memref<1x128xf32, #tpu.memory_space<vmem>>, vector<1x128xf32>
    %73 = vector.shape_cast %70 : vector<2x16x128xf32> to vector<32x128xf32>
    %cst_48 = arith.constant dense<0.000000e+00> : vector<32x384xf32>
    %74 = tpu.matmul %73, %71, %cst_48 {dimension_numbers = #tpu.dot_dimension_numbers<[1], [0], [0], [1], [0, 0, 1, 1], [], []>} : vector<32x128xf32>, vector<128x384xf32>, vector<32x384xf32> -> vector<32x384xf32>
    %75 = vector.shape_cast %74 : vector<32x384xf32> to vector<2x16x384xf32>
    %76 = vector.extract_strided_slice %75 {offsets = [0, 0, 0], sizes = [2, 16, 128], strides = [1, 1, 1]} : vector<2x16x384xf32> to vector<2x16x128xf32>
    %77 = vector.extract_strided_slice %75 {offsets = [0, 0, 128], sizes = [2, 16, 128], strides = [1, 1, 1]} : vector<2x16x384xf32> to vector<2x16x128xf32>
    %78 = vector.extract_strided_slice %75 {offsets = [0, 0, 256], sizes = [2, 16, 128], strides = [1, 1, 1]} : vector<2x16x384xf32> to vector<2x16x128xf32>
    "tpu.trace_start"() <{level = 10 : i32, message = "bik,bkl->bil"}> : () -> ()
    %cst_49 = arith.constant dense<0.000000e+00> : vector<2x16x128xf32>
    %79 = tpu.matmul %64, %76, %cst_49 {dimension_numbers = #tpu.dot_dimension_numbers<[2], [1], [1], [2], [0, 0, 0, 1, 1, 2], [0], [0]>} : vector<2x16x16xf32>, vector<2x16x128xf32>, vector<2x16x128xf32> -> vector<2x16x128xf32>
    "tpu.trace_stop"() : () -> ()
    %80 = arith.addf %77, %79 : vector<2x16x128xf32>
    "tpu.trace_start"() <{level = 10 : i32, message = "bik,bkl->bil"}> : () -> ()
    %cst_50 = arith.constant dense<0.000000e+00> : vector<2x16x128xf32>
    %81 = tpu.matmul %65, %78, %cst_50 {dimension_numbers = #tpu.dot_dimension_numbers<[2], [1], [1], [2], [0, 0, 0, 1, 1, 2], [0], [0]>} : vector<2x16x16xf32>, vector<2x16x128xf32>, vector<2x16x128xf32> -> vector<2x16x128xf32>
    "tpu.trace_stop"() : () -> ()
    %82 = arith.addf %80, %81 : vector<2x16x128xf32>
    %83 = vector.shape_cast %72 : vector<1x128xf32> to vector<1x1x128xf32>
    %84 = vector.broadcast %83 : vector<1x1x128xf32> to vector<2x16x128xf32>
    %85 = arith.addf %82, %84 : vector<2x16x128xf32>
    %cst_51 = arith.constant 0.000000e+00 : f32
    %86 = vector.broadcast %cst_51 : f32 to vector<2x16x128xf32>
    %87 = arith.cmpf oge, %85, %86 : vector<2x16x128xf32>
    %cst_52 = arith.constant 2.000000e-01 : f32
    %88 = vector.broadcast %cst_52 : f32 to vector<2x16x128xf32>
    %89 = arith.mulf %88, %85 : vector<2x16x128xf32>
    %90 = arith.select %87, %85, %89 : vector<2x16x128xi1>, vector<2x16x128xf32>
    %c0_53 = arith.constant 0 : index
    %c0_54 = arith.constant 0 : index
    %91 = vector.load %arg11[%c0_53, %c0_54] : memref<128x384xf32, #tpu.memory_space<vmem>>, vector<128x384xf32>
    %c0_55 = arith.constant 0 : index
    %c0_56 = arith.constant 0 : index
    %92 = vector.load %arg12[%c0_55, %c0_56] : memref<1x128xf32, #tpu.memory_space<vmem>>, vector<1x128xf32>
    %93 = vector.shape_cast %90 : vector<2x16x128xf32> to vector<32x128xf32>
    %cst_57 = arith.constant dense<0.000000e+00> : vector<32x384xf32>
    %94 = tpu.matmul %93, %91, %cst_57 {dimension_numbers = #tpu.dot_dimension_numbers<[1], [0], [0], [1], [0, 0, 1, 1], [], []>} : vector<32x128xf32>, vector<128x384xf32>, vector<32x384xf32> -> vector<32x384xf32>
    %95 = vector.shape_cast %94 : vector<32x384xf32> to vector<2x16x384xf32>
    %96 = vector.extract_strided_slice %95 {offsets = [0, 0, 0], sizes = [2, 16, 128], strides = [1, 1, 1]} : vector<2x16x384xf32> to vector<2x16x128xf32>
    %97 = vector.extract_strided_slice %95 {offsets = [0, 0, 128], sizes = [2, 16, 128], strides = [1, 1, 1]} : vector<2x16x384xf32> to vector<2x16x128xf32>
    %98 = vector.extract_strided_slice %95 {offsets = [0, 0, 256], sizes = [2, 16, 128], strides = [1, 1, 1]} : vector<2x16x384xf32> to vector<2x16x128xf32>
    "tpu.trace_start"() <{level = 10 : i32, message = "bik,bkl->bil"}> : () -> ()
    %cst_58 = arith.constant dense<0.000000e+00> : vector<2x16x128xf32>
    %99 = tpu.matmul %64, %96, %cst_58 {dimension_numbers = #tpu.dot_dimension_numbers<[2], [1], [1], [2], [0, 0, 0, 1, 1, 2], [0], [0]>} : vector<2x16x16xf32>, vector<2x16x128xf32>, vector<2x16x128xf32> -> vector<2x16x128xf32>
    "tpu.trace_stop"() : () -> ()
    %100 = arith.addf %97, %99 : vector<2x16x128xf32>
    "tpu.trace_start"() <{level = 10 : i32, message = "bik,bkl->bil"}> : () -> ()
    %cst_59 = arith.constant dense<0.000000e+00> : vector<2x16x128xf32>
    %101 = tpu.matmul %65, %98, %cst_59 {dimension_numbers = #tpu.dot_dimension_numbers<[2], [1], [1], [2], [0, 0, 0, 1, 1, 2], [0], [0]>} : vector<2x16x16xf32>, vector<2x16x128xf32>, vector<2x16x128xf32> -> vector<2x16x128xf32>
    "tpu.trace_stop"() : () -> ()
    %102 = arith.addf %100, %101 : vector<2x16x128xf32>
    %103 = vector.shape_cast %92 : vector<1x128xf32> to vector<1x1x128xf32>
    %104 = vector.broadcast %103 : vector<1x1x128xf32> to vector<2x16x128xf32>
    %105 = arith.addf %102, %104 : vector<2x16x128xf32>
    %106 = arith.addf %63, %105 : vector<2x16x128xf32>
    %c0_60 = arith.constant 0 : index
    %c0_61 = arith.constant 0 : index
    %107 = vector.load %arg17[%c0_60, %c0_61] : memref<1x128xf32, #tpu.memory_space<vmem>>, vector<1x128xf32>
    %108 = vector.shape_cast %107 : vector<1x128xf32> to vector<1x1x128xf32>
    %109 = vector.broadcast %108 : vector<1x1x128xf32> to vector<2x16x128xf32>
    %110 = arith.mulf %109, %106 : vector<2x16x128xf32>
    %111 = arith.addf %3, %110 : vector<2x16x128xf32>
    %c0_62 = arith.constant 0 : index
    %c0_63 = arith.constant 0 : index
    %c0_64 = arith.constant 0 : index
    %112 = vector.load %arg19[%c0_62, %c0_63, %c0_64] : memref<2x16x128xf32, #tpu.memory_space<vmem>>, vector<2x16x128xf32>
    tpu.vector_store %arg19[%c0_62, %c0_63, %c0_64], %111 {strides = array<i32>} : memref<2x16x128xf32, #tpu.memory_space<vmem>>, vector<2x16x128xf32>,
    %c0_65 = arith.constant 0 : index
    %c0_66 = arith.constant 0 : index
    %c0_67 = arith.constant 0 : index
    %c0_68 = arith.constant 0 : index
    %113 = vector.load %arg18[%c0_65, %c0_66, %c0_67, %c0_68] : memref<1x2x16x128xf32, #tpu.memory_space<vmem>>, vector<1x2x16x128xf32>
    %114 = vector.shape_cast %113 : vector<1x2x16x128xf32> to vector<2x16x128xf32>
    %115 = vector.shape_cast %111 : vector<2x16x128xf32> to vector<1x2x16x128xf32>
    tpu.vector_store %arg18[%c0_65, %c0_66, %c0_67, %c0_68], %115 {strides = array<i32>} : memref<1x2x16x128xf32, #tpu.memory_space<vmem>>, vector<1x2x16x128xf32>,
    return
  }
  func.func @transform_0(%arg0: i32) -> (i32, i32, i32) {
    %c0_i32 = arith.constant 0 : i32
    %c0_i32_0 = arith.constant 0 : i32
    %c0_i32_1 = arith.constant 0 : i32
    %c0_i32_2 = arith.constant 0 : i32
    return %c0_i32, %c0_i32_0, %c0_i32_1 : i32, i32, i32
  }
  func.func @transform_1(%arg0: i32) -> (i32, i32) {
    %c0_i32 = arith.constant 0 : i32
    %c0_i32_0 = arith.constant 0 : i32
    %c0_i32_1 = arith.constant 0 : i32
    return %c0_i32, %c0_i32_0 : i32, i32
  }
  func.func @transform_2(%arg0: i32) -> (i32, i32) {
    %c0_i32 = arith.constant 0 : i32
    %c0_i32_0 = arith.constant 0 : i32
    %c0_i32_1 = arith.constant 0 : i32
    return %c0_i32, %c0_i32_0 : i32, i32
  }
  func.func @transform_3(%arg0: i32) -> (i32, i32) {
    %c0_i32 = arith.constant 0 : i32
    %c0_i32_0 = arith.constant 0 : i32
    %c0_i32_1 = arith.constant 0 : i32
    return %c0_i32, %c0_i32_0 : i32, i32
  }
  func.func @transform_4(%arg0: i32) -> (i32, i32) {
    %c0_i32 = arith.constant 0 : i32
    %c0_i32_0 = arith.constant 0 : i32
    %c0_i32_1 = arith.constant 0 : i32
    return %c0_i32, %c0_i32_0 : i32, i32
  }
  func.func @transform_5(%arg0: i32) -> (i32, i32) {
    %c0_i32 = arith.constant 0 : i32
    %c0_i32_0 = arith.constant 0 : i32
    %c0_i32_1 = arith.constant 0 : i32
    return %c0_i32, %c0_i32_0 : i32, i32
  }
  func.func @transform_6(%arg0: i32) -> (i32, i32) {
    %c0_i32 = arith.constant 0 : i32
    %c0_i32_0 = arith.constant 0 : i32
    %c0_i32_1 = arith.constant 0 : i32
    return %c0_i32, %c0_i32_0 : i32, i32
  }
  func.func @transform_7(%arg0: i32) -> (i32, i32) {
    %c0_i32 = arith.constant 0 : i32
    %c0_i32_0 = arith.constant 0 : i32
    %c0_i32_1 = arith.constant 0 : i32
    return %c0_i32, %c0_i32_0 : i32, i32
  }
  func.func @transform_8(%arg0: i32) -> (i32, i32) {
    %c0_i32 = arith.constant 0 : i32
    %c0_i32_0 = arith.constant 0 : i32
    %c0_i32_1 = arith.constant 0 : i32
    return %c0_i32, %c0_i32_0 : i32, i32
  }
  func.func @transform_9(%arg0: i32) -> (i32, i32) {
    %c0_i32 = arith.constant 0 : i32
    %c0_i32_0 = arith.constant 0 : i32
    %c0_i32_1 = arith.constant 0 : i32
    return %c0_i32, %c0_i32_0 : i32, i32
  }
  func.func @transform_10(%arg0: i32) -> (i32, i32) {
    %c0_i32 = arith.constant 0 : i32
    %c0_i32_0 = arith.constant 0 : i32
    %c0_i32_1 = arith.constant 0 : i32
    return %c0_i32, %c0_i32_0 : i32, i32
  }
  func.func @transform_11(%arg0: i32) -> (i32, i32) {
    %c0_i32 = arith.constant 0 : i32
    %c0_i32_0 = arith.constant 0 : i32
    %c0_i32_1 = arith.constant 0 : i32
    return %c0_i32, %c0_i32_0 : i32, i32
  }
  func.func @transform_12(%arg0: i32) -> (i32, i32) {
    %c0_i32 = arith.constant 0 : i32
    %c0_i32_0 = arith.constant 0 : i32
    %c0_i32_1 = arith.constant 0 : i32
    return %c0_i32, %c0_i32_0 : i32, i32
  }
  func.func @transform_13(%arg0: i32) -> (i32, i32) {
    %c0_i32 = arith.constant 0 : i32
    %c0_i32_0 = arith.constant 0 : i32
    %c0_i32_1 = arith.constant 0 : i32
    return %c0_i32, %c0_i32_0 : i32, i32
  }
  func.func @transform_14(%arg0: i32) -> (i32, i32, i32) {
    %c0_i32 = arith.constant 0 : i32
    %c0_i32_0 = arith.constant 0 : i32
    %c0_i32_1 = arith.constant 0 : i32
    %c0_i32_2 = arith.constant 0 : i32
    return %c0_i32, %c0_i32_0, %c0_i32_1 : i32, i32, i32
  }
  func.func @transform_15(%arg0: i32) -> (i32, i32, i32) {
    %c0_i32 = arith.constant 0 : i32
    %c0_i32_0 = arith.constant 0 : i32
    %c0_i32_1 = arith.constant 0 : i32
    %c0_i32_2 = arith.constant 0 : i32
    return %c0_i32, %c0_i32_0, %c0_i32_1 : i32, i32, i32
  }
  func.func @transform_16(%arg0: i32) -> (i32, i32) {
    %c0_i32 = arith.constant 0 : i32
    %c0_i32_0 = arith.constant 0 : i32
    %c0_i32_1 = arith.constant 0 : i32
    return %c0_i32, %c0_i32_0 : i32, i32
  }
  func.func @transform_17(%arg0: i32) -> (i32, i32, i32, i32) {
    %c0_i32 = arith.constant 0 : i32
    %c0_i32_0 = arith.constant 0 : i32
    %c0_i32_1 = arith.constant 0 : i32
    %c0_i32_2 = arith.constant 0 : i32
    return %arg0, %c0_i32, %c0_i32_0, %c0_i32_1 : i32, i32, i32, i32
  }
}

module attributes {stable_mosaic.version = 11 : i64} {
  func.func @_outconv_kernel(%arg0: i32, %arg1: memref<2x16x128xf32, #tpu.memory_space<vmem>>, %arg2: memref<128x128xf32, #tpu.memory_space<vmem>>, %arg3: memref<1x128xf32, #tpu.memory_space<vmem>>, %arg4: memref<128x400xf32, #tpu.memory_space<vmem>>, %arg5: memref<1x400xf32, #tpu.memory_space<vmem>>, %arg6: memref<128x400xf32, #tpu.memory_space<vmem>>, %arg7: memref<400x8xf32, #tpu.memory_space<vmem>>, %arg8: memref<400x8xf32, #tpu.memory_space<vmem>>, %arg9: memref<400x128xf32, #tpu.memory_space<vmem>>, %arg10: memref<400x16xf32, #tpu.memory_space<vmem>>, %arg11: memref<2x8xf32, #tpu.memory_space<vmem>>, %arg12: memref<2x16x8xf32, #tpu.memory_space<vmem>>, %arg13: memref<2x128xf32, #tpu.memory_space<vmem>>, %arg14: memref<2x16x16xf32, #tpu.memory_space<vmem>>) attributes {dimension_semantics = [#tpu.dimension_semantics<arbitrary>], iteration_bounds = array<i64: 1>, scalar_prefetch = 0 : i64, scratch_operands = 0 : i64, tpu.core_type = #tpu.core_type<tc>, window_params = [{pipeline_mode = #tpu.pipeline_mode<synchronous>, transform_indices = @transform_0, window_bounds = array<i64: 2, 16, 128>}, {pipeline_mode = #tpu.pipeline_mode<synchronous>, transform_indices = @transform_1, window_bounds = array<i64: 128, 128>}, {pipeline_mode = #tpu.pipeline_mode<synchronous>, transform_indices = @transform_2, window_bounds = array<i64: 1, 128>}, {pipeline_mode = #tpu.pipeline_mode<synchronous>, transform_indices = @transform_3, window_bounds = array<i64: 128, 400>}, {pipeline_mode = #tpu.pipeline_mode<synchronous>, transform_indices = @transform_4, window_bounds = array<i64: 1, 400>}, {pipeline_mode = #tpu.pipeline_mode<synchronous>, transform_indices = @transform_5, window_bounds = array<i64: 128, 400>}, {pipeline_mode = #tpu.pipeline_mode<synchronous>, transform_indices = @transform_6, window_bounds = array<i64: 400, 8>}, {pipeline_mode = #tpu.pipeline_mode<synchronous>, transform_indices = @transform_7, window_bounds = array<i64: 400, 8>}, {pipeline_mode = #tpu.pipeline_mode<synchronous>, transform_indices = @transform_8, window_bounds = array<i64: 400, 128>}, {pipeline_mode = #tpu.pipeline_mode<synchronous>, transform_indices = @transform_9, window_bounds = array<i64: 400, 16>}, {pipeline_mode = #tpu.pipeline_mode<synchronous>, transform_indices = @transform_10, window_bounds = array<i64: 2, 8>}, {pipeline_mode = #tpu.pipeline_mode<synchronous>, transform_indices = @transform_11, window_bounds = array<i64: 2, 16, 8>}, {pipeline_mode = #tpu.pipeline_mode<synchronous>, transform_indices = @transform_12, window_bounds = array<i64: 2, 128>}, {pipeline_mode = #tpu.pipeline_mode<synchronous>, transform_indices = @transform_13, window_bounds = array<i64: 2, 16, 16>}]} {
    %c0 = arith.constant 0 : index
    %c0_0 = arith.constant 0 : index
    %c0_1 = arith.constant 0 : index
    %0 = vector.load %arg1[%c0, %c0_0, %c0_1] : memref<2x16x128xf32, #tpu.memory_space<vmem>>, vector<2x16x128xf32>
    %1 = vector.shape_cast %0 : vector<2x16x128xf32> to vector<32x128xf32>
    %cst = arith.constant 0.000000e+00 : f32
    %2 = vector.broadcast %cst : f32 to vector<32x128xf32>
    %3 = arith.cmpf oge, %1, %2 : vector<32x128xf32>
    %cst_2 = arith.constant 2.000000e-01 : f32
    %4 = vector.broadcast %cst_2 : f32 to vector<32x128xf32>
    %5 = arith.mulf %4, %1 : vector<32x128xf32>
    %6 = arith.select %3, %1, %5 : vector<32x128xi1>, vector<32x128xf32>
    %c0_3 = arith.constant 0 : index
    %c0_4 = arith.constant 0 : index
    %7 = vector.load %arg2[%c0_3, %c0_4] : memref<128x128xf32, #tpu.memory_space<vmem>>, vector<128x128xf32>
    %cst_5 = arith.constant dense<0.000000e+00> : vector<32x128xf32>
    %8 = tpu.matmul %6, %7, %cst_5 {dimension_numbers = #tpu.dot_dimension_numbers<[1], [0], [0], [1], [0, 0, 1, 1], [], []>} : vector<32x128xf32>, vector<128x128xf32>, vector<32x128xf32> -> vector<32x128xf32>
    %c0_6 = arith.constant 0 : index
    %c0_7 = arith.constant 0 : index
    %9 = vector.load %arg3[%c0_6, %c0_7] : memref<1x128xf32, #tpu.memory_space<vmem>>, vector<1x128xf32>
    %10 = vector.broadcast %9 : vector<1x128xf32> to vector<32x128xf32>
    %11 = arith.addf %8, %10 : vector<32x128xf32>
    %cst_8 = arith.constant 0.000000e+00 : f32
    %12 = vector.broadcast %cst_8 : f32 to vector<32x128xf32>
    %13 = arith.cmpf oge, %11, %12 : vector<32x128xf32>
    %cst_9 = arith.constant 2.000000e-01 : f32
    %14 = vector.broadcast %cst_9 : f32 to vector<32x128xf32>
    %15 = arith.mulf %14, %11 : vector<32x128xf32>
    %16 = arith.select %13, %11, %15 : vector<32x128xi1>, vector<32x128xf32>
    %c0_10 = arith.constant 0 : index
    %c0_11 = arith.constant 0 : index
    %17 = vector.load %arg4[%c0_10, %c0_11] : memref<128x400xf32, #tpu.memory_space<vmem>>, vector<128x400xf32>
    %cst_12 = arith.constant dense<0.000000e+00> : vector<32x400xf32>
    %18 = tpu.matmul %16, %17, %cst_12 {dimension_numbers = #tpu.dot_dimension_numbers<[1], [0], [0], [1], [0, 0, 1, 1], [], []>} : vector<32x128xf32>, vector<128x400xf32>, vector<32x400xf32> -> vector<32x400xf32>
    %c0_13 = arith.constant 0 : index
    %c0_14 = arith.constant 0 : index
    %19 = vector.load %arg5[%c0_13, %c0_14] : memref<1x400xf32, #tpu.memory_space<vmem>>, vector<1x400xf32>
    %20 = vector.broadcast %19 : vector<1x400xf32> to vector<32x400xf32>
    %21 = arith.addf %18, %20 : vector<32x400xf32>
    %c0_15 = arith.constant 0 : index
    %c0_16 = arith.constant 0 : index
    %22 = vector.load %arg6[%c0_15, %c0_16] : memref<128x400xf32, #tpu.memory_space<vmem>>, vector<128x400xf32>
    %cst_17 = arith.constant dense<0.000000e+00> : vector<32x400xf32>
    %23 = tpu.matmul %1, %22, %cst_17 {dimension_numbers = #tpu.dot_dimension_numbers<[1], [0], [0], [1], [0, 0, 1, 1], [], []>} : vector<32x128xf32>, vector<128x400xf32>, vector<32x400xf32> -> vector<32x400xf32>
    %24 = arith.addf %23, %21 : vector<32x400xf32>
    %25 = vector.shape_cast %24 : vector<32x400xf32> to vector<2x16x400xf32>
    %cst_18 = arith.constant dense<0.000000e+00> : vector<2x400xf32>
    %26 = vector.multi_reduction <add>, %25, %cst_18 [1] : vector<2x16x400xf32> to vector<2x400xf32>
    %c0_19 = arith.constant 0 : index
    %c0_20 = arith.constant 0 : index
    %27 = vector.load %arg7[%c0_19, %c0_20] : memref<400x8xf32, #tpu.memory_space<vmem>>, vector<400x8xf32>
    %cst_21 = arith.constant dense<0.000000e+00> : vector<2x8xf32>
    %28 = tpu.matmul %26, %27, %cst_21 {dimension_numbers = #tpu.dot_dimension_numbers<[1], [0], [0], [1], [0, 0, 1, 1], [], []>} : vector<2x400xf32>, vector<400x8xf32>, vector<2x8xf32> -> vector<2x8xf32>
    %cst_22 = arith.constant 3.906250e-03 : f32
    %29 = vector.broadcast %cst_22 : f32 to vector<2x8xf32>
    %30 = arith.mulf %28, %29 : vector<2x8xf32>
    %c0_23 = arith.constant 0 : index
    %c0_24 = arith.constant 0 : index
    %31 = vector.load %arg11[%c0_23, %c0_24] : memref<2x8xf32, #tpu.memory_space<vmem>>, vector<2x8xf32>
    tpu.vector_store %arg11[%c0_23, %c0_24], %30 {strides = array<i32>} : memref<2x8xf32, #tpu.memory_space<vmem>>, vector<2x8xf32>,
    %c0_25 = arith.constant 0 : index
    %c0_26 = arith.constant 0 : index
    %32 = vector.load %arg9[%c0_25, %c0_26] : memref<400x128xf32, #tpu.memory_space<vmem>>, vector<400x128xf32>
    %cst_27 = arith.constant dense<0.000000e+00> : vector<2x128xf32>
    %33 = tpu.matmul %26, %32, %cst_27 {dimension_numbers = #tpu.dot_dimension_numbers<[1], [0], [0], [1], [0, 0, 1, 1], [], []>} : vector<2x400xf32>, vector<400x128xf32>, vector<2x128xf32> -> vector<2x128xf32>
    %cst_28 = arith.constant 6.250000e-02 : f32
    %34 = vector.broadcast %cst_28 : f32 to vector<2x128xf32>
    %35 = arith.mulf %33, %34 : vector<2x128xf32>
    %c0_29 = arith.constant 0 : index
    %c0_30 = arith.constant 0 : index
    %36 = vector.load %arg13[%c0_29, %c0_30] : memref<2x128xf32, #tpu.memory_space<vmem>>, vector<2x128xf32>
    tpu.vector_store %arg13[%c0_29, %c0_30], %35 {strides = array<i32>} : memref<2x128xf32, #tpu.memory_space<vmem>>, vector<2x128xf32>,
    %c0_31 = arith.constant 0 : index
    %c0_32 = arith.constant 0 : index
    %37 = vector.load %arg8[%c0_31, %c0_32] : memref<400x8xf32, #tpu.memory_space<vmem>>, vector<400x8xf32>
    %cst_33 = arith.constant dense<0.000000e+00> : vector<32x8xf32>
    %38 = tpu.matmul %24, %37, %cst_33 {dimension_numbers = #tpu.dot_dimension_numbers<[1], [0], [0], [1], [0, 0, 1, 1], [], []>} : vector<32x400xf32>, vector<400x8xf32>, vector<32x8xf32> -> vector<32x8xf32>
    %39 = vector.shape_cast %38 : vector<32x8xf32> to vector<2x16x8xf32>
    %cst_34 = arith.constant 6.250000e-02 : f32
    %40 = vector.broadcast %cst_34 : f32 to vector<2x16x8xf32>
    %41 = arith.mulf %39, %40 : vector<2x16x8xf32>
    %c0_35 = arith.constant 0 : index
    %c0_36 = arith.constant 0 : index
    %c0_37 = arith.constant 0 : index
    %42 = vector.load %arg12[%c0_35, %c0_36, %c0_37] : memref<2x16x8xf32, #tpu.memory_space<vmem>>, vector<2x16x8xf32>
    tpu.vector_store %arg12[%c0_35, %c0_36, %c0_37], %41 {strides = array<i32>} : memref<2x16x8xf32, #tpu.memory_space<vmem>>, vector<2x16x8xf32>,
    %c0_38 = arith.constant 0 : index
    %c0_39 = arith.constant 0 : index
    %43 = vector.load %arg10[%c0_38, %c0_39] : memref<400x16xf32, #tpu.memory_space<vmem>>, vector<400x16xf32>
    %cst_40 = arith.constant dense<0.000000e+00> : vector<32x16xf32>
    %44 = tpu.matmul %24, %43, %cst_40 {dimension_numbers = #tpu.dot_dimension_numbers<[1], [0], [0], [1], [0, 0, 1, 1], [], []>} : vector<32x400xf32>, vector<400x16xf32>, vector<32x16xf32> -> vector<32x16xf32>
    %45 = vector.shape_cast %44 : vector<32x16xf32> to vector<2x16x16xf32>
    %c0_41 = arith.constant 0 : index
    %c0_42 = arith.constant 0 : index
    %c0_43 = arith.constant 0 : index
    %46 = vector.load %arg14[%c0_41, %c0_42, %c0_43] : memref<2x16x16xf32, #tpu.memory_space<vmem>>, vector<2x16x16xf32>
    tpu.vector_store %arg14[%c0_41, %c0_42, %c0_43], %45 {strides = array<i32>} : memref<2x16x16xf32, #tpu.memory_space<vmem>>, vector<2x16x16xf32>,
    return
  }
  func.func @transform_0(%arg0: i32) -> (i32, i32, i32) {
    %c0_i32 = arith.constant 0 : i32
    %c0_i32_0 = arith.constant 0 : i32
    %c0_i32_1 = arith.constant 0 : i32
    %c0_i32_2 = arith.constant 0 : i32
    return %c0_i32, %c0_i32_0, %c0_i32_1 : i32, i32, i32
  }
  func.func @transform_1(%arg0: i32) -> (i32, i32) {
    %c0_i32 = arith.constant 0 : i32
    %c0_i32_0 = arith.constant 0 : i32
    %c0_i32_1 = arith.constant 0 : i32
    return %c0_i32, %c0_i32_0 : i32, i32
  }
  func.func @transform_2(%arg0: i32) -> (i32, i32) {
    %c0_i32 = arith.constant 0 : i32
    %c0_i32_0 = arith.constant 0 : i32
    %c0_i32_1 = arith.constant 0 : i32
    return %c0_i32, %c0_i32_0 : i32, i32
  }
  func.func @transform_3(%arg0: i32) -> (i32, i32) {
    %c0_i32 = arith.constant 0 : i32
    %c0_i32_0 = arith.constant 0 : i32
    %c0_i32_1 = arith.constant 0 : i32
    return %c0_i32, %c0_i32_0 : i32, i32
  }
  func.func @transform_4(%arg0: i32) -> (i32, i32) {
    %c0_i32 = arith.constant 0 : i32
    %c0_i32_0 = arith.constant 0 : i32
    %c0_i32_1 = arith.constant 0 : i32
    return %c0_i32, %c0_i32_0 : i32, i32
  }
  func.func @transform_5(%arg0: i32) -> (i32, i32) {
    %c0_i32 = arith.constant 0 : i32
    %c0_i32_0 = arith.constant 0 : i32
    %c0_i32_1 = arith.constant 0 : i32
    return %c0_i32, %c0_i32_0 : i32, i32
  }
  func.func @transform_6(%arg0: i32) -> (i32, i32) {
    %c0_i32 = arith.constant 0 : i32
    %c0_i32_0 = arith.constant 0 : i32
    %c0_i32_1 = arith.constant 0 : i32
    return %c0_i32, %c0_i32_0 : i32, i32
  }
  func.func @transform_7(%arg0: i32) -> (i32, i32) {
    %c0_i32 = arith.constant 0 : i32
    %c0_i32_0 = arith.constant 0 : i32
    %c0_i32_1 = arith.constant 0 : i32
    return %c0_i32, %c0_i32_0 : i32, i32
  }
  func.func @transform_8(%arg0: i32) -> (i32, i32) {
    %c0_i32 = arith.constant 0 : i32
    %c0_i32_0 = arith.constant 0 : i32
    %c0_i32_1 = arith.constant 0 : i32
    return %c0_i32, %c0_i32_0 : i32, i32
  }
  func.func @transform_9(%arg0: i32) -> (i32, i32) {
    %c0_i32 = arith.constant 0 : i32
    %c0_i32_0 = arith.constant 0 : i32
    %c0_i32_1 = arith.constant 0 : i32
    return %c0_i32, %c0_i32_0 : i32, i32
  }
  func.func @transform_10(%arg0: i32) -> (i32, i32) {
    %c0_i32 = arith.constant 0 : i32
    %c0_i32_0 = arith.constant 0 : i32
    %c0_i32_1 = arith.constant 0 : i32
    return %c0_i32, %c0_i32_0 : i32, i32
  }
  func.func @transform_11(%arg0: i32) -> (i32, i32, i32) {
    %c0_i32 = arith.constant 0 : i32
    %c0_i32_0 = arith.constant 0 : i32
    %c0_i32_1 = arith.constant 0 : i32
    %c0_i32_2 = arith.constant 0 : i32
    return %c0_i32, %c0_i32_0, %c0_i32_1 : i32, i32, i32
  }
  func.func @transform_12(%arg0: i32) -> (i32, i32) {
    %c0_i32 = arith.constant 0 : i32
    %c0_i32_0 = arith.constant 0 : i32
    %c0_i32_1 = arith.constant 0 : i32
    return %c0_i32, %c0_i32_0 : i32, i32
  }
  func.func @transform_13(%arg0: i32) -> (i32, i32, i32) {
    %c0_i32 = arith.constant 0 : i32
    %c0_i32_0 = arith.constant 0 : i32
    %c0_i32_1 = arith.constant 0 : i32
    %c0_i32_2 = arith.constant 0 : i32
    return %c0_i32, %c0_i32_0, %c0_i32_1 : i32, i32, i32
  }
}

module attributes {stable_mosaic.version = 11 : i64} {
  func.func @_lat_kernel(%arg0: i32, %arg1: memref<2x520xf32, #tpu.memory_space<vmem>>, %arg2: memref<520x64xf32, #tpu.memory_space<vmem>>, %arg3: memref<1x64xf32, #tpu.memory_space<vmem>>, %arg4: memref<64x32xf32, #tpu.memory_space<vmem>>, %arg5: memref<1x32xf32, #tpu.memory_space<vmem>>, %arg6: memref<520x32xf32, #tpu.memory_space<vmem>>, %arg7: memref<32x32xf32, #tpu.memory_space<vmem>>, %arg8: memref<1x32xf32, #tpu.memory_space<vmem>>, %arg9: memref<32x32xf32, #tpu.memory_space<vmem>>, %arg10: memref<1x32xf32, #tpu.memory_space<vmem>>, %arg11: memref<32x32xf32, #tpu.memory_space<vmem>>, %arg12: memref<1x32xf32, #tpu.memory_space<vmem>>, %arg13: memref<2x32xf32, #tpu.memory_space<vmem>>) attributes {dimension_semantics = [#tpu.dimension_semantics<arbitrary>], iteration_bounds = array<i64: 1>, scalar_prefetch = 0 : i64, scratch_operands = 0 : i64, tpu.core_type = #tpu.core_type<tc>, window_params = [{pipeline_mode = #tpu.pipeline_mode<synchronous>, transform_indices = @transform_0, window_bounds = array<i64: 2, 520>}, {pipeline_mode = #tpu.pipeline_mode<synchronous>, transform_indices = @transform_1, window_bounds = array<i64: 520, 64>}, {pipeline_mode = #tpu.pipeline_mode<synchronous>, transform_indices = @transform_2, window_bounds = array<i64: 1, 64>}, {pipeline_mode = #tpu.pipeline_mode<synchronous>, transform_indices = @transform_3, window_bounds = array<i64: 64, 32>}, {pipeline_mode = #tpu.pipeline_mode<synchronous>, transform_indices = @transform_4, window_bounds = array<i64: 1, 32>}, {pipeline_mode = #tpu.pipeline_mode<synchronous>, transform_indices = @transform_5, window_bounds = array<i64: 520, 32>}, {pipeline_mode = #tpu.pipeline_mode<synchronous>, transform_indices = @transform_6, window_bounds = array<i64: 32, 32>}, {pipeline_mode = #tpu.pipeline_mode<synchronous>, transform_indices = @transform_7, window_bounds = array<i64: 1, 32>}, {pipeline_mode = #tpu.pipeline_mode<synchronous>, transform_indices = @transform_8, window_bounds = array<i64: 32, 32>}, {pipeline_mode = #tpu.pipeline_mode<synchronous>, transform_indices = @transform_9, window_bounds = array<i64: 1, 32>}, {pipeline_mode = #tpu.pipeline_mode<synchronous>, transform_indices = @transform_10, window_bounds = array<i64: 32, 32>}, {pipeline_mode = #tpu.pipeline_mode<synchronous>, transform_indices = @transform_11, window_bounds = array<i64: 1, 32>}, {pipeline_mode = #tpu.pipeline_mode<synchronous>, transform_indices = @transform_12, window_bounds = array<i64: 2, 32>}]} {
    %c0 = arith.constant 0 : index
    %c0_0 = arith.constant 0 : index
    %0 = vector.load %arg1[%c0, %c0_0] : memref<2x520xf32, #tpu.memory_space<vmem>>, vector<2x520xf32>
    %c0_1 = arith.constant 0 : index
    %c0_2 = arith.constant 0 : index
    %1 = vector.load %arg2[%c0_1, %c0_2] : memref<520x64xf32, #tpu.memory_space<vmem>>, vector<520x64xf32>
    %c0_3 = arith.constant 0 : index
    %c0_4 = arith.constant 0 : index
    %2 = vector.load %arg3[%c0_3, %c0_4] : memref<1x64xf32, #tpu.memory_space<vmem>>, vector<1x64xf32>
    %c0_5 = arith.constant 0 : index
    %c0_6 = arith.constant 0 : index
    %3 = vector.load %arg4[%c0_5, %c0_6] : memref<64x32xf32, #tpu.memory_space<vmem>>, vector<64x32xf32>
    %c0_7 = arith.constant 0 : index
    %c0_8 = arith.constant 0 : index
    %4 = vector.load %arg5[%c0_7, %c0_8] : memref<1x32xf32, #tpu.memory_space<vmem>>, vector<1x32xf32>
    %c0_9 = arith.constant 0 : index
    %c0_10 = arith.constant 0 : index
    %5 = vector.load %arg6[%c0_9, %c0_10] : memref<520x32xf32, #tpu.memory_space<vmem>>, vector<520x32xf32>
    %cst = arith.constant 0.000000e+00 : f32
    %6 = vector.broadcast %cst : f32 to vector<2x520xf32>
    %7 = arith.cmpf oge, %0, %6 : vector<2x520xf32>
    %cst_11 = arith.constant 2.000000e-01 : f32
    %8 = vector.broadcast %cst_11 : f32 to vector<2x520xf32>
    %9 = arith.mulf %8, %0 : vector<2x520xf32>
    %10 = arith.select %7, %0, %9 : vector<2x520xi1>, vector<2x520xf32>
    %cst_12 = arith.constant dense<0.000000e+00> : vector<2x64xf32>
    %11 = tpu.matmul %10, %1, %cst_12 {dimension_numbers = #tpu.dot_dimension_numbers<[1], [0], [0], [1], [0, 0, 1, 1], [], []>} : vector<2x520xf32>, vector<520x64xf32>, vector<2x64xf32> -> vector<2x64xf32>
    %12 = vector.broadcast %2 : vector<1x64xf32> to vector<2x64xf32>
    %13 = arith.addf %11, %12 : vector<2x64xf32>
    %cst_13 = arith.constant 0.000000e+00 : f32
    %14 = vector.broadcast %cst_13 : f32 to vector<2x64xf32>
    %15 = arith.cmpf oge, %13, %14 : vector<2x64xf32>
    %cst_14 = arith.constant 2.000000e-01 : f32
    %16 = vector.broadcast %cst_14 : f32 to vector<2x64xf32>
    %17 = arith.mulf %16, %13 : vector<2x64xf32>
    %18 = arith.select %15, %13, %17 : vector<2x64xi1>, vector<2x64xf32>
    %cst_15 = arith.constant dense<0.000000e+00> : vector<2x32xf32>
    %19 = tpu.matmul %18, %3, %cst_15 {dimension_numbers = #tpu.dot_dimension_numbers<[1], [0], [0], [1], [0, 0, 1, 1], [], []>} : vector<2x64xf32>, vector<64x32xf32>, vector<2x32xf32> -> vector<2x32xf32>
    %20 = vector.broadcast %4 : vector<1x32xf32> to vector<2x32xf32>
    %21 = arith.addf %19, %20 : vector<2x32xf32>
    %cst_16 = arith.constant dense<0.000000e+00> : vector<2x32xf32>
    %22 = tpu.matmul %0, %5, %cst_16 {dimension_numbers = #tpu.dot_dimension_numbers<[1], [0], [0], [1], [0, 0, 1, 1], [], []>} : vector<2x520xf32>, vector<520x32xf32>, vector<2x32xf32> -> vector<2x32xf32>
    %23 = arith.addf %22, %21 : vector<2x32xf32>
    %c0_17 = arith.constant 0 : index
    %c0_18 = arith.constant 0 : index
    %24 = vector.load %arg7[%c0_17, %c0_18] : memref<32x32xf32, #tpu.memory_space<vmem>>, vector<32x32xf32>
    %c0_19 = arith.constant 0 : index
    %c0_20 = arith.constant 0 : index
    %25 = vector.load %arg8[%c0_19, %c0_20] : memref<1x32xf32, #tpu.memory_space<vmem>>, vector<1x32xf32>
    %c0_21 = arith.constant 0 : index
    %c0_22 = arith.constant 0 : index
    %26 = vector.load %arg9[%c0_21, %c0_22] : memref<32x32xf32, #tpu.memory_space<vmem>>, vector<32x32xf32>
    %c0_23 = arith.constant 0 : index
    %c0_24 = arith.constant 0 : index
    %27 = vector.load %arg10[%c0_23, %c0_24] : memref<1x32xf32, #tpu.memory_space<vmem>>, vector<1x32xf32>
    %cst_25 = arith.constant 0.000000e+00 : f32
    %28 = vector.broadcast %cst_25 : f32 to vector<2x32xf32>
    %29 = arith.cmpf oge, %23, %28 : vector<2x32xf32>
    %cst_26 = arith.constant 2.000000e-01 : f32
    %30 = vector.broadcast %cst_26 : f32 to vector<2x32xf32>
    %31 = arith.mulf %30, %23 : vector<2x32xf32>
    %32 = arith.select %29, %23, %31 : vector<2x32xi1>, vector<2x32xf32>
    %cst_27 = arith.constant dense<0.000000e+00> : vector<2x32xf32>
    %33 = tpu.matmul %32, %24, %cst_27 {dimension_numbers = #tpu.dot_dimension_numbers<[1], [0], [0], [1], [0, 0, 1, 1], [], []>} : vector<2x32xf32>, vector<32x32xf32>, vector<2x32xf32> -> vector<2x32xf32>
    %34 = vector.broadcast %25 : vector<1x32xf32> to vector<2x32xf32>
    %35 = arith.addf %33, %34 : vector<2x32xf32>
    %cst_28 = arith.constant 0.000000e+00 : f32
    %36 = vector.broadcast %cst_28 : f32 to vector<2x32xf32>
    %37 = arith.cmpf oge, %35, %36 : vector<2x32xf32>
    %cst_29 = arith.constant 2.000000e-01 : f32
    %38 = vector.broadcast %cst_29 : f32 to vector<2x32xf32>
    %39 = arith.mulf %38, %35 : vector<2x32xf32>
    %40 = arith.select %37, %35, %39 : vector<2x32xi1>, vector<2x32xf32>
    %cst_30 = arith.constant dense<0.000000e+00> : vector<2x32xf32>
    %41 = tpu.matmul %40, %26, %cst_30 {dimension_numbers = #tpu.dot_dimension_numbers<[1], [0], [0], [1], [0, 0, 1, 1], [], []>} : vector<2x32xf32>, vector<32x32xf32>, vector<2x32xf32> -> vector<2x32xf32>
    %42 = vector.broadcast %27 : vector<1x32xf32> to vector<2x32xf32>
    %43 = arith.addf %41, %42 : vector<2x32xf32>
    %44 = arith.addf %23, %43 : vector<2x32xf32>
    %c0_31 = arith.constant 0 : index
    %c0_32 = arith.constant 0 : index
    %45 = vector.load %arg11[%c0_31, %c0_32] : memref<32x32xf32, #tpu.memory_space<vmem>>, vector<32x32xf32>
    %cst_33 = arith.constant dense<0.000000e+00> : vector<2x32xf32>
    %46 = tpu.matmul %44, %45, %cst_33 {dimension_numbers = #tpu.dot_dimension_numbers<[1], [0], [0], [1], [0, 0, 1, 1], [], []>} : vector<2x32xf32>, vector<32x32xf32>, vector<2x32xf32> -> vector<2x32xf32>
    %c0_34 = arith.constant 0 : index
    %c0_35 = arith.constant 0 : index
    %47 = vector.load %arg12[%c0_34, %c0_35] : memref<1x32xf32, #tpu.memory_space<vmem>>, vector<1x32xf32>
    %48 = vector.broadcast %47 : vector<1x32xf32> to vector<2x32xf32>
    %49 = arith.addf %46, %48 : vector<2x32xf32>
    %c0_36 = arith.constant 0 : index
    %c0_37 = arith.constant 0 : index
    %50 = vector.load %arg13[%c0_36, %c0_37] : memref<2x32xf32, #tpu.memory_space<vmem>>, vector<2x32xf32>
    tpu.vector_store %arg13[%c0_36, %c0_37], %49 {strides = array<i32>} : memref<2x32xf32, #tpu.memory_space<vmem>>, vector<2x32xf32>,
    return
  }
  func.func @transform_0(%arg0: i32) -> (i32, i32) {
    %c0_i32 = arith.constant 0 : i32
    %c0_i32_0 = arith.constant 0 : i32
    %c0_i32_1 = arith.constant 0 : i32
    return %c0_i32, %c0_i32_0 : i32, i32
  }
  func.func @transform_1(%arg0: i32) -> (i32, i32) {
    %c0_i32 = arith.constant 0 : i32
    %c0_i32_0 = arith.constant 0 : i32
    %c0_i32_1 = arith.constant 0 : i32
    return %c0_i32, %c0_i32_0 : i32, i32
  }
  func.func @transform_2(%arg0: i32) -> (i32, i32) {
    %c0_i32 = arith.constant 0 : i32
    %c0_i32_0 = arith.constant 0 : i32
    %c0_i32_1 = arith.constant 0 : i32
    return %c0_i32, %c0_i32_0 : i32, i32
  }
  func.func @transform_3(%arg0: i32) -> (i32, i32) {
    %c0_i32 = arith.constant 0 : i32
    %c0_i32_0 = arith.constant 0 : i32
    %c0_i32_1 = arith.constant 0 : i32
    return %c0_i32, %c0_i32_0 : i32, i32
  }
  func.func @transform_4(%arg0: i32) -> (i32, i32) {
    %c0_i32 = arith.constant 0 : i32
    %c0_i32_0 = arith.constant 0 : i32
    %c0_i32_1 = arith.constant 0 : i32
    return %c0_i32, %c0_i32_0 : i32, i32
  }
  func.func @transform_5(%arg0: i32) -> (i32, i32) {
    %c0_i32 = arith.constant 0 : i32
    %c0_i32_0 = arith.constant 0 : i32
    %c0_i32_1 = arith.constant 0 : i32
    return %c0_i32, %c0_i32_0 : i32, i32
  }
  func.func @transform_6(%arg0: i32) -> (i32, i32) {
    %c0_i32 = arith.constant 0 : i32
    %c0_i32_0 = arith.constant 0 : i32
    %c0_i32_1 = arith.constant 0 : i32
    return %c0_i32, %c0_i32_0 : i32, i32
  }
  func.func @transform_7(%arg0: i32) -> (i32, i32) {
    %c0_i32 = arith.constant 0 : i32
    %c0_i32_0 = arith.constant 0 : i32
    %c0_i32_1 = arith.constant 0 : i32
    return %c0_i32, %c0_i32_0 : i32, i32
  }
  func.func @transform_8(%arg0: i32) -> (i32, i32) {
    %c0_i32 = arith.constant 0 : i32
    %c0_i32_0 = arith.constant 0 : i32
    %c0_i32_1 = arith.constant 0 : i32
    return %c0_i32, %c0_i32_0 : i32, i32
  }
  func.func @transform_9(%arg0: i32) -> (i32, i32) {
    %c0_i32 = arith.constant 0 : i32
    %c0_i32_0 = arith.constant 0 : i32
    %c0_i32_1 = arith.constant 0 : i32
    return %c0_i32, %c0_i32_0 : i32, i32
  }
  func.func @transform_10(%arg0: i32) -> (i32, i32) {
    %c0_i32 = arith.constant 0 : i32
    %c0_i32_0 = arith.constant 0 : i32
    %c0_i32_1 = arith.constant 0 : i32
    return %c0_i32, %c0_i32_0 : i32, i32
  }
  func.func @transform_11(%arg0: i32) -> (i32, i32) {
    %c0_i32 = arith.constant 0 : i32
    %c0_i32_0 = arith.constant 0 : i32
    %c0_i32_1 = arith.constant 0 : i32
    return %c0_i32, %c0_i32_0 : i32, i32
  }
  func.func @transform_12(%arg0: i32) -> (i32, i32) {
    %c0_i32 = arith.constant 0 : i32
    %c0_i32_0 = arith.constant 0 : i32
    %c0_i32_1 = arith.constant 0 : i32
    return %c0_i32, %c0_i32_0 : i32, i32
  }
}

</mosaic_0001>

<bundles_post_ra>
// kernel: tile.14
= control target key start
LH: loop header
LB: loop body
LE: loop exit
PB: predicated region body
PF: predicated region fallthrough
CT: control target
= control target key end

     0   :  { %s8_s6 = smov 3  ;;  %s11_s7 = smov 12  ;;  %vm13_vm0 = vcmask 1043458   ;;  %vm18_vm1 = vcmask 1045508   ;;  %vm23_vm2 = vcmask 1047558   ;;  %vm3_vm3 = vcmask 261120   ;;  %s207_s0 = inlined_call_operand.vmem [shape: f32[2,16,32], index: 0, kind: input, shape index: {}]   ;;  %s208_s1 = inlined_call_operand.vmem [shape: f32[2,512], index: 1, kind: output, shape index: {}]  }
   0x1   :  { %v116_v0 = vld [vmem:[%s207_s0 + $0x3] ss:$16 sm:%s8_s6]   ;;  %v117_v1 = vld [vmem:[%s207_s0 - $0x19] ss:$16 sm:%s11_s7]   ;;  %s16_s12 = smov 48  ;;  %s21_s13 = smov 192 }
   0x2   :  { %v14_v2 = vsel %vm13_vm0, %v117_v1, %v116_v0  ;;  %v118_v3 = vld [vmem:[%s207_s0 - $0x35] ss:$16 sm:%s16_s12]   ;;  %v119_v4 = vld [vmem:[%s207_s0 - $0x51] ss:$16 sm:%s21_s13]   ;;  %s36_s18 = smov 3  ;;  %s39_s21 = smov 12 }
   0x3   :  { %v19_v5 = vsel %vm18_vm1, %v118_v3, %v14_v2  ;;  %v120_v6 = vld [vmem:[%s207_s0 + $0x2] ss:$16 sm:%s36_s18]   ;;  %s44_s22 = smov 48  ;;  %v2_v7 = vld [vmem:[%s207_s0] ss:$4 sm:$0xff]   ;;  %s49_s29 = smov 192 }
   0x4   :  { %v24_v8 = vsel %vm23_vm2, %v119_v4, %v19_v5  ;;  %v121_v9 = vld [vmem:[%s207_s0 - $0x1a] ss:$16 sm:%s39_s21]   ;;  %v122_v10 = vld [vmem:[%s207_s0 - $0x36] ss:$16 sm:%s44_s22]   ;;  %s134_s30 = smov 96   ;;  %s64_s4 = smov 3 }
   0x5   :  { %25 = vrot.lane.b32.xlu0 %v24_v8, %s134_s30  ;;  %v42_v11 = vsel %vm13_vm0, %v121_v9, %v120_v6  ;;  %v123_v12 = vld [vmem:[%s207_s0 - $0x52] ss:$16 sm:%s49_s29]   ;;  %s67_s5 = smov 12  ;;  %s72_s10 = smov 48  ;;  %vm27_vm4 = vcmask 1048320   ;;  %vm55_vm5 = vcmask 785920  }
   0x6   :  { %v47_v13 = vsel %vm18_vm1, %v122_v10, %v42_v11  ;;  %v124_v14 = vld [vmem:[%s207_s0 + $0x1] ss:$16 sm:%s64_s4]   ;;  %v125_v15 = vld [vmem:[%s207_s0 - $0x1b] ss:$16 sm:%s67_s5]   ;;  %s77_s11 = smov 192  ;;  %s136_s16 = smov 32  }
   0x7   :  { %4 = vst.msk [vmem:[#allocation0] ss:$8 sm:$0xf] %vm3_vm3, %v2_v7   ;;  %6 = vst.msk [vmem:[#allocation0 - $0x1f] ss:$8 sm:$0xf0] %vm3_vm3, %v2_v7   ;;  %v52_v16 = vsel %vm23_vm2, %v123_v12, %v47_v13  ;;  %v70_v17 = vsel %vm13_vm0, %v125_v15, %v124_v14 }
   0x8   :  { %v126_v18 = vld [vmem:[%s207_s0 - $0x37] ss:$16 sm:%s72_s10]   ;;  %v127_v19 = vld [vmem:[%s207_s0 - $0x53] ss:$16 sm:%s77_s11]   ;;  %s135_s0 = smov 64   ;;  %vm83_vm6 = vcmask 523520  }
   0x9   :  { %v75_v20 = vsel %vm18_vm1, %v126_v18, %v70_v17  ;;  %53 = vrot.lane.b32.xlu0 %v52_v16, %s135_s0 }
   0xa   :  { %v80_v21 = vsel %vm23_vm2, %v127_v19, %v75_v20 }
   0xb   :  { %81 = vrot.lane.b32.xlu1 %v80_v21, %s136_s16 }
  0x77   :  { %v26_v22 = vpop.permute.xlu0 %25  }
  0x78   :  { %28 = vst.msk [vmem:[#allocation0] sm:$0x3] %vm27_vm4, %v26_v22   ;;  %30 = vst.msk [vmem:[#allocation0 + $0x6] sm:$0xc] %vm27_vm4, %v26_v22  }
  0x79   :  { %32 = vst.msk [vmem:[#allocation0 + $0xc] sm:$0x30] %vm27_vm4, %v26_v22   ;;  %34 = vst.msk [vmem:[#allocation0 + $0x12] sm:$0xc0] %vm27_vm4, %v26_v22  }
  0x7b   :  { %v54_v23 = vpop.permute.xlu0 %53  }
  0x7c   :  { %56 = vst.msk [vmem:[#allocation0] sm:$0x3] %vm55_vm5, %v54_v23   ;;  %58 = vst.msk [vmem:[#allocation0 + $0x6] sm:$0xc] %vm55_vm5, %v54_v23  }
  0x7d   :  { %60 = vst.msk [vmem:[#allocation0 + $0xc] sm:$0x30] %vm55_vm5, %v54_v23   ;;  %62 = vst.msk [vmem:[#allocation0 + $0x12] sm:$0xc0] %vm55_vm5, %v54_v23   ;;  %v82_v24 = vpop.permute.xlu1 %81  }
  0x7e   :  { %84 = vst.msk [vmem:[#allocation0] sm:$0x3] %vm83_vm6, %v82_v24   ;;  %86 = vst.msk [vmem:[#allocation0 + $0x6] sm:$0xc] %vm83_vm6, %v82_v24  }
  0x7f   :  { %88 = vst.msk [vmem:[#allocation0 + $0xc] sm:$0x30] %vm83_vm6, %v82_v24   ;;  %90 = vst.msk [vmem:[#allocation0 + $0x12] sm:$0xc0] %vm83_vm6, %v82_v24  }
  0x85   :  { %v94_v25 = vld [vmem:[#allocation0] sm:$0x3]  ;;  %v98_v26 = vld [vmem:[#allocation0 + $0x8] sm:$0x3] }
  0x86   :  { %v103_v27 = vld [vmem:[#allocation0 + $0x10] sm:$0x3]  ;;  %96 = vst [vmem:[%s208_s1] sm:$0x3] %v94_v25  ;;  %128 = vst [vmem:[%s208_s1 + $0x2] sm:$0x3] %v98_v26 }
  0x87   :  { %129 = vst [vmem:[%s208_s1 + $0x4] sm:$0x3] %v103_v27  ;;  %v109_v28 = vld [vmem:[#allocation0 + $0x18] sm:$0x3] }
  0x88   :  { %130 = vst [vmem:[%s208_s1 + $0x6] sm:$0x3] %v109_v28 }

// kernel: tile.19
= control target key start
LH: loop header
LB: loop body
LE: loop exit
PB: predicated region body
PF: predicated region fallthrough
CT: control target
= control target key end

     0   :  { %s7_s6 = smov 3  ;;  %s21_s9 = smov 3  ;;  %vm4_vm0 = vcmask 64512   ;;  %vm11_vm1 = vcmask 1048512   ;;  %vm18_vm2 = vcmask 982912   ;;  %vm25_vm3 = vcmask 917312   ;;  %s223_s0 = inlined_call_operand.vmem [shape: f32[2,16,8], index: 0, kind: input, shape index: {}]   ;;  %s224_s1 = inlined_call_operand.vmem [shape: f32[2,128], index: 1, kind: output, shape index: {}]  }
   0x1   :  { %v117_v0 = vld [vmem:[%s223_s0 + $0xf] ss:$16 sm:%s7_s6]   ;;  %s147_s10 = smov 120   ;;  %v119_v1 = vld [vmem:[%s223_s0 + $0xd] ss:$16 sm:%s21_s9]   ;;  %s14_s13 = smov 3 }
   0x2   :  { %9 = vrot.lane.b32.xlu0 %v117_v0, %s147_s10  ;;  %s148_s14 = smov 104   ;;  %v118_v2 = vld [vmem:[%s223_s0 + $0xe] ss:$16 sm:%s14_s13]   ;;  %s28_s17 = smov 3  ;;  %vm32_vm4 = vcmask 851712   ;;  %vm39_vm5 = vcmask 786112  }
   0x3   :  { %23 = vrot.lane.b32.xlu1 %v119_v1, %s148_s14  ;;  %v120_v3 = vld [vmem:[%s223_s0 + $0xc] ss:$16 sm:%s28_s17]   ;;  %s35_s20 = smov 3  ;;  %s42_s21 = smov 3  ;;  %vm46_vm6 = vcmask 720512   ;;  %vm53_vm7 = vcmask 654912  }
   0x4   :  { %s149_s22 = smov 112   ;;  %s150_s23 = smov 96   ;;  %v121_v4 = vld [vmem:[%s223_s0 + $0xb] ss:$16 sm:%s35_s20]   ;;  %v122_v5 = vld [vmem:[%s223_s0 + $0xa] ss:$16 sm:%s42_s21]  }
   0x5   :  { %s49_s28 = smov 3  ;;  %s56_s29 = smov 3  ;;  %vm60_vm8 = vcmask 589312   ;;  %vm67_vm9 = vcmask 523712   ;;  %vm74_vm10 = vcmask 458112   ;;  %vm81_vm11 = vcmask 392512  }
   0x6   :  { %16 = vrot.lane.b32.xlu0 %v118_v2, %s149_s22  ;;  %s151_s30 = smov 88   ;;  %s152_s2 = smov 80   ;;  %v123_v6 = vld [vmem:[%s223_s0 + $0x9] ss:$16 sm:%s49_s28]   ;;  %vm88_vm12 = vcmask 326912   ;;  %vm95_vm13 = vcmask 261312  }
   0x7   :  { %30 = vrot.lane.b32.xlu1 %v120_v3, %s150_s23  ;;  %v124_v7 = vld [vmem:[%s223_s0 + $0x8] ss:$16 sm:%s56_s29]   ;;  %s63_s7 = smov 3  ;;  %s70_s8 = smov 3  ;;  %vm102_vm14 = vcmask 195712   ;;  %vm109_vm15 = vcmask 130112  }
   0x8   :  { %s153_s9 = smov 72   ;;  %s154_s10 = smov 64   ;;  %v125_v8 = vld [vmem:[%s223_s0 + $0x7] ss:$16 sm:%s63_s7]   ;;  %v126_v9 = vld [vmem:[%s223_s0 + $0x6] ss:$16 sm:%s70_s8]  }
   0x9   :  { %s2_s13 = smov 3  ;;  %s77_s16 = smov 3 }
   0xa   :  { %37 = vrot.lane.b32.xlu0 %v121_v4, %s151_s30  ;;  %v3_v10 = vld [vmem:[%s223_s0] ss:$16 sm:%s2_s13]   ;;  %s84_s19 = smov 3  ;;  %s155_s20 = smov 56  }
   0xb   :  { %44 = vrot.lane.b32.xlu1 %v122_v5, %s152_s2  ;;  %5 = vst.msk [vmem:[#allocation0] sm:$0x3] %vm4_vm0, %v3_v10   ;;  %s156_s21 = smov 48   ;;  %v127_v11 = vld [vmem:[%s223_s0 + $0x5] ss:$16 sm:%s77_s16]   ;;  %s91_s26 = smov 3 }
   0xc   :  { %v128_v12 = vld [vmem:[%s223_s0 + $0x4] ss:$16 sm:%s84_s19]   ;;  %s98_s27 = smov 3  ;;  %s157_s28 = smov 40   ;;  %v129_v13 = vld [vmem:[%s223_s0 + $0x3] ss:$16 sm:%s91_s26]  }
   0xd   :  { %s158_s29 = smov 32   ;;  %v130_v14 = vld [vmem:[%s223_s0 + $0x2] ss:$16 sm:%s98_s27]   ;;  %s105_s5 = smov 3 }
   0xe   :  { %51 = vrot.lane.b32.xlu0 %v123_v6, %s153_s9  ;;  %s159_s6 = smov 24   ;;  %s160_s7 = smov 16   ;;  %v131_v15 = vld [vmem:[%s223_s0 + $0x1] ss:$16 sm:%s105_s5]  }
   0xf   :  { %58 = vrot.lane.b32.xlu1 %v124_v7, %s154_s10  ;;  %s161_s0 = smov 8  }
  0x12   :  { %65 = vrot.lane.b32.xlu0 %v125_v8, %s155_s20 }
  0x13   :  { %72 = vrot.lane.b32.xlu1 %v126_v9, %s156_s21 }
  0x16   :  { %79 = vrot.lane.b32.xlu0 %v127_v11, %s157_s28 }
  0x17   :  { %86 = vrot.lane.b32.xlu1 %v128_v12, %s158_s29 }
  0x1a   :  { %93 = vrot.lane.b32.xlu0 %v129_v13, %s159_s6 }
  0x1b   :  { %100 = vrot.lane.b32.xlu1 %v130_v14, %s160_s7 }
  0x1e   :  { %107 = vrot.lane.b32.xlu0 %v131_v15, %s161_s0 }
  0x74   :  { %v10_v16 = vpop.permute.xlu0 %9  }
  0x75   :  { %12 = vst.msk [vmem:[#allocation0] sm:$0x3] %vm11_vm1, %v10_v16   ;;  %v24_v17 = vpop.permute.xlu1 %23  }
  0x78   :  { %v17_v18 = vpop.permute.xlu0 %16  }
  0x79   :  { %19 = vst.msk [vmem:[#allocation0] sm:$0x3] %vm18_vm2, %v17_v18   ;;  %v31_v19 = vpop.permute.xlu1 %30  }
  0x7a   :  { %26 = vst.msk [vmem:[#allocation0] sm:$0x3] %vm25_vm3, %v24_v17  }
  0x7b   :  { %33 = vst.msk [vmem:[#allocation0] sm:$0x3] %vm32_vm4, %v31_v19  }
  0x7c   :  { %v38_v20 = vpop.permute.xlu0 %37  }
  0x7d   :  { %40 = vst.msk [vmem:[#allocation0] sm:$0x3] %vm39_vm5, %v38_v20   ;;  %v45_v21 = vpop.permute.xlu1 %44  }
  0x7e   :  { %47 = vst.msk [vmem:[#allocation0] sm:$0x3] %vm46_vm6, %v45_v21  }
  0x80   :  { %v52_v22 = vpop.permute.xlu0 %51  }
  0x81   :  { %54 = vst.msk [vmem:[#allocation0] sm:$0x3] %vm53_vm7, %v52_v22   ;;  %v59_v23 = vpop.permute.xlu1 %58  }
  0x82   :  { %61 = vst.msk [vmem:[#allocation0] sm:$0x3] %vm60_vm8, %v59_v23  }
  0x84   :  { %v66_v24 = vpop.permute.xlu0 %65  }
  0x85   :  { %68 = vst.msk [vmem:[#allocation0] sm:$0x3] %vm67_vm9, %v66_v24   ;;  %v73_v25 = vpop.permute.xlu1 %72  }
  0x86   :  { %75 = vst.msk [vmem:[#allocation0] sm:$0x3] %vm74_vm10, %v73_v25  }
  0x88   :  { %v80_v26 = vpop.permute.xlu0 %79  }
  0x89   :  { %82 = vst.msk [vmem:[#allocation0] sm:$0x3] %vm81_vm11, %v80_v26   ;;  %v87_v27 = vpop.permute.xlu1 %86  }
  0x8a   :  { %89 = vst.msk [vmem:[#allocation0] sm:$0x3] %vm88_vm12, %v87_v27  }
  0x8c   :  { %v94_v28 = vpop.permute.xlu0 %93  }
  0x8d   :  { %96 = vst.msk [vmem:[#allocation0] sm:$0x3] %vm95_vm13, %v94_v28   ;;  %v101_v29 = vpop.permute.xlu1 %100  }
  0x8e   :  { %103 = vst.msk [vmem:[#allocation0] sm:$0x3] %vm102_vm14, %v101_v29  }
  0x90   :  { %v108_v30 = vpop.permute.xlu0 %107  }
  0x91   :  { %110 = vst.msk [vmem:[#allocation0] sm:$0x3] %vm109_vm15, %v108_v30  }
  0x98   :  { %v114_v31 = vld [vmem:[#allocation0] sm:$0x3] }
  0x99   :  { %116 = vst [vmem:[%s224_s1] sm:$0x3] %v114_v31 }

// kernel: labs_injected_encoder_forward.5
= control target key start
LH: loop header
LB: loop body
LE: loop exit
PB: predicated region body
PF: predicated region fallthrough
CT: control target
= control target key end

     0   :  { %s2334_s0 = inlined_call_operand.vmem [shape: f32[2,10], index: 0, kind: input, shape index: {}]   ;;  %s2335_s1 = inlined_call_operand.hbm [shape: f32[10,64], index: 1, kind: input, shape index: {}]   ;;  %s2336_s2 = inlined_call_operand.vmem [shape: f32[1,64], index: 2, kind: input, shape index: {}]   ;;  %s2337_s3 = inlined_call_operand.vmem [shape: f32[64,32], index: 3, kind: input, shape index: {}]   ;;  %s2338_s4 = inlined_call_operand.hbm [shape: f32[1,32], index: 4, kind: input, shape index: {}]   ;;  %s2339_s5 = inlined_call_operand.hbm [shape: f32[10,32], index: 5, kind: input, shape index: {}]   ;;  %s2340_s6 = inlined_call_operand.hbm [shape: f32[32,32], index: 6, kind: input, shape index: {}]   ;;  %s2341_s7 = inlined_call_operand.hbm [shape: f32[1,32], index: 7, kind: input, shape index: {}]   ;;  %s2342_s8 = inlined_call_operand.hbm [shape: f32[32,32], index: 8, kind: input, shape index: {}]   ;;  %s2343_s9 = inlined_call_operand.hbm [shape: f32[1,32], index: 9, kind: input, shape index: {}]   ;;  %s2344_s10 = inlined_call_operand.vmem [shape: f32[32,32], index: 10, kind: input, shape index: {}]   ;;  %s2345_s11 = inlined_call_operand.vmem [shape: f32[1,32], index: 11, kind: input, shape index: {}]   ;;  %s2346_s12 = inlined_call_operand.hbm [shape: f32[32,32], index: 12, kind: input, shape index: {}]   ;;  %s2347_s13 = inlined_call_operand.vmem [shape: f32[1,32], index: 13, kind: input, shape index: {}]   ;;  %s2348_s14 = inlined_call_operand.hbm [shape: f32[32,64], index: 14, kind: input, shape index: {}]   ;;  %s2349_s15 = inlined_call_operand.hbm [shape: f32[1,64], index: 15, kind: input, shape index: {}]   ;;  %s2350_s16 = inlined_call_operand.vmem [shape: f32[64,8], index: 16, kind: input, shape index: {}]   ;;  %s2351_s17 = inlined_call_operand.hbm [shape: f32[1,8], index: 17, kind: input, shape index: {}]   ;;  %s2352_s18 = inlined_call_operand.vmem [shape: f32[32,8], index: 18, kind: input, shape index: {}]   ;;  %s2353_s19 = inlined_call_operand.hbm [shape: f32[8,32], index: 19, kind: input, shape index: {}]   ;;  %s2354_s20 = inlined_call_operand.hbm [shape: f32[8,8], index: 20, kind: input, shape index: {}]   ;;  %s2355_s21 = inlined_call_operand.vmem [shape: f32[2,32], index: 21, kind: output, shape index: {0}]   ;;  %s2356_s22 = inlined_call_operand.vmem [shape: f32[2,8], index: 22, kind: output, shape index: {1}]  }
   0x1   :  { %2362 = sst [smem:[#allocation29_spill]] %s2334_s0 }
   0x2   :  { %2363 = sst [smem:[#allocation30_spill]] %s2335_s1 }
   0x3   :  { %2364 = sst [smem:[#allocation31_spill]] %s2336_s2 }
   0x4   :  { %2365 = sst [smem:[#allocation32_spill]] %s2337_s3 }
   0x5   :  { %2366 = sst [smem:[#allocation33_spill]] %s2338_s4 }
   0x6   :  { %2367 = sst [smem:[#allocation34_spill]] %s2339_s5 }
   0x7   :  { %2368 = sst [smem:[#allocation35_spill]] %s2340_s6 }
   0x8   :  { %2369 = sst [smem:[#allocation36_spill]] %s2356_s22 }
   0x9   :  { %28 = vsyncpa [#allocation3], 0 }
   0xa   :  { %29 = vsyncpa [#allocation5], 0 }
   0xb   :  { %30 = vsyncpa [#allocation8], 0 }
   0xc   :  { %31 = vsyncpa [#allocation11], 0 }
   0xd   :  { %32 = vsyncpa [#allocation14], 0 }
   0xe   :  { %33 = vsyncpa [#allocation17], 0 }
   0xf   :  { %34 = vsyncpa [#allocation20], 0  ;;  %s1870_s3 = smov [#allocation4]   ;;  %s2370_s4 = sld [smem:[#allocation33_spill]] }
  0x10   :  { %s59_s28 = sshll.u32 %s1870_s3, 4  ;;  %s60_s28 = int_to_ptr.vmem [resolvable:$true] %s59_s28 }
  0x15   :  { %s1570_s0 = scalar_lea.hbm %s2370_s4, 16 }
  0x16   :  { %p1571_p0 = scmp.ne.s32.totalorder %s2370_s4, %s1570_s0  ;;  %p1574_p1 = scmp.lt.u32.totalorder %s1570_s0, %s2370_s4 }
  0x18   :  { %p1576_p2 = pnand %p1574_p1, %p1571_p0 }
  0x1a   :  { %1579 = shalt.err (!%p1576_p2)
}
  0x1b   :  { %s1580_s6 = scalar_lea.vmem %s60_s28, 16  ;;  %s1584_s25 = scalar_lea.vmem %s60_s28, 32 }
  0x1c   :  { %p1581_p3 = scmp.ne.s32.totalorder %s60_s28, %s1580_s6  ;;  %p1585_p4 = scmp.lt.s32.totalorder %s60_s28, %s60_s28 }
  0x1d   :  { %p1586_p5 = scmp.lt.s32.totalorder %s1584_s25, %s1580_s6 }
  0x1f   :  { %p1587_p6 = por %p1586_p5, %p1585_p4 }
  0x21   :  { %p1588_p7 = pnand %p1587_p6, %p1581_p3 }
  0x23   :  { %1591 = shalt.err (!%p1588_p7)
}
  0x24   :  { %62 = dma.hbm_to_vmem [thread:$0]  %s2370_s4, 16, %s60_s28, [#allocation5]  }
  0x25   :  { %s1871_s27 = smov [#allocation7]   ;;  %s1872_s29 = smov [#allocation10]  }
  0x26   :  { %s80_s3 = sshll.u32 %s1871_s27, 4  ;;  %s102_s30 = sshll.u32 %s1872_s29, 4  ;;  %s81_s3 = int_to_ptr.vmem [resolvable:$true] %s80_s3  ;;  %s103_s30 = int_to_ptr.vmem [resolvable:$true] %s102_s30 }
  0x27   :  { %s2371_s1 = sld [smem:[#allocation35_spill]] }
  0x2d   :  { %s1592_s5 = scalar_lea.hbm %s2371_s1, 512 }
  0x2e   :  { %p1593_p8 = scmp.ne.s32.totalorder %s2371_s1, %s1592_s5  ;;  %p1596_p9 = scmp.lt.u32.totalorder %s1592_s5, %s2371_s1 }
  0x30   :  { %p1598_p10 = pnand %p1596_p9, %p1593_p8 }
  0x32   :  { %1601 = shalt.err (!%p1598_p10)
}
  0x33   :  { %s1602_s28 = scalar_lea.vmem %s81_s3, 512  ;;  %p1607_p12 = scmp.lt.s32.totalorder %s81_s3, %s81_s3 }
  0x34   :  { %p1603_p11 = scmp.ne.s32.totalorder %s81_s3, %s1602_s28  ;;  %p1608_p13 = scmp.lt.s32.totalorder %s1602_s28, %s1602_s28 }
  0x36   :  { %p1609_p0 = por %p1608_p13, %p1607_p12 }
  0x38   :  { %p1610_p1 = pnand %p1609_p0, %p1603_p11 }
  0x3a   :  { %1613 = shalt.err (!%p1610_p1)
}
  0x3b   :  { %s1873_s4 = smov 128   ;;  %s1874_s26 = smov 8  }
  0x3c   :  { %86 = dma.hbm_to_vmem [thread:$0]  %s2371_s1, 512, %s81_s3, [#allocation8], %s1873_s4, %s1873_s4, %s1874_s26  }
  0x3d   :  { %s1614_s0 = scalar_lea.hbm %s2342_s8, 512 }
  0x3e   :  { %p1615_p2 = scmp.ne.s32.totalorder %s2342_s8, %s1614_s0  ;;  %p1618_p3 = scmp.lt.u32.totalorder %s1614_s0, %s2342_s8 }
  0x40   :  { %p1620_p4 = pnand %p1618_p3, %p1615_p2 }
  0x42   :  { %1623 = shalt.err (!%p1620_p4)
}
  0x43   :  { %s1624_s25 = scalar_lea.vmem %s103_s30, 512  ;;  %p1629_p6 = scmp.lt.s32.totalorder %s103_s30, %s103_s30 }
  0x44   :  { %p1625_p5 = scmp.ne.s32.totalorder %s103_s30, %s1624_s25  ;;  %p1630_p7 = scmp.lt.s32.totalorder %s1624_s25, %s1624_s25 }
  0x46   :  { %p1631_p8 = por %p1630_p7, %p1629_p6 }
  0x48   :  { %p1632_p9 = pnand %p1631_p8, %p1625_p5 }
  0x4a   :  { %1635 = shalt.err (!%p1632_p9)
}
  0x4b   :  { %108 = dma.hbm_to_vmem [thread:$0]  %s2342_s8, 512, %s103_s30, [#allocation11], %s1873_s4, %s1873_s4, %s1874_s26  }
  0x4c   :  { %s1875_s28 = smov [#allocation13]   ;;  %s1876_s2 = smov [#allocation16]  }
  0x4d   :  { %s128_s22 = sshll.u32 %s1875_s28, 4  ;;  %s155_s27 = sshll.u32 %s1876_s2, 4  ;;  %s129_s22 = int_to_ptr.vmem [resolvable:$true] %s128_s22  ;;  %s156_s27 = int_to_ptr.vmem [resolvable:$true] %s155_s27 }
  0x4e   :  { %s1636_s23 = scalar_lea.hbm %s2346_s12, 512 }
  0x4f   :  { %p1637_p10 = scmp.ne.s32.totalorder %s2346_s12, %s1636_s23  ;;  %p1640_p11 = scmp.lt.u32.totalorder %s1636_s23, %s2346_s12 }
  0x51   :  { %p1642_p12 = pnand %p1640_p11, %p1637_p10 }
  0x53   :  { %1645 = shalt.err (!%p1642_p12)
}
  0x54   :  { %s1646_s8 = scalar_lea.vmem %s129_s22, 512  ;;  %p1651_p0 = scmp.lt.s32.totalorder %s129_s22, %s129_s22 }
  0x55   :  { %p1647_p13 = scmp.ne.s32.totalorder %s129_s22, %s1646_s8  ;;  %p1652_p1 = scmp.lt.s32.totalorder %s1646_s8, %s1646_s8 }
  0x57   :  { %p1653_p2 = por %p1652_p1, %p1651_p0 }
  0x59   :  { %p1654_p3 = pnand %p1653_p2, %p1647_p13 }
  0x5b   :  { %1657 = shalt.err (!%p1654_p3)
}
  0x5c   :  { %134 = dma.hbm_to_vmem [thread:$0]  %s2346_s12, 512, %s129_s22, [#allocation14], %s1873_s4, %s1873_s4, %s1874_s26  }
  0x5d   :  { %s1658_s2 = scalar_lea.hbm %s2349_s15, 16 }
  0x5e   :  { %p1659_p4 = scmp.ne.s32.totalorder %s2349_s15, %s1658_s2  ;;  %p1662_p5 = scmp.lt.u32.totalorder %s1658_s2, %s2349_s15 }
  0x60   :  { %p1664_p6 = pnand %p1662_p5, %p1659_p4 }
  0x62   :  { %1667 = shalt.err (!%p1664_p6)
}
  0x63   :  { %s1668_s24 = scalar_lea.vmem %s156_s27, 16  ;;  %s1672_s6 = scalar_lea.vmem %s156_s27, 32 }
  0x64   :  { %p1669_p7 = scmp.ne.s32.totalorder %s156_s27, %s1668_s24  ;;  %p1673_p8 = scmp.lt.s32.totalorder %s156_s27, %s156_s27 }
  0x65   :  { %p1674_p9 = scmp.lt.s32.totalorder %s1672_s6, %s1668_s24 }
  0x67   :  { %p1675_p10 = por %p1674_p9, %p1673_p8 }
  0x69   :  { %p1676_p11 = pnand %p1675_p10, %p1669_p7 }
  0x6b   :  { %1679 = shalt.err (!%p1676_p11)
}
  0x6c   :  { %158 = dma.hbm_to_vmem [thread:$0]  %s2349_s15, 16, %s156_s27, [#allocation17]  }
  0x6d   :  { %s1877_s25 = smov [#allocation19]   ;;  %s1878_s30 = smov [#allocation2]  }
  0x6e   :  { %s179_s8 = sshll.u32 %s1877_s25, 4  ;;  %s42_s3 = sshll.u32 %s1878_s30, 4  ;;  %s180_s8 = int_to_ptr.vmem [resolvable:$true] %s179_s8  ;;  %s43_s3 = int_to_ptr.vmem [resolvable:$true] %s42_s3 }
  0x6f   :  { %s1680_s2 = scalar_lea.hbm %s2353_s19, 128 }
  0x70   :  { %p1681_p12 = scmp.ne.s32.totalorder %s2353_s19, %s1680_s2  ;;  %p1684_p13 = scmp.lt.u32.totalorder %s1680_s2, %s2353_s19 }
  0x72   :  { %p1686_p0 = pnand %p1684_p13, %p1681_p12 }
  0x74   :  { %1689 = shalt.err (!%p1686_p0)
}
  0x75   :  { %s1690_s15 = scalar_lea.vmem %s180_s8, 128  ;;  %p1695_p2 = scmp.lt.s32.totalorder %s180_s8, %s180_s8 }
  0x76   :  { %p1691_p1 = scmp.ne.s32.totalorder %s180_s8, %s1690_s15  ;;  %p1696_p3 = scmp.lt.s32.totalorder %s1690_s15, %s1690_s15 }
  0x78   :  { %p1697_p4 = por %p1696_p3, %p1695_p2 }
  0x7a   :  { %p1698_p5 = pnand %p1697_p4, %p1691_p1 }
  0x7c   :  { %1701 = shalt.err (!%p1698_p5)
}
  0x7d   :  { %182 = dma.hbm_to_vmem [thread:$0]  %s2353_s19, 128, %s180_s8, [#allocation20]  }
  0x7e   :  { %s2372_s22 = sld [smem:[#allocation30_spill]] }
  0x84   :  { %s1702_s25 = scalar_lea.hbm %s2372_s22, 256 }
  0x85   :  { %p1703_p6 = scmp.ne.s32.totalorder %s2372_s22, %s1702_s25  ;;  %p1706_p7 = scmp.lt.u32.totalorder %s1702_s25, %s2372_s22 }
  0x87   :  { %p1708_p8 = pnand %p1706_p7, %p1703_p6 }
  0x89   :  { %1711 = shalt.err (!%p1708_p8)
}
  0x8a   :  { %s1712_s29 = scalar_lea.vmem %s43_s3, 256  ;;  %p1717_p10 = scmp.lt.s32.totalorder %s43_s3, %s43_s3 }
  0x8b   :  { %p1713_p9 = scmp.ne.s32.totalorder %s43_s3, %s1712_s29  ;;  %p1718_p11 = scmp.lt.s32.totalorder %s1712_s29, %s1712_s29 }
  0x8d   :  { %p1719_p12 = por %p1718_p11, %p1717_p10 }
  0x8f   :  { %p1720_p13 = pnand %p1719_p12, %p1713_p9 }
  0x91   :  { %1723 = shalt.err (!%p1720_p13)
}
  0x92   :  { %48 = dma.hbm_to_vmem [thread:$0]  %s2372_s22, 256, %s43_s3, [#allocation3], %s1873_s4, %s1873_s4, %s1874_s26  }
  0x93   :  { %s1879_s0 = smov [#allocation6]   ;;  %s1880_s5 = smov [#allocation9]  }
  0x94   :  { %s68_s23 = sshll.u32 %s1879_s0, 4  ;;  %s93_s15 = sshll.u32 %s1880_s5, 4  ;;  %s69_s23 = int_to_ptr.vmem [resolvable:$true] %s68_s23  ;;  %s94_s15 = int_to_ptr.vmem [resolvable:$true] %s93_s15 }
  0x95   :  { %s2373_s6 = sld [smem:[#allocation34_spill]] }
  0x9b   :  { %s1724_s12 = scalar_lea.hbm %s2373_s6, 256 }
  0x9c   :  { %p1725_p0 = scmp.ne.s32.totalorder %s2373_s6, %s1724_s12  ;;  %p1728_p1 = scmp.lt.u32.totalorder %s1724_s12, %s2373_s6 }
  0x9e   :  { %p1730_p2 = pnand %p1728_p1, %p1725_p0 }
  0xa0   :  { %1733 = shalt.err (!%p1730_p2)
}
  0xa1   :  { %s1734_s3 = scalar_lea.vmem %s69_s23, 256  ;;  %p1739_p4 = scmp.lt.s32.totalorder %s69_s23, %s69_s23 }
  0xa2   :  { %p1735_p3 = scmp.ne.s32.totalorder %s69_s23, %s1734_s3  ;;  %p1740_p5 = scmp.lt.s32.totalorder %s1734_s3, %s1734_s3 }
  0xa4   :  { %p1741_p6 = por %p1740_p5, %p1739_p4 }
  0xa6   :  { %p1742_p7 = pnand %p1741_p6, %p1735_p3 }
  0xa8   :  { %1745 = shalt.err (!%p1742_p7)
}
  0xa9   :  { %74 = dma.hbm_to_vmem [thread:$0]  %s2373_s6, 256, %s69_s23, [#allocation5], %s1873_s4, %s1873_s4, %s1874_s26  }
  0xaa   :  { %s1746_s8 = scalar_lea.hbm %s2341_s7, 16 }
  0xab   :  { %p1747_p8 = scmp.ne.s32.totalorder %s2341_s7, %s1746_s8  ;;  %p1750_p9 = scmp.lt.u32.totalorder %s1746_s8, %s2341_s7 }
  0xad   :  { %p1752_p10 = pnand %p1750_p9, %p1747_p8 }
  0xaf   :  { %1755 = shalt.err (!%p1752_p10)
}
  0xb0   :  { %s1756_s12 = scalar_lea.vmem %s94_s15, 16  ;;  %s1760_s25 = scalar_lea.vmem %s94_s15, 32 }
  0xb1   :  { %p1757_p11 = scmp.ne.s32.totalorder %s94_s15, %s1756_s12  ;;  %p1761_p12 = scmp.lt.s32.totalorder %s94_s15, %s94_s15 }
  0xb2   :  { %p1762_p13 = scmp.lt.s32.totalorder %s1760_s25, %s1756_s12 }
  0xb4   :  { %p1763_p0 = por %p1762_p13, %p1761_p12 }
  0xb6   :  { %p1764_p1 = pnand %p1763_p0, %p1757_p11 }
  0xb8   :  { %1767 = shalt.err (!%p1764_p1)
}
  0xb9   :  { %96 = dma.hbm_to_vmem [thread:$0]  %s2341_s7, 16, %s94_s15, [#allocation8]  }
  0xba   :  { %s1881_s30 = smov [#allocation12]   ;;  %s1882_s28 = smov [#allocation15]  }
  0xbb   :  { %s115_s1 = sshll.u32 %s1881_s30, 4  ;;  %s142_s3 = sshll.u32 %s1882_s28, 4  ;;  %s116_s1 = int_to_ptr.vmem [resolvable:$true] %s115_s1  ;;  %s143_s3 = int_to_ptr.vmem [resolvable:$true] %s142_s3 }
  0xbc   :  { %s1768_s29 = scalar_lea.hbm %s2343_s9, 16 }
  0xbd   :  { %p1769_p2 = scmp.ne.s32.totalorder %s2343_s9, %s1768_s29  ;;  %p1772_p3 = scmp.lt.u32.totalorder %s1768_s29, %s2343_s9 }
  0xbf   :  { %p1774_p4 = pnand %p1772_p3, %p1769_p2 }
  0xc1   :  { %1777 = shalt.err (!%p1774_p4)
}
  0xc2   :  { %s1778_s7 = scalar_lea.vmem %s116_s1, 16  ;;  %s1782_s15 = scalar_lea.vmem %s116_s1, 32 }
  0xc3   :  { %p1779_p5 = scmp.ne.s32.totalorder %s116_s1, %s1778_s7  ;;  %p1783_p6 = scmp.lt.s32.totalorder %s116_s1, %s116_s1 }
  0xc4   :  { %p1784_p7 = scmp.lt.s32.totalorder %s1782_s15, %s1778_s7 }
  0xc6   :  { %p1785_p8 = por %p1784_p7, %p1783_p6 }
  0xc8   :  { %p1786_p9 = pnand %p1785_p8, %p1779_p5 }
  0xca   :  { %1789 = shalt.err (!%p1786_p9)
}
  0xcb   :  { %118 = dma.hbm_to_vmem [thread:$0]  %s2343_s9, 16, %s116_s1, [#allocation11]  }
  0xcc   :  { %s1790_s23 = scalar_lea.hbm %s2348_s14, 512 }
  0xcd   :  { %p1791_p10 = scmp.ne.s32.totalorder %s2348_s14, %s1790_s23  ;;  %p1794_p11 = scmp.lt.u32.totalorder %s1790_s23, %s2348_s14 }
  0xcf   :  { %p1796_p12 = pnand %p1794_p11, %p1791_p10 }
  0xd1   :  { %1799 = shalt.err (!%p1796_p12)
}
  0xd2   :  { %s1800_s2 = scalar_lea.vmem %s143_s3, 512  ;;  %p1805_p0 = scmp.lt.s32.totalorder %s143_s3, %s143_s3 }
  0xd3   :  { %p1801_p13 = scmp.ne.s32.totalorder %s143_s3, %s1800_s2  ;;  %p1806_p1 = scmp.lt.s32.totalorder %s1800_s2, %s1800_s2 }
  0xd5   :  { %p1807_p2 = por %p1806_p1, %p1805_p0 }
  0xd7   :  { %p1808_p3 = pnand %p1807_p2, %p1801_p13 }
  0xd9   :  { %1811 = shalt.err (!%p1808_p3)
}
  0xda   :  { %148 = dma.hbm_to_vmem [thread:$0]  %s2348_s14, 512, %s143_s3, [#allocation14], %s1873_s4, %s1873_s4, %s1874_s26  }
  0xdb   :  { %s1883_s29 = smov [#allocation18]   ;;  %s1884_s8 = smov [#allocation21]  }
  0xdc   :  { %s167_s19 = sshll.u32 %s1883_s29, 4  ;;  %s189_s0 = sshll.u32 %s1884_s8, 4  ;;  %s168_s19 = int_to_ptr.vmem [resolvable:$true] %s167_s19  ;;  %s190_s0 = int_to_ptr.vmem [resolvable:$true] %s189_s0 }
  0xdd   :  { %s1812_s15 = scalar_lea.hbm %s2351_s17, 16 }
  0xde   :  { %p1813_p4 = scmp.ne.s32.totalorder %s2351_s17, %s1812_s15  ;;  %p1816_p5 = scmp.lt.u32.totalorder %s1812_s15, %s2351_s17 }
  0xe0   :  { %p1818_p6 = pnand %p1816_p5, %p1813_p4 }
  0xe2   :  { %1821 = shalt.err (!%p1818_p6)
}
  0xe3   :  { %s1822_s14 = scalar_lea.vmem %s168_s19, 16  ;;  %s1826_s4 = scalar_lea.vmem %s168_s19, 32 }
  0xe4   :  { %p1823_p7 = scmp.ne.s32.totalorder %s168_s19, %s1822_s14  ;;  %p1827_p8 = scmp.lt.s32.totalorder %s168_s19, %s168_s19 }
  0xe5   :  { %p1828_p9 = scmp.lt.s32.totalorder %s1826_s4, %s1822_s14 }
  0xe7   :  { %p1829_p10 = por %p1828_p9, %p1827_p8 }
  0xe9   :  { %p1830_p11 = pnand %p1829_p10, %p1823_p7 }
  0xeb   :  { %1833 = shalt.err (!%p1830_p11)
}
  0xec   :  { %170 = dma.hbm_to_vmem [thread:$0]  %s2351_s17, 16, %s168_s19, [#allocation17]  }
  0xed   :  { %s1834_s30 = scalar_lea.hbm %s2354_s20, 128 }
  0xee   :  { %p1835_p12 = scmp.ne.s32.totalorder %s2354_s20, %s1834_s30  ;;  %p1838_p13 = scmp.lt.u32.totalorder %s1834_s30, %s2354_s20 }
  0xf0   :  { %p1840_p0 = pnand %p1838_p13, %p1835_p12 }
  0xf2   :  { %1843 = shalt.err (!%p1840_p0)
}
  0xf3   :  { %s1844_s1 = scalar_lea.vmem %s190_s0, 128  ;;  %p1849_p2 = scmp.lt.s32.totalorder %s190_s0, %s190_s0 }
  0xf4   :  { %p1845_p1 = scmp.ne.s32.totalorder %s190_s0, %s1844_s1  ;;  %p1850_p3 = scmp.lt.s32.totalorder %s1844_s1, %s1844_s1 }
  0xf6   :  { %p1851_p4 = por %p1850_p3, %p1849_p2 }
  0xf8   :  { %p1852_p5 = pnand %p1851_p4, %p1845_p1 }
  0xfa   :  { %1855 = shalt.err (!%p1852_p5)
}
  0xfb   :  { %192 = dma.hbm_to_vmem [thread:$0]  %s2354_s20, 128, %s190_s0, [#allocation20]  }
  0xfc   :  { %1856 = dma.done.wait [#allocation3], 256  }
  0xfd   :  { %1857 = vsyncadd [#allocation3], 4294967040 }
  0xfe   :  { %1858 = dma.done.wait [#allocation5], 272  }
  0xff   :  { %1859 = vsyncadd [#allocation5], 4294967024 }
 0x100   :  { %1860 = dma.done.wait [#allocation8], 528  }
 0x101   :  { %1861 = vsyncadd [#allocation8], 4294966768 }
 0x102   :  { %1862 = dma.done.wait [#allocation11], 528  }
 0x103   :  { %1863 = vsyncadd [#allocation11], 4294966768 }
 0x104   :  { %1864 = dma.done.wait [#allocation14], 1024  }
 0x105   :  { %1865 = vsyncadd [#allocation14], 4294966272 }
 0x106   :  { %1866 = dma.done.wait [#allocation17], 32  }
 0x107   :  { %1867 = vsyncadd [#allocation17], 4294967264 }
 0x108   :  { %1868 = dma.done.wait [#allocation20], 256  }
 0x109   :  { %1869 = vsyncadd [#allocation20], 4294967040  ;;  %v1885_v0 = vmov 0.0|0.0   ;;  %vm1886_vm0 = vmmov 0   ;;  %v1887_v1 = vmov 0.0   ;;  %vm260_vm1 = vcmask 1041408  }
 0x10a   :  { %1478 = vmatprep.subr.bf16.mxu0 %v1885_v0  ;;  %1482 = vmatprep.subr.bf16.mxu1 %v1885_v0  ;;  %vm1888_vm2 = vmmov 1   ;;  %v233_v3 = vld [vmem:[#allocation2] sm:$0xff]  ;;  %v234_v4 = vld [vmem:[#allocation2 + $0x8] sm:$0x3]  ;;  %s2376_s8 = sld [smem:[#allocation29_spill]]  ;;  %s2377_s7 = sld [smem:[#allocation32_spill]] }
 0x10b   :  { %1354 = vmatprep.mubr.msk.f32.mxu0 %vm1886_vm0, %v1887_v1  ;;  %1373 = vmatprep.mubr.msk.f32.mxu1 %vm1886_vm0, %v1887_v1  ;;  %vm2184_vm3 = vmpackc.low %vm260_vm1, %vm1888_vm2  ;;  %v1479_v6 = vpack.c.bf16 %v234_v4, %v233_v3  ;;  %vm256_vm5 = vcmask 80896   ;;  %v245_v21 = vld [vmem:[#allocation6] sm:$0xff]  ;;  %v246_v22 = vld [vmem:[#allocation6 + $0x8] sm:$0x3]  ;;  %s2378_s1 = sld [smem:[#allocation31_spill]]  ;;  %vm343_vm7 = vcmask 523264  }
 0x10c   :  { %v1495_v23 = vpack.c.bf16 %v246_v22, %v245_v21  ;;  %v493_v30 = vld [vmem:[#allocation7] sm:$0xff]  ;;  %v494_v31 = vld [vmem:[#allocation7 + $0x8] sm:$0xff]  ;;  %v495_v35 = vld [vmem:[#allocation7 + $0x10] sm:$0xff]  ;;  %vm512_vm9 = vcmask 261120   ;;  %vm1103_vm1 = vcmask 64512   ;;  %vm1177_vm2 = vcmask 254976  }
 0x10d   :  { %1481 = vmatpush3.bf16.msk.msra.mxu0 %vm2184_vm3, %v1479_v6  ;;  %v1499_v32 = vpack.c.bf16 %v494_v31, %v493_v30  ;;  %v496_v36 = vld [vmem:[#allocation7 + $0x18] sm:$0xff]  ;;  %v1273_v38 = vld [vmem:[#allocation4] ss:$0 sm:$0xff]  ;;  %v498_v42 = vld [vmem:[#allocation10] sm:$0xff] }
 0x10e   :  { %1494 = vmatprep.subr.bf16.mxu0 %v1885_v0  ;;  %v1502_v37 = vpack.c.bf16 %v496_v36, %v495_v35  ;;  %v499_v43 = vld [vmem:[#allocation10 + $0x8] sm:$0xff]  ;;  %v500_v48 = vld [vmem:[#allocation10 + $0x10] sm:$0xff]  ;;  %v501_v49 = vld [vmem:[#allocation10 + $0x18] sm:$0xff] }
 0x10f   :  { %v1505_v46 = vpack.c.bf16 %v499_v43, %v498_v42  ;;  %v1508_v50 = vpack.c.bf16 %v501_v49, %v500_v48  ;;  %v1277_v51 = vld [vmem:[#allocation9] ss:$0 sm:$0xff]  ;;  %v670_v58 = vld [vmem:[%s2344_s10 + $0x8] sm:$0xff]  ;;  %v671_v60 = vld [vmem:[%s2344_s10 + $0x10] sm:$0xff] }
 0x110   :  { %v232_v5 = vld [vmem:[%s2376_s8] sm:$0x3]  ;;  %v237_v9 = vld [vmem:[%s2377_s7 + $0x8] sm:$0xff]  ;;  %v238_v10 = vld [vmem:[%s2377_s7 + $0x10] sm:$0xff] }
 0x111   :  { %vm247_vm4 = vcmp.ge.f32.partialorder %v232_v5, 0.0  ;;  %v248_v7 = vmul.f32 0.2, %v232_v5  ;;  %v236_v8 = vld [vmem:[%s2377_s7] sm:$0xff]  ;;  %v239_v12 = vld [vmem:[%s2377_s7 + $0x18] sm:$0xff]  ;;  %v241_v16 = vld [vmem:[%s2377_s7 + $0x28] sm:$0xff] }
 0x112   :  { %v1483_v11 = vpack.c.bf16 %v237_v9, %v236_v8  ;;  %v1486_v14 = vpack.c.bf16 %v239_v12, %v238_v10  ;;  %v240_v15 = vld [vmem:[%s2377_s7 + $0x20] sm:$0xff]  ;;  %v242_v18 = vld [vmem:[%s2377_s7 + $0x30] sm:$0xff]  ;;  %v243_v19 = vld [vmem:[%s2377_s7 + $0x38] sm:$0xff] }
 0x113   :  { %v249_v13 = vsel %vm247_vm4, %v232_v5, %v248_v7  ;;  %v1489_v17 = vpack.c.bf16 %v241_v16, %v240_v15  ;;  %v1492_v20 = vpack.c.bf16 %v243_v19, %v242_v18  ;;  %v1270_v24 = vld [vmem:[%s2378_s1] ss:$0 sm:$0xff]  ;;  %v672_v61 = vld [vmem:[%s2344_s10 + $0x18] sm:$0xff]  ;;  %v674_v63 = vld [vmem:[#allocation13] sm:$0xff] }
 0x114   :  { %1484 = vmatpush3.bf16.msra.mxu1 %v1483_v11  ;;  %1355 = vmatmul.mubr.msk.f32.vlgmr.msra.gmra.mrb[0].mxu0 %vm256_vm5, %v249_v13  ;;  %v669_v57 = vld [vmem:[%s2344_s10] sm:$0xff]  ;;  %v1514_v62 = vpack.c.bf16 %v672_v61, %v671_v60  ;;  %v675_v2 = vld [vmem:[#allocation13 + $0x8] sm:$0xff]  ;;  %v676_v11 = vld [vmem:[#allocation13 + $0x10] sm:$0xff] }
 0x115   :  { %1485 = vmatprep.subr.bf16.mxu1 %v1885_v0  ;;  %1380 = vmatprep.mubr.msk.f32.mxu0 %vm1886_vm0, %v1887_v1  ;;  %v1511_v59 = vpack.c.bf16 %v670_v58, %v669_v57  ;;  %v1517_v3 = vpack.c.bf16 %v675_v2, %v674_v63  ;;  %v1279_v4 = vld [vmem:[#allocation12] ss:$0 sm:$0xff]  ;;  %v845_v21 = vld [vmem:[#allocation15 + $0x8] sm:$0xff]  ;;  %v852_v30 = vld [vmem:[%s2350_s16 + $0x18] sm:$0xff] }
 0x116   :  { %1497 = vmatpush3.bf16.msk.msra.mxu0 %vm2184_vm3, %v1495_v23  ;;  %v677_v12 = vld [vmem:[#allocation13 + $0x18] sm:$0xff]  ;;  %v846_v23 = vld [vmem:[#allocation15 + $0x10] sm:$0xff]  ;;  %v859_v48 = vld [vmem:[%s2352_s18 + $0x8] sm:$0xff]  ;;  %vm1253_vm3 = vcmask 58368  }
 0x117   :  { %1498 = vmatprep.subr.bf16.mxu0 %v1885_v0  ;;  %v1520_v13 = vpack.c.bf16 %v677_v12, %v676_v11  ;;  %v1283_v35 = vld [vmem:[%s2347_s13] ss:$0 sm:$0xff]  ;;  %v855_v42 = vld [vmem:[%s2350_s16 + $0x30] sm:$0xff]  ;;  %v856_v43 = vld [vmem:[%s2350_s16 + $0x38] sm:$0xff] }
 0x118   :  { %1487 = vmatpush3.bf16.msra.mxu1 %v1486_v14  ;;  %v1281_v14 = vld [vmem:[%s2345_s11] ss:$0 sm:$0xff]  ;;  %v1102_v57 = vld [vmem:[#allocation19] sm:$0xff]  ;;  %v1287_v58 = vld [vmem:[#allocation18] ss:$0 sm:$0xff]  ;;  %s2379_s11 = sld [smem:[#allocation36_spill]] }
 0x119   :  { %1488 = vmatprep.subr.bf16.mxu1 %v1885_v0  ;;  %1381 = vmatmul.mubr.msk.f32.vlgmr.msra.gmra.mrb[2].mxu0 %vm256_vm5, %v232_v5  ;;  %v1179_v63 = vld [vmem:[#allocation21] sm:$0xff] }
 0x11a   :  { %1391 = vmatprep.mubr.msk.f32.mxu0 %vm1886_vm0, %v1887_v1  ;;  %1500 = vmatpush3.bf16.msra.mxu0 %v1499_v32  ;;  %v853_v32 = vld [vmem:[%s2350_s16 + $0x20] sm:$0xff] }
 0x11b   :  { %1501 = vmatprep.subr.bf16.mxu0 %v1885_v0 }
 0x11c   :  { %1490 = vmatpush3.bf16.msra.mxu1 %v1489_v17 }
 0x11d   :  { %1491 = vmatprep.subr.bf16.mxu1 %v1885_v0 }
 0x11e   :  { %1503 = vmatpush3.bf16.msra.mxu0 %v1502_v37 }
 0x11f   :  { %1504 = vmatprep.subr.bf16.mxu0 %v1885_v0 }
 0x120   :  { %1493 = vmatpush3.bf16.msra.mxu1 %v1492_v20  ;;  %v844_v20 = vld [vmem:[#allocation15] sm:$0xff] }
 0x121   :  { %1516 = vmatprep.subr.bf16.mxu1 %v1885_v0  ;;  %v1523_v22 = vpack.c.bf16 %v845_v21, %v844_v20 }
 0x1e7   :  { %v330_v25 = vpop.f32.mrb[0].mxu0 }
 0x1e8   :  { %v331_v26 = vadd.f32 %v1270_v24, %v330_v25  ;;  %v1356_v27 = vpop.f32.mrb[1].mxu0  ;;  %v847_v24 = vld [vmem:[#allocation15 + $0x18] sm:$0xff] }
 0x1e9   :  { %v1526_v25 = vpack.c.bf16 %v847_v24, %v846_v23  ;;  %v850_v27 = vld [vmem:[%s2350_s16 + $0x8] sm:$0xff] }
 0x1ea   :  { %vm334_vm6 = vcmp.ge.f32.partialorder %v331_v26, 0.0  ;;  %v335_v28 = vmul.f32 0.2, %v331_v26 }
 0x1ec   :  { %v336_v29 = vsel %vm334_vm6, %v331_v26, %v335_v28  ;;  %v489_v33 = vpop.f32.mrb[2].mxu0  ;;  %v849_v26 = vld [vmem:[%s2350_s16] sm:$0xff]  ;;  %v851_v28 = vld [vmem:[%s2350_s16 + $0x10] sm:$0xff] }
 0x1ed   :  { %1374 = vmatmul.mubr.msk.f32.vlgmr.msra.gmra.mrb[0].mxu1 %vm343_vm7, %v336_v29  ;;  %v1382_v34 = vpop.f32.mrb[3].mxu0  ;;  %v1529_v29 = vpack.c.bf16 %v850_v27, %v849_v26  ;;  %v1532_v31 = vpack.c.bf16 %v852_v30, %v851_v28 }
 0x1ee   :  { %1424 = vmatprep.mubr.msk.f32.mxu1 %vm1886_vm0, %v1887_v1  ;;  %1518 = vmatpush3.bf16.msra.mxu1 %v1517_v3 }
 0x1ef   :  { %1519 = vmatprep.subr.bf16.mxu1 %v1885_v0 }
 0x1f2   :  { %1521 = vmatpush3.bf16.msra.mxu1 %v1520_v13 }
 0x1f3   :  { %1528 = vmatprep.subr.bf16.mxu1 %v1885_v0 }
 0x2c0   :  { %v413_v39 = vpop.f32.mrb[0].mxu1 }
 0x2c1   :  { %v414_v40 = vadd.f32 %v1273_v38, %v413_v39  ;;  %v1375_v41 = vpop.f32.mrb[1].mxu1 }
 0x2c3   :  { %v490_v44 = vadd.f32 %v489_v33, %v414_v40  ;;  %v854_v33 = vld [vmem:[%s2350_s16 + $0x28] sm:$0xff] }
 0x2c4   :  { %v1535_v34 = vpack.c.bf16 %v854_v33, %v853_v32 }
 0x2c5   :  { %v504_v45 = vmul.f32 0.2, %v490_v44  ;;  %vm503_vm8 = vcmp.ge.f32.partialorder %v490_v44, 0.0 }
 0x2c7   :  { %v505_v47 = vsel %vm503_vm8, %v490_v44, %v504_v45  ;;  %v1285_v45 = vld [vmem:[#allocation16] ss:$0 sm:$0xff] }
 0x2c8   :  { %1392 = vmatmul.mubr.msk.f32.vlgmr.msra.gmra.mrb[4].mxu0 %vm512_vm9, %v505_v47  ;;  %v858_v47 = vld [vmem:[%s2352_s18] sm:$0xff] }
 0x2c9   :  { %1506 = vmatpush3.bf16.msra.mxu0 %v1505_v46  ;;  %1402 = vmatprep.mubr.msk.f32.mxu0 %vm1886_vm0, %v1887_v1 }
 0x2ca   :  { %1507 = vmatprep.subr.bf16.mxu0 %v1885_v0 }
 0x2cd   :  { %1509 = vmatpush3.bf16.msra.mxu0 %v1508_v50 }
 0x2ce   :  { %1510 = vmatprep.subr.bf16.mxu0 %v1885_v0 }
 0x39b   :  { %v582_v52 = vpop.f32.mrb[4].mxu0 }
 0x39c   :  { %v583_v53 = vadd.f32 %v1277_v51, %v582_v52  ;;  %v1393_v54 = vpop.f32.mrb[5].mxu0  ;;  %v1541_v52 = vpack.c.bf16 %v859_v48, %v858_v47 }
 0x39d   :  { %v861_v54 = vld [vmem:[%s2352_s18 + $0x18] sm:$0xff] }
 0x39e   :  { %vm586_vm10 = vcmp.ge.f32.partialorder %v583_v53, 0.0  ;;  %v587_v55 = vmul.f32 0.2, %v583_v53 }
 0x3a0   :  { %v588_v56 = vsel %vm586_vm10, %v583_v53, %v587_v55  ;;  %v860_v53 = vld [vmem:[%s2352_s18 + $0x10] sm:$0xff] }
 0x3a1   :  { %1403 = vmatmul.mubr.msk.f32.vlgmr.msra.gmra.mrb[6].mxu0 %vm512_vm9, %v588_v56  ;;  %v1544_v56 = vpack.c.bf16 %v861_v54, %v860_v53 }
 0x3a2   :  { %1413 = vmatprep.mubr.msk.f32.mxu0 %vm1886_vm0, %v1887_v1  ;;  %1512 = vmatpush3.bf16.msra.mxu0 %v1511_v59 }
 0x3a3   :  { %1513 = vmatprep.subr.bf16.mxu0 %v1885_v0 }
 0x3a6   :  { %1515 = vmatpush3.bf16.msra.mxu0 %v1514_v62 }
 0x3a7   :  { %1522 = vmatprep.subr.bf16.mxu0 %v1885_v0 }
 0x474   :  { %v664_v5 = vpop.f32.mrb[6].mxu0 }
 0x475   :  { %v665_v6 = vadd.f32 %v1279_v4, %v664_v5  ;;  %v1404_v7 = vpop.f32.mrb[7].mxu0 }
 0x477   :  { %v668_v8 = vadd.f32 %v665_v6, %v490_v44  ;;  %v1538_v44 = vpack.c.bf16 %v856_v43, %v855_v42 }
 0x479   :  { %vm679_vm11 = vcmp.ge.f32.partialorder %v668_v8, 0.0  ;;  %v680_v9 = vmul.f32 0.2, %v668_v8 }
 0x47b   :  { %v681_v10 = vsel %vm679_vm11, %v668_v8, %v680_v9 }
 0x47c   :  { %1414 = vmatmul.mubr.msk.f32.vlgmr.msra.gmra.mrb[8].mxu0 %vm512_vm9, %v681_v10 }
 0x47d   :  { %1435 = vmatprep.mubr.msk.f32.mxu0 %vm1886_vm0, %v1887_v1  ;;  %1524 = vmatpush3.bf16.msra.mxu0 %v1523_v22 }
 0x47e   :  { %1525 = vmatprep.subr.bf16.mxu0 %v1885_v0 }
 0x481   :  { %1527 = vmatpush3.bf16.msra.mxu0 %v1526_v25 }
 0x482   :  { %1468 = vmatprep.subr.mxu0 %v1887_v1 }
 0x54f   :  { %v757_v15 = vpop.f32.mrb[8].mxu0 }
 0x550   :  { %v758_v16 = vadd.f32 %v1281_v14, %v757_v15  ;;  %v1415_v17 = vpop.f32.mrb[9].mxu0 }
 0x552   :  { %vm761_vm12 = vcmp.ge.f32.partialorder %v758_v16, 0.0  ;;  %v762_v18 = vmul.f32 0.2, %v758_v16 }
 0x554   :  { %v763_v19 = vsel %vm761_vm12, %v758_v16, %v762_v18 }
 0x555   :  { %1425 = vmatmul.mubr.msk.f32.vlgmr.msra.gmra.mrb[2].mxu1 %vm512_vm9, %v763_v19 }
 0x556   :  { %1454 = vmatprep.mubr.msk.f32.mxu1 %vm1886_vm0, %v1887_v1  ;;  %1530 = vmatpush3.bf16.msra.mxu1 %v1529_v29 }
 0x557   :  { %1531 = vmatprep.subr.bf16.mxu1 %v1885_v0 }
 0x55a   :  { %1533 = vmatpush3.bf16.msra.mxu1 %v1532_v31 }
 0x55b   :  { %1534 = vmatprep.subr.bf16.mxu1 %v1885_v0 }
 0x55e   :  { %1536 = vmatpush3.bf16.msra.mxu1 %v1535_v34 }
 0x55f   :  { %1537 = vmatprep.subr.bf16.mxu1 %v1885_v0 }
 0x562   :  { %1539 = vmatpush3.bf16.msra.mxu1 %v1538_v44 }
 0x563   :  { %1540 = vmatprep.subr.bf16.mxu1 %v1885_v0 }
 0x628   :  { %v839_v36 = vpop.f32.mrb[2].mxu1 }
 0x629   :  { %v840_v37 = vadd.f32 %v1283_v35, %v839_v36  ;;  %v1426_v38 = vpop.f32.mrb[3].mxu1 }
 0x62b   :  { %v843_v39 = vadd.f32 %v840_v37, %v668_v8 }
 0x62d   :  { %vm862_vm13 = vcmp.ge.f32.partialorder %v843_v39, 0.0  ;;  %v863_v40 = vmul.f32 0.2, %v843_v39 }
 0x62f   :  { %v864_v41 = vsel %vm862_vm13, %v843_v39, %v863_v40 }
 0x630   :  { %1436 = vmatmul.mubr.msk.f32.vlgmr.msra.gmra.mrb[10].mxu0 %vm512_vm9, %v864_v41 }
 0x631   :  { %1470 = vmatprep.mubr.msk.f32.mxu0 %vm1886_vm0, %v1887_v1  ;;  %1469 = vmatpush3.msra.mxu0 %v1102_v57 }
 0x632   :  { %1473 = vmatprep.subr.mxu0 %v1887_v1 }
 0x703   :  { %v940_v46 = vpop.f32.mrb[10].mxu0 }
 0x704   :  { %v941_v49 = vadd.f32 %v1285_v45, %v940_v46  ;;  %v1437_v50 = vpop.f32.mrb[11].mxu0 }
 0x706   :  { %vm944_vm14 = vcmp.ge.f32.partialorder %v941_v49, 0.0  ;;  %v945_v51 = vmul.f32 0.2, %v941_v49 }
 0x708   :  { %v946_v55 = vsel %vm944_vm14, %v941_v49, %v945_v51 }
 0x709   :  { %1455 = vmatmul.mubr.msk.f32.vlgmr.msra.gmra.mrb[4].mxu1 %vm343_vm7, %v946_v55 }
 0x70a   :  { %1542 = vmatpush3.bf16.msra.mxu1 %v1541_v52  ;;  %1465 = vmatprep.mubr.msk.f32.mxu1 %vm1886_vm0, %v1887_v1 }
 0x70b   :  { %1543 = vmatprep.subr.bf16.mxu1 %v1885_v0 }
 0x70e   :  { %1545 = vmatpush3.bf16.msra.mxu1 %v1544_v56 }
 0x711   :  { %1466 = vmatmul.mubr.msk.f32.vlgmr.msra.gmra.mrb[4].mxu1 %vm512_vm9, %v843_v39 }
 0x7e4   :  { %v1095_v59 = vpop.f32.mrb[4].mxu1 }
 0x7e5   :  { %v1548_v60 = vadd.f32 %v1287_v58, %v1095_v59  ;;  %v1467_v61 = vpop.f32.mrb[5].mxu1 }
 0x7e7   :  { %v1100_v62 = vmul.f32 0.2, %v1548_v60  ;;  %vm1099_vm15 = vcmp.ge.f32.partialorder %v1548_v60, 0.0 }
 0x7e9   :  { %v1101_v2 = vsel %vm1099_vm15, %v1548_v60, %v1100_v62 }
 0x7ea   :  { %1471 = vmatmul.mubr.msk.f32.vlgmr.msra.gmra.mrb[12].mxu0 %vm1103_vm1, %v1101_v2 }
 0x7eb   :  { %1474 = vmatpush3.msra.mxu0 %v1179_v63  ;;  %1475 = vmatprep.mubr.msk.f32.mxu0 %vm1886_vm0, %v1887_v1 }
 0x7ee   :  { %1476 = vmatmul.mubr.msk.f32.vlgmr.msra.gmra.mrb[14].mxu0 %vm1103_vm1, %v1548_v60 }
 0x8bd   :  { %v1173_v0 = vpop.f32.mrb[12].mxu0 }
 0x8be   :  { %1178 = vst.msk [vmem:[%s2355_s21] sm:$0x3] %vm1177_vm2, %v1173_v0  ;;  %v1472_v3 = vpop.f32.mrb[13].mxu0 }
 0x8c1   :  { %v1249_v4 = vpop.f32.mrb[14].mxu0 }
 0x8c2   :  { %1254 = vst.msk [vmem:[%s2379_s11] sm:$0x3] %vm1253_vm3, %v1249_v4  ;;  %v1477_v5 = vpop.f32.mrb[15].mxu0 }
 0x8c3   :  { %1263 = vsyncpa [#allocation3], 1 }
 0x8c4   :  { %1264 = vsyncpa [#allocation5], 1 }
 0x8c5   :  { %1265 = vsyncpa [#allocation8], 1 }
 0x8c6   :  { %1266 = vsyncpa [#allocation11], 1 }
 0x8c7   :  { %1267 = vsyncpa [#allocation14], 1 }
 0x8c8   :  { %1268 = vsyncpa [#allocation17], 1 }
 0x8c9   :  { %1269 = vsyncpa [#allocation20], 1 }

// kernel: labs_injected_encoder_forward.6
= control target key start
LH: loop header
LB: loop body
LE: loop exit
PB: predicated region body
PF: predicated region fallthrough
CT: control target
= control target key end

     0   :  { %14 = vsyncpa [#allocation3], 0  ;;  %s3035_s0 = inlined_call_operand.vmem [shape: f32[2,16,64], index: 0, kind: input, shape index: {}]   ;;  %s3036_s1 = inlined_call_operand.vmem [shape: f32[64,384], index: 1, kind: input, shape index: {}]   ;;  %s3037_s2 = inlined_call_operand.hbm [shape: f32[1,128], index: 2, kind: input, shape index: {}]   ;;  %s3038_s3 = inlined_call_operand.vmem [shape: f32[128,384], index: 3, kind: input, shape index: {}]   ;;  %s3039_s4 = inlined_call_operand.hbm [shape: f32[1,128], index: 4, kind: input, shape index: {}]   ;;  %s3040_s5 = inlined_call_operand.vmem [shape: f32[128,384], index: 5, kind: input, shape index: {}]   ;;  %s3041_s6 = inlined_call_operand.hbm [shape: f32[1,128], index: 6, kind: input, shape index: {}]   ;;  %s3042_s7 = inlined_call_operand.vmem [shape: f32[2,16,16], index: 7, kind: input, shape index: {}]   ;;  %s3043_s8 = inlined_call_operand.hbm [shape: f32[2,16,16], index: 8, kind: input, shape index: {}]   ;;  %s3044_s9 = inlined_call_operand.vmem [shape: f32[2,16,128], index: 9, kind: output, shape index: {}]  }
   0x1   :  { %15 = vsyncpa [#allocation5], 0 }
   0x2   :  { %16 = vsyncpa [#allocation8], 0  ;;  %s2395_s30 = smov [#allocation4]   ;;  %s2396_s11 = smov [#allocation2]  }
   0x3   :  { %s39_s10 = sshll.u32 %s2395_s30, 4  ;;  %s27_s12 = sshll.u32 %s2396_s11, 4  ;;  %s40_s10 = int_to_ptr.vmem [resolvable:$true] %s39_s10  ;;  %s28_s12 = int_to_ptr.vmem [resolvable:$true] %s27_s12 }
   0x4   :  { %s2301_s15 = scalar_lea.hbm %s3039_s4, 16 }
   0x5   :  { %p2302_p0 = scmp.ne.s32.totalorder %s3039_s4, %s2301_s15  ;;  %p2305_p1 = scmp.lt.u32.totalorder %s2301_s15, %s3039_s4 }
   0x7   :  { %p2307_p2 = pnand %p2305_p1, %p2302_p0 }
   0x9   :  { %2310 = shalt.err (!%p2307_p2)
}
   0xa   :  { %s2311_s20 = scalar_lea.vmem %s40_s10, 16  ;;  %s2315_s21 = scalar_lea.vmem %s40_s10, 32 }
   0xb   :  { %p2312_p3 = scmp.ne.s32.totalorder %s40_s10, %s2311_s20  ;;  %p2316_p4 = scmp.lt.s32.totalorder %s40_s10, %s40_s10 }
   0xc   :  { %p2317_p5 = scmp.lt.s32.totalorder %s2315_s21, %s2311_s20 }
   0xe   :  { %p2318_p6 = por %p2317_p5, %p2316_p4 }
  0x10   :  { %p2319_p7 = pnand %p2318_p6, %p2312_p3 }
  0x12   :  { %2322 = shalt.err (!%p2319_p7)
}
  0x13   :  { %42 = dma.hbm_to_vmem [thread:$0]  %s3039_s4, 16, %s40_s10, [#allocation5]  }
  0x14   :  { %s2323_s26 = scalar_lea.hbm %s3037_s2, 16 }
  0x15   :  { %p2324_p8 = scmp.ne.s32.totalorder %s3037_s2, %s2323_s26  ;;  %p2327_p9 = scmp.lt.u32.totalorder %s2323_s26, %s3037_s2 }
  0x17   :  { %p2329_p10 = pnand %p2327_p9, %p2324_p8 }
  0x19   :  { %2332 = shalt.err (!%p2329_p10)
}
  0x1a   :  { %s2333_s11 = scalar_lea.vmem %s28_s12, 16  ;;  %s2337_s13 = scalar_lea.vmem %s28_s12, 32 }
  0x1b   :  { %p2334_p11 = scmp.ne.s32.totalorder %s28_s12, %s2333_s11  ;;  %p2338_p12 = scmp.lt.s32.totalorder %s28_s12, %s28_s12 }
  0x1c   :  { %p2339_p13 = scmp.lt.s32.totalorder %s2337_s13, %s2333_s11 }
  0x1e   :  { %p2340_p0 = por %p2339_p13, %p2338_p12 }
  0x20   :  { %p2341_p1 = pnand %p2340_p0, %p2334_p11 }
  0x22   :  { %2344 = shalt.err (!%p2341_p1)
}
  0x23   :  { %30 = dma.hbm_to_vmem [thread:$0]  %s3037_s2, 16, %s28_s12, [#allocation3]  }
  0x24   :  { %s2397_s14 = smov [#allocation6]   ;;  %s2398_s16 = smov [#allocation7]  }
  0x25   :  { %s51_s15 = sshll.u32 %s2397_s14, 4  ;;  %s62_s17 = sshll.u32 %s2398_s16, 4  ;;  %s52_s15 = int_to_ptr.vmem [resolvable:$true] %s51_s15  ;;  %s2476_s17 = int_to_ptr.vmem [resolvable:$true] %s62_s17 }
  0x26   :  { %s2345_s20 = scalar_lea.hbm %s3041_s6, 16 }
  0x27   :  { %p2346_p2 = scmp.ne.s32.totalorder %s3041_s6, %s2345_s20  ;;  %p2349_p3 = scmp.lt.u32.totalorder %s2345_s20, %s3041_s6 }
  0x29   :  { %p2351_p4 = pnand %p2349_p3, %p2346_p2 }
  0x2b   :  { %2354 = shalt.err (!%p2351_p4)
}
  0x2c   :  { %s2355_s2 = scalar_lea.vmem %s52_s15, 16  ;;  %s2359_s12 = scalar_lea.vmem %s52_s15, 32 }
  0x2d   :  { %p2356_p5 = scmp.ne.s32.totalorder %s52_s15, %s2355_s2  ;;  %p2360_p6 = scmp.lt.s32.totalorder %s52_s15, %s52_s15 }
  0x2e   :  { %p2361_p7 = scmp.lt.s32.totalorder %s2359_s12, %s2355_s2 }
  0x30   :  { %p2362_p8 = por %p2361_p7, %p2360_p6 }
  0x32   :  { %p2363_p9 = pnand %p2362_p8, %p2356_p5 }
  0x34   :  { %2366 = shalt.err (!%p2363_p9)
}
  0x35   :  { %54 = dma.hbm_to_vmem [thread:$0]  %s3041_s6, 16, %s52_s15, [#allocation5]  }
  0x36   :  { %s2367_s29 = scalar_lea.hbm %s3043_s8, 512 }
  0x37   :  { %p2368_p10 = scmp.ne.s32.totalorder %s3043_s8, %s2367_s29  ;;  %p2371_p11 = scmp.lt.u32.totalorder %s2367_s29, %s3043_s8 }
  0x39   :  { %p2373_p12 = pnand %p2371_p11, %p2368_p10 }
  0x3b   :  { %2376 = shalt.err (!%p2373_p12)
}
  0x3c   :  { %s2377_s10 = scalar_lea.vmem %s2476_s17, 512  ;;  %p2382_p0 = scmp.lt.s32.totalorder %s2476_s17, %s2476_s17 }
  0x3d   :  { %p2378_p13 = scmp.ne.s32.totalorder %s2476_s17, %s2377_s10  ;;  %p2383_p1 = scmp.lt.s32.totalorder %s2377_s10, %s2377_s10 }
  0x3f   :  { %p2384_p2 = por %p2383_p1, %p2382_p0 }
  0x41   :  { %p2385_p3 = pnand %p2384_p2, %p2378_p13 }
  0x43   :  { %2388 = shalt.err (!%p2385_p3)
}
  0x44   :  { %s2399_s6 = smov 128   ;;  %s2400_s14 = smov 8  }
  0x45   :  { %68 = dma.hbm_to_vmem [thread:$0]  %s3043_s8, 512, %s2476_s17, [#allocation8], %s2399_s6, %s2399_s6, %s2400_s14  }
  0x46   :  { %2389 = dma.done.wait [#allocation3], 16  }
  0x47   :  { %2390 = vsyncadd [#allocation3], 4294967280 }
  0x48   :  { %2391 = dma.done.wait [#allocation5], 32  }
  0x49   :  { %2392 = vsyncadd [#allocation5], 4294967264 }
  0x4a   :  { %2393 = dma.done.wait [#allocation8], 512  }
  0x4b   :  { %2394 = vsyncadd [#allocation8], 4294966784  ;;  %v2401_v0 = vmov 0.0   ;;  %v94_v1 = vld [vmem:[%s3036_s1 + $0x8] sm:$0xff]  ;;  %v97_v2 = vld [vmem:[%s3036_s1 + $0x20] sm:$0xff]  ;;  %vm118_vm0 = vcmask 523264  }
  0x4c   :  { %195 = vmatprep.mubr.f32.mxu0 %v2401_v0  ;;  %v95_v3 = vld [vmem:[%s3036_s1 + $0x10] sm:$0xff]  ;;  %v2086_v4 = vpack.c.bf16 %v97_v2, %v94_v1  ;;  %v98_v5 = vld [vmem:[%s3036_s1 + $0x28] sm:$0xff]  ;;  %v93_v6 = vld [vmem:[%s3036_s1] sm:$0xff]  ;;  %vm305_vm1 = vcmask 130048  }
  0x4d   :  { %v96_v7 = vld [vmem:[%s3036_s1 + $0x18] sm:$0xff]  ;;  %v2102_v8 = vpack.c.bf16 %v98_v5, %v95_v3  ;;  %v103_v11 = vld [vmem:[%s3036_s1 + $0x50] sm:$0xff]  ;;  %v101_v12 = vld [vmem:[%s3036_s1 + $0x40] sm:$0xff] }
  0x4e   :  { %v2088_v9 = vpack.c.bf16 %v96_v7, %v93_v6  ;;  %v100_v10 = vld [vmem:[%s3036_s1 + $0x38] sm:$0xff]  ;;  %2087 = vmatprep.subr.bf16.mxu0 %v2086_v4  ;;  %v99_v15 = vld [vmem:[%s3036_s1 + $0x30] sm:$0xff]  ;;  %v102_v16 = vld [vmem:[%s3036_s1 + $0x48] sm:$0xff] }
  0x4f   :  { %v2090_v13 = vpack.c.bf16 %v103_v11, %v100_v10  ;;  %v104_v14 = vld [vmem:[%s3036_s1 + $0x58] sm:$0xff]  ;;  %2103 = vmatprep.subr.bf16.mxu1 %v2102_v8  ;;  %v2092_v18 = vpack.c.bf16 %v102_v16, %v99_v15  ;;  %v106_v19 = vld [vmem:[%s3036_s1 + $0x68] sm:$0xff]  ;;  %v109_v20 = vld [vmem:[%s3036_s1 + $0x80] sm:$0xff] }
  0x50   :  { %2089 = vmatpush1.bf16.msra.mxu0 %v2088_v9  ;;  %v2106_v17 = vpack.c.bf16 %v104_v14, %v101_v12  ;;  %v107_v21 = vld [vmem:[%s3036_s1 + $0x70] sm:$0xff]  ;;  %2105 = vmatpush3.bf16.msra.mxu1 %v2102_v8  ;;  %v2094_v22 = vpack.c.bf16 %v109_v20, %v106_v19  ;;  %v110_v23 = vld [vmem:[%s3036_s1 + $0x88] sm:$0xff]  ;;  %v105_v24 = vld [vmem:[%s3036_s1 + $0x60] sm:$0xff] }
  0x51   :  { %2091 = vmatprep.subr.bf16.mxu0 %v2090_v13  ;;  %v108_v25 = vld [vmem:[%s3036_s1 + $0x78] sm:$0xff]  ;;  %v2110_v26 = vpack.c.bf16 %v110_v23, %v107_v21  ;;  %v115_v28 = vld [vmem:[%s3036_s1 + $0xb0] sm:$0xff]  ;;  %v113_v29 = vld [vmem:[%s3036_s1 + $0xa0] sm:$0xff] }
  0x52   :  { %2107 = vmatprep.subr.bf16.mxu1 %v2106_v17  ;;  %v112_v27 = vld [vmem:[%s3036_s1 + $0x98] sm:$0xff]  ;;  %v2096_v31 = vpack.c.bf16 %v108_v25, %v105_v24  ;;  %v111_v33 = vld [vmem:[%s3036_s1 + $0x90] sm:$0xff]  ;;  %v114_v34 = vld [vmem:[%s3036_s1 + $0xa8] sm:$0xff] }
  0x53   :  { %v116_v30 = vld [vmem:[%s3036_s1 + $0xb8] sm:$0xff]  ;;  %v2098_v32 = vpack.c.bf16 %v115_v28, %v112_v27  ;;  %v89_v35 = vld [vmem:[%s3035_s0] sm:$0xff]  ;;  %v2100_v37 = vpack.c.bf16 %v114_v34, %v111_v33  ;;  %v90_v38 = vld [vmem:[%s3035_s0 + $0x8] sm:$0xff] }
  0x54   :  { %2093 = vmatpush1.bf16.msra.mxu0 %v2092_v18  ;;  %2109 = vmatpush3.bf16.msra.mxu1 %v2106_v17  ;;  %v2114_v36 = vpack.c.bf16 %v116_v30, %v113_v29  ;;  %v91_v39 = vld [vmem:[%s3035_s0 + $0x10] sm:$0xff]  ;;  %v92_v40 = vld [vmem:[%s3035_s0 + $0x18] sm:$0xff]  ;;  %v2606_v41 = vld [vmem:[%s3042_s7] sm:$0xff] }
  0x55   :  { %2095 = vmatprep.subr.bf16.mxu0 %v2094_v22  ;;  %2111 = vmatprep.subr.bf16.mxu1 %v2110_v26  ;;  %v2610_v42 = vld [vmem:[#allocation7] sm:$0xff]  ;;  %v663_v52 = vld [vmem:[%s3038_s3 + $0x18] sm:$0xff]  ;;  %v670_v55 = vld [vmem:[%s3038_s3 + $0x50] sm:$0xff] }
  0x56   :  { %1920 = vmatprep.mubr.msk.f32.mxu1 %vm118_vm0, %v89_v35  ;;  %v661_v44 = vld [vmem:[%s3038_s3 + $0x8] sm:$0xff]  ;;  %v664_v45 = vld [vmem:[%s3038_s3 + $0x20] sm:$0xff]  ;;  %v667_v54 = vld [vmem:[%s3038_s3 + $0x38] sm:$0xff] }
  0x57   :  { %v2134_v50 = vpack.c.bf16 %v664_v45, %v661_v44  ;;  %v660_v51 = vld [vmem:[%s3038_s3] sm:$0xff]  ;;  %v2636_v59 = vld [vmem:[#allocation7 + $0x8] sm:$0xff]  ;;  %v2138_v63 = vpack.c.bf16 %v670_v55, %v667_v54  ;;  %v675_v12 = vld [vmem:[%s3038_s3 + $0x78] sm:$0xff] }
  0x58   :  { %2097 = vmatpush1.bf16.msra.mxu0 %v2096_v31  ;;  %2113 = vmatpush3.bf16.msra.mxu1 %v2110_v26  ;;  %v2136_v61 = vpack.c.bf16 %v663_v52, %v660_v51  ;;  %v666_v1 = vld [vmem:[%s3038_s3 + $0x30] sm:$0xff]  ;;  %v669_v2 = vld [vmem:[%s3038_s3 + $0x48] sm:$0xff]  ;;  %v676_v6 = vld [vmem:[%s3038_s3 + $0x80] sm:$0xff] }
  0x59   :  { %2099 = vmatprep.subr.bf16.mxu0 %v2098_v32  ;;  %2115 = vmatprep.subr.bf16.mxu1 %v2114_v36  ;;  %v2647_v4 = vld [vmem:[%s3042_s7 + $0x8] sm:$0xff]  ;;  %v2662_v8 = vld [vmem:[%s3042_s7 + $0x10] sm:$0xff]  ;;  %v2140_v9 = vpack.c.bf16 %v669_v2, %v666_v1  ;;  %v672_v11 = vld [vmem:[%s3038_s3 + $0x60] sm:$0xff] }
  0x5a   :  { %v673_v5 = vld [vmem:[%s3038_s3 + $0x68] sm:$0xff]  ;;  %v679_v14 = vld [vmem:[%s3038_s3 + $0x98] sm:$0xff]  ;;  %v682_v15 = vld [vmem:[%s3038_s3 + $0xb0] sm:$0xff]  ;;  %v2144_v20 = vpack.c.bf16 %v675_v12, %v672_v11 }
  0x5b   :  { %v2142_v10 = vpack.c.bf16 %v676_v6, %v673_v5  ;;  %v662_v18 = vld [vmem:[%s3038_s3 + $0x10] sm:$0xff]  ;;  %v665_v19 = vld [vmem:[%s3038_s3 + $0x28] sm:$0xff]  ;;  %v2146_v21 = vpack.c.bf16 %v682_v15, %v679_v14  ;;  %v2698_v24 = vld [vmem:[%s3042_s7 + $0x18] sm:$0xff] }
  0x5c   :  { %2101 = vmatpush1.bf16.msra.mxu0 %v2100_v37  ;;  %2117 = vmatpush3.bf16.msra.mxu1 %v2114_v36  ;;  %v678_v22 = vld [vmem:[%s3038_s3 + $0x90] sm:$0xff]  ;;  %v681_v23 = vld [vmem:[%s3038_s3 + $0xa8] sm:$0xff]  ;;  %v688_v26 = vld [vmem:[%s3038_s3 + $0xe0] sm:$0xff]  ;;  %v2166_v28 = vpack.c.bf16 %v665_v19, %v662_v18 }
  0x5d   :  { %v685_v25 = vld [vmem:[%s3038_s3 + $0xc8] sm:$0xff]  ;;  %v2706_v27 = vld [vmem:[#allocation7 + $0x10] sm:$0xff]  ;;  %v668_v29 = vld [vmem:[%s3038_s3 + $0x40] sm:$0xff]  ;;  %v2148_v31 = vpack.c.bf16 %v681_v23, %v678_v22 }
  0x5e   :  { %v671_v30 = vld [vmem:[%s3038_s3 + $0x58] sm:$0xff]  ;;  %v2150_v32 = vpack.c.bf16 %v688_v26, %v685_v25  ;;  %v684_v33 = vld [vmem:[%s3038_s3 + $0xc0] sm:$0xff]  ;;  %v694_v37 = vld [vmem:[%s3038_s3 + $0x110] sm:$0xff] }
  0x5f   :  { %1769 = vmatmul.mubr.msk.f32.vlgmr.msra.gmra.mrb[0].mxu0 %vm118_vm0, %v89_v35  ;;  %1921 = vmatmul.mubr.msk.f32.vlgmr.msra.gmra.mrb[0].mxu1 %vm118_vm0, %v90_v38  ;;  %v687_v34 = vld [vmem:[%s3038_s3 + $0xd8] sm:$0xff]  ;;  %v689_v51 = vld [vmem:[%s3038_s3 + $0xe8] sm:$0xff]  ;;  %v692_v55 = vld [vmem:[%s3038_s3 + $0x100] sm:$0xff] }
  0x60   :  { %201 = vmatprep.mubr.f32.mxu0 %v2401_v0  ;;  %1923 = vmatprep.mubr.msk.f32.mxu1 %vm118_vm0, %v91_v39  ;;  %v2724_v35 = vld [vmem:[#allocation7 + $0x18] sm:$0xff]  ;;  %v693_v54 = vld [vmem:[%s3038_s3 + $0x108] sm:$0xff]  ;;  %v706_v11 = vld [vmem:[%s3038_s3 + $0x170] sm:$0xff] }
  0x61   :  { %v691_v36 = vld [vmem:[%s3038_s3 + $0xf8] sm:$0xff]  ;;  %v696_v1 = vld [vmem:[%s3038_s3 + $0x120] sm:$0xff]  ;;  %v701_v6 = vld [vmem:[%s3038_s3 + $0x148] sm:$0xff] }
  0x62   :  { %v2154_v44 = vpack.c.bf16 %v694_v37, %v691_v36  ;;  %v699_v2 = vld [vmem:[%s3038_s3 + $0x138] sm:$0xff]  ;;  %v705_v14 = vld [vmem:[%s3038_s3 + $0x168] sm:$0xff]  ;;  %v704_v15 = vld [vmem:[%s3038_s3 + $0x160] sm:$0xff] }
  0x63   :  { %1770 = vmatmul.mubr.msk.f32.gmra.mrb[2].mxu0 %vm118_vm0, %v90_v38  ;;  %1924 = vmatmul.mubr.msk.f32.gmra.mrb[2].mxu1 %vm118_vm0, %v92_v40  ;;  %v2170_v38 = vpack.c.bf16 %v671_v30, %v668_v29  ;;  %v2160_v5 = vpack.c.bf16 %v699_v2, %v696_v1  ;;  %v707_v18 = vld [vmem:[%s3038_s3 + $0x178] sm:$0xff]  ;;  %v1223_v2 = vld [vmem:[%s3040_s5 + $0x50] sm:$0xff] }
  0x64   :  { %207 = vmatprep.mubr.f32.mxu0 %v2401_v0  ;;  %1930 = vmatprep.mubr.msk.f32.mxu1 %vm305_vm1, %v2606_v41  ;;  %v2194_v19 = vpack.c.bf16 %v707_v18, %v704_v15  ;;  %v1220_v1 = vld [vmem:[%s3040_s5 + $0x38] sm:$0xff] }
  0x67   :  { %1771 = vmatmul.mubr.msk.f32.gmra.mrb[4].mxu0 %vm118_vm0, %v91_v39  ;;  %v674_v39 = vld [vmem:[%s3038_s3 + $0x70] sm:$0xff] }
  0x68   :  { %213 = vmatprep.mubr.f32.mxu0 %v2401_v0 }
  0x6b   :  { %1772 = vmatmul.mubr.msk.f32.gmra.mrb[6].mxu0 %vm118_vm0, %v92_v40  ;;  %v677_v40 = vld [vmem:[%s3038_s3 + $0x88] sm:$0xff] }
  0x6c   :  { %1944 = vmatprep.mubr.msk.f32.mxu0 %vm305_vm1, %v2610_v42  ;;  %v2174_v45 = vpack.c.bf16 %v677_v40, %v674_v39 }
 0x132   :  { %v197_v43 = vpop.f32.mrb[0].mxu0  ;;  %v1922_v46 = vpop.f32.mrb[0].mxu1 }
 0x133   :  { %v2620_v47 = vpop.f32.mrb[1].mxu0  ;;  %v286_v48 = vpop.f32.mrb[1].mxu1 }
 0x134   :  { %v2126_v49 = vpack.c.bf16 %v1922_v46, %v286_v48  ;;  %v680_v46 = vld [vmem:[%s3038_s3 + $0xa0] sm:$0xff]  ;;  %v683_v48 = vld [vmem:[%s3038_s3 + $0xb8] sm:$0xff] }
 0x136   :  { %v203_v53 = vpop.f32.mrb[2].mxu0  ;;  %2127 = vmatprep.subr.bf16.mxu0 %v2126_v49  ;;  %v1925_v58 = vpop.f32.mrb[2].mxu1 }
 0x137   :  { %v2118_v56 = vpack.c.bf16 %v203_v53, %v197_v43  ;;  %v2634_v57 = vpop.f32.mrb[3].mxu0  ;;  %2129 = vmatpush3.bf16.msra.mxu0 %v2126_v49  ;;  %v296_v60 = vpop.f32.mrb[3].mxu1  ;;  %v2152_v43 = vpack.c.bf16 %v687_v34, %v684_v33  ;;  %v2178_v49 = vpack.c.bf16 %v683_v48, %v680_v46  ;;  %v690_v53 = vld [vmem:[%s3038_s3 + $0xf0] sm:$0xff] }
 0x138   :  { %v2130_v62 = vpack.c.bf16 %v1925_v58, %v296_v60  ;;  %2135 = vmatprep.subr.bf16.mxu0 %v2134_v50  ;;  %v686_v50 = vld [vmem:[%s3038_s3 + $0xd0] sm:$0xff]  ;;  %v695_v58 = vld [vmem:[%s3038_s3 + $0x118] sm:$0xff] }
 0x139   :  { %2119 = vmatprep.subr.bf16.mxu1 %v2118_v56  ;;  %v2182_v52 = vpack.c.bf16 %v689_v51, %v686_v50  ;;  %v2186_v60 = vpack.c.bf16 %v695_v58, %v692_v55 }
 0x13a   :  { %2121 = vmatpush3.bf16.msra.mxu1 %v2118_v56  ;;  %v209_v3 = vpop.f32.mrb[4].mxu0  ;;  %1945 = vmatmul.mubr.msk.f32.vlgmr.msra.gmra.mrb[8].mxu0 %vm305_vm1, %v2636_v59  ;;  %v2156_v56 = vpack.c.bf16 %v693_v54, %v690_v53  ;;  %v1217_v53 = vld [vmem:[%s3040_s5 + $0x20] sm:$0xff] }
 0x13b   :  { %v2655_v7 = vpop.f32.mrb[5].mxu0  ;;  %2137 = vmatpush1.bf16.msra.mxu0 %v2136_v61  ;;  %773 = vmatprep.mubr.f32.mxu0 %v2401_v0  ;;  %v697_v61 = vld [vmem:[%s3038_s3 + $0x128] sm:$0xff] }
 0x13c   :  { %2139 = vmatprep.subr.bf16.mxu0 %v2138_v63 }
 0x13d   :  { %1931 = vmatmul.mubr.msk.f32.vlgmr.msra.gmra.mrb[4].mxu1 %vm305_vm1, %v2647_v4 }
 0x13e   :  { %v215_v13 = vpop.f32.mrb[6].mxu0  ;;  %1937 = vmatprep.mubr.msk.f32.mxu1 %vm305_vm1, %v2662_v8 }
 0x13f   :  { %v2122_v16 = vpack.c.bf16 %v215_v13, %v209_v3  ;;  %v2681_v17 = vpop.f32.mrb[7].mxu0  ;;  %2141 = vmatpush1.bf16.msra.mxu0 %v2140_v9  ;;  %v698_v3 = vld [vmem:[%s3038_s3 + $0x130] sm:$0xff] }
 0x140   :  { %2143 = vmatprep.subr.bf16.mxu0 %v2142_v10  ;;  %v2190_v9 = vpack.c.bf16 %v701_v6, %v698_v3  ;;  %v703_v10 = vld [vmem:[%s3038_s3 + $0x158] sm:$0xff]  ;;  %v702_v13 = vld [vmem:[%s3038_s3 + $0x150] sm:$0xff] }
 0x141   :  { %2123 = vmatprep.subr.bf16.mxu1 %v2122_v16  ;;  %v2162_v12 = vpack.c.bf16 %v706_v11, %v703_v10  ;;  %v1219_v10 = vld [vmem:[%s3040_s5 + $0x30] sm:$0xff]  ;;  %v1222_v11 = vld [vmem:[%s3040_s5 + $0x48] sm:$0xff] }
 0x142   :  { %2125 = vmatpush3.bf16.msra.mxu1 %v2122_v16  ;;  %v2164_v16 = vpack.c.bf16 %v705_v14, %v702_v13  ;;  %v1229_v13 = vld [vmem:[%s3040_s5 + $0x80] sm:$0xff]  ;;  %v2220_v15 = vpack.c.bf16 %v1222_v11, %v1219_v10 }
 0x143   :  { %2131 = vmatprep.subr.bf16.mxu1 %v2130_v62  ;;  %2145 = vmatpush1.bf16.msra.mxu0 %v2144_v20  ;;  %v1245_v10 = vld [vmem:[%s3040_s5 + $0x100] sm:$0xff] }
 0x144   :  { %2147 = vmatprep.subr.bf16.mxu0 %v2146_v21 }
 0x145   :  { %1938 = vmatmul.mubr.msk.f32.vlgmr.msra.gmra.mrb[6].mxu1 %vm305_vm1, %v2698_v24 }
 0x146   :  { %2133 = vmatpush3.bf16.msra.mxu1 %v2130_v62  ;;  %1951 = vmatprep.mubr.msk.f32.mxu1 %vm305_vm1, %v2706_v27  ;;  %v700_v62 = vld [vmem:[%s3038_s3 + $0x140] sm:$0xff] }
 0x147   :  { %2167 = vmatprep.subr.bf16.mxu1 %v2166_v28  ;;  %2149 = vmatpush1.bf16.msra.mxu0 %v2148_v31  ;;  %v2158_v63 = vpack.c.bf16 %v700_v62, %v697_v61  ;;  %v1213_v61 = vld [vmem:[%s3040_s5] sm:$0xff]  ;;  %v1216_v62 = vld [vmem:[%s3040_s5 + $0x18] sm:$0xff] }
 0x148   :  { %2151 = vmatprep.subr.bf16.mxu0 %v2150_v32  ;;  %v2216_v6 = vpack.c.bf16 %v1216_v62, %v1213_v61  ;;  %v1233_v61 = vld [vmem:[%s3040_s5 + $0xa0] sm:$0xff]  ;;  %v1236_v62 = vld [vmem:[%s3040_s5 + $0xb8] sm:$0xff] }
 0x149   :  { %1952 = vmatmul.mubr.msk.f32.vlgmr.msra.gmra.mrb[8].mxu1 %vm305_vm1, %v2724_v35 }
 0x14a   :  { %2169 = vmatpush3.bf16.msra.mxu1 %v2166_v28  ;;  %v1785_v28 = vld [vmem:[#allocation2] ss:$0 sm:$0xff] }
 0x14b   :  { %2171 = vmatprep.subr.bf16.mxu1 %v2170_v38  ;;  %2153 = vmatpush1.bf16.msra.mxu0 %v2152_v43 }
 0x14c   :  { %2155 = vmatprep.subr.bf16.mxu0 %v2154_v44 }
 0x14e   :  { %2173 = vmatpush3.bf16.msra.mxu1 %v2170_v38 }
 0x14f   :  { %2175 = vmatprep.subr.bf16.mxu1 %v2174_v45  ;;  %2157 = vmatpush1.bf16.msra.mxu0 %v2156_v56 }
 0x150   :  { %2159 = vmatprep.subr.bf16.mxu0 %v2158_v63 }
 0x152   :  { %2177 = vmatpush3.bf16.msra.mxu1 %v2174_v45 }
 0x153   :  { %2179 = vmatprep.subr.bf16.mxu1 %v2178_v49  ;;  %2161 = vmatpush1.bf16.msra.mxu0 %v2160_v5 }
 0x154   :  { %2163 = vmatprep.subr.bf16.mxu0 %v2162_v12  ;;  %v1226_v12 = vld [vmem:[%s3040_s5 + $0x68] sm:$0xff] }
 0x156   :  { %2181 = vmatpush3.bf16.msra.mxu1 %v2178_v49 }
 0x157   :  { %2183 = vmatprep.subr.bf16.mxu1 %v2182_v52  ;;  %2165 = vmatpush1.bf16.msra.mxu0 %v2164_v16 }
 0x15a   :  { %2185 = vmatpush3.bf16.msra.mxu1 %v2182_v52  ;;  %v1214_v52 = vld [vmem:[%s3040_s5 + $0x8] sm:$0xff] }
 0x15b   :  { %2187 = vmatprep.subr.bf16.mxu1 %v2186_v60 }
 0x15e   :  { %2189 = vmatpush3.bf16.msra.mxu1 %v2186_v60  ;;  %v2214_v60 = vpack.c.bf16 %v1217_v53, %v1214_v52 }
 0x15f   :  { %2191 = vmatprep.subr.bf16.mxu1 %v2190_v9 }
 0x162   :  { %2193 = vmatpush3.bf16.msra.mxu1 %v2190_v9  ;;  %v2218_v9 = vpack.c.bf16 %v1223_v2, %v1220_v1  ;;  %v1239_v1 = vld [vmem:[%s3040_s5 + $0xd0] sm:$0xff]  ;;  %v1242_v2 = vld [vmem:[%s3040_s5 + $0xe8] sm:$0xff] }
 0x163   :  { %2195 = vmatprep.subr.bf16.mxu1 %v2194_v19 }
 0x166   :  { %2197 = vmatpush3.bf16.msra.mxu1 %v2194_v19  ;;  %v2222_v19 = vpack.c.bf16 %v1229_v13, %v1226_v12  ;;  %v1248_v12 = vld [vmem:[%s3040_s5 + $0x118] sm:$0xff] }
 0x167   :  { %v2266_v13 = vpack.c.bf16 %v1248_v12, %v1245_v10 }
 0x20d   :  { %v1946_v20 = vpop.f32.mrb[8].mxu0 }
 0x20e   :  { %v544_v21 = vpop.f32.mrb[9].mxu0 }
 0x210   :  { %v1932_v22 = vpop.f32.mrb[4].mxu1 }
 0x211   :  { %v469_v23 = vadd.f32 %v1932_v22, %v2634_v57  ;;  %v378_v25 = vpop.f32.mrb[5].mxu1 }
 0x212   :  { %v468_v26 = vadd.f32 %v378_v25, %v2620_v47  ;;  %v1235_v25 = vld [vmem:[%s3040_s5 + $0xb0] sm:$0xff] }
 0x213   :  { %v635_v29 = vadd.f32 %v1946_v20, %v469_v23  ;;  %v1225_v20 = vld [vmem:[%s3040_s5 + $0x60] sm:$0xff]  ;;  %v1232_v23 = vld [vmem:[%s3040_s5 + $0x98] sm:$0xff] }
 0x214   :  { %v634_v30 = vadd.f32 %v544_v21, %v468_v26  ;;  %v1228_v21 = vld [vmem:[%s3040_s5 + $0x78] sm:$0xff] }
 0x215   :  { %v2802_v31 = vadd.f32 %v1785_v28, %v635_v29  ;;  %v2224_v29 = vpack.c.bf16 %v1228_v21, %v1225_v20  ;;  %v1252_v20 = vld [vmem:[%s3040_s5 + $0x138] sm:$0xff]  ;;  %v1251_v21 = vld [vmem:[%s3040_s5 + $0x130] sm:$0xff] }
 0x216   :  { %v2804_v32 = vadd.f32 %v1785_v28, %v634_v30 }
 0x217   :  { %v653_v33 = vmul.f32 0.2, %v2802_v31  ;;  %vm649_vm3 = vcmp.ge.f32.partialorder %v2802_v31, 0.0 }
 0x218   :  { %v1939_v34 = vpop.f32.mrb[6].mxu1  ;;  %vm648_vm2 = vcmp.ge.f32.partialorder %v2804_v32, 0.0  ;;  %v652_v36 = vmul.f32 0.2, %v2804_v32 }
 0x219   :  { %v471_v57 = vadd.f32 %v1939_v34, %v2681_v17  ;;  %v459_v37 = vpop.f32.mrb[7].mxu1  ;;  %v657_v39 = vsel %vm649_vm3, %v2802_v31, %v653_v33  ;;  %v1215_v34 = vld [vmem:[%s3040_s5 + $0x10] sm:$0xff] }
 0x21a   :  { %v470_v47 = vadd.f32 %v459_v37, %v2655_v7  ;;  %v656_v38 = vsel %vm648_vm2, %v2804_v32, %v652_v36  ;;  %v2226_v36 = vpack.c.bf16 %v1235_v25, %v1232_v23  ;;  %v1231_v37 = vld [vmem:[%s3040_s5 + $0x90] sm:$0xff]  ;;  %v1254_v23 = vld [vmem:[%s3040_s5 + $0x148] sm:$0xff] }
 0x21b   :  { %774 = vmatmul.mubr.f32.vlgmr.msra.gmra.mrb[10].mxu0 %v656_v38  ;;  %1986 = vmatprep.mubr.f32.mxu1 %v656_v38  ;;  %v1238_v38 = vld [vmem:[%s3040_s5 + $0xc8] sm:$0xff]  ;;  %v2270_v25 = vpack.c.bf16 %v1254_v23, %v1251_v21 }
 0x21c   :  { %v1953_v40 = vpop.f32.mrb[8].mxu1  ;;  %1987 = vmatmul.mubr.f32.vlgmr.msra.gmra.mrb[10].mxu1 %v657_v39  ;;  %779 = vmatprep.mubr.f32.mxu0 %v2401_v0 }
 0x21d   :  { %v637_v43 = vadd.f32 %v1953_v40, %v471_v57  ;;  %v625_v44 = vpop.f32.mrb[9].mxu1  ;;  %v1218_v57 = vld [vmem:[%s3040_s5 + $0x28] sm:$0xff] }
 0x21e   :  { %v636_v45 = vadd.f32 %v625_v44, %v470_v47  ;;  %v1234_v47 = vld [vmem:[%s3040_s5 + $0xa8] sm:$0xff]  ;;  %v2246_v40 = vpack.c.bf16 %v1218_v57, %v1215_v34 }
 0x21f   :  { %v2815_v46 = vadd.f32 %v1785_v28, %v637_v43  ;;  %780 = vmatmul.mubr.f32.gmra.mrb[12].mxu0 %v657_v39  ;;  %v1241_v39 = vld [vmem:[%s3040_s5 + $0xe0] sm:$0xff]  ;;  %v2228_v44 = vpack.c.bf16 %v1234_v47, %v1231_v37  ;;  %v1258_v34 = vld [vmem:[%s3040_s5 + $0x168] sm:$0xff]  ;;  %v1260_v37 = vld [vmem:[%s3040_s5 + $0x178] sm:$0xff] }
 0x220   :  { %v2817_v17 = vadd.f32 %v1785_v28, %v636_v45  ;;  %785 = vmatprep.mubr.f32.mxu0 %v2401_v0  ;;  %v1221_v43 = vld [vmem:[%s3040_s5 + $0x40] sm:$0xff]  ;;  %v1224_v45 = vld [vmem:[%s3040_s5 + $0x58] sm:$0xff] }
 0x221   :  { %v655_v7 = vmul.f32 0.2, %v2815_v46  ;;  %vm651_vm5 = vcmp.ge.f32.partialorder %v2815_v46, 0.0  ;;  %v2250_v52 = vpack.c.bf16 %v1224_v45, %v1221_v43 }
 0x222   :  { %vm650_vm4 = vcmp.ge.f32.partialorder %v2817_v17, 0.0  ;;  %v654_v48 = vmul.f32 0.2, %v2817_v17 }
 0x223   :  { %v659_v50 = vsel %vm651_vm5, %v2815_v46, %v655_v7  ;;  %v2230_v7 = vpack.c.bf16 %v1241_v39, %v1238_v38 }
 0x224   :  { %v658_v49 = vsel %vm650_vm4, %v2817_v17, %v654_v48  ;;  %v1237_v48 = vld [vmem:[%s3040_s5 + $0xc0] sm:$0xff] }
 0x225   :  { %786 = vmatmul.mubr.f32.gmra.mrb[14].mxu0 %v658_v49  ;;  %1989 = vmatprep.mubr.f32.mxu1 %v658_v49  ;;  %v1240_v49 = vld [vmem:[%s3040_s5 + $0xd8] sm:$0xff] }
 0x226   :  { %1990 = vmatmul.mubr.f32.gmra.mrb[12].mxu1 %v659_v50  ;;  %791 = vmatprep.mubr.f32.mxu0 %v2401_v0  ;;  %v2232_v53 = vpack.c.bf16 %v1240_v49, %v1237_v48 }
 0x227   :  { %1996 = vmatprep.mubr.msk.f32.mxu1 %vm305_vm1, %v2606_v41 }
 0x229   :  { %792 = vmatmul.mubr.f32.gmra.mrb[16].mxu0 %v659_v50  ;;  %v1244_v50 = vld [vmem:[%s3040_s5 + $0xf8] sm:$0xff] }
 0x22a   :  { %2010 = vmatprep.mubr.msk.f32.mxu0 %vm305_vm1, %v2610_v42 }
 0x2ee   :  { %v775_v51 = vpop.f32.mrb[10].mxu0 }
 0x2ef   :  { %v2837_v54 = vpop.f32.mrb[11].mxu0  ;;  %v1988_v55 = vpop.f32.mrb[10].mxu1 }
 0x2f0   :  { %v864_v56 = vpop.f32.mrb[11].mxu1 }
 0x2f1   :  { %v2206_v58 = vpack.c.bf16 %v1988_v55, %v864_v56  ;;  %v1227_v55 = vld [vmem:[%s3040_s5 + $0x70] sm:$0xff]  ;;  %v1230_v56 = vld [vmem:[%s3040_s5 + $0x88] sm:$0xff] }
 0x2f2   :  { %v781_v63 = vpop.f32.mrb[12].mxu0 }
 0x2f3   :  { %v2198_v3 = vpack.c.bf16 %v781_v63, %v775_v51  ;;  %v2851_v5 = vpop.f32.mrb[13].mxu0  ;;  %2207 = vmatprep.subr.bf16.mxu0 %v2206_v58  ;;  %v1247_v51 = vld [vmem:[%s3040_s5 + $0x110] sm:$0xff]  ;;  %v2258_v63 = vpack.c.bf16 %v1236_v62, %v1233_v61 }
 0x2f4   :  { %2209 = vmatpush3.bf16.msra.mxu0 %v2206_v58  ;;  %v2234_v58 = vpack.c.bf16 %v1247_v51, %v1244_v50 }
 0x2f5   :  { %2199 = vmatprep.subr.bf16.mxu1 %v2198_v3  ;;  %2215 = vmatprep.subr.bf16.mxu0 %v2214_v60  ;;  %v2254_v60 = vpack.c.bf16 %v1230_v56, %v1227_v55 }
 0x2f6   :  { %2201 = vmatpush3.bf16.msra.mxu1 %v2198_v3  ;;  %v2262_v3 = vpack.c.bf16 %v1242_v2, %v1239_v1 }
 0x2f7   :  { %2011 = vmatmul.mubr.msk.f32.vlgmr.msra.gmra.mrb[18].mxu0 %vm305_vm1, %v2636_v59 }
 0x2f8   :  { %v787_v14 = vpop.f32.mrb[14].mxu0  ;;  %2217 = vmatpush1.bf16.msra.mxu0 %v2216_v6  ;;  %1326 = vmatprep.mubr.f32.mxu0 %v2401_v0  ;;  %v1243_v6 = vld [vmem:[%s3040_s5 + $0xf0] sm:$0xff] }
 0x2f9   :  { %v2868_v16 = vpop.f32.mrb[15].mxu0  ;;  %v1991_v18 = vpop.f32.mrb[12].mxu1  ;;  %1997 = vmatmul.mubr.msk.f32.vlgmr.msra.gmra.mrb[14].mxu1 %vm305_vm1, %v2647_v4  ;;  %2219 = vmatprep.subr.bf16.mxu0 %v2218_v9  ;;  %v1246_v9 = vld [vmem:[%s3040_s5 + $0x108] sm:$0xff] }
 0x2fa   :  { %v874_v22 = vpop.f32.mrb[13].mxu1  ;;  %2003 = vmatprep.mubr.msk.f32.mxu1 %vm305_vm1, %v2662_v8  ;;  %v2236_v11 = vpack.c.bf16 %v1246_v9, %v1243_v6 }
 0x2fb   :  { %v2210_v26 = vpack.c.bf16 %v1991_v18, %v874_v22 }
 0x2fc   :  { %v793_v28 = vpop.f32.mrb[16].mxu0  ;;  %2221 = vmatpush1.bf16.msra.mxu0 %v2220_v15  ;;  %v1253_v15 = vld [vmem:[%s3040_s5 + $0x140] sm:$0xff] }
 0x2fd   :  { %v2202_v30 = vpack.c.bf16 %v793_v28, %v787_v14  ;;  %v2886_v33 = vpop.f32.mrb[17].mxu0  ;;  %2223 = vmatprep.subr.bf16.mxu0 %v2222_v19  ;;  %v1250_v14 = vld [vmem:[%s3040_s5 + $0x128] sm:$0xff]  ;;  %v1249_v19 = vld [vmem:[%s3040_s5 + $0x120] sm:$0xff]  ;;  %v1259_v28 = vld [vmem:[%s3040_s5 + $0x170] sm:$0xff] }
 0x2fe   :  { %v2238_v18 = vpack.c.bf16 %v1253_v15, %v1250_v14  ;;  %v2240_v22 = vpack.c.bf16 %v1252_v20, %v1249_v19 }
 0x2ff   :  { %2203 = vmatprep.subr.bf16.mxu1 %v2202_v30 }
 0x300   :  { %2205 = vmatpush3.bf16.msra.mxu1 %v2202_v30  ;;  %2225 = vmatpush1.bf16.msra.mxu0 %v2224_v29  ;;  %v1255_v30 = vld [vmem:[%s3040_s5 + $0x150] sm:$0xff] }
 0x301   :  { %2211 = vmatprep.subr.bf16.mxu1 %v2210_v26  ;;  %2227 = vmatprep.subr.bf16.mxu0 %v2226_v36  ;;  %v1257_v36 = vld [vmem:[%s3040_s5 + $0x160] sm:$0xff]  ;;  %v2244_v57 = vpack.c.bf16 %v1258_v34, %v1255_v30 }
 0x302   :  { %v2274_v47 = vpack.c.bf16 %v1260_v37, %v1257_v36  ;;  %v1803_v30 = vld [vmem:[#allocation6] ss:$0 sm:$0xff] }
 0x303   :  { %2004 = vmatmul.mubr.msk.f32.vlgmr.msra.gmra.mrb[16].mxu1 %vm305_vm1, %v2698_v24 }
 0x304   :  { %2213 = vmatpush3.bf16.msra.mxu1 %v2210_v26  ;;  %2017 = vmatprep.mubr.msk.f32.mxu1 %vm305_vm1, %v2706_v27  ;;  %v1256_v26 = vld [vmem:[%s3040_s5 + $0x158] sm:$0xff] }
 0x305   :  { %2247 = vmatprep.subr.bf16.mxu1 %v2246_v40  ;;  %2229 = vmatpush1.bf16.msra.mxu0 %v2228_v44  ;;  %v2242_v29 = vpack.c.bf16 %v1259_v28, %v1256_v26 }
 0x306   :  { %2231 = vmatprep.subr.bf16.mxu0 %v2230_v7  ;;  %v1794_v7 = vld [vmem:[#allocation4] ss:$0 sm:$0xff] }
 0x307   :  { %2018 = vmatmul.mubr.msk.f32.vlgmr.msra.gmra.mrb[18].mxu1 %vm305_vm1, %v2724_v35 }
 0x308   :  { %2249 = vmatpush3.bf16.msra.mxu1 %v2246_v40 }
 0x309   :  { %2251 = vmatprep.subr.bf16.mxu1 %v2250_v52  ;;  %2233 = vmatpush1.bf16.msra.mxu0 %v2232_v53 }
 0x30a   :  { %2235 = vmatprep.subr.bf16.mxu0 %v2234_v58 }
 0x30c   :  { %2253 = vmatpush3.bf16.msra.mxu1 %v2250_v52 }
 0x30d   :  { %2255 = vmatprep.subr.bf16.mxu1 %v2254_v60  ;;  %2237 = vmatpush1.bf16.msra.mxu0 %v2236_v11 }
 0x30e   :  { %2239 = vmatprep.subr.bf16.mxu0 %v2238_v18 }
 0x310   :  { %2257 = vmatpush3.bf16.msra.mxu1 %v2254_v60 }
 0x311   :  { %2259 = vmatprep.subr.bf16.mxu1 %v2258_v63  ;;  %2241 = vmatpush1.bf16.msra.mxu0 %v2240_v22 }
 0x312   :  { %2243 = vmatprep.subr.bf16.mxu0 %v2242_v29 }
 0x314   :  { %2261 = vmatpush3.bf16.msra.mxu1 %v2258_v63 }
 0x315   :  { %2263 = vmatprep.subr.bf16.mxu1 %v2262_v3  ;;  %2245 = vmatpush1.bf16.msra.mxu0 %v2244_v57 }
 0x318   :  { %2265 = vmatpush3.bf16.msra.mxu1 %v2262_v3 }
 0x319   :  { %2267 = vmatprep.subr.bf16.mxu1 %v2266_v13 }
 0x31c   :  { %2269 = vmatpush3.bf16.msra.mxu1 %v2266_v13 }
 0x31d   :  { %2271 = vmatprep.subr.bf16.mxu1 %v2270_v25 }
 0x320   :  { %2273 = vmatpush3.bf16.msra.mxu1 %v2270_v25 }
 0x321   :  { %2275 = vmatprep.subr.bf16.mxu1 %v2274_v47 }
 0x324   :  { %2277 = vmatpush3.bf16.msra.mxu1 %v2274_v47 }
 0x3ca   :  { %v2012_v38 = vpop.f32.mrb[18].mxu0 }
 0x3cb   :  { %v1103_v39 = vpop.f32.mrb[19].mxu0 }
 0x3cc   :  { %v1998_v40 = vpop.f32.mrb[14].mxu1 }
 0x3cd   :  { %v1034_v43 = vadd.f32 %v1998_v40, %v2851_v5  ;;  %v949_v44 = vpop.f32.mrb[15].mxu1 }
 0x3ce   :  { %v1033_v45 = vadd.f32 %v949_v44, %v2837_v54 }
 0x3cf   :  { %v1188_v48 = vadd.f32 %v2012_v38, %v1034_v43 }
 0x3d0   :  { %v1187_v49 = vadd.f32 %v1103_v39, %v1033_v45 }
 0x3d1   :  { %v1198_v50 = vadd.f32 %v1794_v7, %v1188_v48 }
 0x3d2   :  { %v1197_v51 = vadd.f32 %v1794_v7, %v1187_v49 }
 0x3d3   :  { %v1206_v52 = vmul.f32 0.2, %v1198_v50  ;;  %vm1202_vm7 = vcmp.ge.f32.partialorder %v1198_v50, 0.0 }
 0x3d4   :  { %v1205_v53 = vmul.f32 0.2, %v1197_v51  ;;  %vm1201_vm6 = vcmp.ge.f32.partialorder %v1197_v51, 0.0 }
 0x3d5   :  { %v1210_v5 = vsel %vm1202_vm7, %v1198_v50, %v1206_v52 }
 0x3d6   :  { %v2005_v55 = vpop.f32.mrb[16].mxu1  ;;  %v1209_v56 = vsel %vm1201_vm6, %v1197_v51, %v1205_v53 }
 0x3d7   :  { %v1036_v58 = vadd.f32 %v2005_v55, %v2886_v33  ;;  %v1024_v60 = vpop.f32.mrb[17].mxu1  ;;  %1327 = vmatmul.mubr.f32.vlgmr.msra.gmra.mrb[20].mxu0 %v1209_v56  ;;  %2052 = vmatprep.mubr.f32.mxu1 %v1209_v56 }
 0x3d8   :  { %v1035_v61 = vadd.f32 %v1024_v60, %v2868_v16  ;;  %2053 = vmatmul.mubr.f32.vlgmr.msra.gmra.mrb[20].mxu1 %v1210_v5  ;;  %1332 = vmatprep.mubr.f32.mxu0 %v2401_v0 }
 0x3da   :  { %v2019_v54 = vpop.f32.mrb[18].mxu1 }
 0x3db   :  { %v1190_v62 = vadd.f32 %v2019_v54, %v1036_v58  ;;  %v1178_v63 = vpop.f32.mrb[19].mxu1  ;;  %1333 = vmatmul.mubr.f32.gmra.mrb[22].mxu0 %v1210_v5 }
 0x3dc   :  { %v1189_v1 = vadd.f32 %v1178_v63, %v1035_v61  ;;  %1338 = vmatprep.mubr.f32.mxu0 %v2401_v0 }
 0x3dd   :  { %v1200_v2 = vadd.f32 %v1794_v7, %v1190_v62 }
 0x3de   :  { %v1199_v3 = vadd.f32 %v1794_v7, %v1189_v1 }
 0x3df   :  { %v1208_v6 = vmul.f32 0.2, %v1200_v2  ;;  %vm1204_vm9 = vcmp.ge.f32.partialorder %v1200_v2, 0.0 }
 0x3e0   :  { %vm1203_vm8 = vcmp.ge.f32.partialorder %v1199_v3, 0.0  ;;  %v1207_v33 = vmul.f32 0.2, %v1199_v3 }
 0x3e1   :  { %v1212_v16 = vsel %vm1204_vm9, %v1200_v2, %v1208_v6 }
 0x3e2   :  { %v1211_v9 = vsel %vm1203_vm8, %v1199_v3, %v1207_v33 }
 0x3e3   :  { %1339 = vmatmul.mubr.f32.gmra.mrb[24].mxu0 %v1211_v9  ;;  %2055 = vmatprep.mubr.f32.mxu1 %v1211_v9 }
 0x3e4   :  { %2056 = vmatmul.mubr.f32.gmra.mrb[22].mxu1 %v1212_v16  ;;  %1344 = vmatprep.mubr.f32.mxu0 %v2401_v0 }
 0x3e5   :  { %2062 = vmatprep.mubr.msk.f32.mxu1 %vm305_vm1, %v2606_v41 }
 0x3e7   :  { %1345 = vmatmul.mubr.f32.gmra.mrb[26].mxu0 %v1212_v16 }
 0x3e8   :  { %2076 = vmatprep.mubr.msk.f32.mxu0 %vm305_vm1, %v2610_v42 }
 0x4aa   :  { %v1328_v10 = vpop.f32.mrb[20].mxu0 }
 0x4ab   :  { %v1330_v11 = vpop.f32.mrb[21].mxu0  ;;  %v2054_v12 = vpop.f32.mrb[20].mxu1 }
 0x4ac   :  { %v1417_v13 = vpop.f32.mrb[21].mxu1 }
 0x4ad   :  { %v2286_v14 = vpack.c.bf16 %v2054_v12, %v1417_v13 }
 0x4ae   :  { %v1334_v15 = vpop.f32.mrb[22].mxu0 }
 0x4af   :  { %v2278_v18 = vpack.c.bf16 %v1334_v15, %v1328_v10  ;;  %v1336_v19 = vpop.f32.mrb[23].mxu0  ;;  %2287 = vmatprep.subr.bf16.mxu0 %v2286_v14 }
 0x4b0   :  { %2289 = vmatpush3.bf16.msra.mxu0 %v2286_v14 }
 0x4b1   :  { %2279 = vmatprep.subr.bf16.mxu1 %v2278_v18 }
 0x4b2   :  { %2281 = vmatpush3.bf16.msra.mxu1 %v2278_v18 }
 0x4b3   :  { %2077 = vmatmul.mubr.msk.f32.vlgmr.msra.gmra.mrb[28].mxu0 %vm305_vm1, %v2636_v59 }
 0x4b5   :  { %2063 = vmatmul.mubr.msk.f32.vlgmr.msra.gmra.mrb[24].mxu1 %vm305_vm1, %v2647_v4 }
 0x4b6   :  { %v1340_v0 = vpop.f32.mrb[24].mxu0  ;;  %2069 = vmatprep.mubr.msk.f32.mxu1 %vm305_vm1, %v2662_v8 }
 0x4b7   :  { %v1342_v41 = vpop.f32.mrb[25].mxu0  ;;  %v2057_v42 = vpop.f32.mrb[22].mxu1 }
 0x4b8   :  { %v1427_v20 = vpop.f32.mrb[23].mxu1 }
 0x4b9   :  { %v2290_v21 = vpack.c.bf16 %v2057_v42, %v1427_v20 }
 0x4ba   :  { %v1346_v22 = vpop.f32.mrb[26].mxu0 }
 0x4bb   :  { %v2282_v23 = vpack.c.bf16 %v1346_v22, %v1340_v0  ;;  %v1348_v25 = vpop.f32.mrb[27].mxu0 }
 0x4bd   :  { %2283 = vmatprep.subr.bf16.mxu1 %v2282_v23 }
 0x4be   :  { %2285 = vmatpush3.bf16.msra.mxu1 %v2282_v23 }
 0x4bf   :  { %2291 = vmatprep.subr.bf16.mxu1 %v2290_v21 }
 0x4c1   :  { %2070 = vmatmul.mubr.msk.f32.vlgmr.msra.gmra.mrb[26].mxu1 %vm305_vm1, %v2698_v24 }
 0x4c2   :  { %2293 = vmatpush3.bf16.msra.mxu1 %v2290_v21  ;;  %2083 = vmatprep.mubr.msk.f32.mxu1 %vm305_vm1, %v2706_v27 }
 0x4c5   :  { %2084 = vmatmul.mubr.msk.f32.vlgmr.msra.gmra.mrb[28].mxu1 %vm305_vm1, %v2724_v35 }
 0x586   :  { %v2078_v59 = vpop.f32.mrb[28].mxu0 }
 0x587   :  { %v1656_v4 = vpop.f32.mrb[29].mxu0 }
 0x588   :  { %v2064_v8 = vpop.f32.mrb[24].mxu1 }
 0x589   :  { %v1587_v26 = vadd.f32 %v2064_v8, %v1336_v19  ;;  %v1502_v28 = vpop.f32.mrb[25].mxu1 }
 0x58a   :  { %v1586_v29 = vadd.f32 %v1502_v28, %v1330_v11 }
 0x58b   :  { %v1741_v34 = vadd.f32 %v2078_v59, %v1587_v26 }
 0x58c   :  { %v1740_v36 = vadd.f32 %v1656_v4, %v1586_v29 }
 0x58d   :  { %v1751_v57 = vadd.f32 %v1803_v30, %v1741_v34 }
 0x58e   :  { %v1750_v37 = vadd.f32 %v1803_v30, %v1740_v36 }
 0x58f   :  { %v1755_v24 = vadd.f32 %v1751_v57, %v2802_v31 }
 0x590   :  { %v1754_v47 = vadd.f32 %v1750_v37, %v2804_v32 }
 0x591   :  { %1759 = vst [vmem:[%s3044_s9 + $0x8] sm:$0xff] %v1755_v24 }
 0x592   :  { %1758 = vst [vmem:[%s3044_s9] sm:$0xff] %v1754_v47 }
 0x594   :  { %v2071_v27 = vpop.f32.mrb[26].mxu1 }
 0x595   :  { %v1589_v35 = vadd.f32 %v2071_v27, %v1348_v25  ;;  %v1577_v38 = vpop.f32.mrb[27].mxu1 }
 0x596   :  { %v1588_v39 = vadd.f32 %v1577_v38, %v1342_v41 }
 0x598   :  { %v2085_v40 = vpop.f32.mrb[28].mxu1 }
 0x599   :  { %v1743_v43 = vadd.f32 %v2085_v40, %v1589_v35  ;;  %v1731_v44 = vpop.f32.mrb[29].mxu1 }
 0x59a   :  { %v1742_v45 = vadd.f32 %v1731_v44, %v1588_v39 }
 0x59b   :  { %v1753_v7 = vadd.f32 %v1803_v30, %v1743_v43 }
 0x59c   :  { %v1752_v31 = vadd.f32 %v1803_v30, %v1742_v45 }
 0x59d   :  { %v1757_v32 = vadd.f32 %v1753_v7, %v2815_v46 }
 0x59e   :  { %v1756_v48 = vadd.f32 %v1752_v31, %v2817_v17 }
 0x59f   :  { %1761 = vst [vmem:[%s3044_s9 + $0x18] sm:$0xff] %v1757_v32 }
 0x5a0   :  { %1760 = vst [vmem:[%s3044_s9 + $0x10] sm:$0xff] %v1756_v48 }
 0x5a1   :  { %1766 = vsyncpa [#allocation3], 1 }
 0x5a2   :  { %1767 = vsyncpa [#allocation5], 1 }
 0x5a3   :  { %1768 = vsyncpa [#allocation8], 1 }

// kernel: labs_injected_encoder_forward.7
= control target key start
LH: loop header
LB: loop body
LE: loop exit
PB: predicated region body
PF: predicated region fallthrough
CT: control target
= control target key end

     0   :  { %s5647_s0 = inlined_call_operand.vmem [shape: f32[2,16,128], index: 0, kind: input, shape index: {}]   ;;  %s5648_s1 = inlined_call_operand.vmem [shape: f32[2,512], index: 1, kind: input, shape index: {}]   ;;  %s5649_s2 = inlined_call_operand.vmem [shape: f32[2,128], index: 2, kind: input, shape index: {}]   ;;  %s5650_s3 = inlined_call_operand.vmem [shape: f32[128,512], index: 3, kind: input, shape index: {}]   ;;  %s5651_s4 = inlined_call_operand.hbm [shape: f32[1,512], index: 4, kind: input, shape index: {}]   ;;  %s5652_s5 = inlined_call_operand.vmem [shape: f32[512,128], index: 5, kind: input, shape index: {}]   ;;  %s5653_s6 = inlined_call_operand.hbm [shape: f32[1,128], index: 6, kind: input, shape index: {}]   ;;  %s5654_s7 = inlined_call_operand.hbm [shape: f32[128,128], index: 7, kind: input, shape index: {}]   ;;  %s5655_s8 = inlined_call_operand.vmem [shape: f32[128,384], index: 8, kind: input, shape index: {}]   ;;  %s5656_s9 = inlined_call_operand.hbm [shape: f32[1,128], index: 9, kind: input, shape index: {}]   ;;  %s5657_s10 = inlined_call_operand.hbm [shape: f32[128,384], index: 10, kind: input, shape index: {}]   ;;  %s5658_s11 = inlined_call_operand.hbm [shape: f32[1,128], index: 11, kind: input, shape index: {}]   ;;  %s5659_s12 = inlined_call_operand.vmem [shape: f32[128,8], index: 12, kind: input, shape index: {}]   ;;  %s5660_s13 = inlined_call_operand.hbm [shape: f32[8,128], index: 13, kind: input, shape index: {}]   ;;  %s5661_s14 = inlined_call_operand.vmem [shape: f32[2,16,16], index: 14, kind: input, shape index: {}]   ;;  %s5662_s15 = inlined_call_operand.hbm [shape: f32[2,16,16], index: 15, kind: input, shape index: {}]   ;;  %s5663_s16 = inlined_call_operand.vmem [shape: f32[1,128], index: 16, kind: input, shape index: {}]   ;;  %s5664_s17 = inlined_call_operand.vmem [shape: f32[2,2,16,128], index: 17, kind: output, shape index: {}]  }
   0x1   :  { %5672 = sst [smem:[#allocation22_spill]] %s5647_s0 }
   0x2   :  { %5673 = sst [smem:[#allocation23_spill]] %s5648_s1 }
   0x3   :  { %5674 = sst [smem:[#allocation24_spill]] %s5651_s4 }
   0x4   :  { %5675 = sst [smem:[#allocation25_spill]] %s5653_s6 }
   0x5   :  { %5676 = sst [smem:[#allocation26_spill]] %s5654_s7 }
   0x6   :  { %5677 = sst [smem:[#allocation27_spill]] %s5661_s14 }
   0x7   :  { %5678 = sst [smem:[#allocation28_spill]] %s5663_s16 }
   0x8   :  { %22 = vsyncpa [#allocation4], 0 }
   0x9   :  { %23 = vsyncpa [#allocation6], 0 }
   0xa   :  { %24 = vsyncpa [#allocation9], 0 }
   0xb   :  { %25 = vsyncpa [#allocation12], 0 }
   0xc   :  { %26 = vsyncpa [#allocation15], 0  ;;  %s4504_s24 = smov 0  }
   0xd LB: > { %5679 = sst [smem:[#allocation21_spill]] %s4396_s24  ;;  %s4398_s25 = smov [#allocation5]   ;;  %s4396_s24 = sphi %s4504_s24, %s32_s24  }
   0xe   : > { %s459_s26 = sshll.u32 %s4398_s25, 4  ;;  %s4510_s27 = sadd.s32 4294967295, %s4396_s24   ;;  %s4516_s26 = int_to_ptr.vmem [resolvable:$true] %s459_s26 }
   0xf   : > { %p3159_p0 = scmp.ge.s32.totalorder %s4396_s24, 1  ;;  %p420_p1 = scmp.lt.s32.totalorder %s4396_s24, 3 }
  0x10   : > { %p5668_p3 = scmp.eq.s32.totalorder %s4510_s27, 0  ;;  %s4399_s29 = smov [#allocation8]  }
  0x11   : > { %p4518_p4 = pnand %p3159_p0, %p420_p1  ;;  %s486_s0 = sshll.u32 %s4399_s29, 4  ;;  %s4524_s0 = int_to_ptr.vmem [resolvable:$true] %s486_s0 }
  0x12   : > { %s4400_s30 = smov [#allocation11]   ;;  %s4401_s1 = smov [#allocation3]  }
  0x13   : > { %s5680_s28 = scalar_select %p4518_p4, 1, 0 }
  0x14   : > { %p4075_p5 = pneg %p4518_p4  ;;  %s510_s18 = sshll.u32 %s4400_s30, 4  ;;  %s4532_s18 = int_to_ptr.vmem [resolvable:$true] %s510_s18 }
  0x15   : > { %s445_s20 = sshll.u32 %s4401_s1, 4  ;;  %s5682_s6 = sld [smem:[#allocation25_spill]]  ;;  %s4534_s20 = int_to_ptr.vmem [resolvable:$true] %s445_s20 }
  0x16   : > { %p4528_p6 = pnand %p5668_p3, %p4075_p5 }
  0x18   : > { %p4544_p8 = pneg %p4528_p6 }
  0x1b   : > { %s4146_s23 = scalar_lea.hbm %s5682_s6, 16 }
  0x1c   : > { %p4147_p7 = scmp.ne.s32.totalorder %s5682_s6, %s4146_s23  ;;  %p4153_p11 = scmp.lt.u32.totalorder %s4146_s23, %s5682_s6 }
  0x1e   : > { %p4149_p9 = pnand %p4544_p8, %p4147_p7 }
  0x20   : > { %p4150_p10 = pneg %p4149_p9 }
  0x22   : > { %p4155_p12 = pnand %p4153_p11, %p4150_p10 }
  0x24   : > { %4158 = shalt.err (!%p4155_p12)
}
  0x25   : > { %s4159_s21 = scalar_lea.vmem %s4516_s26, 16  ;;  %s4166_s22 = scalar_lea.vmem %s4516_s26, 32 }
  0x26   : > { %p4160_p13 = scmp.ne.s32.totalorder %s4516_s26, %s4159_s21  ;;  %p4167_p5 = scmp.lt.s32.totalorder %s4516_s26, %s4516_s26 }
  0x27   : > { %p4168_p7 = scmp.lt.s32.totalorder %s4166_s22, %s4159_s21 }
  0x28   : > { %p4162_p0 = pnand %p4160_p13, %p4544_p8 }
  0x29   : > { %p4169_p9 = por %p4168_p7, %p4167_p5 }
  0x2a   : > { %p4163_p1 = pneg %p4162_p0 }
  0x2c   : > { %p4170_p2 = pnand %p4169_p9, %p4163_p1 }
  0x2e   : > { %4173 = shalt.err (!%p4170_p2)
}
  0x2f   : > { %4081 = dma.hbm_to_vmem [thread:$0]  (!%p4528_p6), %s5682_s6, 16, %s4516_s26, [#allocation6]  }
  0x30   : > { %s4174_s1 = scalar_lea.hbm %s5656_s9, 16 }
  0x31   : > { %p4175_p10 = scmp.ne.s32.totalorder %s5656_s9, %s4174_s1  ;;  %p4181_p2 = scmp.lt.u32.totalorder %s4174_s1, %s5656_s9 }
  0x33   : > { %p4177_p11 = pnand %p4175_p10, %p4544_p8 }
  0x35   : > { %p4178_p12 = pneg %p4177_p11 }
  0x37   : > { %p4183_p13 = pnand %p4181_p2, %p4178_p12 }
  0x39   : > { %4186 = shalt.err (!%p4183_p13)
}
  0x3a   : > { %s4187_s26 = scalar_lea.vmem %s4524_s0, 16  ;;  %s4194_s14 = scalar_lea.vmem %s4524_s0, 32 }
  0x3b   : > { %p4188_p0 = scmp.ne.s32.totalorder %s4524_s0, %s4187_s26  ;;  %p4195_p7 = scmp.lt.s32.totalorder %s4524_s0, %s4524_s0 }
  0x3c   : > { %p4196_p9 = scmp.lt.s32.totalorder %s4194_s14, %s4187_s26 }
  0x3d   : > { %p4190_p1 = pnand %p4188_p0, %p4544_p8 }
  0x3e   : > { %p4197_p10 = por %p4196_p9, %p4195_p7 }
  0x3f   : > { %p4191_p5 = pneg %p4190_p1 }
  0x41   : > { %p4198_p11 = pnand %p4197_p10, %p4191_p5 }
  0x43   : > { %4201 = shalt.err (!%p4198_p11)
}
  0x44   : > { %4087 = dma.hbm_to_vmem [thread:$0]  (!%p4528_p6), %s5656_s9, 16, %s4524_s0, [#allocation9]  }
  0x45   : > { %s4202_s29 = scalar_lea.hbm %s5658_s11, 16 }
  0x46   : > { %p4203_p12 = scmp.ne.s32.totalorder %s5658_s11, %s4202_s29  ;;  %p4209_p0 = scmp.lt.u32.totalorder %s4202_s29, %s5658_s11 }
  0x48   : > { %p4205_p2 = pnand %p4203_p12, %p4544_p8 }
  0x4a   : > { %p4206_p13 = pneg %p4205_p2 }
  0x4c   : > { %p4211_p1 = pnand %p4209_p0, %p4206_p13 }
  0x4e   : > { %4214 = shalt.err (!%p4211_p1)
}
  0x4f   : > { %s4215_s0 = scalar_lea.vmem %s4532_s18, 16  ;;  %s4222_s14 = scalar_lea.vmem %s4532_s18, 32 }
  0x50   : > { %p4216_p5 = scmp.ne.s32.totalorder %s4532_s18, %s4215_s0  ;;  %p4223_p10 = scmp.lt.s32.totalorder %s4532_s18, %s4532_s18 }
  0x51   : > { %p4224_p11 = scmp.lt.s32.totalorder %s4222_s14, %s4215_s0 }
  0x52   : > { %p4218_p7 = pnand %p4216_p5, %p4544_p8 }
  0x53   : > { %p4225_p12 = por %p4224_p11, %p4223_p10 }
  0x54   : > { %p4219_p9 = pneg %p4218_p7 }
  0x56   : > { %p4226_p2 = pnand %p4225_p12, %p4219_p9 }
  0x58   : > { %4229 = shalt.err (!%p4226_p2)
}
  0x59   : > { %4093 = dma.hbm_to_vmem [thread:$0]  (!%p4528_p6), %s5658_s11, 16, %s4532_s18, [#allocation12]  }
  0x5a   : > { %s5684_s4 = sld [smem:[#allocation24_spill]] }
  0x60   : > { %s4230_s29 = scalar_lea.hbm %s5684_s4, 64 }
  0x61   : > { %p4231_p13 = scmp.ne.s32.totalorder %s5684_s4, %s4230_s29  ;;  %p4237_p5 = scmp.lt.u32.totalorder %s4230_s29, %s5684_s4 }
  0x63   : > { %p4233_p0 = pnand %p4231_p13, %p4544_p8 }
  0x65   : > { %p4234_p1 = pneg %p4233_p0 }
  0x67   : > { %p4239_p7 = pnand %p4237_p5, %p4234_p1 }
  0x69   : > { %4242 = shalt.err (!%p4239_p7)
}
  0x6a   : > { %s4243_s18 = scalar_lea.vmem %s4534_s20, 64  ;;  %p4251_p12 = scmp.lt.s32.totalorder %s4534_s20, %s4534_s20 }
  0x6b   : > { %p4244_p9 = scmp.ne.s32.totalorder %s4534_s20, %s4243_s18  ;;  %p4252_p2 = scmp.lt.s32.totalorder %s4243_s18, %s4243_s18 }
  0x6d   : > { %p4246_p10 = pnand %p4244_p9, %p4544_p8  ;;  %p4253_p13 = por %p4252_p2, %p4251_p12 }
  0x6f   : > { %p4247_p11 = pneg %p4246_p10 }
  0x71   : > { %p4254_p0 = pnand %p4253_p13, %p4247_p11 }
  0x73   : > { %4257 = shalt.err (!%p4254_p0)
}
  0x74   : > { %4078 = dma.hbm_to_vmem [thread:$0]  (!%p4528_p6), %s5684_s4, 64, %s4534_s20, [#allocation4]  }
  0x75   : > { %s4402_s16 = smov [#allocation7]   ;;  %s5685_s7 = sld [smem:[#allocation26_spill]] }
  0x76   : > { %s469_s24 = sshll.u32 %s4402_s16, 4  ;;  %s470_s24 = int_to_ptr.vmem [resolvable:$true] %s469_s24 }
  0x7b   : > { %s4258_s29 = scalar_lea.hbm %s5685_s7, 2048 }
  0x7c   : > { %p4259_p1 = scmp.ne.s32.totalorder %s5685_s7, %s4258_s29  ;;  %p4265_p9 = scmp.lt.u32.totalorder %s4258_s29, %s5685_s7 }
  0x7e   : > { %p4261_p5 = pnand %p4259_p1, %p4544_p8 }
  0x80   : > { %p4262_p7 = pneg %p4261_p5 }
  0x82   : > { %p4267_p10 = pnand %p4265_p9, %p4262_p7 }
  0x84   : > { %4270 = shalt.err (!%p4267_p10)
}
  0x85   : > { %s4271_s20 = scalar_lea.vmem %s470_s24, 2048  ;;  %p4279_p13 = scmp.lt.s32.totalorder %s470_s24, %s470_s24 }
  0x86   : > { %p4272_p11 = scmp.ne.s32.totalorder %s470_s24, %s4271_s20  ;;  %p4280_p0 = scmp.lt.s32.totalorder %s4271_s20, %s4271_s20 }
  0x88   : > { %p4274_p12 = pnand %p4272_p11, %p4544_p8  ;;  %p4281_p3 = por %p4280_p0, %p4279_p13 }
  0x8a   : > { %p4275_p2 = pneg %p4274_p12 }
  0x8c   : > { %p4282_p4 = pnand %p4281_p3, %p4275_p2 }
  0x8e   : > { %4285 = shalt.err (!%p4282_p4)
}
  0x8f   : > { %s5670_s18 = smov 128   ;;  %s5671_s0 = smov 8  }
  0x90   : > { %4084 = dma.hbm_to_vmem [thread:$0]  (!%p4528_p6), %s5685_s7, 2048, %s470_s24, [#allocation6], %s5670_s18, %s5670_s18, %s5671_s0  }
  0x91   : > { %s4405_s23 = smov [#allocation10]   ;;  %s4286_s21 = scalar_lea.hbm %s5657_s10, 6144 }
  0x92   : > { %s496_s25 = sshll.u32 %s4405_s23, 4  ;;  %p4287_p3 = scmp.ne.s32.totalorder %s5657_s10, %s4286_s21  ;;  %s497_s25 = int_to_ptr.vmem [resolvable:$true] %s496_s25 }
  0x93   : > { %p4293_p5 = scmp.lt.u32.totalorder %s4286_s21, %s5657_s10 }
  0x94   : > { %p4289_p4 = pnand %p4287_p3, %p4544_p8 }
  0x96   : > { %p4290_p1 = pneg %p4289_p4 }
  0x98   : > { %p4295_p7 = pnand %p4293_p5, %p4290_p1 }
  0x9a   : > { %4298 = shalt.err (!%p4295_p7)
}
  0x9b   : > { %s4299_s24 = scalar_lea.vmem %s497_s25, 6144  ;;  %p4307_p12 = scmp.lt.s32.totalorder %s497_s25, %s497_s25 }
  0x9c   : > { %p4300_p9 = scmp.ne.s32.totalorder %s497_s25, %s4299_s24  ;;  %p4308_p2 = scmp.lt.s32.totalorder %s4299_s24, %s4299_s24 }
  0x9e   : > { %p4302_p10 = pnand %p4300_p9, %p4544_p8  ;;  %p4309_p13 = por %p4308_p2, %p4307_p12 }
  0xa0   : > { %p4303_p11 = pneg %p4302_p10 }
  0xa2   : > { %p4310_p0 = pnand %p4309_p13, %p4303_p11 }
  0xa4   : > { %4313 = shalt.err (!%p4310_p0)
}
  0xa5   : > { %s4406_s14 = smov 384   ;;  %s4407_s16 = smov 24  }
  0xa6   : > { %4090 = dma.hbm_to_vmem [thread:$0]  (!%p4528_p6), %s5657_s10, 6144, %s497_s25, [#allocation9], %s4406_s14, %s4406_s14, %s4407_s16  }
  0xa7   : > { %s4408_s29 = smov [#allocation13]   ;;  %s4409_s21 = smov [#allocation14]  }
  0xa8   : > { %s524_s1 = sshll.u32 %s4408_s29, 4  ;;  %s537_s22 = sshll.u32 %s4409_s21, 4  ;;  %s525_s1 = int_to_ptr.vmem [resolvable:$true] %s524_s1  ;;  %s538_s22 = int_to_ptr.vmem [resolvable:$true] %s537_s22 }
  0xa9   : > { %s4314_s24 = scalar_lea.hbm %s5660_s13, 128 }
  0xaa   : > { %p4315_p3 = scmp.ne.s32.totalorder %s5660_s13, %s4314_s24  ;;  %p4321_p5 = scmp.lt.u32.totalorder %s4314_s24, %s5660_s13 }
  0xac   : > { %p4317_p4 = pnand %p4315_p3, %p4544_p8 }
  0xae   : > { %p4318_p1 = pneg %p4317_p4 }
  0xb0   : > { %p4323_p7 = pnand %p4321_p5, %p4318_p1 }
  0xb2   : > { %4326 = shalt.err (!%p4323_p7)
}
  0xb3   : > { %s4327_s25 = scalar_lea.vmem %s525_s1, 128  ;;  %p4335_p12 = scmp.lt.s32.totalorder %s525_s1, %s525_s1 }
  0xb4   : > { %p4328_p9 = scmp.ne.s32.totalorder %s525_s1, %s4327_s25  ;;  %p4336_p2 = scmp.lt.s32.totalorder %s4327_s25, %s4327_s25 }
  0xb6   : > { %p4330_p10 = pnand %p4328_p9, %p4544_p8  ;;  %p4337_p13 = por %p4336_p2, %p4335_p12 }
  0xb8   : > { %p4331_p11 = pneg %p4330_p10 }
  0xba   : > { %p4338_p0 = pnand %p4337_p13, %p4331_p11 }
  0xbc   : > { %4341 = shalt.err (!%p4338_p0)
}
  0xbd   : > { %4096 = dma.hbm_to_vmem [thread:$0]  (!%p4528_p6), %s5660_s13, 128, %s525_s1, [#allocation12]  }
  0xbe   : > { %s4342_s14 = scalar_lea.hbm %s5662_s15, 512 }
  0xbf   : > { %p4343_p3 = scmp.ne.s32.totalorder %s5662_s15, %s4342_s14  ;;  %p4349_p5 = scmp.lt.u32.totalorder %s4342_s14, %s5662_s15 }
  0xc1   : > { %p4345_p4 = pnand %p4343_p3, %p4544_p8 }
  0xc3   : > { %p4346_p1 = pneg %p4345_p4 }
  0xc5   : > { %p4351_p7 = pnand %p4349_p5, %p4346_p1 }
  0xc7   : > { %4354 = shalt.err (!%p4351_p7)
}
  0xc8   : > { %s4355_s21 = scalar_lea.vmem %s538_s22, 512  ;;  %p4363_p12 = scmp.lt.s32.totalorder %s538_s22, %s538_s22 }
  0xc9   : > { %p4356_p9 = scmp.ne.s32.totalorder %s538_s22, %s4355_s21  ;;  %p4364_p2 = scmp.lt.s32.totalorder %s4355_s21, %s4355_s21 }
  0xcb   : > { %p4358_p10 = pnand %p4356_p9, %p4544_p8  ;;  %p4365_p13 = por %p4364_p2, %p4363_p12 }
  0xcd   : > { %p4359_p11 = pneg %p4358_p10 }
  0xcf   : > { %p4366_p0 = pnand %p4365_p13, %p4359_p11 }
  0xd1   : > { %4369 = shalt.err (!%p4366_p0)
}
  0xd2   : > { %s5686_s1 = smov 8   ;;  %s5687_s26 = smov 128  }
  0xd3   : > { %4099 = dma.hbm_to_vmem [thread:$0]  (!%p4528_p6), %s5662_s15, 512, %s538_s22, [#allocation15], %s5687_s26, %s5687_s26, %s5686_s1  }
  0xd4   : > { %p5688_p3 = scmp.ne.s32.totalorder %s5680_s28, 0 }
  0xd5   : > { %p5689_p8 = scmp.eq.s32.totalorder (!%p5688_p3), %s4510_s27, 0 }
  0xd6   : > { %556 = sbr.rel (%p5688_p3) target bundleno = 2567 (0xa07), region = 88 }
  0xdd   : > { %4375 = dma.done.wait (%p5689_p8), [#allocation4], 64   ;;  %p5690_p4 = pmov %p5689_p8 }
  0xdf   : > { %4377 = vsyncadd (%p5690_p4), [#allocation4], 4294967232  ;;  %p5691_p1 = pmov %p5690_p4 }
  0xe1   : > { %4379 = dma.done.wait (%p5691_p1), [#allocation6], 2064   ;;  %p5692_p5 = pmov %p5691_p1 }
  0xe2   : > { %p5693_p7 = pmov %p5691_p1 }
  0xe3   : > { %4381 = vsyncadd (%p5692_p5), [#allocation6], 4294965232 }
  0xe4   : > { %4383 = dma.done.wait (%p5693_p7), [#allocation9], 6160   ;;  %p5694_p6 = pmov %p5691_p1 }
  0xe5   : > { %p5695_p9 = pmov %p5691_p1 }
  0xe6   : > { %4385 = vsyncadd (%p5694_p6), [#allocation9], 4294961136 }
  0xe7   : > { %4387 = dma.done.wait (%p5695_p9), [#allocation12], 144   ;;  %p5696_p10 = pmov %p5691_p1 }
  0xe8   : > { %p5697_p11 = pmov %p5691_p1 }
  0xe9   : > { %4389 = vsyncadd (%p5696_p10), [#allocation12], 4294967152 }
  0xea   : > { %4391 = dma.done.wait (%p5697_p11), [#allocation15], 512   ;;  %p5698_p12 = pmov %p5691_p1 }
  0xeb   : > { %p631_p2 = scmp.lt.s32.totalorder %s4510_s27, 1  ;;  %p5699_p13 = scmp.ne.s32.totalorder %s4510_s27, 0 }
  0xec   : > { %4393 = vsyncadd (%p5698_p12), [#allocation15], 4294966784  ;;  %s5700_s6 = sld [smem:[#allocation22_spill]] (!%p5699_p13) }
  0xed   : > { %s632_s28 = scalar_select %p631_p2, %s4510_s27, 1 }
  0xee   : > { %639 = sbr.rel (%p5699_p13) target bundleno = 245 (0xf5), region = 124 }
  0xef   : > { %s3206_s19 = sshll.u32 %s632_s28, 5 }
  0xf0   : > { %s4742_s25 = scalar_lea.vmem %s5664_s17, %s3206_s19 }
  0xf2   : > { %v640_v0 = vld [vmem:[%s5700_s6] sm:$0xff] (!%p5699_p13)  ;;  %v641_v1 = vld [vmem:[%s5700_s6 + $0x8] sm:$0xff] (!%p5699_p13)  ;;  %v642_v2 = vld [vmem:[%s5700_s6 + $0x10] sm:$0xff] (!%p5699_p13) }
  0xf3   : > { %644 = vst [vmem:[#allocation2] sm:$0xff] (!%p5699_p13), %v640_v0  ;;  %645 = vst [vmem:[#allocation2 + $0x8] sm:$0xff] (!%p5699_p13), %v641_v1  ;;  %v643_v3 = vld [vmem:[%s5700_s6 + $0x18] sm:$0xff] (!%p5699_p13) }
  0xf4   : > { %646 = vst [vmem:[#allocation2 + $0x10] sm:$0xff] (!%p5699_p13), %v642_v2  ;;  %647 = vst [vmem:[#allocation2 + $0x18] sm:$0xff] (!%p5699_p13), %v643_v3 }
  0xf5 PF: > { %v652_v4 = vld [vmem:[%s5659_s12] sm:$0xff]  ;;  %v653_v5 = vld [vmem:[%s5659_s12 + $0x8] sm:$0xff]  ;;  %v654_v6 = vld [vmem:[%s5659_s12 + $0x10] sm:$0xff]  ;;  %v4410_v7 = vmov 0.0|0.0   ;;  %vm4411_vm0 = vmmov 0   ;;  %v4412_v10 = vmov 0.0   ;;  %v837_v55 = vlaneseq }
  0xf6   : > { %3675 = vmatprep.subr.bf16.mxu0 %v4410_v7  ;;  %v4768_v8 = vpack.c.bf16 %v653_v5, %v652_v4  ;;  %v655_v9 = vld [vmem:[%s5659_s12 + $0x18] sm:$0xff]  ;;  %3457 = vmatprep.mubr.msk.f32.mxu0 %vm4411_vm0, %v4412_v10  ;;  %v656_v12 = vld [vmem:[%s5659_s12 + $0x20] sm:$0xff]  ;;  %v657_v13 = vld [vmem:[%s5659_s12 + $0x28] sm:$0xff]  ;;  %vm685_vm1 = vcmask 1041409   ;;  %vm759_vm2 = vcmask 64512   ;;  %s5701_s1 = sld [smem:[#allocation23_spill]] }
  0xf7   : > { %3460 = vmatprep.subr.mxu1 %v4412_v10  ;;  %3462 = vmatprep.mubr.msk.f32.mxu1 %vm4411_vm0, %v4412_v10  ;;  %v4779_v11 = vpack.c.bf16 %v655_v9, %v654_v6  ;;  %v3682_v19 = vpack.c.bf16 %v657_v13, %v656_v12  ;;  %v658_v21 = vld [vmem:[%s5659_s12 + $0x30] sm:$0xff]  ;;  %v659_v22 = vld [vmem:[%s5659_s12 + $0x38] sm:$0xff]  ;;  %v660_v28 = vld [vmem:[%s5659_s12 + $0x40] sm:$0xff]  ;;  %v4413_v53 = vmov 1966171168   ;;  %v4854_v57 = vshrl.u32 %v837_v55, 7 }
  0xf8   : > { %3677 = vmatpush3.bf16.msra.mxu0 %v4768_v8  ;;  %v3685_v25 = vpack.c.bf16 %v659_v22, %v658_v21  ;;  %v661_v29 = vld [vmem:[%s5659_s12 + $0x48] sm:$0xff]  ;;  %v662_v33 = vld [vmem:[%s5659_s12 + $0x50] sm:$0xff]  ;;  %v663_v34 = vld [vmem:[%s5659_s12 + $0x58] sm:$0xff]  ;;  %v835_v54 = vunpack.c.l.s4 %v4413_v53  ;;  %s5702_s14 = sld [smem:[#allocation27_spill]]  ;;  %s5703_s20 = sld [smem:[#allocation28_spill]] }
  0xf9   : > { %3678 = vmatprep.subr.bf16.mxu0 %v4410_v7  ;;  %v3688_v30 = vpack.c.bf16 %v661_v29, %v660_v28  ;;  %v3691_v35 = vpack.c.bf16 %v663_v34, %v662_v33  ;;  %v664_v38 = vld [vmem:[%s5659_s12 + $0x60] sm:$0xff]  ;;  %v665_v39 = vld [vmem:[%s5659_s12 + $0x68] sm:$0xff]  ;;  %v666_v43 = vld [vmem:[%s5659_s12 + $0x70] sm:$0xff]  ;;  %v4861_v61 = vsub.s32 0, %v4854_v57 }
  0xfa   : > { %v4788_v14 = vld [vmem:[#allocation2] sm:$0xff]  ;;  %v4790_v15 = vld [vmem:[#allocation2 + $0x8] sm:$0xff]  ;;  %v3694_v40 = vpack.c.bf16 %v665_v39, %v664_v38  ;;  %v667_v44 = vld [vmem:[%s5659_s12 + $0x78] sm:$0xff]  ;;  %v836_v56 = vunpack.c.0.s8 %v835_v54 }
  0xfb   : > { %v4792_v16 = vld [vmem:[#allocation2 + $0x10] sm:$0xff]  ;;  %v4794_v17 = vld [vmem:[#allocation2 + $0x18] sm:$0xff]  ;;  %v669_v18 = vadd.f32 %v4790_v15, %v4788_v14  ;;  %v3697_v45 = vpack.c.bf16 %v667_v44, %v666_v43  ;;  %v1088_v28 = vld [vmem:[%s5650_s3 + $0x8] sm:$0xff] }
  0xfc   : > { %3680 = vmatpush3.bf16.msra.mxu0 %v4779_v11  ;;  %v676_v20 = vadd.f32 %v4794_v17, %v4792_v16  ;;  %v668_v49 = vld [vmem:[#allocation13] sm:$0xff]  ;;  %v4857_v58 = vsub.s32 %v836_v56, %v4854_v57  ;;  %v1087_v33 = vld [vmem:[%s5650_s3] sm:$0xff] }
  0xfd   : > { %3681 = vmatprep.subr.bf16.mxu0 %v4410_v7  ;;  %v670_v23 = vrot.slane %v669_v18, 4  ;;  %3461 = vmatpush3.msra.mxu1 %v668_v49  ;;  %v1092_v29 = vld [vmem:[%s5650_s3 + $0x28] sm:$0xff]  ;;  %v1091_v34 = vld [vmem:[%s5650_s3 + $0x20] sm:$0xff] }
  0xfe   : > { %v677_v24 = vrot.slane %v676_v20, 4  ;;  %3699 = vmatprep.subr.bf16.mxu1 %v4410_v7  ;;  %v1100_v38 = vld [vmem:[%s5650_s3 + $0x68] sm:$0xff]  ;;  %v1115_v53 = vld [vmem:[%s5650_s3 + $0xe0] sm:$0xff] }
  0xff   : > { %v671_v26 = vadd.f32 %v670_v23, %v669_v18  ;;  %v1104_v43 = vld [vmem:[%s5650_s3 + $0x88] sm:$0xff] }
 0x100   : > { %3683 = vmatpush3.bf16.msra.mxu0 %v3682_v19  ;;  %v678_v27 = vadd.f32 %v677_v24, %v676_v20  ;;  %v1108_v44 = vld [vmem:[%s5650_s3 + $0xa8] sm:$0xff] }
 0x101   : > { %3684 = vmatprep.subr.bf16.mxu0 %v4410_v7  ;;  %v672_v31 = vrot.slane %v671_v26, 2  ;;  %v1120_v55 = vld [vmem:[%s5650_s3 + $0x108] sm:$0xff] }
 0x102   : > { %v679_v32 = vrot.slane %v678_v27, 2  ;;  %v1124_v56 = vld [vmem:[%s5650_s3 + $0x128] sm:$0xff] }
 0x103   : > { %v673_v36 = vadd.f32 %v672_v31, %v671_v26  ;;  %v3723_v31 = vpack.c.bf16 %v1092_v29, %v1088_v28  ;;  %v1113_v28 = vld [vmem:[%s5650_s3 + $0xd0] sm:$0xff] }
 0x104   : > { %3686 = vmatpush3.bf16.msra.mxu0 %v3685_v25  ;;  %v680_v37 = vadd.f32 %v679_v32, %v678_v27  ;;  %v1094_v32 = vld [vmem:[%s5650_s3 + $0x38] sm:$0xff]  ;;  %v1117_v29 = vld [vmem:[%s5650_s3 + $0xf0] sm:$0xff] }
 0x105   : > { %3687 = vmatprep.subr.bf16.mxu0 %v4410_v7  ;;  %v674_v41 = vrot.slane %v673_v36, 1 }
 0x106   : > { %v681_v42 = vrot.slane %v680_v37, 1 }
 0x107   : > { %v675_v46 = vadd.f32 %v674_v41, %v673_v36  ;;  %v3725_v36 = vpack.c.bf16 %v1091_v34, %v1087_v33  ;;  %v1099_v41 = vld [vmem:[%s5650_s3 + $0x60] sm:$0xff]  ;;  %v1121_v34 = vld [vmem:[%s5650_s3 + $0x110] sm:$0xff] }
 0x108   : > { %3689 = vmatpush3.bf16.msra.mxu0 %v3688_v30  ;;  %v682_v47 = vadd.f32 %v681_v42, %v680_v37  ;;  %v1096_v37 = vld [vmem:[%s5650_s3 + $0x48] sm:$0xff] }
 0x109   : > { %3690 = vmatprep.subr.bf16.mxu0 %v4410_v7  ;;  %v3727_v39 = vpack.c.bf16 %v1100_v38, %v1096_v37  ;;  %v1128_v37 = vld [vmem:[%s5650_s3 + $0x148] sm:$0xff] }
 0x10a   : > { %v686_v48 = vsel %vm685_vm1, %v682_v47, %v675_v46  ;;  %v1103_v46 = vld [vmem:[%s5650_s3 + $0x80] sm:$0xff]  ;;  %v1132_v38 = vld [vmem:[%s5650_s3 + $0x168] sm:$0xff] }
 0x10b   : > { %v1107_v47 = vld [vmem:[%s5650_s3 + $0xa0] sm:$0xff] }
 0x10c   : > { %3692 = vmatpush3.bf16.msra.mxu0 %v3691_v35 }
 0x10d   : > { %3693 = vmatprep.subr.bf16.mxu0 %v4410_v7 }
 0x110   : > { %3695 = vmatpush3.bf16.msra.mxu0 %v3694_v40 }
 0x111   : > { %3696 = vmatprep.subr.bf16.mxu0 %v4410_v7 }
 0x114   : > { %3698 = vmatpush3.bf16.msra.mxu0 %v3697_v45 }
 0x115   : > { %3500 = vmatprep.subr.mxu0 %v4412_v10 }
 0x117   : > { %3458 = vmatmul.mubr.f32.vlgmr.msra.gmra.mrb[0].mxu0 %v686_v48  ;;  %v3733_v48 = vpack.c.bf16 %v1107_v47, %v1103_v46  ;;  %v1129_v46 = vld [vmem:[%s5650_s3 + $0x150] sm:$0xff] }
 0x118   : > { %3502 = vmatprep.mubr.msk.f32.mxu0 %vm4411_vm0, %v4412_v10  ;;  %3501 = vmatpush3.msra.mxu0 %v668_v49  ;;  %v1112_v49 = vld [vmem:[%s5650_s3 + $0xc8] sm:$0xff]  ;;  %v1133_v47 = vld [vmem:[%s5650_s3 + $0x170] sm:$0xff] }
 0x1ea   : > { %v754_v50 = vpop.f32.mrb[0].mxu0 }
 0x1eb   : > { %v758_v51 = vmul.f32 0.00390625, %v754_v50  ;;  %v3459_v52 = vpop.f32.mrb[1].mxu0  ;;  %v1116_v50 = vld [vmem:[%s5650_s3 + $0xe8] sm:$0xff] }
 0x1ec   : > { %v1111_v52 = vld [vmem:[%s5650_s3 + $0xc0] sm:$0xff] }
 0x1ed   : > { %3463 = vmatmul.mubr.msk.f32.vlgmr.msra.gmra.mrb[0].mxu1 %vm759_vm2, %v758_v51  ;;  %v3735_v51 = vpack.c.bf16 %v1116_v50, %v1112_v49  ;;  %v3737_v54 = vpack.c.bf16 %v1115_v53, %v1111_v52  ;;  %v1136_v49 = vld [vmem:[%s5650_s3 + $0x188] sm:$0xff]  ;;  %v1142_v53 = vld [vmem:[%s5650_s3 + $0x1b8] sm:$0xff] }
 0x1ee   : > { %3701 = vmatpush3.bf16.msra.mxu1 %v4768_v8  ;;  %3497 = vmatprep.mubr.msk.f32.mxu1 %vm4411_vm0, %v4412_v10  ;;  %v1140_v50 = vld [vmem:[%s5650_s3 + $0x1a8] sm:$0xff] }
 0x1ef   : > { %3702 = vmatprep.subr.bf16.mxu1 %v4410_v7  ;;  %v3747_v52 = vpack.c.bf16 %v1140_v50, %v1136_v49  ;;  %v1516_v50 = vld [vmem:[%s5652_s5 + $0x118] sm:$0xff] }
 0x1f2   : > { %3704 = vmatpush3.bf16.msra.mxu1 %v4779_v11 }
 0x1f3   : > { %3705 = vmatprep.subr.bf16.mxu1 %v4410_v7 }
 0x1f6   : > { %3707 = vmatpush3.bf16.msra.mxu1 %v3682_v19 }
 0x1f7   : > { %3708 = vmatprep.subr.bf16.mxu1 %v4410_v7 }
 0x1fa   : > { %3710 = vmatpush3.bf16.msra.mxu1 %v3685_v25 }
 0x1fb   : > { %3711 = vmatprep.subr.bf16.mxu1 %v4410_v7 }
 0x1fe   : > { %3713 = vmatpush3.bf16.msra.mxu1 %v3688_v30  ;;  %v1090_v30 = vld [vmem:[%s5650_s3 + $0x18] sm:$0xff] }
 0x1ff   : > { %3714 = vmatprep.subr.bf16.mxu1 %v4410_v7 }
 0x202   : > { %3716 = vmatpush3.bf16.msra.mxu1 %v3691_v35  ;;  %v3755_v35 = vpack.c.bf16 %v1094_v32, %v1090_v30  ;;  %v1122_v30 = vld [vmem:[%s5650_s3 + $0x118] sm:$0xff]  ;;  %v3769_v32 = vpack.c.bf16 %v1117_v29, %v1113_v28 }
 0x203   : > { %3717 = vmatprep.subr.bf16.mxu1 %v4410_v7 }
 0x204   : > { %3756 = vmatprep.subr.bf16.mxu0 %v3755_v35  ;;  %v1125_v35 = vld [vmem:[%s5650_s3 + $0x130] sm:$0xff] }
 0x206   : > { %3719 = vmatpush3.bf16.msra.mxu1 %v3694_v40  ;;  %v1095_v40 = vld [vmem:[%s5650_s3 + $0x40] sm:$0xff] }
 0x207   : > { %3720 = vmatprep.subr.bf16.mxu1 %v4410_v7  ;;  %v3729_v42 = vpack.c.bf16 %v1099_v41, %v1095_v40  ;;  %v3743_v40 = vpack.c.bf16 %v1132_v38, %v1128_v37  ;;  %v1134_v41 = vld [vmem:[%s5650_s3 + $0x178] sm:$0xff]  ;;  %v1499_v37 = vld [vmem:[%s5652_s5 + $0x90] sm:$0xff] }
 0x208   : > { %v1500_v38 = vld [vmem:[%s5652_s5 + $0x98] sm:$0xff] }
 0x20a   : > { %3722 = vmatpush3.bf16.msra.mxu1 %v3697_v45  ;;  %v3731_v45 = vpack.c.bf16 %v1108_v44, %v1104_v43  ;;  %v1131_v43 = vld [vmem:[%s5650_s3 + $0x160] sm:$0xff] }
 0x20b   : > { %3724 = vmatprep.subr.bf16.mxu1 %v3723_v31  ;;  %v1126_v31 = vld [vmem:[%s5650_s3 + $0x138] sm:$0xff] }
 0x20c   : > { %v3771_v33 = vpack.c.bf16 %v1126_v31, %v1122_v30  ;;  %v1481_v30 = vld [vmem:[%s5652_s5] sm:$0xff]  ;;  %v1482_v31 = vld [vmem:[%s5652_s5 + $0x8] sm:$0xff] }
 0x2c0   : > { %v829_v59 = vpop.f32.mrb[0].mxu1 }
 0x2c1   : > { %v840_v60 = vrot.slane %v829_v59, %v4857_v58  ;;  %v3464_v62 = vpop.f32.mrb[1].mxu1  ;;  %v3739_v59 = vpack.c.bf16 %v1124_v56, %v1120_v55  ;;  %v1139_v55 = vld [vmem:[%s5650_s3 + $0x1a0] sm:$0xff] }
 0x2c2   : > { %v1123_v62 = vld [vmem:[%s5650_s3 + $0x120] sm:$0xff] }
 0x2c3   : > { %v841_v63 = vcombine.high %v840_v60, %v840_v60  ;;  %v848_v0 = vrot.slane %v840_v60, %v4857_v58  ;;  %v1119_v60 = vld [vmem:[%s5650_s3 + $0x100] sm:$0xff] }
 0x2c5   : > { %v855_v1 = vrot.slane %v841_v63, %v4857_v58  ;;  %v859_v2 = vrot.slane %v848_v0, %v4861_v61  ;;  %v3741_v63 = vpack.c.bf16 %v1123_v62, %v1119_v60  ;;  %v1137_v60 = vld [vmem:[%s5650_s3 + $0x190] sm:$0xff] }
 0x2c6   : > { %v1141_v62 = vld [vmem:[%s5650_s3 + $0x1b0] sm:$0xff] }
 0x2c7   : > { %v863_v3 = vrot.slane %v855_v1, %v4861_v61  ;;  %v4868_v4 = vsub.f32 %v4788_v14, %v859_v2  ;;  %v4871_v5 = vsub.f32 %v4790_v15, %v859_v2 }
 0x2c9   : > { %v4874_v6 = vsub.f32 %v4792_v16, %v863_v3  ;;  %v4877_v7 = vsub.f32 %v4794_v17, %v863_v3  ;;  %v870_v8 = vmul.f32 %v4868_v4, %v4868_v4  ;;  %v871_v9 = vmul.f32 %v4871_v5, %v4871_v5 }
 0x2cb   : > { %v872_v11 = vmul.f32 %v4874_v6, %v4874_v6  ;;  %v873_v12 = vmul.f32 %v4877_v7, %v4877_v7  ;;  %v874_v13 = vadd.f32 %v871_v9, %v870_v8  ;;  %v1089_v8 = vld [vmem:[%s5650_s3 + $0x10] sm:$0xff] }
 0x2cc   : > { %v1093_v9 = vld [vmem:[%s5650_s3 + $0x30] sm:$0xff] }
 0x2cd   : > { %v875_v14 = vrot.slane %v874_v13, 4  ;;  %v881_v15 = vadd.f32 %v873_v12, %v872_v11  ;;  %v1098_v11 = vld [vmem:[%s5650_s3 + $0x58] sm:$0xff] }
 0x2ce   : > { %v1102_v12 = vld [vmem:[%s5650_s3 + $0x78] sm:$0xff] }
 0x2cf   : > { %v876_v16 = vadd.f32 %v875_v14, %v874_v13  ;;  %v882_v18 = vrot.slane %v881_v15, 4  ;;  %v3757_v13 = vpack.c.bf16 %v1093_v9, %v1089_v8  ;;  %v3759_v14 = vpack.c.bf16 %v1102_v12, %v1098_v11  ;;  %v1150_v8 = vld [vmem:[%s5650_s3 + $0x1f8] sm:$0xff]  ;;  %v1143_v9 = vld [vmem:[%s5650_s3 + $0x1c0] sm:$0xff] }
 0x2d0   : > { %v1147_v11 = vld [vmem:[%s5650_s3 + $0x1e0] sm:$0xff] }
 0x2d1   : > { %v877_v19 = vrot.slane %v876_v16, 2  ;;  %v883_v17 = vadd.f32 %v882_v18, %v881_v15  ;;  %v1097_v15 = vld [vmem:[%s5650_s3 + $0x50] sm:$0xff] }
 0x2d3   : > { %v878_v20 = vadd.f32 %v877_v19, %v876_v16  ;;  %v884_v21 = vrot.slane %v883_v17, 2  ;;  %v1101_v16 = vld [vmem:[%s5650_s3 + $0x70] sm:$0xff]  ;;  %v1106_v19 = vld [vmem:[%s5650_s3 + $0x98] sm:$0xff] }
 0x2d5   : > { %v879_v22 = vrot.slane %v878_v20, 1  ;;  %v885_v23 = vadd.f32 %v884_v21, %v883_v17  ;;  %v1110_v17 = vld [vmem:[%s5650_s3 + $0xb8] sm:$0xff] }
 0x2d6   : > { %v3763_v21 = vpack.c.bf16 %v1110_v17, %v1106_v19  ;;  %v1498_v19 = vld [vmem:[%s5652_s5 + $0x88] sm:$0xff] }
 0x2d7   : > { %v886_v24 = vrot.slane %v885_v23, 1  ;;  %v880_v25 = vadd.f32 %v879_v22, %v878_v20  ;;  %v3761_v20 = vpack.c.bf16 %v1101_v16, %v1097_v15  ;;  %v1105_v22 = vld [vmem:[%s5650_s3 + $0x90] sm:$0xff] }
 0x2d8   : > { %v1149_v15 = vld [vmem:[%s5650_s3 + $0x1f0] sm:$0xff] }
 0x2d9   : > { %v887_v26 = vadd.f32 %v886_v24, %v885_v23  ;;  %v1109_v23 = vld [vmem:[%s5650_s3 + $0xb0] sm:$0xff]  ;;  %v1114_v24 = vld [vmem:[%s5650_s3 + $0xd8] sm:$0xff] }
 0x2db   : > { %v890_v27 = vsel %vm685_vm1, %v887_v26, %v880_v25  ;;  %v1118_v25 = vld [vmem:[%s5650_s3 + $0xf8] sm:$0xff]  ;;  %v3765_v26 = vpack.c.bf16 %v1109_v23, %v1105_v22 }
 0x2dc   : > { %3498 = vmatmul.mubr.f32.vlgmr.msra.gmra.mrb[2].mxu1 %v890_v27  ;;  %v3767_v27 = vpack.c.bf16 %v1118_v25, %v1114_v24 }
 0x2dd   : > { %1215 = vmatprep.mubr.f32.mxu1 %v4412_v10  ;;  %3726 = vmatpush1.bf16.msra.mxu1 %v3725_v36  ;;  %v3773_v36 = vpack.c.bf16 %v1125_v35, %v1121_v34 }
 0x2de   : > { %3728 = vmatprep.subr.bf16.mxu1 %v3727_v39  ;;  %v1130_v39 = vld [vmem:[%s5650_s3 + $0x158] sm:$0xff] }
 0x2df   : > { %v3775_v44 = vpack.c.bf16 %v1134_v41, %v1130_v39 }
 0x2e1   : > { %3730 = vmatpush1.bf16.msra.mxu1 %v3729_v42  ;;  %v1127_v42 = vld [vmem:[%s5650_s3 + $0x140] sm:$0xff] }
 0x2e2   : > { %3732 = vmatprep.subr.bf16.mxu1 %v3731_v45  ;;  %v3745_v45 = vpack.c.bf16 %v1131_v43, %v1127_v42  ;;  %v3791_v42 = vpack.c.bf16 %v1500_v38, %v1499_v37  ;;  %v1483_v43 = vld [vmem:[%s5652_s5 + $0x10] sm:$0xff]  ;;  %v1508_v38 = vld [vmem:[%s5652_s5 + $0xd8] sm:$0xff] }
 0x2e3   : > { %v1507_v37 = vld [vmem:[%s5652_s5 + $0xd0] sm:$0xff] }
 0x2e5   : > { %3734 = vmatpush1.bf16.msra.mxu1 %v3733_v48  ;;  %v3777_v48 = vpack.c.bf16 %v1133_v47, %v1129_v46 }
 0x2e6   : > { %3736 = vmatprep.subr.bf16.mxu1 %v3735_v51  ;;  %v1138_v51 = vld [vmem:[%s5650_s3 + $0x198] sm:$0xff] }
 0x2e7   : > { %v3779_v56 = vpack.c.bf16 %v1142_v53, %v1138_v51  ;;  %v1501_v51 = vld [vmem:[%s5652_s5 + $0xa0] sm:$0xff]  ;;  %v1534_v53 = vld [vmem:[%s5652_s5 + $0x1a8] sm:$0xff] }
 0x2e9   : > { %3738 = vmatpush1.bf16.msra.mxu1 %v3737_v54  ;;  %v1135_v54 = vld [vmem:[%s5650_s3 + $0x180] sm:$0xff] }
 0x2ea   : > { %3740 = vmatprep.subr.bf16.mxu1 %v3739_v59  ;;  %v3749_v59 = vpack.c.bf16 %v1139_v55, %v1135_v54 }
 0x2ed   : > { %3742 = vmatpush1.bf16.msra.mxu1 %v3741_v63  ;;  %v3781_v63 = vpack.c.bf16 %v1141_v62, %v1137_v60  ;;  %v1486_v60 = vld [vmem:[%s5652_s5 + $0x28] sm:$0xff] }
 0x2ee   : > { %3744 = vmatprep.subr.bf16.mxu1 %v3743_v40  ;;  %v3789_v40 = vpack.c.bf16 %v1482_v31, %v1481_v30 }
 0x2f1   : > { %3746 = vmatpush1.bf16.msra.mxu1 %v3745_v45  ;;  %v1515_v45 = vld [vmem:[%s5652_s5 + $0x110] sm:$0xff] }
 0x2f2   : > { %3748 = vmatprep.subr.bf16.mxu1 %v3747_v52  ;;  %v1502_v52 = vld [vmem:[%s5652_s5 + $0xa8] sm:$0xff]  ;;  %v3825_v55 = vpack.c.bf16 %v1516_v50, %v1515_v45  ;;  %v1523_v45 = vld [vmem:[%s5652_s5 + $0x150] sm:$0xff]  ;;  %v1509_v50 = vld [vmem:[%s5652_s5 + $0xe0] sm:$0xff] }
 0x2f5   : > { %3750 = vmatpush1.bf16.msra.mxu1 %v3749_v59  ;;  %v1485_v59 = vld [vmem:[%s5652_s5 + $0x20] sm:$0xff] }
 0x3af   : > { %v958_v0 = vpop.f32.mrb[2].mxu1 }
 0x3b0   : > { %v962_v1 = vmul.f32 0.00390625, %v958_v0  ;;  %v3499_v2 = vpop.f32.mrb[3].mxu1  ;;  %v1144_v0 = vld [vmem:[%s5650_s3 + $0x1c8] sm:$0xff] }
 0x3b1   : > { %v1146_v2 = vld [vmem:[%s5650_s3 + $0x1d8] sm:$0xff] }
 0x3b2   : > { %v963_v3 = vadd.f32 1e-05, %v962_v1  ;;  %v1148_v1 = vld [vmem:[%s5650_s3 + $0x1e8] sm:$0xff]  ;;  %v3783_v12 = vpack.c.bf16 %v1150_v8, %v1146_v2  ;;  %v1517_v2 = vld [vmem:[%s5652_s5 + $0x120] sm:$0xff]  ;;  %v1504_v8 = vld [vmem:[%s5652_s5 + $0xb8] sm:$0xff] }
 0x3b4   : > { %4140 = vrsqrt.f32 %v963_v3  ;;  %v3751_v3 = vpack.c.bf16 %v1148_v1, %v1144_v0 }
 0x3b6   : > { %3752 = vmatprep.subr.bf16.mxu1 %v3751_v3  ;;  %v1518_v3 = vld [vmem:[%s5652_s5 + $0x128] sm:$0xff] }
 0x3be   : > { %v4141_v18 = vpop.eup %4140 }
 0x3bf   : > { %3503 = vmatmul.mubr.msk.f32.vlgmr.msra.gmra.mrb[2].mxu0 %vm759_vm2, %v4141_v18  ;;  %v1497_v18 = vld [vmem:[%s5652_s5 + $0x80] sm:$0xff] }
 0x3c0   : > { %3758 = vmatpush1.bf16.msra.mxu0 %v3757_v13  ;;  %1304 = vmatprep.mubr.f32.mxu0 %v4412_v10  ;;  %v3753_v13 = vpack.c.bf16 %v1147_v11, %v1143_v9  ;;  %v3787_v17 = vpack.c.bf16 %v1498_v19, %v1497_v18  ;;  %v1535_v9 = vld [vmem:[%s5652_s5 + $0x1b0] sm:$0xff]  ;;  %v1536_v11 = vld [vmem:[%s5652_s5 + $0x1b8] sm:$0xff] }
 0x3c1   : > { %3760 = vmatprep.subr.bf16.mxu0 %v3759_v14  ;;  %v1145_v14 = vld [vmem:[%s5650_s3 + $0x1d0] sm:$0xff] }
 0x3c2   : > { %v3785_v16 = vpack.c.bf16 %v1149_v15, %v1145_v14  ;;  %3754 = vmatpush1.bf16.msra.mxu1 %v3753_v13  ;;  %v3829_v13 = vpack.c.bf16 %v1518_v3, %v1517_v2  ;;  %v1487_v14 = vld [vmem:[%s5652_s5 + $0x30] sm:$0xff]  ;;  %v1488_v15 = vld [vmem:[%s5652_s5 + $0x38] sm:$0xff] }
 0x3c3   : > { %3788 = vmatprep.subr.bf16.mxu1 %v3787_v17  ;;  %v3831_v17 = vpack.c.bf16 %v1536_v11, %v1535_v9  ;;  %v1512_v2 = vld [vmem:[%s5652_s5 + $0xf8] sm:$0xff]  ;;  %v1543_v9 = vld [vmem:[%s5652_s5 + $0x1f0] sm:$0xff] }
 0x3c4   : > { %3762 = vmatpush1.bf16.msra.mxu0 %v3761_v20  ;;  %v1529_v20 = vld [vmem:[%s5652_s5 + $0x180] sm:$0xff] }
 0x3c5   : > { %3764 = vmatprep.subr.bf16.mxu0 %v3763_v21  ;;  %v1530_v21 = vld [vmem:[%s5652_s5 + $0x188] sm:$0xff] }
 0x3c6   : > { %v3819_v22 = vpack.c.bf16 %v1530_v21, %v1529_v20  ;;  %v1519_v20 = vld [vmem:[%s5652_s5 + $0x130] sm:$0xff]  ;;  %v1520_v21 = vld [vmem:[%s5652_s5 + $0x138] sm:$0xff] }
 0x3c8   : > { %3766 = vmatpush1.bf16.msra.mxu0 %v3765_v26 }
 0x3c9   : > { %3768 = vmatprep.subr.bf16.mxu0 %v3767_v27 }
 0x3cc   : > { %3770 = vmatpush1.bf16.msra.mxu0 %v3769_v32  ;;  %v1513_v32 = vld [vmem:[%s5652_s5 + $0x100] sm:$0xff] }
 0x3cd   : > { %3772 = vmatprep.subr.bf16.mxu0 %v3771_v33 }
 0x3d0   : > { %3774 = vmatpush1.bf16.msra.mxu0 %v3773_v36  ;;  %v1514_v36 = vld [vmem:[%s5652_s5 + $0x108] sm:$0xff] }
 0x3d1   : > { %3776 = vmatprep.subr.bf16.mxu0 %v3775_v44  ;;  %v3821_v41 = vpack.c.bf16 %v1514_v36, %v1513_v32  ;;  %v1484_v44 = vld [vmem:[%s5652_s5 + $0x18] sm:$0xff]  ;;  %v1522_v36 = vld [vmem:[%s5652_s5 + $0x148] sm:$0xff] }
 0x3d2   : > { %v3793_v54 = vpack.c.bf16 %v1484_v44, %v1483_v43  ;;  %v1492_v43 = vld [vmem:[%s5652_s5 + $0x58] sm:$0xff] }
 0x3d4   : > { %3778 = vmatpush1.bf16.msra.mxu0 %v3777_v48 }
 0x3d5   : > { %3780 = vmatprep.subr.bf16.mxu0 %v3779_v56  ;;  %v3795_v56 = vpack.c.bf16 %v1502_v52, %v1501_v51  ;;  %v1510_v51 = vld [vmem:[%s5652_s5 + $0xe8] sm:$0xff] }
 0x3d6   : > { %v3811_v52 = vpack.c.bf16 %v1510_v51, %v1509_v50 }
 0x3d8   : > { %3782 = vmatpush1.bf16.msra.mxu0 %v3781_v63 }
 0x3d9   : > { %3784 = vmatprep.subr.bf16.mxu0 %v3783_v12  ;;  %v3797_v12 = vpack.c.bf16 %v1486_v60, %v1485_v59  ;;  %v1525_v59 = vld [vmem:[%s5652_s5 + $0x160] sm:$0xff] }
 0x3dc   : > { %3786 = vmatpush1.bf16.msra.mxu0 %v3785_v16 }
 0x3dd   : > { %3820 = vmatprep.subr.bf16.mxu0 %v3819_v22  ;;  %v1505_v22 = vld [vmem:[%s5652_s5 + $0xc0] sm:$0xff] }
 0x492   : > { %v1034_v23 = vpop.f32.mrb[2].mxu0 }
 0x493   : > { %v1045_v24 = vrot.slane %v1034_v23, %v4857_v58  ;;  %v3504_v25 = vpop.f32.mrb[3].mxu0  ;;  %v1506_v23 = vld [vmem:[%s5652_s5 + $0xc8] sm:$0xff] }
 0x494   : > { %v1538_v25 = vld [vmem:[%s5652_s5 + $0x1c8] sm:$0xff]  ;;  %v3803_v31 = vpack.c.bf16 %v1506_v23, %v1505_v22  ;;  %v1337_v22 = vsub.s32 1, %v4854_v57  ;;  %v1345_v23 = vsub.s32 3, %v4854_v57 }
 0x495   : > { %v1046_v26 = vcombine.high %v1045_v24, %v1045_v24  ;;  %v1053_v27 = vrot.slane %v1045_v24, %v4857_v58  ;;  %v1537_v24 = vld [vmem:[%s5652_s5 + $0x1c0] sm:$0xff] }
 0x496   : > { %v3835_v32 = vpack.c.bf16 %v1538_v25, %v1537_v24  ;;  %v3182_v24 = vld.sshfl [vmem:[%s5701_s1] sm:$0xff pattern:$0x75316420] }
 0x497   : > { %v1060_v28 = vrot.slane %v1046_v26, %v4857_v58  ;;  %v1064_v29 = vrot.slane %v1053_v27, %v4861_v61  ;;  %v3801_v26 = vpack.c.bf16 %v1488_v15, %v1487_v14  ;;  %v3833_v27 = vpack.c.bf16 %v1520_v21, %v1519_v20  ;;  %v1528_v14 = vld [vmem:[%s5652_s5 + $0x178] sm:$0xff]  ;;  %v1329_v21 = vld [vmem:[#allocation3] sm:$0xf] }
 0x498   : > { %v1341_v20 = vsub.s32 2, %v4854_v57  ;;  %v5320_v25 = vrot.slane %v1329_v21, %v4861_v61  ;;  %v1384_v57 = vrot.slane %v3182_v24, %v1337_v22 }
 0x499   : > { %v1068_v33 = vrot.slane %v1060_v28, %v4861_v61  ;;  %v5110_v34 = vmul.f32 %v1064_v29, %v4868_v4  ;;  %v5113_v35 = vmul.f32 %v1064_v29, %v4871_v5  ;;  %v1531_v4 = vld [vmem:[%s5652_s5 + $0x190] sm:$0xff]  ;;  %v1532_v5 = vld [vmem:[%s5652_s5 + $0x198] sm:$0xff]  ;;  %v1489_v28 = vld [vmem:[%s5652_s5 + $0x40] sm:$0xff] }
 0x49a   : > { %v3823_v49 = vpack.c.bf16 %v1532_v5, %v1531_v4  ;;  %v1490_v29 = vld [vmem:[%s5652_s5 + $0x48] sm:$0xff]  ;;  %v1539_v4 = vld [vmem:[%s5652_s5 + $0x1d0] sm:$0xff]  ;;  %v1540_v5 = vld [vmem:[%s5652_s5 + $0x1d8] sm:$0xff] }
 0x49b   : > { %vm1075_vm3 = vcmp.ge.f32.partialorder %v5110_v34, 0.0  ;;  %v1079_v39 = vmul.f32 0.2, %v5110_v34  ;;  %v5142_v46 = vmul.f32 %v1068_v33, %v4874_v6  ;;  %v1080_v48 = vmul.f32 0.2, %v5113_v35  ;;  %v1533_v6 = vld [vmem:[%s5652_s5 + $0x1a0] sm:$0xff] }
 0x49c   : > { %vm1076_vm4 = vcmp.ge.f32.partialorder %v5113_v35, 0.0  ;;  %v5171_v62 = vmul.f32 %v1068_v33, %v4877_v7  ;;  %v3827_v1 = vpack.c.bf16 %v1534_v53, %v1533_v6  ;;  %v1503_v7 = vld [vmem:[%s5652_s5 + $0xb0] sm:$0xff]  ;;  %v1521_v33 = vld [vmem:[%s5652_s5 + $0x140] sm:$0xff]  ;;  %v3839_v44 = vpack.c.bf16 %v1540_v5, %v1539_v4  ;;  %v1494_v53 = vld [vmem:[%s5652_s5 + $0x68] sm:$0xff] }
 0x49d   : > { %v1083_v47 = vsel %vm1075_vm3, %v5110_v34, %v1079_v39  ;;  %v1084_v63 = vsel %vm1076_vm4, %v5113_v35, %v1080_v48  ;;  %v1081_v0 = vmul.f32 0.2, %v5142_v46  ;;  %vm1077_vm5 = vcmp.ge.f32.partialorder %v5142_v46, 0.0  ;;  %v1493_v6 = vld [vmem:[%s5652_s5 + $0x60] sm:$0xff] }
 0x49e   : > { %1216 = vmatmul.mubr.f32.vlgmr.msra.gmra.mrb[4].mxu1 %v1083_v47  ;;  %1305 = vmatmul.mubr.f32.vlgmr.msra.gmra.mrb[4].mxu0 %v1083_v47  ;;  %v1082_v18 = vmul.f32 0.2, %v5171_v62  ;;  %v3799_v19 = vpack.c.bf16 %v1504_v8, %v1503_v7  ;;  %vm1078_vm6 = vcmp.ge.f32.partialorder %v5171_v62, 0.0  ;;  %v3805_v39 = vpack.c.bf16 %v1490_v29, %v1489_v28  ;;  %v1524_v47 = vld [vmem:[%s5652_s5 + $0x158] sm:$0xff]  ;;  %v1495_v7 = vld [vmem:[%s5652_s5 + $0x70] sm:$0xff]  ;;  %v1730_v4 = vld [vmem:[#allocation7 + $0x20] sm:$0xff] }
 0x49f   : > { %1221 = vmatprep.mubr.f32.mxu1 %v4412_v10  ;;  %1310 = vmatprep.mubr.f32.mxu0 %v4412_v10  ;;  %v1085_v16 = vsel %vm1077_vm5, %v5142_v46, %v1081_v0  ;;  %v1496_v8 = vld [vmem:[%s5652_s5 + $0x78] sm:$0xff]  ;;  %v5324_v28 = vrot.slane %v1329_v21, %v1337_v22  ;;  %v5326_v29 = vrot.slane %v1329_v21, %v1345_v23 }
 0x4a0   : > { %3790 = vmatpush3.bf16.msra.mxu1 %v3789_v40  ;;  %3822 = vmatpush3.bf16.msra.mxu0 %v3821_v41  ;;  %v1086_v30 = vsel %vm1078_vm6, %v5171_v62, %v1082_v18  ;;  %v3837_v40 = vpack.c.bf16 %v1522_v36, %v1521_v33  ;;  %v1491_v41 = vld [vmem:[%s5652_s5 + $0x50] sm:$0xff]  ;;  %v3817_v11 = vpack.c.bf16 %v1496_v8, %v1495_v7  ;;  %v1726_v18 = vld [vmem:[#allocation7] sm:$0xff] }
 0x4a1   : > { %3792 = vmatprep.subr.bf16.mxu1 %v3791_v42  ;;  %3824 = vmatprep.subr.bf16.mxu0 %v3823_v49  ;;  %v3807_v42 = vpack.c.bf16 %v1508_v38, %v1507_v37  ;;  %v3809_v48 = vpack.c.bf16 %v1492_v43, %v1491_v41  ;;  %v3841_v49 = vpack.c.bf16 %v1524_v47, %v1523_v45  ;;  %v1728_v37 = vld [vmem:[#allocation7 + $0x10] sm:$0xff]  ;;  %v1729_v38 = vld [vmem:[#allocation7 + $0x18] sm:$0xff]  ;;  %v1731_v43 = vld [vmem:[#allocation7 + $0x28] sm:$0xff] }
 0x4a2   : > { %1222 = vmatmul.mubr.f32.gmra.mrb[6].mxu1 %v1084_v63  ;;  %1311 = vmatmul.mubr.f32.gmra.mrb[6].mxu0 %v1084_v63  ;;  %v1526_v63 = vld [vmem:[%s5652_s5 + $0x168] sm:$0xff]  ;;  %v1392_v36 = vrot.slane %v3182_v24, %v1345_v23  ;;  %v1733_v45 = vld [vmem:[#allocation7 + $0x38] sm:$0xff] }
 0x4a3   : > { %1227 = vmatprep.mubr.f32.mxu1 %v4412_v10  ;;  %1316 = vmatprep.mubr.f32.mxu0 %v4412_v10  ;;  %v3845_v0 = vpack.c.bf16 %v1526_v63, %v1525_v59 }
 0x4a4   : > { %3794 = vmatpush3.bf16.msra.mxu1 %v3793_v54  ;;  %3826 = vmatpush3.bf16.msra.mxu0 %v3825_v55  ;;  %v1541_v54 = vld [vmem:[%s5652_s5 + $0x1e0] sm:$0xff]  ;;  %v3813_v55 = vpack.c.bf16 %v1494_v53, %v1493_v6  ;;  %v5342_v53 = vpack.c.bf16 %v1729_v38, %v1728_v37 }
 0x4a5   : > { %3796 = vmatprep.subr.bf16.mxu1 %v3795_v56  ;;  %3828 = vmatprep.subr.bf16.mxu0 %v3827_v1  ;;  %v1542_v56 = vld [vmem:[%s5652_s5 + $0x1e8] sm:$0xff]  ;;  %v1511_v1 = vld [vmem:[%s5652_s5 + $0xf0] sm:$0xff] }
 0x4a6   : > { %1228 = vmatmul.mubr.f32.gmra.mrb[8].mxu1 %v1085_v16  ;;  %1317 = vmatmul.mubr.f32.gmra.mrb[8].mxu0 %v1085_v16  ;;  %v3843_v60 = vpack.c.bf16 %v1542_v56, %v1541_v54  ;;  %v3815_v3 = vpack.c.bf16 %v1512_v2, %v1511_v1 }
 0x4a7   : > { %1233 = vmatprep.mubr.f32.mxu1 %v4412_v10  ;;  %1322 = vmatprep.mubr.f32.mxu0 %v4412_v10 }
 0x4a8   : > { %3798 = vmatpush3.bf16.msra.mxu1 %v3797_v12  ;;  %3830 = vmatpush3.bf16.msra.mxu0 %v3829_v13  ;;  %v1544_v12 = vld [vmem:[%s5652_s5 + $0x1f8] sm:$0xff]  ;;  %v1527_v13 = vld [vmem:[%s5652_s5 + $0x170] sm:$0xff] }
 0x4a9   : > { %3800 = vmatprep.subr.bf16.mxu1 %v3799_v19  ;;  %3832 = vmatprep.subr.bf16.mxu0 %v3831_v17  ;;  %v3847_v15 = vpack.c.bf16 %v1544_v12, %v1543_v9  ;;  %v3849_v16 = vpack.c.bf16 %v1528_v14, %v1527_v13  ;;  %v1727_v19 = vld [vmem:[#allocation7 + $0x8] sm:$0xff] }
 0x4aa   : > { %1234 = vmatmul.mubr.f32.gmra.mrb[10].mxu1 %v1086_v30  ;;  %1323 = vmatmul.mubr.f32.gmra.mrb[10].mxu0 %v1086_v30  ;;  %v5310_v17 = vpack.c.bf16 %v1727_v19, %v1726_v18  ;;  %v1380_v30 = vrot.slane %v3182_v24, %v4861_v61 }
 0x4ac   : > { %3802 = vmatpush3.bf16.msra.mxu1 %v3801_v26  ;;  %3834 = vmatpush3.bf16.msra.mxu0 %v3833_v27  ;;  %v5322_v26 = vrot.slane %v1329_v21, %v1341_v20  ;;  %v1376_v27 = vcombine.high %v3182_v24, %v3182_v24 }
 0x4ad   : > { %3804 = vmatprep.subr.bf16.mxu1 %v3803_v31  ;;  %3836 = vmatprep.subr.bf16.mxu0 %v3835_v32  ;;  %v1388_v31 = vrot.slane %v3182_v24, %v1341_v20 }
 0x4ae   : > { %v5338_v50 = vrot.slane %v1376_v27, %v1337_v22  ;;  %v5340_v6 = vrot.slane %v1376_v27, %v1345_v23 }
 0x4b0   : > { %3806 = vmatpush3.bf16.msra.mxu1 %v3805_v39  ;;  %3838 = vmatpush3.bf16.msra.mxu0 %v3837_v40 }
 0x4b1   : > { %3808 = vmatprep.subr.bf16.mxu1 %v3807_v42  ;;  %3840 = vmatprep.subr.bf16.mxu0 %v3839_v44  ;;  %v5332_v42 = vrot.slane %v1376_v27, %v4861_v61  ;;  %v1732_v44 = vld [vmem:[#allocation7 + $0x30] sm:$0xff] }
 0x4b2   : > { %v5346_v63 = vpack.c.bf16 %v1733_v45, %v1732_v44 }
 0x4b4   : > { %3810 = vmatpush3.bf16.msra.mxu1 %v3809_v48  ;;  %3842 = vmatpush3.bf16.msra.mxu0 %v3841_v49  ;;  %v5336_v49 = vrot.slane %v1376_v27, %v1341_v20 }
 0x4b5   : > { %3812 = vmatprep.subr.bf16.mxu1 %v3811_v52  ;;  %3844 = vmatprep.subr.bf16.mxu0 %v3843_v60  ;;  %v5344_v60 = vpack.c.bf16 %v1731_v43, %v1730_v4 }
 0x4b8   : > { %3814 = vmatpush3.bf16.msra.mxu1 %v3813_v55  ;;  %3846 = vmatpush3.bf16.msra.mxu0 %v3845_v0 }
 0x4b9   : > { %3816 = vmatprep.subr.bf16.mxu1 %v3815_v3  ;;  %3848 = vmatprep.subr.bf16.mxu0 %v3847_v15 }
 0x4bc   : > { %3818 = vmatpush3.bf16.msra.mxu1 %v3817_v11  ;;  %3850 = vmatpush3.bf16.msra.mxu0 %v3849_v16 }
 0x4bd   : > { %3852 = vmatprep.subr.bf16.mxu1 %v5310_v17 }
 0x571   : > { %v1217_v32 = vpop.f32.mrb[4].mxu1  ;;  %v1306_v33 = vpop.f32.mrb[4].mxu0 }
 0x572   : > { %v1351_v5 = vadd.f32 %v5320_v25, %v1217_v32  ;;  %v1353_v39 = vadd.f32 %v5322_v26, %v1306_v33  ;;  %v1219_v40 = vpop.f32.mrb[5].mxu1  ;;  %v1308_v41 = vpop.f32.mrb[5].mxu0 }
 0x573   : > { %v1352_v47 = vadd.f32 %v5324_v28, %v1219_v40  ;;  %v1354_v48 = vadd.f32 %v5326_v29, %v1308_v41 }
 0x574   : > { %v1417_v51 = vadd.f32 %v1380_v30, %v1351_v5  ;;  %v1419_v52 = vadd.f32 %v1388_v31, %v1353_v39 }
 0x575   : > { %v1418_v54 = vadd.f32 %v1384_v57, %v1352_v47  ;;  %v1420_v55 = vadd.f32 %v1392_v36, %v1354_v48  ;;  %v1223_v56 = vpop.f32.mrb[6].mxu1  ;;  %v1312_v59 = vpop.f32.mrb[6].mxu0 }
 0x576   : > { %vm1433_vm7 = vcmp.ge.f32.partialorder %v1417_v51, 0.0  ;;  %v1449_v0 = vmul.f32 0.2, %v1417_v51  ;;  %vm1435_vm8 = vcmp.ge.f32.partialorder %v1419_v52, 0.0  ;;  %v1451_v1 = vmul.f32 0.2, %v1419_v52 }
 0x577   : > { %v1355_v2 = vadd.f32 %v5320_v25, %v1223_v56  ;;  %v1357_v3 = vadd.f32 %v5322_v26, %v1312_v59  ;;  %v1225_v7 = vpop.f32.mrb[7].mxu1  ;;  %v1314_v8 = vpop.f32.mrb[7].mxu0  ;;  %vm1434_vm9 = vcmp.ge.f32.partialorder %v1418_v54, 0.0  ;;  %v1450_v9 = vmul.f32 0.2, %v1418_v54 }
 0x578   : > { %v1356_v11 = vadd.f32 %v5324_v28, %v1225_v7  ;;  %v1358_v12 = vadd.f32 %v5326_v29, %v1314_v8  ;;  %vm1436_vm10 = vcmp.ge.f32.partialorder %v1420_v55, 0.0  ;;  %v1452_v13 = vmul.f32 0.2, %v1420_v55 }
 0x579   : > { %v1421_v14 = vadd.f32 %v1380_v30, %v1355_v2  ;;  %v1423_v15 = vadd.f32 %v1388_v31, %v1357_v3  ;;  %v1229_v16 = vpop.f32.mrb[8].mxu1  ;;  %v1318_v18 = vpop.f32.mrb[8].mxu0  ;;  %v1466_v19 = vsel %vm1434_vm9, %v1418_v54, %v1450_v9  ;;  %v1465_v20 = vsel %vm1433_vm7, %v1417_v51, %v1449_v0 }
 0x57a   : > { %v1422_v21 = vadd.f32 %v1384_v57, %v1356_v11  ;;  %v1424_v22 = vadd.f32 %v1392_v36, %v1358_v12  ;;  %v1359_v23 = vadd.f32 %v5320_v25, %v1229_v16  ;;  %v1361_v24 = vadd.f32 %v5322_v26, %v1318_v18  ;;  %v1231_v27 = vpop.f32.mrb[9].mxu1  ;;  %v1320_v32 = vpop.f32.mrb[9].mxu0  ;;  %1609 = vmatprep.mubr.f32.mxu1 %v1466_v19 }
 0x57b   : > { %v1360_v33 = vadd.f32 %v5324_v28, %v1231_v27  ;;  %v1362_v37 = vadd.f32 %v5326_v29, %v1320_v32  ;;  %v1468_v30 = vsel %vm1436_vm10, %v1420_v55, %v1452_v13  ;;  %1610 = vmatmul.mubr.f32.vlgmr.msra.gmra.mrb[12].mxu1 %v1465_v20  ;;  %v1467_v31 = vsel %vm1435_vm8, %v1419_v52, %v1451_v1  ;;  %v1741_v27 = vld [vmem:[#allocation7 + $0x78] sm:$0xff] }
 0x57c   : > { %v1425_v38 = vadd.f32 %v5332_v42, %v1359_v23  ;;  %v1427_v57 = vadd.f32 %v5336_v49, %v1361_v24  ;;  %1694 = vmatprep.mubr.f32.mxu0 %v1468_v30  ;;  %3854 = vmatpush3.bf16.msra.mxu1 %v5310_v17  ;;  %vm1438_vm11 = vcmp.ge.f32.partialorder %v1422_v21, 0.0  ;;  %v1454_v36 = vmul.f32 0.2, %v1422_v21  ;;  %v1740_v24 = vld [vmem:[#allocation7 + $0x70] sm:$0xff]  ;;  %v1893_v32 = vld [vmem:[%s5655_s8 + $0x20] sm:$0xff]  ;;  %v1894_v30 = vld [vmem:[%s5655_s8 + $0x28] sm:$0xff] }
 0x57d   : > { %v1426_v4 = vadd.f32 %v5338_v50, %v1360_v33  ;;  %v1428_v5 = vadd.f32 %v5340_v6, %v1362_v37  ;;  %1695 = vmatmul.mubr.f32.vlgmr.msra.gmra.mrb[12].mxu0 %v1467_v31  ;;  %v1235_v39 = vpop.f32.mrb[10].mxu1  ;;  %v1324_v40 = vpop.f32.mrb[10].mxu0  ;;  %vm1440_vm12 = vcmp.ge.f32.partialorder %v1424_v22, 0.0  ;;  %v1456_v41 = vmul.f32 0.2, %v1424_v22  ;;  %3856 = vmatprep.subr.bf16.mxu1 %v5342_v53  ;;  %v1889_v37 = vld [vmem:[%s5655_s8] sm:$0xff] }
 0x57e   : > { %v1363_v43 = vadd.f32 %v5320_v25, %v1235_v39  ;;  %v1365_v44 = vadd.f32 %v5322_v26, %v1324_v40  ;;  %v1237_v45 = vpop.f32.mrb[11].mxu1  ;;  %v1326_v47 = vpop.f32.mrb[11].mxu0  ;;  %v1470_v17 = vsel %vm1438_vm11, %v1422_v21, %v1454_v36  ;;  %vm1437_vm13 = vcmp.ge.f32.partialorder %v1421_v14, 0.0  ;;  %v1738_v21 = vld [vmem:[#allocation7 + $0x60] sm:$0xff] }
 0x57f   : > { %v1364_v48 = vadd.f32 %v5324_v28, %v1237_v45  ;;  %v1366_v51 = vadd.f32 %v5326_v29, %v1326_v47  ;;  %1614 = vmatprep.mubr.f32.mxu1 %v1470_v17  ;;  %v1472_v52 = vsel %vm1440_vm12, %v1424_v22, %v1456_v41  ;;  %v1453_v54 = vmul.f32 0.2, %v1421_v14  ;;  %v1734_v28 = vld [vmem:[#allocation7 + $0x40] sm:$0xff]  ;;  %v1739_v22 = vld [vmem:[#allocation7 + $0x68] sm:$0xff]  ;;  %v1900_v41 = vld [vmem:[%s5655_s8 + $0x58] sm:$0xff] }
 0x580   : > { %v1429_v55 = vadd.f32 %v5332_v42, %v1363_v43  ;;  %v1431_v56 = vadd.f32 %v5336_v49, %v1365_v44  ;;  %1699 = vmatprep.mubr.f32.mxu0 %v1472_v52  ;;  %vm1439_vm14 = vcmp.ge.f32.partialorder %v1423_v15, 0.0  ;;  %v1455_v25 = vmul.f32 0.2, %v1423_v15  ;;  %3858 = vmatpush3.bf16.msra.mxu1 %v5342_v53  ;;  %v1735_v49 = vld [vmem:[#allocation7 + $0x48] sm:$0xff]  ;;  %v1897_v39 = vld [vmem:[%s5655_s8 + $0x40] sm:$0xff] }
 0x581   : > { %v1430_v26 = vadd.f32 %v5338_v50, %v1364_v48  ;;  %v1432_v59 = vadd.f32 %v5340_v6, %v1366_v51  ;;  %v1469_v0 = vsel %vm1437_vm13, %v1421_v14, %v1453_v54  ;;  %vm1442_vm15 = vcmp.ge.f32.partialorder %v1426_v4, 0.0  ;;  %3860 = vmatprep.subr.bf16.mxu1 %v5344_v60  ;;  %v1736_v14 = vld [vmem:[#allocation7 + $0x50] sm:$0xff]  ;;  %v1902_v44 = vld [vmem:[%s5655_s8 + $0x68] sm:$0xff]  ;;  %v1905_v45 = vld [vmem:[%s5655_s8 + $0x80] sm:$0xff] }
 0x582   : > { %1615 = vmatmul.mubr.f32.gmra.mrb[14].mxu1 %v1469_v0  ;;  %v1471_v29 = vsel %vm1439_vm14, %v1423_v15, %v1455_v25  ;;  %v1458_v1 = vmul.f32 0.2, %v1426_v4  ;;  %vm1444_vm0 = vcmp.ge.f32.partialorder %v1428_v5, 0.0  ;;  %v1460_v42 = vmul.f32 0.2, %v1428_v5  ;;  %v1737_v15 = vld [vmem:[#allocation7 + $0x58] sm:$0xff] }
 0x583   : > { %1700 = vmatmul.mubr.f32.gmra.mrb[14].mxu0 %v1471_v29  ;;  %vm1441_vm1 = vcmp.ge.f32.partialorder %v1425_v38, 0.0  ;;  %v1457_v2 = vmul.f32 0.2, %v1425_v38  ;;  %vm1443_vm2 = vcmp.ge.f32.partialorder %v1427_v57, 0.0  ;;  %v1459_v53 = vmul.f32 0.2, %v1427_v57 }
 0x584   : > { %v1474_v3 = vsel %vm1442_vm15, %v1426_v4, %v1458_v1  ;;  %v1476_v50 = vsel %vm1444_vm0, %v1428_v5, %v1460_v42  ;;  %3862 = vmatpush3.bf16.msra.mxu1 %v5344_v60  ;;  %vm1446_vm3 = vcmp.ge.f32.partialorder %v1430_v26, 0.0  ;;  %v1462_v6 = vmul.f32 0.2, %v1430_v26  ;;  %v1895_v4 = vld [vmem:[%s5655_s8 + $0x30] sm:$0xff]  ;;  %v1898_v5 = vld [vmem:[%s5655_s8 + $0x48] sm:$0xff]  ;;  %v1901_v17 = vld [vmem:[%s5655_s8 + $0x60] sm:$0xff] }
 0x585   : > { %1619 = vmatprep.mubr.f32.mxu1 %v1474_v3  ;;  %1704 = vmatprep.mubr.f32.mxu0 %v1476_v50  ;;  %v1473_v7 = vsel %vm1441_vm1, %v1425_v38, %v1457_v2  ;;  %vm1448_vm4 = vcmp.ge.f32.partialorder %v1432_v59, 0.0  ;;  %v1464_v8 = vmul.f32 0.2, %v1432_v59  ;;  %v3867_v9 = vpack.c.bf16 %v1735_v49, %v1734_v28  ;;  %v1896_v38 = vld [vmem:[%s5655_s8 + $0x38] sm:$0xff]  ;;  %v1903_v51 = vld [vmem:[%s5655_s8 + $0x70] sm:$0xff]  ;;  %v1906_v54 = vld [vmem:[%s5655_s8 + $0x88] sm:$0xff] }
 0x586   : > { %1620 = vmatmul.mubr.f32.gmra.mrb[16].mxu1 %v1473_v7  ;;  %v1475_v11 = vsel %vm1443_vm2, %v1427_v57, %v1459_v53  ;;  %v1478_v12 = vsel %vm1446_vm3, %v1430_v26, %v1462_v6  ;;  %3864 = vmatprep.subr.bf16.mxu1 %v5346_v63  ;;  %vm1445_vm5 = vcmp.ge.f32.partialorder %v1429_v55, 0.0  ;;  %v1461_v13 = vmul.f32 0.2, %v1429_v55  ;;  %v1899_v57 = vld [vmem:[%s5655_s8 + $0x50] sm:$0xff]  ;;  %v1904_v48 = vld [vmem:[%s5655_s8 + $0x78] sm:$0xff]  ;;  %v1910_v0 = vld [vmem:[%s5655_s8 + $0xa8] sm:$0xff] }
 0x587   : > { %1705 = vmatmul.mubr.f32.gmra.mrb[16].mxu0 %v1475_v11  ;;  %1624 = vmatprep.mubr.f32.mxu1 %v1478_v12  ;;  %v1480_v60 = vsel %vm1448_vm4, %v1432_v59, %v1464_v8  ;;  %vm1447_vm6 = vcmp.ge.f32.partialorder %v1431_v56, 0.0  ;;  %v1463_v16 = vmul.f32 0.2, %v1431_v56  ;;  %v3871_v19 = vpack.c.bf16 %v1737_v15, %v1736_v14  ;;  %v1907_v59 = vld [vmem:[%s5655_s8 + $0x90] sm:$0xff]  ;;  %v1909_v28 = vld [vmem:[%s5655_s8 + $0xa0] sm:$0xff]  ;;  %v1912_v1 = vld [vmem:[%s5655_s8 + $0xb8] sm:$0xff] }
 0x588   : > { %1709 = vmatprep.mubr.f32.mxu0 %v1480_v60  ;;  %3866 = vmatpush3.bf16.msra.mxu1 %v5346_v63  ;;  %v1477_v18 = vsel %vm1445_vm5, %v1429_v55, %v1461_v13  ;;  %v3875_v23 = vpack.c.bf16 %v1739_v22, %v1738_v21  ;;  %v3879_v63 = vpack.c.bf16 %v1741_v27, %v1740_v24  ;;  %v1908_v55 = vld [vmem:[%s5655_s8 + $0x98] sm:$0xff]  ;;  %v1914_v42 = vld [vmem:[%s5655_s8 + $0xc8] sm:$0xff]  ;;  %v1917_v49 = vld [vmem:[%s5655_s8 + $0xe0] sm:$0xff]  ;;  %vm2112_vm11 = vcmask 130048  }
 0x589   : > { %3868 = vmatprep.subr.bf16.mxu1 %v3867_v9  ;;  %v1479_v20 = vsel %vm1447_vm6, %v1431_v56, %v1463_v16  ;;  %v3887_v36 = vpack.c.bf16 %v1899_v57, %v1896_v38  ;;  %v3889_v40 = vpack.c.bf16 %v1898_v5, %v1895_v4  ;;  %v3919_v43 = vpack.c.bf16 %v1900_v41, %v1897_v39  ;;  %v1911_v56 = vld [vmem:[%s5655_s8 + $0xb0] sm:$0xff]  ;;  %v1913_v3 = vld [vmem:[%s5655_s8 + $0xc0] sm:$0xff]  ;;  %v1916_v50 = vld [vmem:[%s5655_s8 + $0xd8] sm:$0xff] }
 0x58a   : > { %1625 = vmatmul.mubr.f32.gmra.mrb[18].mxu1 %v1477_v18  ;;  %v3891_v47 = vpack.c.bf16 %v1905_v45, %v1902_v44  ;;  %v3893_v52 = vpack.c.bf16 %v1904_v48, %v1901_v17  ;;  %v3923_v25 = vpack.c.bf16 %v1906_v54, %v1903_v51  ;;  %v3895_v26 = vpack.c.bf16 %v1911_v56, %v1908_v55  ;;  %v1915_v6 = vld [vmem:[%s5655_s8 + $0xd0] sm:$0xff]  ;;  %v1918_v7 = vld [vmem:[%s5655_s8 + $0xe8] sm:$0xff]  ;;  %v1920_v8 = vld [vmem:[%s5655_s8 + $0xf8] sm:$0xff] }
 0x58b   : > { %1710 = vmatmul.mubr.f32.gmra.mrb[18].mxu0 %v1479_v20  ;;  %3537 = vmatprep.mubr.f32.mxu1 %v5110_v34  ;;  %v1890_v34 = vld [vmem:[%s5655_s8 + $0x8] sm:$0xff]  ;;  %v3897_v29 = vpack.c.bf16 %v1910_v0, %v1907_v59  ;;  %v3927_v2 = vpack.c.bf16 %v1912_v1, %v1909_v28  ;;  %v3899_v53 = vpack.c.bf16 %v1917_v49, %v1914_v42  ;;  %v1921_v13 = vld [vmem:[%s5655_s8 + $0x100] sm:$0xff]  ;;  %v1924_v14 = vld [vmem:[%s5655_s8 + $0x118] sm:$0xff] }
 0x58c   : > { %3870 = vmatpush3.bf16.msra.mxu1 %v3867_v9  ;;  %2002 = vmatprep.mubr.f32.mxu0 %v4412_v10  ;;  %v3883_v33 = vpack.c.bf16 %v1893_v32, %v1890_v34  ;;  %v1923_v9 = vld [vmem:[%s5655_s8 + $0x110] sm:$0xff]  ;;  %v3931_v11 = vpack.c.bf16 %v1918_v7, %v1915_v6  ;;  %v3901_v12 = vpack.c.bf16 %v1916_v50, %v1913_v3  ;;  %v1922_v16 = vld [vmem:[%s5655_s8 + $0x108] sm:$0xff]  ;;  %v1929_v21 = vld [vmem:[%s5655_s8 + $0x140] sm:$0xff] }
 0x58d   : > { %3872 = vmatprep.subr.bf16.mxu1 %v3871_v19  ;;  %v3903_v15 = vpack.c.bf16 %v1923_v9, %v1920_v8  ;;  %v1919_v60 = vld [vmem:[%s5655_s8 + $0xf0] sm:$0xff]  ;;  %v3935_v18 = vpack.c.bf16 %v1924_v14, %v1921_v13  ;;  %v1926_v20 = vld [vmem:[%s5655_s8 + $0x128] sm:$0xff]  ;;  %v1928_v24 = vld [vmem:[%s5655_s8 + $0x138] sm:$0xff] }
 0x58e   : > { %3884 = vmatprep.subr.bf16.mxu0 %v3883_v33  ;;  %v3907_v22 = vpack.c.bf16 %v1929_v21, %v1926_v20  ;;  %v1927_v27 = vld [vmem:[%s5655_s8 + $0x130] sm:$0xff]  ;;  %v1930_v34 = vld [vmem:[%s5655_s8 + $0x148] sm:$0xff]  ;;  %v1932_v33 = vld [vmem:[%s5655_s8 + $0x158] sm:$0xff] }
 0x58f   : > { %v3939_v32 = vpack.c.bf16 %v1930_v34, %v1927_v27  ;;  %v1936_v38 = vld [vmem:[%s5655_s8 + $0x178] sm:$0xff]  ;;  %v3184_v3 = vld.sshfl [vmem:[%s5649_s2] sm:$0x11 pattern:$0x75316420] }
 0x590   : > { %3874 = vmatpush3.bf16.msra.mxu1 %v3871_v19  ;;  %v3905_v19 = vpack.c.bf16 %v1922_v16, %v1919_v60  ;;  %v1843_v50 = vrot.slane %v3184_v3, %v4857_v58  ;;  %v1836_v6 = vcombine.high %v3184_v3, %v3184_v3  ;;  %v3183_v9 = vld [vmem:[#allocation5] ss:$0 sm:$0xff]  ;;  %v5597_v3 = vld [vmem:[#allocation14 + $0x8] sm:$0xff] }
 0x591   : > { %3876 = vmatprep.subr.bf16.mxu1 %v3875_v23 }
 0x592   : > { %v1854_v7 = vrot.slane %v1843_v50, %v4861_v61  ;;  %v1850_v8 = vrot.slane %v1836_v6, %v4857_v58  ;;  %v5599_v50 = vld [vmem:[#allocation14 + $0x10] sm:$0xff] }
 0x594   : > { %3878 = vmatpush3.bf16.msra.mxu1 %v3875_v23  ;;  %v1925_v23 = vld [vmem:[%s5655_s8 + $0x120] sm:$0xff] }
 0x595   : > { %3880 = vmatprep.subr.bf16.mxu1 %v3879_v63 }
 0x598   : > { %3882 = vmatpush3.bf16.msra.mxu1 %v3879_v63  ;;  %v3909_v63 = vpack.c.bf16 %v1928_v24, %v1925_v23 }
 0x59b   : > { %3538 = vmatmul.mubr.f32.vlgmr.msra.gmra.mrb[20].mxu1 %v5113_v35  ;;  %v1892_v35 = vld [vmem:[%s5655_s8 + $0x18] sm:$0xff] }
 0x59c   : > { %3540 = vmatprep.mubr.f32.mxu1 %v5142_v46  ;;  %v1891_v46 = vld [vmem:[%s5655_s8 + $0x10] sm:$0xff] }
 0x59d   : > { %v3915_v31 = vpack.c.bf16 %v1894_v30, %v1891_v46  ;;  %v1931_v46 = vld [vmem:[%s5655_s8 + $0x150] sm:$0xff]  ;;  %v1933_v30 = vld [vmem:[%s5655_s8 + $0x160] sm:$0xff] }
 0x59e   : > { %v3943_v57 = vpack.c.bf16 %v1936_v38, %v1933_v30  ;;  %v5560_v30 = vld [vmem:[%s5702_s14] sm:$0xff]  ;;  %v2472_v38 = vld [vmem:[#allocation10 + $0x28] sm:$0xff] }
 0x59f   : > { %3541 = vmatmul.mubr.f32.gmra.mrb[22].mxu1 %v5171_v62  ;;  %v3885_v62 = vpack.c.bf16 %v1892_v35, %v1889_v37  ;;  %3916 = vmatprep.subr.bf16.mxu1 %v3915_v31  ;;  %v1935_v37 = vld [vmem:[%s5655_s8 + $0x170] sm:$0xff] }
 0x5a0   : > { %3918 = vmatpush3.bf16.msra.mxu1 %v3915_v31  ;;  %v3911_v35 = vpack.c.bf16 %v1935_v37, %v1932_v33 }
 0x5a1   : > { %3886 = vmatpush1.bf16.msra.mxu0 %v3885_v62  ;;  %3920 = vmatprep.subr.bf16.mxu1 %v3919_v43  ;;  %v1934_v62 = vld [vmem:[%s5655_s8 + $0x168] sm:$0xff] }
 0x5a2   : > { %3888 = vmatprep.subr.bf16.mxu0 %v3887_v36  ;;  %v3913_v31 = vpack.c.bf16 %v1934_v62, %v1931_v46 }
 0x5a4   : > { %3922 = vmatpush3.bf16.msra.mxu1 %v3919_v43 }
 0x5a5   : > { %3890 = vmatpush1.bf16.msra.mxu0 %v3889_v40  ;;  %3924 = vmatprep.subr.bf16.mxu1 %v3923_v25 }
 0x5a6   : > { %3892 = vmatprep.subr.bf16.mxu0 %v3891_v47 }
 0x5a8   : > { %3926 = vmatpush3.bf16.msra.mxu1 %v3923_v25 }
 0x5a9   : > { %3894 = vmatpush1.bf16.msra.mxu0 %v3893_v52  ;;  %3928 = vmatprep.subr.bf16.mxu1 %v3927_v2 }
 0x5aa   : > { %3896 = vmatprep.subr.bf16.mxu0 %v3895_v26 }
 0x5ac   : > { %3930 = vmatpush3.bf16.msra.mxu1 %v3927_v2 }
 0x5ad   : > { %3898 = vmatpush1.bf16.msra.mxu0 %v3897_v29  ;;  %3932 = vmatprep.subr.bf16.mxu1 %v3931_v11 }
 0x5ae   : > { %3900 = vmatprep.subr.bf16.mxu0 %v3899_v53 }
 0x5b0   : > { %3934 = vmatpush3.bf16.msra.mxu1 %v3931_v11 }
 0x5b1   : > { %3902 = vmatpush1.bf16.msra.mxu0 %v3901_v12  ;;  %3936 = vmatprep.subr.bf16.mxu1 %v3935_v18 }
 0x5b2   : > { %3904 = vmatprep.subr.bf16.mxu0 %v3903_v15  ;;  %v1858_v15 = vrot.slane %v1850_v8, %v4861_v61  ;;  %v2470_v8 = vld [vmem:[#allocation10 + $0x18] sm:$0xff] }
 0x5b4   : > { %3938 = vmatpush3.bf16.msra.mxu1 %v3935_v18 }
 0x5b5   : > { %3906 = vmatpush1.bf16.msra.mxu0 %v3905_v19  ;;  %3940 = vmatprep.subr.bf16.mxu1 %v3939_v32 }
 0x5b6   : > { %3908 = vmatprep.subr.bf16.mxu0 %v3907_v22 }
 0x5b8   : > { %3942 = vmatpush3.bf16.msra.mxu1 %v3939_v32 }
 0x5b9   : > { %3910 = vmatpush1.bf16.msra.mxu0 %v3909_v63  ;;  %3944 = vmatprep.subr.bf16.mxu1 %v3943_v57 }
 0x5ba   : > { %3912 = vmatprep.subr.bf16.mxu0 %v3911_v35 }
 0x5bc   : > { %3946 = vmatpush3.bf16.msra.mxu1 %v3943_v57 }
 0x5bd   : > { %3914 = vmatpush1.bf16.msra.mxu0 %v3913_v31  ;;  %v2469_v31 = vld [vmem:[#allocation10 + $0x10] sm:$0xff] }
 0x5be   : > { %v3995_v57 = vpack.c.bf16 %v2472_v38, %v2469_v31  ;;  %v2492_v38 = vld [vmem:[#allocation10 + $0xc8] sm:$0xff] }
 0x5c0   : > { %3996 = vmatprep.subr.bf16.mxu1 %v3995_v57 }
 0x64e   : > { %v3277_v36 = vpop.f32.mrb[12].mxu1 }
 0x64f   : > { %v3278_v4 = vpop.f32.mrb[13].mxu1 }
 0x650   : > { %v3321_v5 = vpop.f32.mrb[12].mxu0  ;;  %v3279_v39 = vadd.f32 %v3278_v4, %v3277_v36  ;;  %v2475_v36 = vld [vmem:[#allocation10 + $0x40] sm:$0xff]  ;;  %v2478_v4 = vld [vmem:[#allocation10 + $0x58] sm:$0xff] }
 0x651   : > { %v3322_v40 = vpop.f32.mrb[13].mxu0 }
 0x652   : > { %v3323_v41 = vadd.f32 %v3322_v40, %v3321_v5  ;;  %v3999_v5 = vpack.c.bf16 %v2478_v4, %v2475_v36  ;;  %v2484_v40 = vld [vmem:[#allocation10 + $0x88] sm:$0xff]  ;;  %v2491_v36 = vld [vmem:[#allocation10 + $0xc0] sm:$0xff] }
 0x654   : > { %v1697_v43 = vadd.f32 %v3323_v41, %v3279_v39  ;;  %v2481_v39 = vld [vmem:[#allocation10 + $0x70] sm:$0xff] }
 0x655   : > { %v3280_v44 = vpop.f32.mrb[14].mxu1  ;;  %v4003_v41 = vpack.c.bf16 %v2484_v40, %v2481_v39  ;;  %v2493_v39 = vld [vmem:[#allocation10 + $0xd0] sm:$0xff]  ;;  %v2496_v40 = vld [vmem:[#allocation10 + $0xe8] sm:$0xff] }
 0x656   : > { %v3324_v45 = vpop.f32.mrb[14].mxu0  ;;  %v3281_v47 = vpop.f32.mrb[15].mxu1  ;;  %v1722_v60 = vadd.f32 %v3183_v9, %v1697_v43 }
 0x657   : > { %v3282_v17 = vadd.f32 %v3281_v47, %v3280_v44  ;;  %v3325_v48 = vpop.f32.mrb[15].mxu0 }
 0x658   : > { %v3326_v51 = vadd.f32 %v3325_v48, %v3324_v45 }
 0x659   : > { %v3283_v52 = vpop.f32.mrb[16].mxu1 }
 0x65a   : > { %v1702_v54 = vadd.f32 %v3326_v51, %v3282_v17  ;;  %v3327_v55 = vpop.f32.mrb[16].mxu0  ;;  %v3284_v56 = vpop.f32.mrb[17].mxu1 }
 0x65b   : > { %v3285_v25 = vadd.f32 %v3284_v56, %v3283_v52  ;;  %v3328_v26 = vpop.f32.mrb[17].mxu0 }
 0x65c   : > { %v3329_v59 = vadd.f32 %v3328_v26, %v3327_v55  ;;  %v1723_v12 = vadd.f32 %v3183_v9, %v1702_v54  ;;  %v5571_v26 = vld [vmem:[%s5702_s14 + $0x8] sm:$0xff] }
 0x65d   : > { %v3286_v0 = vpop.f32.mrb[18].mxu1 }
 0x65e   : > { %v1707_v28 = vadd.f32 %v3329_v59, %v3285_v25  ;;  %v3330_v29 = vpop.f32.mrb[18].mxu0  ;;  %v3287_v1 = vpop.f32.mrb[19].mxu1 }
 0x65f   : > { %v3288_v42 = vadd.f32 %v3287_v1, %v3286_v0  ;;  %v3331_v49 = vpop.f32.mrb[19].mxu0  ;;  %v5578_v0 = vld [vmem:[%s5702_s14 + $0x10] sm:$0xff] }
 0x660   : > { %v3332_v2 = vadd.f32 %v3331_v49, %v3330_v29  ;;  %v1724_v23 = vadd.f32 %v3183_v9, %v1707_v28  ;;  %v5591_v49 = vld [vmem:[#allocation14] sm:$0xff] }
 0x662   : > { %v1712_v53 = vadd.f32 %v3332_v2, %v3288_v42  ;;  %v5589_v42 = vld [vmem:[%s5702_s14 + $0x18] sm:$0xff]  ;;  %v2468_v2 = vld [vmem:[#allocation10 + $0x8] sm:$0xff] }
 0x664   : > { %v1725_v21 = vadd.f32 %v3183_v9, %v1712_v53  ;;  %v2471_v53 = vld [vmem:[#allocation10 + $0x20] sm:$0xff]  ;;  %v2474_v9 = vld [vmem:[#allocation10 + $0x38] sm:$0xff] }
 0x665   : > { %v3963_v6 = vpack.c.bf16 %v2471_v53, %v2468_v2  ;;  %v2503_v53 = vld [vmem:[#allocation10 + $0x120] sm:$0xff] }
 0x66e   : > { %v3539_v11 = vpop.f32.mrb[20].mxu1 }
 0x66f   : > { %v1862_v13 = vadd.f32 %v3539_v11, %v1854_v7  ;;  %v1808_v14 = vpop.f32.mrb[21].mxu1  ;;  %v2477_v11 = vld [vmem:[#allocation10 + $0x50] sm:$0xff] }
 0x670   : > { %v1861_v16 = vadd.f32 %v1854_v7, %v1808_v14  ;;  %v2467_v7 = vld [vmem:[#allocation10] sm:$0xff]  ;;  %v3967_v14 = vpack.c.bf16 %v2477_v11, %v2474_v9  ;;  %v2508_v9 = vld [vmem:[#allocation10 + $0x148] sm:$0xff] }
 0x671   : > { %v5534_v18 = vadd.f32 %v1862_v13, %v1723_v12  ;;  %v5605_v12 = vld [vmem:[#allocation14 + $0x18] sm:$0xff]  ;;  %v3965_v13 = vpack.c.bf16 %v2470_v8, %v2467_v7  ;;  %v2505_v7 = vld [vmem:[#allocation10 + $0x130] sm:$0xff] }
 0x672   : > { %v5536_v19 = vadd.f32 %v1861_v16, %v1722_v60  ;;  %v3542_v20 = vpop.f32.mrb[22].mxu1  ;;  %v2476_v60 = vld [vmem:[#allocation10 + $0x48] sm:$0xff]  ;;  %v4019_v11 = vpack.c.bf16 %v2508_v9, %v2505_v7 }
 0x673   : > { %v1864_v22 = vadd.f32 %v3542_v20, %v1858_v15  ;;  %v1818_v24 = vpop.f32.mrb[23].mxu1  ;;  %v1882_v58 = vmul.f32 0.2, %v5534_v18  ;;  %vm1878_vm8 = vcmp.ge.f32.partialorder %v5534_v18, 0.0  ;;  %v2480_v16 = vld [vmem:[#allocation10 + $0x68] sm:$0xff]  ;;  %v2483_v20 = vld [vmem:[#allocation10 + $0x80] sm:$0xff] }
 0x674   : > { %v1863_v27 = vadd.f32 %v1858_v15, %v1818_v24  ;;  %vm1877_vm7 = vcmp.ge.f32.partialorder %v5536_v19, 0.0  ;;  %v1881_v63 = vmul.f32 0.2, %v5536_v19  ;;  %v2473_v15 = vld [vmem:[#allocation10 + $0x30] sm:$0xff]  ;;  %v2482_v24 = vld [vmem:[#allocation10 + $0x78] sm:$0xff] }
 0x675   : > { %v5542_v61 = vadd.f32 %v1864_v22, %v1725_v21  ;;  %v1886_v33 = vsel %vm1878_vm8, %v5534_v18, %v1882_v58  ;;  %v3969_v21 = vpack.c.bf16 %v2476_v60, %v2473_v15  ;;  %v3971_v22 = vpack.c.bf16 %v2483_v20, %v2480_v16  ;;  %v2509_v60 = vld [vmem:[#allocation10 + $0x150] sm:$0xff]  ;;  %v2512_v16 = vld [vmem:[#allocation10 + $0x168] sm:$0xff]  ;;  %v2511_v20 = vld [vmem:[#allocation10 + $0x160] sm:$0xff] }
 0x676   : > { %v5544_v34 = vadd.f32 %v1863_v27, %v1724_v23  ;;  %v1885_v32 = vsel %vm1877_vm7, %v5536_v19, %v1881_v63  ;;  %v2479_v23 = vld [vmem:[#allocation10 + $0x60] sm:$0xff]  ;;  %v2486_v27 = vld [vmem:[#allocation10 + $0x98] sm:$0xff]  ;;  %v2489_v63 = vld [vmem:[#allocation10 + $0xb0] sm:$0xff] }
 0x677   : > { %2003 = vmatmul.mubr.f32.vlgmr.msra.gmra.mrb[20].mxu0 %v1885_v32  ;;  %3575 = vmatprep.mubr.f32.mxu1 %v1885_v32  ;;  %v1884_v37 = vmul.f32 0.2, %v5542_v61  ;;  %vm1880_vm10 = vcmp.ge.f32.partialorder %v5542_v61, 0.0  ;;  %v3973_v58 = vpack.c.bf16 %v2482_v24, %v2479_v23  ;;  %v2485_v32 = vld [vmem:[#allocation10 + $0x90] sm:$0xff] }
 0x678   : > { %3576 = vmatmul.mubr.f32.vlgmr.msra.gmra.mrb[24].mxu1 %v1886_v33  ;;  %2008 = vmatprep.mubr.f32.mxu0 %v4412_v10  ;;  %vm1879_vm9 = vcmp.ge.f32.partialorder %v5544_v34, 0.0  ;;  %v1883_v35 = vmul.f32 0.2, %v5544_v34 }
 0x679   : > { %v1888_v62 = vsel %vm1880_vm10, %v5542_v61, %v1884_v37  ;;  %3998 = vmatpush3.bf16.msra.mxu1 %v3995_v57  ;;  %v2488_v37 = vld [vmem:[#allocation10 + $0xa8] sm:$0xff]  ;;  %v2495_v57 = vld [vmem:[#allocation10 + $0xe0] sm:$0xff] }
 0x67a   : > { %v1887_v46 = vsel %vm1879_vm9, %v5544_v34, %v1883_v35  ;;  %4000 = vmatprep.subr.bf16.mxu1 %v3999_v5  ;;  %v2487_v35 = vld [vmem:[#allocation10 + $0xa0] sm:$0xff]  ;;  %v3979_v4 = vpack.c.bf16 %v2495_v57, %v2492_v38 }
 0x67b   : > { %2009 = vmatmul.mubr.f32.gmra.mrb[22].mxu0 %v1886_v33  ;;  %3578 = vmatprep.mubr.f32.mxu1 %v1887_v46  ;;  %v3975_v33 = vpack.c.bf16 %v2489_v63, %v2486_v27 }
 0x67c   : > { %3579 = vmatmul.mubr.f32.gmra.mrb[26].mxu1 %v1888_v62  ;;  %2014 = vmatprep.mubr.f32.mxu0 %v4412_v10 }
 0x67d   : > { %4002 = vmatpush3.bf16.msra.mxu1 %v3999_v5  ;;  %v2494_v5 = vld [vmem:[#allocation10 + $0xd8] sm:$0xff] }
 0x67e   : > { %4004 = vmatprep.subr.bf16.mxu1 %v4003_v41 }
 0x67f   : > { %2015 = vmatmul.mubr.f32.gmra.mrb[24].mxu0 %v1887_v46  ;;  %v2490_v46 = vld [vmem:[#allocation10 + $0xb8] sm:$0xff] }
 0x680   : > { %2020 = vmatprep.mubr.f32.mxu0 %v4412_v10  ;;  %v4007_v31 = vpack.c.bf16 %v2490_v46, %v2487_v35  ;;  %v3193_v46 = vld [vmem:[#allocation8] ss:$0 sm:$0xff] }
 0x681   : > { %4006 = vmatpush3.bf16.msra.mxu1 %v4003_v41  ;;  %v3981_v41 = vpack.c.bf16 %v2494_v5, %v2491_v36 }
 0x682   : > { %4008 = vmatprep.subr.bf16.mxu1 %v4007_v31 }
 0x683   : > { %2021 = vmatmul.mubr.f32.gmra.mrb[26].mxu0 %v1888_v62  ;;  %v3977_v62 = vpack.c.bf16 %v2488_v37, %v2485_v32 }
 0x684   : > { %3585 = vmatprep.mubr.msk.f32.mxu0 %vm2112_vm11, %v5560_v30 }
 0x685   : > { %4010 = vmatpush3.bf16.msra.mxu1 %v4007_v31 }
 0x74a   : > { %v2004_v43 = vpop.f32.mrb[20].mxu0 }
 0x74b   : > { %v5564_v44 = vpop.f32.mrb[21].mxu0  ;;  %v3577_v45 = vpop.f32.mrb[24].mxu1 }
 0x74c   : > { %v2093_v47 = vpop.f32.mrb[25].mxu1 }
 0x74d   : > { %v3955_v17 = vpack.c.bf16 %v3577_v45, %v2093_v47  ;;  %v2498_v45 = vld [vmem:[#allocation10 + $0xf8] sm:$0xff]  ;;  %v2501_v47 = vld [vmem:[#allocation10 + $0x110] sm:$0xff] }
 0x74e   : > { %v2010_v48 = vpop.f32.mrb[22].mxu0 }
 0x74f   : > { %v3947_v51 = vpack.c.bf16 %v2010_v48, %v2004_v43  ;;  %v5566_v52 = vpop.f32.mrb[23].mxu0  ;;  %v3580_v54 = vpop.f32.mrb[26].mxu1  ;;  %v4011_v43 = vpack.c.bf16 %v2496_v40, %v2493_v39  ;;  %v3983_v48 = vpack.c.bf16 %v2501_v47, %v2498_v45 }
 0x750   : > { %v2103_v55 = vpop.f32.mrb[27].mxu1 }
 0x751   : > { %v3959_v56 = vpack.c.bf16 %v3580_v54, %v2103_v55  ;;  %3948 = vmatprep.subr.bf16.mxu0 %v3947_v51  ;;  %4012 = vmatprep.subr.bf16.mxu1 %v4011_v43  ;;  %v2499_v54 = vld [vmem:[#allocation10 + $0x100] sm:$0xff]  ;;  %v2502_v55 = vld [vmem:[#allocation10 + $0x118] sm:$0xff] }
 0x752   : > { %v2016_v25 = vpop.f32.mrb[24].mxu0  ;;  %3950 = vmatpush3.bf16.msra.mxu0 %v3947_v51  ;;  %4014 = vmatpush3.bf16.msra.mxu1 %v4011_v43  ;;  %v2500_v51 = vld [vmem:[#allocation10 + $0x108] sm:$0xff] }
 0x753   : > { %v5573_v59 = vpop.f32.mrb[25].mxu0 }
 0x755   : > { %3586 = vmatmul.mubr.msk.f32.vlgmr.msra.gmra.mrb[28].mxu0 %vm2112_vm11, %v5571_v26 }
 0x756   : > { %v2022_v28 = vpop.f32.mrb[26].mxu0  ;;  %3592 = vmatprep.mubr.msk.f32.mxu0 %vm2112_vm11, %v5578_v0 }
 0x757   : > { %v3951_v29 = vpack.c.bf16 %v2022_v28, %v2016_v25  ;;  %v5584_v1 = vpop.f32.mrb[27].mxu0  ;;  %v4015_v25 = vpack.c.bf16 %v2502_v55, %v2499_v54  ;;  %v2504_v28 = vld [vmem:[#allocation10 + $0x128] sm:$0xff] }
 0x759   : > { %3952 = vmatprep.subr.bf16.mxu0 %v3951_v29  ;;  %4016 = vmatprep.subr.bf16.mxu1 %v4015_v25 }
 0x75a   : > { %3954 = vmatpush3.bf16.msra.mxu0 %v3951_v29  ;;  %4018 = vmatpush3.bf16.msra.mxu1 %v4015_v25  ;;  %v2507_v29 = vld [vmem:[#allocation10 + $0x140] sm:$0xff] }
 0x75b   : > { %3956 = vmatprep.subr.bf16.mxu0 %v3955_v17  ;;  %v3987_v2 = vpack.c.bf16 %v2507_v29, %v2504_v28  ;;  %4020 = vmatprep.subr.bf16.mxu1 %v4019_v11 }
 0x75d   : > { %3593 = vmatmul.mubr.msk.f32.vlgmr.msra.gmra.mrb[30].mxu0 %vm2112_vm11, %v5589_v42 }
 0x75e   : > { %3958 = vmatpush3.bf16.msra.mxu0 %v3955_v17  ;;  %3599 = vmatprep.mubr.msk.f32.mxu0 %vm2112_vm11, %v5591_v49  ;;  %v2497_v17 = vld [vmem:[#allocation10 + $0xf0] sm:$0xff] }
 0x75f   : > { %3960 = vmatprep.subr.bf16.mxu0 %v3959_v56  ;;  %4022 = vmatpush3.bf16.msra.mxu1 %v4019_v11 }
 0x761   : > { %3600 = vmatmul.mubr.msk.f32.vlgmr.msra.gmra.mrb[32].mxu0 %vm2112_vm11, %v5597_v3 }
 0x762   : > { %3962 = vmatpush3.bf16.msra.mxu0 %v3959_v56  ;;  %3606 = vmatprep.mubr.msk.f32.mxu0 %vm2112_vm11, %v5599_v50  ;;  %v3985_v56 = vpack.c.bf16 %v2500_v51, %v2497_v17 }
 0x763   : > { %3964 = vmatprep.subr.bf16.mxu0 %v3963_v6  ;;  %v2506_v6 = vld [vmem:[#allocation10 + $0x138] sm:$0xff] }
 0x764   : > { %v3989_v8 = vpack.c.bf16 %v2506_v6, %v2503_v53 }
 0x765   : > { %3607 = vmatmul.mubr.msk.f32.vlgmr.msra.gmra.mrb[34].mxu0 %vm2112_vm11, %v5605_v12 }
 0x766   : > { %3966 = vmatpush1.bf16.msra.mxu0 %v3965_v13  ;;  %2580 = vmatprep.mubr.f32.mxu0 %v4412_v10  ;;  %v2510_v13 = vld [vmem:[#allocation10 + $0x158] sm:$0xff] }
 0x767   : > { %3968 = vmatprep.subr.bf16.mxu0 %v3967_v14  ;;  %v2513_v14 = vld [vmem:[#allocation10 + $0x170] sm:$0xff] }
 0x768   : > { %v3991_v15 = vpack.c.bf16 %v2513_v14, %v2510_v13 }
 0x76a   : > { %3970 = vmatpush1.bf16.msra.mxu0 %v3969_v21  ;;  %v3993_v21 = vpack.c.bf16 %v2512_v16, %v2509_v60  ;;  %v3202_v60 = vld [vmem:[#allocation11] ss:$0 sm:$0xff] }
 0x76b   : > { %3972 = vmatprep.subr.bf16.mxu0 %v3971_v22  ;;  %v2514_v22 = vld [vmem:[#allocation10 + $0x178] sm:$0xff] }
 0x76c   : > { %v4023_v23 = vpack.c.bf16 %v2514_v22, %v2511_v20 }
 0x76e   : > { %3974 = vmatpush1.bf16.msra.mxu0 %v3973_v58  ;;  %4024 = vmatprep.subr.bf16.mxu1 %v4023_v23 }
 0x76f   : > { %3976 = vmatprep.subr.bf16.mxu0 %v3975_v33  ;;  %4026 = vmatpush3.bf16.msra.mxu1 %v4023_v23 }
 0x772   : > { %3978 = vmatpush1.bf16.msra.mxu0 %v3977_v62 }
 0x773   : > { %3980 = vmatprep.subr.bf16.mxu0 %v3979_v4 }
 0x776   : > { %3982 = vmatpush1.bf16.msra.mxu0 %v3981_v41 }
 0x777   : > { %3984 = vmatprep.subr.bf16.mxu0 %v3983_v48 }
 0x77a   : > { %3986 = vmatpush1.bf16.msra.mxu0 %v3985_v56 }
 0x77b   : > { %3988 = vmatprep.subr.bf16.mxu0 %v3987_v2 }
 0x77e   : > { %3990 = vmatpush1.bf16.msra.mxu0 %v3989_v8 }
 0x77f   : > { %3992 = vmatprep.subr.bf16.mxu0 %v3991_v15 }
 0x782   : > { %3994 = vmatpush1.bf16.msra.mxu0 %v3993_v21 }
 0x828   : > { %v3587_v24 = vpop.f32.mrb[28].mxu0 }
 0x829   : > { %v2276_v58 = vadd.f32 %v3587_v24, %v5566_v52  ;;  %v2185_v27 = vpop.f32.mrb[29].mxu0 }
 0x82a   : > { %v2275_v63 = vadd.f32 %v2185_v27, %v5564_v44 }
 0x830   : > { %v3594_v32 = vpop.f32.mrb[30].mxu0 }
 0x831   : > { %v2278_v33 = vadd.f32 %v3594_v32, %v5584_v1  ;;  %v2266_v37 = vpop.f32.mrb[31].mxu0 }
 0x832   : > { %v2277_v35 = vadd.f32 %v2266_v37, %v5573_v59 }
 0x834   : > { %v3601_v62 = vpop.f32.mrb[32].mxu0 }
 0x835   : > { %v2442_v31 = vadd.f32 %v3601_v62, %v2276_v58  ;;  %v2351_v38 = vpop.f32.mrb[33].mxu0 }
 0x836   : > { %v2441_v57 = vadd.f32 %v2351_v38, %v2275_v63 }
 0x837   : > { %v2452_v36 = vadd.f32 %v3193_v46, %v2442_v31 }
 0x838   : > { %v2451_v4 = vadd.f32 %v3193_v46, %v2441_v57  ;;  %v3608_v5 = vpop.f32.mrb[34].mxu0 }
 0x839   : > { %v2460_v39 = vmul.f32 0.2, %v2452_v36  ;;  %v2444_v40 = vadd.f32 %v3608_v5, %v2278_v33  ;;  %v2432_v52 = vpop.f32.mrb[35].mxu0  ;;  %vm2456_vm12 = vcmp.ge.f32.partialorder %v2452_v36, 0.0  ;;  %v4142_v33 = vld [vmem:[#allocation2 + $0x8] sm:$0xff] }
 0x83a   : > { %v2459_v41 = vmul.f32 0.2, %v2451_v4  ;;  %v2443_v44 = vadd.f32 %v2432_v52, %v2277_v35  ;;  %vm2455_vm13 = vcmp.ge.f32.partialorder %v2451_v4, 0.0  ;;  %v4143_v35 = vld [vmem:[#allocation2] sm:$0xff] }
 0x83b   : > { %v2454_v43 = vadd.f32 %v3193_v46, %v2444_v40  ;;  %v2464_v59 = vsel %vm2456_vm12, %v2452_v36, %v2460_v39  ;;  %v4144_v40 = vld [vmem:[#allocation2 + $0x18] sm:$0xff] }
 0x83c   : > { %v2453_v1 = vadd.f32 %v3193_v46, %v2443_v44  ;;  %v2463_v45 = vsel %vm2455_vm13, %v2451_v4, %v2459_v41  ;;  %v4145_v41 = vld [vmem:[#allocation2 + $0x10] sm:$0xff] }
 0x83d   : > { %2581 = vmatmul.mubr.f32.vlgmr.msra.gmra.mrb[36].mxu0 %v2463_v45  ;;  %3641 = vmatprep.mubr.f32.mxu1 %v2463_v45  ;;  %v2462_v47 = vmul.f32 0.2, %v2454_v43  ;;  %vm2458_vm15 = vcmp.ge.f32.partialorder %v2454_v43, 0.0 }
 0x83e   : > { %3642 = vmatmul.mubr.f32.vlgmr.msra.gmra.mrb[28].mxu1 %v2464_v59  ;;  %2586 = vmatprep.mubr.f32.mxu0 %v4412_v10  ;;  %vm2457_vm14 = vcmp.ge.f32.partialorder %v2453_v1, 0.0  ;;  %v2461_v17 = vmul.f32 0.2, %v2453_v1 }
 0x83f   : > { %v2466_v51 = vsel %vm2458_vm15, %v2454_v43, %v2462_v47 }
 0x840   : > { %v2465_v48 = vsel %vm2457_vm14, %v2453_v1, %v2461_v17 }
 0x841   : > { %2587 = vmatmul.mubr.f32.gmra.mrb[38].mxu0 %v2464_v59  ;;  %3644 = vmatprep.mubr.f32.mxu1 %v2465_v48 }
 0x842   : > { %3645 = vmatmul.mubr.f32.gmra.mrb[30].mxu1 %v2466_v51  ;;  %2592 = vmatprep.mubr.f32.mxu0 %v4412_v10 }
 0x843   : > { %3651 = vmatprep.mubr.msk.f32.mxu1 %vm2112_vm11, %v5560_v30 }
 0x845   : > { %2593 = vmatmul.mubr.f32.gmra.mrb[40].mxu0 %v2465_v48 }
 0x846   : > { %2598 = vmatprep.mubr.f32.mxu0 %v4412_v10 }
 0x849   : > { %2599 = vmatmul.mubr.f32.gmra.mrb[42].mxu0 %v2466_v51 }
 0x84a   : > { %3665 = vmatprep.mubr.msk.f32.mxu0 %vm2112_vm11, %v5591_v49 }
 0x910   : > { %v2582_v54 = vpop.f32.mrb[36].mxu0 }
 0x911   : > { %v2584_v55 = vpop.f32.mrb[37].mxu0  ;;  %v3643_v56 = vpop.f32.mrb[28].mxu1 }
 0x912   : > { %v2671_v25 = vpop.f32.mrb[29].mxu1 }
 0x913   : > { %v4035_v28 = vpack.c.bf16 %v3643_v56, %v2671_v25 }
 0x914   : > { %v2588_v29 = vpop.f32.mrb[38].mxu0 }
 0x915   : > { %v4027_v2 = vpack.c.bf16 %v2588_v29, %v2582_v54  ;;  %v2590_v53 = vpop.f32.mrb[39].mxu0  ;;  %v3646_v6 = vpop.f32.mrb[30].mxu1  ;;  %4036 = vmatprep.subr.bf16.mxu0 %v4035_v28 }
 0x916   : > { %v2681_v7 = vpop.f32.mrb[31].mxu1  ;;  %4038 = vmatpush3.bf16.msra.mxu0 %v4035_v28 }
 0x917   : > { %v4039_v30 = vpack.c.bf16 %v3646_v6, %v2681_v7  ;;  %4028 = vmatprep.subr.bf16.mxu1 %v4027_v2 }
 0x918   : > { %v2594_v8 = vpop.f32.mrb[40].mxu0  ;;  %4030 = vmatpush3.bf16.msra.mxu1 %v4027_v2 }
 0x919   : > { %v2596_v10 = vpop.f32.mrb[41].mxu0  ;;  %3666 = vmatmul.mubr.msk.f32.vlgmr.msra.gmra.mrb[44].mxu0 %vm2112_vm11, %v5597_v3 }
 0x91b   : > { %3652 = vmatmul.mubr.msk.f32.vlgmr.msra.gmra.mrb[32].mxu1 %vm2112_vm11, %v5571_v26 }
 0x91c   : > { %v2600_v49 = vpop.f32.mrb[42].mxu0  ;;  %3658 = vmatprep.mubr.msk.f32.mxu1 %vm2112_vm11, %v5578_v0 }
 0x91d   : > { %v4031_v9 = vpack.c.bf16 %v2600_v49, %v2594_v8  ;;  %v2602_v11 = vpop.f32.mrb[43].mxu0 }
 0x91f   : > { %4032 = vmatprep.subr.bf16.mxu1 %v4031_v9 }
 0x920   : > { %4034 = vmatpush3.bf16.msra.mxu1 %v4031_v9 }
 0x921   : > { %4040 = vmatprep.subr.bf16.mxu1 %v4039_v30 }
 0x923   : > { %3659 = vmatmul.mubr.msk.f32.vlgmr.msra.gmra.mrb[34].mxu1 %vm2112_vm11, %v5589_v42  ;;  %v3203_v42 = vld [vmem:[%s5703_s20] ss:$0 sm:$0xff] }
 0x924   : > { %4042 = vmatpush3.bf16.msra.mxu1 %v4039_v30  ;;  %3672 = vmatprep.mubr.msk.f32.mxu1 %vm2112_vm11, %v5599_v50 }
 0x927   : > { %3673 = vmatmul.mubr.msk.f32.vlgmr.msra.gmra.mrb[36].mxu1 %vm2112_vm11, %v5605_v12 }
 0x9ec   : > { %v3667_v26 = vpop.f32.mrb[44].mxu0 }
 0x9ed   : > { %v2910_v3 = vpop.f32.mrb[45].mxu0 }
 0x9ee   : > { %v3653_v13 = vpop.f32.mrb[32].mxu1 }
 0x9ef   : > { %v2841_v14 = vadd.f32 %v3653_v13, %v2590_v53  ;;  %v2756_v0 = vpop.f32.mrb[33].mxu1 }
 0x9f0   : > { %v2840_v15 = vadd.f32 %v2756_v0, %v2584_v55 }
 0x9f1   : > { %v2995_v16 = vadd.f32 %v3667_v26, %v2841_v14 }
 0x9f2   : > { %v2994_v20 = vadd.f32 %v2910_v3, %v2840_v15 }
 0x9f3   : > { %v3005_v21 = vadd.f32 %v3202_v60, %v2995_v16 }
 0x9f4   : > { %v3004_v22 = vadd.f32 %v3202_v60, %v2994_v20 }
 0x9f5   : > { %v3009_v50 = vadd.f32 %v3005_v21, %v5534_v18 }
 0x9f6   : > { %v3008_v12 = vadd.f32 %v3004_v22, %v5536_v19  ;;  %v3660_v23 = vpop.f32.mrb[34].mxu1 }
 0x9f7   : > { %v3020_v24 = vmul.f32 %v3203_v42, %v3009_v50  ;;  %v2843_v58 = vadd.f32 %v3660_v23, %v2602_v11  ;;  %v2831_v27 = vpop.f32.mrb[35].mxu1 }
 0x9f8   : > { %v3019_v63 = vmul.f32 %v3203_v42, %v3008_v12  ;;  %v2842_v32 = vadd.f32 %v2831_v27, %v2596_v10 }
 0x9f9   : > { %v3024_v37 = vadd.f32 %v4142_v33, %v3020_v24 }
 0x9fa   : > { %v3023_v46 = vadd.f32 %v4143_v35, %v3019_v63  ;;  %v3674_v62 = vpop.f32.mrb[36].mxu1 }
 0x9fb   : > { %3028 = vst [vmem:[#allocation2 + $0x8] sm:$0xff] %v3024_v37  ;;  %3032 = vst [vmem:[%s4742_s25 + $0x8] sm:$0xff] %v3024_v37  ;;  %v2997_v31 = vadd.f32 %v3674_v62, %v2843_v58  ;;  %v2985_v38 = vpop.f32.mrb[37].mxu1 }
 0x9fc   : > { %3027 = vst [vmem:[#allocation2] sm:$0xff] %v3023_v46  ;;  %3031 = vst [vmem:[%s4742_s25] sm:$0xff] %v3023_v46  ;;  %v2996_v18 = vadd.f32 %v2985_v38, %v2842_v32 }
 0x9fd   : > { %v3007_v19 = vadd.f32 %v3202_v60, %v2997_v31 }
 0x9fe   : > { %v3006_v57 = vadd.f32 %v3202_v60, %v2996_v18 }
 0x9ff   : > { %v3011_v36 = vadd.f32 %v3007_v19, %v5542_v61 }
 0xa00   : > { %v3010_v4 = vadd.f32 %v3006_v57, %v5544_v34 }
 0xa01   : > { %v3022_v5 = vmul.f32 %v3203_v42, %v3011_v36 }
 0xa02   : > { %v3021_v39 = vmul.f32 %v3203_v42, %v3010_v4 }
 0xa03   : > { %v3026_v52 = vadd.f32 %v4144_v40, %v3022_v5 }
 0xa04   : > { %v3025_v44 = vadd.f32 %v4145_v41, %v3021_v39 }
 0xa05   : > { %3030 = vst [vmem:[#allocation2 + $0x18] sm:$0xff] %v3026_v52  ;;  %3034 = vst [vmem:[%s4742_s25 + $0x18] sm:$0xff] %v3026_v52 }
 0xa06   : > { %3029 = vst [vmem:[#allocation2 + $0x10] sm:$0xff] %v3025_v44  ;;  %3033 = vst [vmem:[%s4742_s25 + $0x10] sm:$0xff] %v3025_v44 }
 0xa07 PF: > { %s5704_s24 = sld [smem:[#allocation21_spill]] }
 0xa0d   : > { %s32_s24 = sadd.s32 1, %s5704_s24  }
 0xa0e   : > { %p29_p0 = scmp.ge.s32.totalorder %s32_s24, 4  }
 0xa10   :  { %31 = sbr.rel (!%p29_p0) target bundleno = 13 (0xd), region = 152 }
 0xa17   :  { %3056 = vsyncpa [#allocation4], 1 }
 0xa18   :  { %3058 = vsyncpa [#allocation4 + $0x1], 1 }
 0xa19   :  { %3059 = vsyncpa [#allocation6], 1 }
 0xa1a   :  { %3060 = vsyncpa [#allocation9], 1 }
 0xa1b   :  { %3061 = vsyncpa [#allocation12], 1 }
 0xa1c   :  { %3062 = vsyncpa [#allocation15], 1 }

// kernel: labs_injected_encoder_forward.8
= control target key start
LH: loop header
LB: loop body
LE: loop exit
PB: predicated region body
PF: predicated region fallthrough
CT: control target
= control target key end

     0   :  { %vm702_vm8 = vcmask 130048   ;;  %vm800_vm9 = vcmask 1041409   ;;  %vm951_vm10 = vcmask 58368   ;;  %vm1381_vm11 = vcmask 64512   ;;  %s3678_s1 = inlined_call_operand.vmem [shape: f32[128,128], index: 1, kind: input, shape index: {}]   ;;  %s3679_s0 = inlined_call_operand.vmem [shape: f32[2,16,128], index: 0, kind: input, shape index: {}]   ;;  %s3680_s3 = inlined_call_operand.vmem [shape: f32[128,400], index: 3, kind: input, shape index: {}]   ;;  %s3681_s5 = inlined_call_operand.vmem [shape: f32[128,400], index: 5, kind: input, shape index: {}]   ;;  %s3682_s2 = inlined_call_operand.vmem [shape: f32[1,128], index: 2, kind: input, shape index: {}]   ;;  %s3683_s6 = inlined_call_operand.vmem [shape: f32[400,8], index: 6, kind: input, shape index: {}]   ;;  %s3684_s8 = inlined_call_operand.vmem [shape: f32[400,128], index: 8, kind: input, shape index: {}]   ;;  %s3685_s7 = inlined_call_operand.vmem [shape: f32[400,8], index: 7, kind: input, shape index: {}]   ;;  %s3686_s4 = inlined_call_operand.vmem [shape: f32[1,400], index: 4, kind: input, shape index: {}]   ;;  %s3687_s9 = inlined_call_operand.vmem [shape: f32[400,16], index: 9, kind: input, shape index: {}]   ;;  %s3688_s10 = inlined_call_operand.vmem [shape: f32[2,8], index: 10, kind: output, shape index: {0}]   ;;  %s3689_s12 = inlined_call_operand.vmem [shape: f32[2,128], index: 12, kind: output, shape index: {2}]   ;;  %s3690_s11 = inlined_call_operand.vmem [shape: f32[2,16,8], index: 11, kind: output, shape index: {1}]   ;;  %s3691_s13 = inlined_call_operand.vmem [shape: f32[2,16,16], index: 13, kind: output, shape index: {3}]  }
   0x1   :  { %v55_v0 = vld [vmem:[%s3678_s1] sm:$0xff]  ;;  %v56_v1 = vld [vmem:[%s3678_s1 + $0x8] sm:$0xff]  ;;  %v57_v2 = vld [vmem:[%s3678_s1 + $0x10] sm:$0xff] }
   0x2   :  { %v1853_v3 = vpack.c.bf16 %v56_v1, %v55_v0  ;;  %v58_v4 = vld [vmem:[%s3678_s1 + $0x18] sm:$0xff]  ;;  %v59_v6 = vld [vmem:[%s3678_s1 + $0x20] sm:$0xff]  ;;  %v60_v7 = vld [vmem:[%s3678_s1 + $0x28] sm:$0xff] }
   0x3   :  { %v1857_v5 = vpack.c.bf16 %v58_v4, %v57_v2  ;;  %v1861_v8 = vpack.c.bf16 %v60_v7, %v59_v6  ;;  %v2394_v9 = vld [vmem:[%s3679_s0] sm:$0xff]  ;;  %v61_v10 = vld [vmem:[%s3678_s1 + $0x30] sm:$0xff]  ;;  %v62_v11 = vld [vmem:[%s3678_s1 + $0x38] sm:$0xff] }
   0x4   :  { %1854 = vmatprep.subr.bf16.mxu0 %v1853_v3  ;;  %vm43_vm0 = vcmp.ge.f32.partialorder %v2394_v9, 0.0  ;;  %v47_v12 = vmul.f32 0.2, %v2394_v9  ;;  %v176_v14 = vld [vmem:[%s3680_s3 + $0x8] sm:$0xff]  ;;  %v1865_v16 = vpack.c.bf16 %v62_v11, %v61_v10  ;;  %v175_v18 = vld [vmem:[%s3680_s3] sm:$0xff]  ;;  %v65_v32 = vld [vmem:[%s3678_s1 + $0x50] sm:$0xff] }
   0x5   :  { %1856 = vmatpush3.bf16.msra.mxu0 %v1853_v3  ;;  %v180_v15 = vld [vmem:[%s3680_s3 + $0x28] sm:$0xff]  ;;  %v179_v19 = vld [vmem:[%s3680_s3 + $0x20] sm:$0xff]  ;;  %v66_v33 = vld [vmem:[%s3678_s1 + $0x58] sm:$0xff] }
   0x6   :  { %1858 = vmatprep.subr.bf16.mxu0 %v1857_v5  ;;  %v51_v13 = vsel %vm43_vm0, %v2394_v9, %v47_v12  ;;  %v1885_v17 = vpack.c.bf16 %v180_v15, %v176_v14  ;;  %v63_v20 = vld [vmem:[%s3678_s1 + $0x40] sm:$0xff]  ;;  %v64_v21 = vld [vmem:[%s3678_s1 + $0x48] sm:$0xff]  ;;  %v1887_v22 = vpack.c.bf16 %v179_v19, %v175_v18  ;;  %v1873_v40 = vpack.c.bf16 %v66_v33, %v65_v32  ;;  %v69_v50 = vld [vmem:[%s3678_s1 + $0x70] sm:$0xff] }
   0x7   :  { %1847 = vmatprep.mubr.f32.mxu0 %v51_v13  ;;  %v184_v23 = vld [vmem:[%s3680_s3 + $0x48] sm:$0xff]  ;;  %v183_v26 = vld [vmem:[%s3680_s3 + $0x40] sm:$0xff]  ;;  %v1869_v28 = vpack.c.bf16 %v64_v21, %v63_v20  ;;  %v70_v54 = vld [vmem:[%s3678_s1 + $0x78] sm:$0xff] }
   0x8   :  { %1886 = vmatprep.subr.bf16.mxu1 %v1885_v17  ;;  %v188_v24 = vld [vmem:[%s3680_s3 + $0x68] sm:$0xff]  ;;  %v187_v27 = vld [vmem:[%s3680_s3 + $0x60] sm:$0xff]  ;;  %v2503_v58 = vld [vmem:[%s3679_s0 + $0x10] sm:$0xff]  ;;  %v1881_v60 = vpack.c.bf16 %v70_v54, %v69_v50 }
   0x9   :  { %1860 = vmatpush3.bf16.msra.mxu0 %v1857_v5  ;;  %1888 = vmatpush1.bf16.msra.mxu1 %v1887_v22  ;;  %v1889_v25 = vpack.c.bf16 %v188_v24, %v184_v23  ;;  %v1891_v29 = vpack.c.bf16 %v187_v27, %v183_v26  ;;  %v192_v30 = vld [vmem:[%s3680_s3 + $0x88] sm:$0xff]  ;;  %v191_v35 = vld [vmem:[%s3680_s3 + $0x80] sm:$0xff]  ;;  %v178_v61 = vld [vmem:[%s3680_s3 + $0x18] sm:$0xff]  ;;  %v49_v7 = vmul.f32 0.2, %v2503_v58  ;;  %vm45_vm2 = vcmp.ge.f32.partialorder %v2503_v58, 0.0 }
   0xa   :  { %1862 = vmatprep.subr.bf16.mxu0 %v1861_v8  ;;  %v196_v31 = vld [vmem:[%s3680_s3 + $0xa8] sm:$0xff]  ;;  %v195_v36 = vld [vmem:[%s3680_s3 + $0xa0] sm:$0xff]  ;;  %v182_v1 = vld [vmem:[%s3680_s3 + $0x38] sm:$0xff] }
   0xb   :  { %1890 = vmatprep.subr.bf16.mxu1 %v1889_v25  ;;  %v1893_v34 = vpack.c.bf16 %v196_v31, %v192_v30  ;;  %v1895_v37 = vpack.c.bf16 %v195_v36, %v191_v35  ;;  %v200_v38 = vld [vmem:[%s3680_s3 + $0xc8] sm:$0xff]  ;;  %v199_v42 = vld [vmem:[%s3680_s3 + $0xc0] sm:$0xff]  ;;  %v2527_v5 = vld [vmem:[%s3679_s0 + $0x18] sm:$0xff]  ;;  %v53_v20 = vsel %vm45_vm2, %v2503_v58, %v49_v7 }
   0xc   :  { %v204_v39 = vld [vmem:[%s3680_s3 + $0xe8] sm:$0xff]  ;;  %v203_v43 = vld [vmem:[%s3680_s3 + $0xe0] sm:$0xff]  ;;  %v177_v10 = vld [vmem:[%s3680_s3 + $0x10] sm:$0xff]  ;;  %v50_v18 = vmul.f32 0.2, %v2527_v5  ;;  %vm46_vm3 = vcmp.ge.f32.partialorder %v2527_v5, 0.0 }
   0xd   :  { %1864 = vmatpush3.bf16.msra.mxu0 %v1861_v8  ;;  %1892 = vmatpush1.bf16.msra.mxu1 %v1891_v29  ;;  %v1897_v41 = vpack.c.bf16 %v204_v39, %v200_v38  ;;  %v67_v44 = vld [vmem:[%s3678_s1 + $0x60] sm:$0xff]  ;;  %v68_v45 = vld [vmem:[%s3678_s1 + $0x68] sm:$0xff]  ;;  %v1899_v48 = vpack.c.bf16 %v203_v43, %v199_v42  ;;  %v1917_v8 = vpack.c.bf16 %v182_v1, %v178_v61  ;;  %v181_v11 = vld [vmem:[%s3680_s3 + $0x30] sm:$0xff] }
   0xe   :  { %1866 = vmatprep.subr.bf16.mxu0 %v1865_v16  ;;  %1894 = vmatprep.subr.bf16.mxu1 %v1893_v34  ;;  %v208_v46 = vld [vmem:[%s3680_s3 + $0x108] sm:$0xff]  ;;  %v1877_v49 = vpack.c.bf16 %v68_v45, %v67_v44  ;;  %v207_v52 = vld [vmem:[%s3680_s3 + $0x100] sm:$0xff]  ;;  %v186_v12 = vld [vmem:[%s3680_s3 + $0x58] sm:$0xff]  ;;  %v1919_v19 = vpack.c.bf16 %v181_v11, %v177_v10  ;;  %v54_v27 = vsel %vm46_vm3, %v2527_v5, %v50_v18 }
   0xf   :  { %v212_v47 = vld [vmem:[%s3680_s3 + $0x128] sm:$0xff]  ;;  %v211_v53 = vld [vmem:[%s3680_s3 + $0x120] sm:$0xff]  ;;  %v190_v14 = vld [vmem:[%s3680_s3 + $0x78] sm:$0xff] }
  0x10   :  { %v1901_v51 = vpack.c.bf16 %v212_v47, %v208_v46  ;;  %v216_v55 = vld [vmem:[%s3680_s3 + $0x148] sm:$0xff]  ;;  %v1903_v59 = vpack.c.bf16 %v211_v53, %v207_v52  ;;  %v215_v63 = vld [vmem:[%s3680_s3 + $0x140] sm:$0xff]  ;;  %v1921_v21 = vpack.c.bf16 %v190_v14, %v186_v12  ;;  %v185_v22 = vld [vmem:[%s3680_s3 + $0x50] sm:$0xff]  ;;  %v2301_v14 = vmov 0.0  }
  0x11   :  { %1868 = vmatpush3.bf16.msra.mxu0 %v1865_v16  ;;  %1896 = vmatpush1.bf16.msra.mxu1 %v1895_v37  ;;  %v220_v56 = vld [vmem:[%s3680_s3 + $0x168] sm:$0xff]  ;;  %v219_v0 = vld [vmem:[%s3680_s3 + $0x160] sm:$0xff]  ;;  %v189_v23 = vld [vmem:[%s3680_s3 + $0x70] sm:$0xff] }
  0x12   :  { %1870 = vmatprep.subr.bf16.mxu0 %v1869_v28  ;;  %1898 = vmatprep.subr.bf16.mxu1 %v1897_v41  ;;  %v2498_v57 = vld [vmem:[%s3679_s0 + $0x8] sm:$0xff]  ;;  %v1905_v62 = vpack.c.bf16 %v220_v56, %v216_v55  ;;  %v1907_v6 = vpack.c.bf16 %v219_v0, %v215_v63  ;;  %v223_v15 = vld [vmem:[%s3680_s3 + $0x180] sm:$0xff]  ;;  %v194_v25 = vld [vmem:[%s3680_s3 + $0x98] sm:$0xff] }
  0x13   :  { %v224_v2 = vld [vmem:[%s3680_s3 + $0x188] sm:$0xff]  ;;  %v48_v4 = vmul.f32 0.2, %v2498_v57  ;;  %vm44_vm1 = vcmp.ge.f32.partialorder %v2498_v57, 0.0  ;;  %v227_v16 = vld [vmem:[%s3680_s3 + $0x1a0] sm:$0xff]  ;;  %v198_v26 = vld [vmem:[%s3680_s3 + $0xb8] sm:$0xff]  ;;  %325 = vmatprep.mubr.f32.mxu1 %v2301_v14 }
  0x14   :  { %v228_v3 = vld [vmem:[%s3680_s3 + $0x1a8] sm:$0xff]  ;;  %v1911_v24 = vpack.c.bf16 %v227_v16, %v223_v15  ;;  %v1925_v29 = vpack.c.bf16 %v198_v26, %v194_v25  ;;  %v193_v30 = vld [vmem:[%s3680_s3 + $0x90] sm:$0xff]  ;;  %v202_v32 = vld [vmem:[%s3680_s3 + $0xd8] sm:$0xff] }
  0x15   :  { %1872 = vmatpush3.bf16.msra.mxu0 %v1869_v28  ;;  %1900 = vmatpush1.bf16.msra.mxu1 %v1899_v48  ;;  %v1909_v13 = vpack.c.bf16 %v228_v3, %v224_v2  ;;  %v52_v17 = vsel %vm44_vm1, %v2498_v57, %v48_v4  ;;  %v1923_v28 = vpack.c.bf16 %v189_v23, %v185_v22  ;;  %v197_v31 = vld [vmem:[%s3680_s3 + $0xb0] sm:$0xff]  ;;  %v206_v33 = vld [vmem:[%s3680_s3 + $0xf8] sm:$0xff]  ;;  %v231_v0 = vld [vmem:[%s3680_s3 + $0x1c0] sm:$0xff] }
  0x16   :  { %1874 = vmatprep.subr.bf16.mxu0 %v1873_v40  ;;  %1902 = vmatprep.subr.bf16.mxu1 %v1901_v51  ;;  %v1927_v34 = vpack.c.bf16 %v197_v31, %v193_v30  ;;  %v1929_v35 = vpack.c.bf16 %v206_v33, %v202_v32  ;;  %v201_v36 = vld [vmem:[%s3680_s3 + $0xd0] sm:$0xff]  ;;  %v210_v38 = vld [vmem:[%s3680_s3 + $0x118] sm:$0xff]  ;;  %v235_v2 = vld [vmem:[%s3680_s3 + $0x1e0] sm:$0xff] }
  0x17   :  { %v205_v37 = vld [vmem:[%s3680_s3 + $0xf0] sm:$0xff]  ;;  %v214_v39 = vld [vmem:[%s3680_s3 + $0x138] sm:$0xff]  ;;  %v444_v10 = vld [vmem:[%s3681_s5 + $0x28] sm:$0xff] }
  0x18   :  { %v1933_v41 = vpack.c.bf16 %v214_v39, %v210_v38  ;;  %v209_v42 = vld [vmem:[%s3680_s3 + $0x110] sm:$0xff]  ;;  %v218_v44 = vld [vmem:[%s3680_s3 + $0x158] sm:$0xff]  ;;  %v1626_v16 = vld [vmem:[%s3682_s2] ss:$0 sm:$0xff] }
  0x19   :  { %1876 = vmatpush3.bf16.msra.mxu0 %v1873_v40  ;;  %1904 = vmatpush1.bf16.msra.mxu1 %v1903_v59  ;;  %v1931_v40 = vpack.c.bf16 %v205_v37, %v201_v36  ;;  %v213_v43 = vld [vmem:[%s3680_s3 + $0x130] sm:$0xff]  ;;  %v222_v45 = vld [vmem:[%s3680_s3 + $0x178] sm:$0xff]  ;;  %v232_v59 = vld [vmem:[%s3680_s3 + $0x1c8] sm:$0xff] }
  0x1a   :  { %1878 = vmatprep.subr.bf16.mxu0 %v1877_v49  ;;  %1906 = vmatprep.subr.bf16.mxu1 %v1905_v62  ;;  %v1935_v46 = vpack.c.bf16 %v213_v43, %v209_v42  ;;  %v1937_v47 = vpack.c.bf16 %v222_v45, %v218_v44  ;;  %v217_v48 = vld [vmem:[%s3680_s3 + $0x150] sm:$0xff]  ;;  %v226_v50 = vld [vmem:[%s3680_s3 + $0x198] sm:$0xff]  ;;  %v439_v18 = vld [vmem:[%s3681_s5] sm:$0xff] }
  0x1b   :  { %v230_v51 = vld [vmem:[%s3680_s3 + $0x1b8] sm:$0xff]  ;;  %v225_v54 = vld [vmem:[%s3680_s3 + $0x190] sm:$0xff]  ;;  %v448_v25 = vld [vmem:[%s3681_s5 + $0x48] sm:$0xff] }
  0x1c   :  { %v1941_v53 = vpack.c.bf16 %v230_v51, %v226_v50  ;;  %v229_v55 = vld [vmem:[%s3680_s3 + $0x1b0] sm:$0xff]  ;;  %v234_v61 = vld [vmem:[%s3680_s3 + $0x1d8] sm:$0xff]  ;;  %v452_v26 = vld [vmem:[%s3681_s5 + $0x68] sm:$0xff] }
  0x1d   :  { %1880 = vmatpush3.bf16.msra.mxu0 %v1877_v49  ;;  %1908 = vmatpush1.bf16.msra.mxu1 %v1907_v6  ;;  %v221_v49 = vld [vmem:[%s3680_s3 + $0x170] sm:$0xff]  ;;  %v1943_v56 = vpack.c.bf16 %v229_v55, %v225_v54  ;;  %v238_v63 = vld [vmem:[%s3680_s3 + $0x1f8] sm:$0xff]  ;;  %v1915_v6 = vpack.c.bf16 %v235_v2, %v231_v0  ;;  %v447_v32 = vld [vmem:[%s3681_s5 + $0x40] sm:$0xff] }
  0x1e   :  { %1882 = vmatprep.subr.bf16.mxu0 %v1881_v60  ;;  %1910 = vmatprep.subr.bf16.mxu1 %v1909_v13  ;;  %v1939_v52 = vpack.c.bf16 %v221_v49, %v217_v48  ;;  %v1945_v1 = vpack.c.bf16 %v238_v63, %v234_v61  ;;  %v233_v3 = vld [vmem:[%s3680_s3 + $0x1d0] sm:$0xff]  ;;  %v442_v11 = vld [vmem:[%s3681_s5 + $0x18] sm:$0xff]  ;;  %v451_v33 = vld [vmem:[%s3681_s5 + $0x60] sm:$0xff] }
  0x1f   :  { %v237_v4 = vld [vmem:[%s3680_s3 + $0x1f0] sm:$0xff]  ;;  %v446_v13 = vld [vmem:[%s3681_s5 + $0x38] sm:$0xff]  ;;  %v456_v38 = vld [vmem:[%s3681_s5 + $0x88] sm:$0xff] }
  0x20   :  { %v1947_v7 = vpack.c.bf16 %v237_v4, %v233_v3  ;;  %v1981_v15 = vpack.c.bf16 %v446_v13, %v442_v11  ;;  %v445_v22 = vld [vmem:[%s3681_s5 + $0x30] sm:$0xff]  ;;  %v460_v43 = vld [vmem:[%s3681_s5 + $0xa8] sm:$0xff]  ;;  %v458_v44 = vld [vmem:[%s3681_s5 + $0x98] sm:$0xff] }
  0x21   :  { %1884 = vmatpush3.bf16.msra.mxu0 %v1881_v60  ;;  %1912 = vmatpush1.bf16.msra.mxu1 %v1911_v24  ;;  %v236_v60 = vld [vmem:[%s3680_s3 + $0x1e8] sm:$0xff]  ;;  %v449_v36 = vld [vmem:[%s3681_s5 + $0x50] sm:$0xff]  ;;  %v462_v45 = vld [vmem:[%s3681_s5 + $0xb8] sm:$0xff] }
  0x22   :  { %1918 = vmatprep.subr.bf16.mxu0 %v1917_v8  ;;  %v1913_v62 = vpack.c.bf16 %v236_v60, %v232_v59  ;;  %v440_v8 = vld [vmem:[%s3681_s5 + $0x8] sm:$0xff]  ;;  %v453_v37 = vld [vmem:[%s3681_s5 + $0x70] sm:$0xff]  ;;  %v455_v49 = vld [vmem:[%s3681_s5 + $0x80] sm:$0xff]  ;;  %v1989_v54 = vpack.c.bf16 %v462_v45, %v458_v44 }
  0x23   :  { %v1949_v12 = vpack.c.bf16 %v444_v10, %v440_v8  ;;  %v1987_v48 = vpack.c.bf16 %v453_v37, %v449_v36  ;;  %v459_v50 = vld [vmem:[%s3681_s5 + $0xa0] sm:$0xff]  ;;  %v457_v55 = vld [vmem:[%s3681_s5 + $0x90] sm:$0xff]  ;;  %v464_v59 = vld [vmem:[%s3681_s5 + $0xc8] sm:$0xff] }
  0x24   :  { %1848 = vmatmul.mubr.f32.vlgmr.msra.gmra.mrb[0].mxu0 %v52_v17  ;;  %1914 = vmatprep.subr.bf16.mxu1 %v1913_v62  ;;  %v468_v61 = vld [vmem:[%s3681_s5 + $0xe8] sm:$0xff]  ;;  %v466_v62 = vld [vmem:[%s3681_s5 + $0xd8] sm:$0xff]  ;;  %v1959_v0 = vpack.c.bf16 %v459_v50, %v455_v49  ;;  %v463_v3 = vld [vmem:[%s3681_s5 + $0xc0] sm:$0xff] }
  0x25   :  { %1850 = vmatprep.mubr.f32.mxu0 %v53_v20  ;;  %1920 = vmatpush1.bf16.msra.mxu0 %v1919_v19  ;;  %v443_v20 = vld [vmem:[%s3681_s5 + $0x20] sm:$0xff]  ;;  %v470_v63 = vld [vmem:[%s3681_s5 + $0xf8] sm:$0xff]  ;;  %v465_v10 = vld [vmem:[%s3681_s5 + $0xd0] sm:$0xff] }
  0x26   :  { %1922 = vmatprep.subr.bf16.mxu0 %v1921_v21  ;;  %1916 = vmatpush1.bf16.msra.mxu1 %v1915_v6  ;;  %v441_v21 = vld [vmem:[%s3681_s5 + $0x10] sm:$0xff]  ;;  %v1951_v30 = vpack.c.bf16 %v443_v20, %v439_v18  ;;  %v467_v4 = vld [vmem:[%s3681_s5 + $0xe0] sm:$0xff]  ;;  %v1993_v8 = vpack.c.bf16 %v470_v63, %v466_v62  ;;  %v476_v13 = vld [vmem:[%s3681_s5 + $0x128] sm:$0xff] }
  0x27   :  { %1950 = vmatprep.subr.bf16.mxu1 %v1949_v12  ;;  %v1983_v31 = vpack.c.bf16 %v445_v22, %v441_v21  ;;  %v469_v11 = vld [vmem:[%s3681_s5 + $0xf0] sm:$0xff]  ;;  %v472_v12 = vld [vmem:[%s3681_s5 + $0x108] sm:$0xff]  ;;  %v475_v20 = vld [vmem:[%s3681_s5 + $0x120] sm:$0xff] }
  0x28   :  { %1851 = vmatmul.mubr.f32.gmra.mrb[2].mxu0 %v54_v27  ;;  %v450_v27 = vld [vmem:[%s3681_s5 + $0x58] sm:$0xff]  ;;  %v1995_v18 = vpack.c.bf16 %v469_v11, %v465_v10  ;;  %v1965_v22 = vpack.c.bf16 %v476_v13, %v472_v12  ;;  %v481_v36 = vld [vmem:[%s3681_s5 + $0x150] sm:$0xff]  ;;  %v487_v44 = vld [vmem:[%s3681_s5 + $0x180] sm:$0xff] }
  0x29   :  { %1924 = vmatpush1.bf16.msra.mxu0 %v1923_v28  ;;  %414 = vmatprep.mubr.f32.mxu0 %v2301_v14  ;;  %v454_v28 = vld [vmem:[%s3681_s5 + $0x78] sm:$0xff]  ;;  %v485_v37 = vld [vmem:[%s3681_s5 + $0x170] sm:$0xff]  ;;  %v491_v45 = vld [vmem:[%s3681_s5 + $0x1a0] sm:$0xff] }
  0x2a   :  { %1926 = vmatprep.subr.bf16.mxu0 %v1925_v29  ;;  %v1985_v42 = vpack.c.bf16 %v454_v28, %v450_v27  ;;  %v484_v27 = vld [vmem:[%s3681_s5 + $0x168] sm:$0xff]  ;;  %v482_v28 = vld [vmem:[%s3681_s5 + $0x158] sm:$0xff]  ;;  %v493_v49 = vld [vmem:[%s3681_s5 + $0x1b0] sm:$0xff] }
  0x2b   :  { %v496_v50 = vld [vmem:[%s3681_s5 + $0x1c8] sm:$0xff]  ;;  %v497_v62 = vld [vmem:[%s3681_s5 + $0x1d0] sm:$0xff]  ;;  %v761_v13 = vld [vmem:[%s3683_s6 + $0x98] sm:$0xff] }
  0x2c   :  { %v501_v63 = vld [vmem:[%s3681_s5 + $0x1f0] sm:$0xff] }
  0x2d   :  { %1928 = vmatpush1.bf16.msra.mxu0 %v1927_v34 }
  0x2e   :  { %1930 = vmatprep.subr.bf16.mxu0 %v1929_v35  ;;  %v1953_v35 = vpack.c.bf16 %v452_v26, %v448_v25  ;;  %v477_v25 = vld [vmem:[%s3681_s5 + $0x130] sm:$0xff]  ;;  %v480_v26 = vld [vmem:[%s3681_s5 + $0x148] sm:$0xff] }
  0x31   :  { %1932 = vmatpush1.bf16.msra.mxu0 %v1931_v40 }
  0x32   :  { %1934 = vmatprep.subr.bf16.mxu0 %v1933_v41 }
  0x35   :  { %1936 = vmatpush1.bf16.msra.mxu0 %v1935_v46 }
  0x36   :  { %1938 = vmatprep.subr.bf16.mxu0 %v1937_v47  ;;  %v1955_v47 = vpack.c.bf16 %v451_v33, %v447_v32  ;;  %v479_v32 = vld [vmem:[%s3681_s5 + $0x140] sm:$0xff] }
  0x37   :  { %v483_v33 = vld [vmem:[%s3681_s5 + $0x160] sm:$0xff] }
  0x39   :  { %1940 = vmatpush1.bf16.msra.mxu0 %v1939_v52 }
  0x3a   :  { %1942 = vmatprep.subr.bf16.mxu0 %v1941_v53  ;;  %v1957_v53 = vpack.c.bf16 %v460_v43, %v456_v38  ;;  %v488_v38 = vld [vmem:[%s3681_s5 + $0x188] sm:$0xff]  ;;  %v2003_v43 = vpack.c.bf16 %v485_v37, %v481_v36  ;;  %v782_v37 = vld [vmem:[%s3683_s6 + $0x140] sm:$0xff] }
  0x3d   :  { %1944 = vmatpush1.bf16.msra.mxu0 %v1943_v56  ;;  %v461_v56 = vld [vmem:[%s3681_s5 + $0xb0] sm:$0xff] }
  0x3e   :  { %1946 = vmatprep.subr.bf16.mxu0 %v1945_v1  ;;  %v1991_v1 = vpack.c.bf16 %v461_v56, %v457_v55  ;;  %v495_v56 = vld [vmem:[%s3681_s5 + $0x1c0] sm:$0xff] }
  0x41   :  { %1948 = vmatpush1.bf16.msra.mxu0 %v1947_v7  ;;  %v1961_v7 = vpack.c.bf16 %v468_v61, %v464_v59  ;;  %v499_v61 = vld [vmem:[%s3681_s5 + $0x1e0] sm:$0xff] }
  0x42   :  { %1982 = vmatprep.subr.bf16.mxu0 %v1981_v15  ;;  %v474_v15 = vld [vmem:[%s3681_s5 + $0x118] sm:$0xff] }
  0xf7   :  { %v1849_v17 = vpop.f32.mrb[0].mxu0 }
  0xf8   :  { %v144_v19 = vpop.f32.mrb[1].mxu0  ;;  %v150_v23 = vadd.f32 %v1849_v17, %v1626_v16  ;;  %v1963_v17 = vpack.c.bf16 %v467_v4, %v463_v3  ;;  %v2011_v3 = vpack.c.bf16 %v501_v63, %v497_v62  ;;  %v754_v63 = vld [vmem:[%s3683_s6 + $0x60] sm:$0xff] }
  0xf9   :  { %v145_v24 = vadd.f32 %v1626_v16, %v144_v19  ;;  %v471_v19 = vld [vmem:[%s3681_s5 + $0x100] sm:$0xff] }
  0xfa   :  { %v168_v40 = vmul.f32 0.2, %v150_v23  ;;  %vm164_vm5 = vcmp.ge.f32.partialorder %v150_v23, 0.0 }
  0xfb   :  { %v167_v29 = vmul.f32 0.2, %v145_v24  ;;  %vm163_vm4 = vcmp.ge.f32.partialorder %v145_v24, 0.0  ;;  %v1852_v34 = vpop.f32.mrb[2].mxu0 }
  0xfc   :  { %v154_v39 = vpop.f32.mrb[3].mxu0  ;;  %v160_v51 = vadd.f32 %v1852_v34, %v1626_v16  ;;  %v172_v60 = vsel %vm164_vm5, %v150_v23, %v168_v40  ;;  %v1969_v34 = vpack.c.bf16 %v484_v27, %v480_v26  ;;  %v490_v40 = vld [vmem:[%s3681_s5 + $0x198] sm:$0xff]  ;;  %v747_v26 = vld [vmem:[%s3683_s6 + $0x28] sm:$0xff] }
  0xfd   :  { %v171_v41 = vsel %vm163_vm4, %v145_v24, %v167_v29  ;;  %v155_v46 = vadd.f32 %v1626_v16, %v154_v39  ;;  %v478_v16 = vld [vmem:[%s3681_s5 + $0x138] sm:$0xff]  ;;  %v473_v24 = vld [vmem:[%s3681_s5 + $0x110] sm:$0xff]  ;;  %v492_v39 = vld [vmem:[%s3681_s5 + $0x1a8] sm:$0xff] }
  0xfe   :  { %326 = vmatmul.mubr.f32.vlgmr.msra.gmra.mrb[0].mxu1 %v171_v41  ;;  %415 = vmatmul.mubr.f32.vlgmr.msra.gmra.mrb[4].mxu0 %v171_v41  ;;  %v170_v2 = vmul.f32 0.2, %v160_v51  ;;  %vm166_vm7 = vcmp.ge.f32.partialorder %v160_v51, 0.0  ;;  %v1997_v23 = vpack.c.bf16 %v478_v16, %v474_v15  ;;  %v486_v29 = vld [vmem:[%s3681_s5 + $0x178] sm:$0xff]  ;;  %v744_v16 = vld [vmem:[%s3683_s6 + $0x10] sm:$0xff] }
  0xff   :  { %1952 = vmatpush1.bf16.msra.mxu1 %v1951_v30  ;;  %1984 = vmatpush1.bf16.msra.mxu0 %v1983_v31  ;;  %v169_v52 = vmul.f32 0.2, %v155_v46  ;;  %vm165_vm6 = vcmp.ge.f32.partialorder %v155_v46, 0.0  ;;  %v1967_v30 = vpack.c.bf16 %v475_v20, %v471_v19  ;;  %v1999_v31 = vpack.c.bf16 %v477_v25, %v473_v24  ;;  %v494_v41 = vld [vmem:[%s3681_s5 + $0x1b8] sm:$0xff]  ;;  %v778_v19 = vld [vmem:[%s3683_s6 + $0x120] sm:$0xff]  ;;  %v779_v20 = vld [vmem:[%s3683_s6 + $0x128] sm:$0xff] }
 0x100   :  { %331 = vmatprep.mubr.f32.mxu1 %v2301_v14  ;;  %420 = vmatprep.mubr.f32.mxu0 %v2301_v14  ;;  %v174_v21 = vsel %vm166_vm7, %v160_v51, %v170_v2  ;;  %v500_v51 = vld [vmem:[%s3681_s5 + $0x1e8] sm:$0xff]  ;;  %v1979_v2 = vpack.c.bf16 %v499_v61, %v495_v56  ;;  %v746_v25 = vld [vmem:[%s3683_s6 + $0x20] sm:$0xff] }
 0x101   :  { %1954 = vmatprep.subr.bf16.mxu1 %v1953_v35  ;;  %1986 = vmatprep.subr.bf16.mxu0 %v1985_v42  ;;  %v173_v6 = vsel %vm165_vm6, %v155_v46, %v169_v52  ;;  %v2001_v35 = vpack.c.bf16 %v486_v29, %v482_v28  ;;  %v1971_v42 = vpack.c.bf16 %v483_v33, %v479_v32  ;;  %v498_v52 = vld [vmem:[%s3681_s5 + $0x1d8] sm:$0xff]  ;;  %v780_v28 = vld [vmem:[%s3683_s6 + $0x130] sm:$0xff]  ;;  %v787_v56 = vld [vmem:[%s3683_s6 + $0x168] sm:$0xff] }
 0x102   :  { %332 = vmatmul.mubr.f32.gmra.mrb[2].mxu1 %v172_v60  ;;  %421 = vmatmul.mubr.f32.gmra.mrb[6].mxu0 %v172_v60  ;;  %v1973_v46 = vpack.c.bf16 %v492_v39, %v488_v38  ;;  %v1977_v59 = vpack.c.bf16 %v500_v51, %v496_v50  ;;  %v2023_v27 = vpack.c.bf16 %v747_v26, %v746_v25  ;;  %v781_v29 = vld [vmem:[%s3683_s6 + $0x138] sm:$0xff]  ;;  %v783_v38 = vld [vmem:[%s3683_s6 + $0x148] sm:$0xff] }
 0x103   :  { %1956 = vmatpush1.bf16.msra.mxu1 %v1955_v47  ;;  %1988 = vmatpush1.bf16.msra.mxu0 %v1987_v48  ;;  %v2005_v47 = vpack.c.bf16 %v494_v41, %v490_v40  ;;  %v489_v48 = vld [vmem:[%s3681_s5 + $0x190] sm:$0xff]  ;;  %v765_v32 = vld [vmem:[%s3683_s6 + $0xb8] sm:$0xff]  ;;  %v2058_v39 = vpack.c.bf16 %v783_v38, %v782_v37  ;;  %v766_v40 = vld [vmem:[%s3683_s6 + $0xc0] sm:$0xff] }
 0x104   :  { %1958 = vmatprep.subr.bf16.mxu1 %v1957_v53  ;;  %1990 = vmatprep.subr.bf16.mxu0 %v1989_v54  ;;  %v502_v53 = vld [vmem:[%s3681_s5 + $0x1f8] sm:$0xff]  ;;  %v1975_v54 = vpack.c.bf16 %v491_v45, %v487_v44  ;;  %v2007_v55 = vpack.c.bf16 %v493_v49, %v489_v48  ;;  %v767_v41 = vld [vmem:[%s3683_s6 + $0xc8] sm:$0xff]  ;;  %v768_v49 = vld [vmem:[%s3683_s6 + $0xd0] sm:$0xff] }
 0x105   :  { %337 = vmatprep.mubr.f32.mxu1 %v2301_v14  ;;  %426 = vmatprep.mubr.f32.mxu0 %v2301_v14  ;;  %v2009_v60 = vpack.c.bf16 %v502_v53, %v498_v52  ;;  %v751_v44 = vld [vmem:[%s3683_s6 + $0x48] sm:$0xff]  ;;  %v769_v50 = vld [vmem:[%s3683_s6 + $0xd8] sm:$0xff]  ;;  %v752_v52 = vld [vmem:[%s3683_s6 + $0x50] sm:$0xff] }
 0x106   :  { %338 = vmatmul.mubr.f32.gmra.mrb[4].mxu1 %v173_v6  ;;  %427 = vmatmul.mubr.f32.gmra.mrb[8].mxu0 %v173_v6  ;;  %v774_v6 = vld [vmem:[%s3683_s6 + $0x100] sm:$0xff]  ;;  %v2033_v51 = vpack.c.bf16 %v769_v50, %v768_v49  ;;  %v753_v53 = vld [vmem:[%s3683_s6 + $0x58] sm:$0xff]  ;;  %v771_v61 = vld [vmem:[%s3683_s6 + $0xe8] sm:$0xff] }
 0x107   :  { %1960 = vmatpush1.bf16.msra.mxu1 %v1959_v0  ;;  %1992 = vmatpush1.bf16.msra.mxu0 %v1991_v1  ;;  %v758_v0 = vld [vmem:[%s3683_s6 + $0x80] sm:$0xff]  ;;  %v759_v1 = vld [vmem:[%s3683_s6 + $0x88] sm:$0xff] }
 0x108   :  { %1962 = vmatprep.subr.bf16.mxu1 %v1961_v7  ;;  %1994 = vmatprep.subr.bf16.mxu0 %v1993_v8  ;;  %v2013_v4 = vpack.c.bf16 %v759_v1, %v758_v0  ;;  %v775_v7 = vld [vmem:[%s3683_s6 + $0x108] sm:$0xff]  ;;  %v2302_v8 = vmov 0.0|0.0  }
 0x109   :  { %343 = vmatprep.mubr.f32.mxu1 %v2301_v14  ;;  %432 = vmatprep.mubr.f32.mxu0 %v2301_v14  ;;  %v2046_v10 = vpack.c.bf16 %v775_v7, %v774_v6  ;;  %v755_v0 = vld [vmem:[%s3683_s6 + $0x68] sm:$0xff]  ;;  %v772_v6 = vld [vmem:[%s3683_s6 + $0xf0] sm:$0xff]  ;;  %v773_v7 = vld [vmem:[%s3683_s6 + $0xf8] sm:$0xff] }
 0x10a   :  { %344 = vmatmul.mubr.f32.gmra.mrb[6].mxu1 %v174_v21  ;;  %433 = vmatmul.mubr.f32.gmra.mrb[10].mxu0 %v174_v21  ;;  %v2052_v21 = vpack.c.bf16 %v779_v20, %v778_v19  ;;  %v2039_v1 = vpack.c.bf16 %v755_v0, %v754_v63  ;;  %v241_v19 = vlaneseq }
 0x10b   :  { %1964 = vmatpush1.bf16.msra.mxu1 %v1963_v17  ;;  %1996 = vmatpush1.bf16.msra.mxu0 %v1995_v18  ;;  %v745_v17 = vld [vmem:[%s3683_s6 + $0x18] sm:$0xff] }
 0x10c   :  { %1966 = vmatprep.subr.bf16.mxu1 %v1965_v22  ;;  %1998 = vmatprep.subr.bf16.mxu0 %v1997_v23  ;;  %v2019_v18 = vpack.c.bf16 %v745_v17, %v744_v16  ;;  %v762_v22 = vld [vmem:[%s3683_s6 + $0xa0] sm:$0xff]  ;;  %v763_v23 = vld [vmem:[%s3683_s6 + $0xa8] sm:$0xff]  ;;  %v242_v20 = vshrl.u32 %v241_v19, 7 }
 0x10d   :  { %567 = vmatprep.mubr.f32.mxu1 %v2301_v14  ;;  %656 = vmatprep.mubr.f32.mxu0 %v2301_v14  ;;  %v2021_v24 = vpack.c.bf16 %v763_v23, %v762_v22  ;;  %v1161_v16 = vld [vmem:[%s3685_s7 + $0x80] sm:$0xff]  ;;  %v1162_v17 = vld [vmem:[%s3685_s7 + $0x88] sm:$0xff] }
 0x10e   :  { %v239_v22 = vld [vmem:[%s3686_s4] sm:$0xf]  ;;  %v243_v23 = vsub.s32 0, %v242_v20  ;;  %v247_v25 = vsub.s32 1, %v242_v20 }
 0x10f   :  { %1968 = vmatpush1.bf16.msra.mxu1 %v1967_v30  ;;  %2000 = vmatpush1.bf16.msra.mxu0 %v1999_v31  ;;  %v2055_v30 = vpack.c.bf16 %v781_v29, %v780_v28  ;;  %v764_v31 = vld [vmem:[%s3683_s6 + $0xb0] sm:$0xff] }
 0x110   :  { %1970 = vmatprep.subr.bf16.mxu1 %v1969_v34  ;;  %2002 = vmatprep.subr.bf16.mxu0 %v2001_v35  ;;  %v2025_v33 = vpack.c.bf16 %v765_v32, %v764_v31  ;;  %v748_v34 = vld [vmem:[%s3683_s6 + $0x30] sm:$0xff]  ;;  %v749_v35 = vld [vmem:[%s3683_s6 + $0x38] sm:$0xff]  ;;  %v244_v29 = vrot.slane %v239_v22, %v243_v23 }
 0x111   :  { %v2027_v36 = vpack.c.bf16 %v749_v35, %v748_v34 }
 0x113   :  { %1972 = vmatpush1.bf16.msra.mxu1 %v1971_v42  ;;  %2004 = vmatpush1.bf16.msra.mxu0 %v2003_v43  ;;  %v2029_v42 = vpack.c.bf16 %v767_v41, %v766_v40  ;;  %v750_v43 = vld [vmem:[%s3683_s6 + $0x40] sm:$0xff] }
 0x114   :  { %1974 = vmatprep.subr.bf16.mxu1 %v1973_v46  ;;  %2006 = vmatprep.subr.bf16.mxu0 %v2005_v47  ;;  %v2031_v45 = vpack.c.bf16 %v751_v44, %v750_v43  ;;  %v784_v46 = vld [vmem:[%s3683_s6 + $0x150] sm:$0xff]  ;;  %v785_v47 = vld [vmem:[%s3683_s6 + $0x158] sm:$0xff] }
 0x115   :  { %v2061_v48 = vpack.c.bf16 %v785_v47, %v784_v46 }
 0x117   :  { %1976 = vmatpush1.bf16.msra.mxu1 %v1975_v54  ;;  %2008 = vmatpush1.bf16.msra.mxu0 %v2007_v55  ;;  %v2035_v54 = vpack.c.bf16 %v753_v53, %v752_v52  ;;  %v786_v55 = vld [vmem:[%s3683_s6 + $0x160] sm:$0xff] }
 0x118   :  { %1978 = vmatprep.subr.bf16.mxu1 %v1977_v59  ;;  %2010 = vmatprep.subr.bf16.mxu0 %v2009_v60  ;;  %v2064_v59 = vpack.c.bf16 %v787_v56, %v786_v55  ;;  %v770_v60 = vld [vmem:[%s3683_s6 + $0xe0] sm:$0xff] }
 0x119   :  { %v2037_v62 = vpack.c.bf16 %v771_v61, %v770_v60 }
 0x11b   :  { %1980 = vmatpush1.bf16.msra.mxu1 %v1979_v2  ;;  %2012 = vmatpush1.bf16.msra.mxu0 %v2011_v3  ;;  %v788_v2 = vld [vmem:[%s3683_s6 + $0x170] sm:$0xff]  ;;  %v789_v3 = vld [vmem:[%s3683_s6 + $0x178] sm:$0xff] }
 0x11c   :  { %2045 = vmatprep.subr.bf16.mxu0 %v2302_v8  ;;  %2014 = vmatprep.subr.bf16.mxu1 %v2013_v4  ;;  %v2067_v4 = vpack.c.bf16 %v789_v3, %v788_v2 }
 0x11e   :  { %568 = vmatmul.mubr.f32.vlgmr.msra.gmra.mrb[0].mxu1 %v2394_v9  ;;  %657 = vmatmul.mubr.f32.vlgmr.msra.gmra.mrb[4].mxu0 %v2394_v9  ;;  %v742_v9 = vld [vmem:[%s3683_s6] sm:$0xff] }
 0x11f   :  { %573 = vmatprep.mubr.f32.mxu1 %v2301_v14  ;;  %662 = vmatprep.mubr.f32.mxu0 %v2301_v14 }
 0x120   :  { %2047 = vmatpush1.bf16.msra.mxu0 %v2046_v10  ;;  %v2041_v10 = vpack.c.bf16 %v773_v7, %v772_v6 }
 0x121   :  { %2048 = vmatprep.subr.bf16.mxu0 %v2302_v8 }
 0x122   :  { %574 = vmatmul.mubr.f32.gmra.mrb[2].mxu1 %v2498_v57  ;;  %663 = vmatmul.mubr.f32.gmra.mrb[6].mxu0 %v2498_v57  ;;  %v743_v57 = vld [vmem:[%s3683_s6 + $0x8] sm:$0xff] }
 0x123   :  { %579 = vmatprep.mubr.f32.mxu1 %v2301_v14  ;;  %668 = vmatprep.mubr.f32.mxu0 %v2301_v14  ;;  %v2015_v11 = vpack.c.bf16 %v743_v57, %v742_v9  ;;  %v756_v9 = vld [vmem:[%s3683_s6 + $0x70] sm:$0xff]  ;;  %v757_v57 = vld [vmem:[%s3683_s6 + $0x78] sm:$0xff] }
 0x125   :  { %2016 = vmatpush3.bf16.msra.mxu1 %v2015_v11  ;;  %v790_v11 = vld [vmem:[%s3683_s6 + $0x180] sm:$0xff] }
 0x126   :  { %580 = vmatmul.mubr.f32.gmra.mrb[4].mxu1 %v2503_v58  ;;  %669 = vmatmul.mubr.f32.gmra.mrb[8].mxu0 %v2503_v58  ;;  %v776_v58 = vld [vmem:[%s3683_s6 + $0x110] sm:$0xff] }
 0x127   :  { %585 = vmatprep.mubr.f32.mxu1 %v2301_v14  ;;  %674 = vmatprep.mubr.f32.mxu0 %v2301_v14  ;;  %v777_v14 = vld [vmem:[%s3683_s6 + $0x118] sm:$0xff] }
 0x128   :  { %v2049_v12 = vpack.c.bf16 %v777_v14, %v776_v58  ;;  %v2043_v58 = vpack.c.bf16 %v757_v57, %v756_v9  ;;  %v791_v14 = vld [vmem:[%s3683_s6 + $0x188] sm:$0xff] }
 0x12a   :  { %586 = vmatmul.mubr.f32.gmra.mrb[6].mxu1 %v2527_v5  ;;  %675 = vmatmul.mubr.f32.gmra.mrb[10].mxu0 %v2527_v5  ;;  %v760_v5 = vld [vmem:[%s3683_s6 + $0x90] sm:$0xff] }
 0x12b   :  { %2050 = vmatpush1.bf16.msra.mxu0 %v2049_v12  ;;  %v2017_v15 = vpack.c.bf16 %v761_v13, %v760_v5  ;;  %v2070_v12 = vpack.c.bf16 %v791_v14, %v790_v11  ;;  %v969_v5 = vld [vmem:[%s3684_s8 + $0x80] sm:$0xff]  ;;  %v970_v13 = vld [vmem:[%s3684_s8 + $0x88] sm:$0xff] }
 0x12c   :  { %2051 = vmatprep.subr.bf16.mxu0 %v2302_v8 }
 0x12d   :  { %2018 = vmatprep.subr.bf16.mxu1 %v2017_v15  ;;  %v2072_v15 = vpack.c.bf16 %v970_v13, %v969_v5 }
 0x12e   :  { %2020 = vmatpush3.bf16.msra.mxu1 %v2019_v18  ;;  %v2131_v18 = vpack.c.bf16 %v1162_v17, %v1161_v16 }
 0x12f   :  { %2053 = vmatpush1.bf16.msra.mxu0 %v2052_v21  ;;  %2022 = vmatprep.subr.bf16.mxu1 %v2021_v24  ;;  %v255_v21 = vsub.s32 3, %v242_v20  ;;  %v251_v24 = vsub.s32 2, %v242_v20 }
 0x130   :  { %2054 = vmatprep.subr.bf16.mxu0 %v2302_v8 }
 0x131   :  { %v256_v28 = vrot.slane %v239_v22, %v255_v21 }
 0x132   :  { %2024 = vmatpush3.bf16.msra.mxu1 %v2023_v27 }
 0x133   :  { %2056 = vmatpush1.bf16.msra.mxu0 %v2055_v30  ;;  %2026 = vmatprep.subr.bf16.mxu1 %v2025_v33  ;;  %v252_v30 = vrot.slane %v239_v22, %v251_v24  ;;  %v248_v33 = vrot.slane %v239_v22, %v247_v25 }
 0x134   :  { %2057 = vmatprep.subr.bf16.mxu0 %v2302_v8 }
 0x136   :  { %2028 = vmatpush3.bf16.msra.mxu1 %v2027_v36 }
 0x137   :  { %2059 = vmatpush1.bf16.msra.mxu0 %v2058_v39  ;;  %2030 = vmatprep.subr.bf16.mxu1 %v2029_v42 }
 0x138   :  { %2060 = vmatprep.subr.bf16.mxu0 %v2302_v8 }
 0x13a   :  { %2032 = vmatpush3.bf16.msra.mxu1 %v2031_v45 }
 0x13b   :  { %2062 = vmatpush1.bf16.msra.mxu0 %v2061_v48  ;;  %2034 = vmatprep.subr.bf16.mxu1 %v2033_v51 }
 0x13c   :  { %2063 = vmatprep.subr.bf16.mxu0 %v2302_v8 }
 0x13e   :  { %2036 = vmatpush3.bf16.msra.mxu1 %v2035_v54 }
 0x13f   :  { %2065 = vmatpush1.bf16.msra.mxu0 %v2064_v59  ;;  %2038 = vmatprep.subr.bf16.mxu1 %v2037_v62 }
 0x140   :  { %2066 = vmatprep.subr.bf16.mxu0 %v2302_v8 }
 0x142   :  { %2040 = vmatpush3.bf16.msra.mxu1 %v2039_v1 }
 0x143   :  { %2068 = vmatpush1.bf16.msra.mxu0 %v2067_v4  ;;  %2042 = vmatprep.subr.bf16.mxu1 %v2041_v10 }
 0x144   :  { %2069 = vmatprep.subr.bf16.mxu0 %v2302_v8 }
 0x146   :  { %2044 = vmatpush3.bf16.msra.mxu1 %v2043_v58 }
 0x147   :  { %2071 = vmatpush1.bf16.msra.mxu0 %v2070_v12  ;;  %2073 = vmatprep.subr.bf16.mxu1 %v2072_v15 }
 0x148   :  { %2132 = vmatprep.subr.bf16.mxu0 %v2131_v18 }
 0x1f1   :  { %v569_v26 = vpop.f32.mrb[0].mxu1  ;;  %v658_v27 = vpop.f32.mrb[4].mxu0 }
 0x1f2   :  { %v571_v31 = vpop.f32.mrb[1].mxu1  ;;  %v660_v32 = vpop.f32.mrb[5].mxu0  ;;  %v3042_v37 = vadd.f32 %v569_v26, %v244_v29  ;;  %v3044_v38 = vadd.f32 %v658_v27, %v252_v30 }
 0x1f3   :  { %v3040_v34 = vadd.f32 %v660_v32, %v256_v28  ;;  %v3050_v43 = vadd.f32 %v571_v31, %v248_v33 }
 0x1f5   :  { %v575_v35 = vpop.f32.mrb[2].mxu1  ;;  %v664_v36 = vpop.f32.mrb[6].mxu0  ;;  %v703_v48 = vsel %vm702_vm8, %v3040_v34, 0.0 }
 0x1f6   :  { %v3046_v39 = vadd.f32 %v575_v35, %v244_v29  ;;  %v3048_v40 = vadd.f32 %v664_v36, %v252_v30  ;;  %v577_v41 = vpop.f32.mrb[3].mxu1  ;;  %v666_v42 = vpop.f32.mrb[7].mxu0 }
 0x1f7   :  { %v3052_v44 = vadd.f32 %v577_v41, %v248_v33  ;;  %v3054_v45 = vadd.f32 %v666_v42, %v256_v28 }
 0x1f8   :  { %v681_v46 = vadd.f32 %v3046_v39, %v3042_v37  ;;  %v695_v47 = vadd.f32 %v3048_v40, %v3044_v38 }
 0x1f9   :  { %v688_v49 = vadd.f32 %v3052_v44, %v3050_v43  ;;  %v704_v50 = vsel %vm702_vm8, %v3054_v45, 0.0  ;;  %v581_v51 = vpop.f32.mrb[4].mxu1  ;;  %v670_v52 = vpop.f32.mrb[8].mxu0 }
 0x1fa   :  { %v682_v53 = vrot.slane %v681_v46, 4  ;;  %v705_v54 = vadd.f32 %v704_v50, %v703_v48  ;;  %v583_v55 = vpop.f32.mrb[5].mxu1  ;;  %v672_v56 = vpop.f32.mrb[9].mxu0  ;;  %v696_v59 = vrot.slane %v695_v47, 4  ;;  %v3068_v0 = vadd.f32 %v581_v51, %v244_v29 }
 0x1fb   :  { %v689_v60 = vrot.slane %v688_v49, 4  ;;  %v3066_v62 = vadd.f32 %v672_v56, %v256_v28  ;;  %v3070_v1 = vadd.f32 %v670_v52, %v252_v30  ;;  %v3072_v7 = vadd.f32 %v583_v55, %v248_v33 }
 0x1fc   :  { %v706_v61 = vrot.slane %v705_v54, 4  ;;  %v683_v4 = vadd.f32 %v682_v53, %v681_v46  ;;  %v697_v11 = vadd.f32 %v696_v59, %v695_v47 }
 0x1fd   :  { %v690_v63 = vadd.f32 %v689_v60, %v688_v49  ;;  %v587_v2 = vpop.f32.mrb[6].mxu1  ;;  %v676_v3 = vpop.f32.mrb[10].mxu0  ;;  %v733_v5 = vsel %vm702_vm8, %v3066_v62, 0.0  ;;  %v953_v60 = vld [vmem:[%s3684_s8] sm:$0xff] }
 0x1fe   :  { %v707_v6 = vadd.f32 %v706_v61, %v705_v54  ;;  %v3074_v10 = vadd.f32 %v587_v2, %v244_v29  ;;  %v589_v9 = vpop.f32.mrb[7].mxu1  ;;  %v678_v57 = vpop.f32.mrb[11].mxu0  ;;  %v3076_v58 = vadd.f32 %v676_v3, %v252_v30  ;;  %v684_v19 = vrot.slane %v683_v4, 2  ;;  %v954_v61 = vld [vmem:[%s3684_s8 + $0x8] sm:$0xff]  ;;  %v1145_v3 = vld [vmem:[%s3685_s7] sm:$0xff] }
 0x1ff   :  { %v3078_v14 = vadd.f32 %v589_v9, %v248_v33  ;;  %v3080_v12 = vadd.f32 %v678_v57, %v256_v28  ;;  %v691_v15 = vrot.slane %v690_v63, 2  ;;  %v698_v23 = vrot.slane %v697_v11, 2 }
 0x200   :  { %v712_v13 = vadd.f32 %v3074_v10, %v3068_v0  ;;  %v726_v16 = vadd.f32 %v3076_v58, %v3070_v1  ;;  %v708_v20 = vrot.slane %v707_v6, 2  ;;  %v685_v31 = vadd.f32 %v684_v19, %v683_v4  ;;  %v1146_v4 = vld [vmem:[%s3685_s7 + $0x8] sm:$0xff]  ;;  %v1164_v19 = vld [vmem:[%s3685_s7 + $0x98] sm:$0xff] }
 0x201   :  { %v719_v17 = vadd.f32 %v3078_v14, %v3072_v7  ;;  %v734_v18 = vsel %vm702_vm8, %v3080_v12, 0.0  ;;  %v692_v30 = vadd.f32 %v691_v15, %v690_v63  ;;  %v699_v36 = vadd.f32 %v698_v23, %v697_v11  ;;  %v971_v11 = vld [vmem:[%s3684_s8 + $0x90] sm:$0xff] }
 0x202   :  { %v713_v21 = vrot.slane %v712_v13, 4  ;;  %v735_v22 = vadd.f32 %v734_v18, %v733_v5  ;;  %v727_v24 = vrot.slane %v726_v16, 4  ;;  %v709_v35 = vadd.f32 %v708_v20, %v707_v6  ;;  %v972_v5 = vld [vmem:[%s3684_s8 + $0x98] sm:$0xff]  ;;  %v1163_v18 = vld [vmem:[%s3685_s7 + $0x90] sm:$0xff] }
 0x203   :  { %v720_v25 = vrot.slane %v719_v17, 4  ;;  %v693_v49 = vrot.slane %v692_v30, 1  ;;  %v686_v51 = vrot.slane %v685_v31, 1  ;;  %v700_v55 = vrot.slane %v699_v36, 1  ;;  %v955_v23 = vld [vmem:[%s3684_s8 + $0x10] sm:$0xff] }
 0x204   :  { %v714_v26 = vadd.f32 %v713_v21, %v712_v13  ;;  %v736_v27 = vrot.slane %v735_v22, 4  ;;  %v728_v28 = vadd.f32 %v727_v24, %v726_v16  ;;  %v710_v53 = vrot.slane %v709_v35, 1  ;;  %v956_v24 = vld [vmem:[%s3684_s8 + $0x18] sm:$0xff] }
 0x205   :  { %v721_v29 = vadd.f32 %v720_v25, %v719_v17  ;;  %v694_v6 = vadd.f32 %v693_v49, %v692_v30  ;;  %v687_v13 = vadd.f32 %v686_v51, %v685_v31  ;;  %v2074_v17 = vpack.c.bf16 %v954_v61, %v953_v60  ;;  %v1147_v25 = vld [vmem:[%s3685_s7 + $0x10] sm:$0xff]  ;;  %v973_v30 = vld [vmem:[%s3684_s8 + $0xa0] sm:$0xff]  ;;  %v974_v31 = vld [vmem:[%s3684_s8 + $0xa8] sm:$0xff] }
 0x206   :  { %v715_v32 = vrot.slane %v714_v26, 2  ;;  %v737_v33 = vadd.f32 %v736_v27, %v735_v22  ;;  %v729_v41 = vrot.slane %v728_v28, 2  ;;  %v711_v15 = vadd.f32 %v710_v53, %v709_v35  ;;  %v1165_v35 = vld [vmem:[%s3685_s7 + $0xa0] sm:$0xff]  ;;  %v1150_v51 = vld [vmem:[%s3685_s7 + $0x28] sm:$0xff]  ;;  %v976_v53 = vld [vmem:[%s3684_s8 + $0xb8] sm:$0xff] }
 0x207   :  { %v722_v42 = vrot.slane %v721_v29, 2  ;;  %v701_v21 = vadd.f32 %v700_v55, %v699_v36  ;;  %v2133_v22 = vpack.c.bf16 %v1146_v4, %v1145_v3  ;;  %v1166_v36 = vld [vmem:[%s3685_s7 + $0xa8] sm:$0xff]  ;;  %v1149_v49 = vld [vmem:[%s3685_s7 + $0x20] sm:$0xff]  ;;  %v1168_v55 = vld [vmem:[%s3685_s7 + $0xb8] sm:$0xff] }
 0x208   :  { %v716_v46 = vadd.f32 %v715_v32, %v714_v26  ;;  %v738_v47 = vrot.slane %v737_v33, 2  ;;  %v730_v48 = vadd.f32 %v729_v41, %v728_v28  ;;  %v2076_v28 = vpack.c.bf16 %v972_v5, %v971_v11  ;;  %v959_v61 = vld [vmem:[%s3684_s8 + $0x30] sm:$0xff]  ;;  %v1152_v4 = vld [vmem:[%s3685_s7 + $0x38] sm:$0xff]  ;;  %v1170_v11 = vld [vmem:[%s3685_s7 + $0xc8] sm:$0xff] }
 0x209   :  { %v723_v50 = vadd.f32 %v722_v42, %v721_v29  ;;  %v1148_v29 = vld [vmem:[%s3685_s7 + $0x18] sm:$0xff]  ;;  %v2078_v41 = vpack.c.bf16 %v956_v24, %v955_v23  ;;  %v1171_v23 = vld [vmem:[%s3685_s7 + $0xd0] sm:$0xff] }
 0x20a   :  { %v717_v52 = vrot.slane %v716_v46, 1  ;;  %v739_v54 = vadd.f32 %v738_v47, %v737_v33  ;;  %v731_v56 = vrot.slane %v730_v48, 1  ;;  %v2135_v33 = vpack.c.bf16 %v1164_v19, %v1163_v18  ;;  %v957_v47 = vld [vmem:[%s3684_s8 + $0x20] sm:$0xff]  ;;  %v1172_v24 = vld [vmem:[%s3685_s7 + $0xd8] sm:$0xff] }
 0x20b   :  { %v724_v59 = vrot.slane %v723_v50, 1  ;;  %v2137_v42 = vpack.c.bf16 %v1148_v29, %v1147_v25  ;;  %v1153_v18 = vld [vmem:[%s3685_s7 + $0x40] sm:$0xff] }
 0x20c   :  { %v718_v63 = vadd.f32 %v717_v52, %v716_v46  ;;  %v740_v2 = vrot.slane %v739_v54, 1  ;;  %v732_v57 = vadd.f32 %v731_v56, %v730_v48  ;;  %v2080_v46 = vpack.c.bf16 %v974_v31, %v973_v30  ;;  %v958_v48 = vld [vmem:[%s3684_s8 + $0x28] sm:$0xff]  ;;  %v975_v52 = vld [vmem:[%s3684_s8 + $0xb0] sm:$0xff]  ;;  %v964_v31 = vld [vmem:[%s3684_s8 + $0x58] sm:$0xff] }
 0x20d   :  { %v725_v9 = vadd.f32 %v724_v59, %v723_v50  ;;  %v2139_v50 = vpack.c.bf16 %v1166_v36, %v1165_v35  ;;  %v2082_v56 = vpack.c.bf16 %v958_v48, %v957_v47  ;;  %v2141_v59 = vpack.c.bf16 %v1150_v51, %v1149_v49  ;;  %v963_v30 = vld [vmem:[%s3684_s8 + $0x50] sm:$0xff]  ;;  %v1156_v36 = vld [vmem:[%s3685_s7 + $0x58] sm:$0xff]  ;;  %v1174_v47 = vld [vmem:[%s3685_s7 + $0xe8] sm:$0xff] }
 0x20e   :  { %v741_v16 = vadd.f32 %v740_v2, %v739_v54  ;;  %v3127_v26 = vsel %vm800_vm9, %v718_v63, %v687_v13  ;;  %v3145_v32 = vsel %vm800_vm9, %v732_v57, %v701_v21  ;;  %v1167_v54 = vld [vmem:[%s3685_s7 + $0xb0] sm:$0xff]  ;;  %v2084_v60 = vpack.c.bf16 %v976_v53, %v975_v52  ;;  %v960_v63 = vld [vmem:[%s3684_s8 + $0x38] sm:$0xff]  ;;  %v1169_v57 = vld [vmem:[%s3685_s7 + $0xc0] sm:$0xff] }
 0x20f   :  { %v802_v20 = vsel %vm800_vm9, %v725_v9, %v694_v6  ;;  %v1151_v2 = vld [vmem:[%s3685_s7 + $0x30] sm:$0xff]  ;;  %v2143_v3 = vpack.c.bf16 %v1168_v55, %v1167_v54  ;;  %v977_v6 = vld [vmem:[%s3684_s8 + $0xc0] sm:$0xff]  ;;  %v978_v9 = vld [vmem:[%s3684_s8 + $0xc8] sm:$0xff]  ;;  %v2086_v5 = vpack.c.bf16 %v960_v63, %v959_v61  ;;  %v2147_v19 = vpack.c.bf16 %v1170_v11, %v1169_v57 }
 0x210   :  { %874 = vmatprep.mubr.f32.mxu1 %v802_v20  ;;  %v3130_v27 = vsel %vm800_vm9, %v741_v16, %v711_v15  ;;  %v2145_v13 = vpack.c.bf16 %v1152_v4, %v1151_v2  ;;  %v2088_v15 = vpack.c.bf16 %v978_v9, %v977_v6  ;;  %v961_v16 = vld [vmem:[%s3684_s8 + $0x40] sm:$0xff]  ;;  %v979_v21 = vld [vmem:[%s3684_s8 + $0xd0] sm:$0xff]  ;;  %v2151_v35 = vpack.c.bf16 %v1172_v24, %v1171_v23  ;;  %v966_v52 = vld [vmem:[%s3684_s8 + $0x68] sm:$0xff] }
 0x211   :  { %875 = vmatmul.mubr.f32.vlgmr.msra.gmra.mrb[8].mxu1 %v3127_v26  ;;  %1627 = vmatprep.mubr.msk.f32.mxu0 %vm702_vm8, %v3130_v27  ;;  %v2094_v48 = vpack.c.bf16 %v964_v31, %v963_v30  ;;  %v965_v51 = vld [vmem:[%s3684_s8 + $0x60] sm:$0xff]  ;;  %v1158_v55 = vld [vmem:[%s3685_s7 + $0x68] sm:$0xff]  ;;  %v1176_v61 = vld [vmem:[%s3685_s7 + $0xf8] sm:$0xff] }
 0x212   :  { %2075 = vmatpush3.bf16.msra.mxu1 %v2074_v17  ;;  %945 = vmatmul.mubr.f32.vlgmr.msra.gmra.mrb[12].mxu0 %v3145_v32  ;;  %v962_v17 = vld [vmem:[%s3684_s8 + $0x48] sm:$0xff]  ;;  %v1157_v53 = vld [vmem:[%s3685_s7 + $0x60] sm:$0xff]  ;;  %v2098_v63 = vpack.c.bf16 %v966_v52, %v965_v51  ;;  %v967_v4 = vld [vmem:[%s3684_s8 + $0x70] sm:$0xff] }
 0x213   :  { %1067 = vmatprep.mubr.f32.mxu1 %v802_v20  ;;  %2134 = vmatpush3.bf16.msra.mxu0 %v2133_v22  ;;  %v1154_v20 = vld [vmem:[%s3685_s7 + $0x48] sm:$0xff]  ;;  %v980_v22 = vld [vmem:[%s3684_s8 + $0xd8] sm:$0xff]  ;;  %v2090_v25 = vpack.c.bf16 %v962_v17, %v961_v16  ;;  %v2157_v2 = vpack.c.bf16 %v1158_v55, %v1157_v53  ;;  %v1159_v57 = vld [vmem:[%s3685_s7 + $0x70] sm:$0xff] }
 0x214   :  { %1271 = vmatprep.mubr.f32.mxu0 %v3050_v43  ;;  %2077 = vmatprep.subr.bf16.mxu1 %v2076_v28  ;;  %v2149_v28 = vpack.c.bf16 %v1154_v20, %v1153_v18  ;;  %v2092_v29 = vpack.c.bf16 %v980_v22, %v979_v21  ;;  %v968_v6 = vld [vmem:[%s3684_s8 + $0x78] sm:$0xff]  ;;  %v986_v16 = vld [vmem:[%s3684_s8 + $0x108] sm:$0xff]  ;;  %v1177_v17 = vld [vmem:[%s3685_s7 + $0x100] sm:$0xff] }
 0x215   :  { %2136 = vmatprep.subr.bf16.mxu0 %v2135_v33  ;;  %v1155_v33 = vld [vmem:[%s3685_s7 + $0x50] sm:$0xff]  ;;  %v1160_v11 = vld [vmem:[%s3685_s7 + $0x78] sm:$0xff]  ;;  %v1178_v18 = vld [vmem:[%s3685_s7 + $0x108] sm:$0xff] }
 0x216   :  { %2079 = vmatpush3.bf16.msra.mxu1 %v2078_v41  ;;  %v981_v41 = vld [vmem:[%s3684_s8 + $0xe0] sm:$0xff]  ;;  %v2153_v49 = vpack.c.bf16 %v1156_v36, %v1155_v33  ;;  %v987_v20 = vld [vmem:[%s3684_s8 + $0x110] sm:$0xff]  ;;  %v988_v21 = vld [vmem:[%s3684_s8 + $0x118] sm:$0xff]  ;;  %v2164_v22 = vpack.c.bf16 %v1178_v18, %v1177_v17 }
 0x217   :  { %2138 = vmatpush3.bf16.msra.mxu0 %v2137_v42  ;;  %2081 = vmatprep.subr.bf16.mxu1 %v2080_v46  ;;  %v982_v42 = vld [vmem:[%s3684_s8 + $0xe8] sm:$0xff]  ;;  %v1173_v46 = vld [vmem:[%s3685_s7 + $0xe0] sm:$0xff]  ;;  %v1179_v23 = vld [vmem:[%s3685_s7 + $0x110] sm:$0xff] }
 0x218   :  { %2140 = vmatprep.subr.bf16.mxu0 %v2139_v50  ;;  %v2096_v50 = vpack.c.bf16 %v982_v42, %v981_v41  ;;  %v2155_v54 = vpack.c.bf16 %v1174_v47, %v1173_v46  ;;  %v1180_v24 = vld [vmem:[%s3685_s7 + $0x118] sm:$0xff]  ;;  %v1182_v30 = vld [vmem:[%s3685_s7 + $0x128] sm:$0xff]  ;;  %v991_v33 = vld [vmem:[%s3684_s8 + $0x130] sm:$0xff] }
 0x219   :  { %v1183_v41 = vld [vmem:[%s3685_s7 + $0x130] sm:$0xff]  ;;  %v1184_v42 = vld [vmem:[%s3685_s7 + $0x138] sm:$0xff]  ;;  %v993_v47 = vld [vmem:[%s3684_s8 + $0x140] sm:$0xff] }
 0x21a   :  { %2083 = vmatpush3.bf16.msra.mxu1 %v2082_v56  ;;  %v983_v56 = vld [vmem:[%s3684_s8 + $0xf0] sm:$0xff]  ;;  %v1186_v51 = vld [vmem:[%s3685_s7 + $0x148] sm:$0xff] }
 0x21b   :  { %2142 = vmatpush3.bf16.msra.mxu0 %v2141_v59  ;;  %2085 = vmatprep.subr.bf16.mxu1 %v2084_v60  ;;  %v984_v59 = vld [vmem:[%s3684_s8 + $0xf8] sm:$0xff]  ;;  %v1175_v60 = vld [vmem:[%s3685_s7 + $0xf0] sm:$0xff]  ;;  %v1002_v17 = vld [vmem:[%s3684_s8 + $0x188] sm:$0xff] }
 0x21c   :  { %2144 = vmatprep.subr.bf16.mxu0 %v2143_v3  ;;  %v2100_v3 = vpack.c.bf16 %v984_v59, %v983_v56  ;;  %v2159_v9 = vpack.c.bf16 %v1176_v61, %v1175_v60  ;;  %v995_v53 = vld [vmem:[%s3684_s8 + $0x150] sm:$0xff]  ;;  %v1188_v59 = vld [vmem:[%s3685_s7 + $0x158] sm:$0xff]  ;;  %v997_v61 = vld [vmem:[%s3684_s8 + $0x160] sm:$0xff] }
 0x21d   :  { %v1187_v56 = vld [vmem:[%s3685_s7 + $0x150] sm:$0xff] }
 0x21e   :  { %2087 = vmatpush3.bf16.msra.mxu1 %v2086_v5  ;;  %v2102_v5 = vpack.c.bf16 %v968_v6, %v967_v4  ;;  %v1190_v4 = vld [vmem:[%s3685_s7 + $0x168] sm:$0xff] }
 0x21f   :  { %2146 = vmatpush3.bf16.msra.mxu0 %v2145_v13  ;;  %2089 = vmatprep.subr.bf16.mxu1 %v2088_v15  ;;  %v2161_v13 = vpack.c.bf16 %v1160_v11, %v1159_v57  ;;  %v985_v15 = vld [vmem:[%s3684_s8 + $0x100] sm:$0xff]  ;;  %v1000_v57 = vld [vmem:[%s3684_s8 + $0x178] sm:$0xff] }
 0x220   :  { %2148 = vmatprep.subr.bf16.mxu0 %v2147_v19  ;;  %v2105_v19 = vpack.c.bf16 %v986_v16, %v985_v15  ;;  %v1001_v16 = vld [vmem:[%s3684_s8 + $0x180] sm:$0xff] }
 0x222   :  { %2091 = vmatpush3.bf16.msra.mxu1 %v2090_v25  ;;  %v2108_v25 = vpack.c.bf16 %v988_v21, %v987_v20  ;;  %v1403_v20 = vld [vmem:[%s3687_s9 + $0x88] sm:$0xff]  ;;  %v1193_v21 = vld [vmem:[%s3685_s7 + $0x180] sm:$0xff] }
 0x223   :  { %2150 = vmatpush3.bf16.msra.mxu0 %v2149_v28  ;;  %2093 = vmatprep.subr.bf16.mxu1 %v2092_v29  ;;  %v990_v28 = vld [vmem:[%s3684_s8 + $0x128] sm:$0xff]  ;;  %v2167_v29 = vpack.c.bf16 %v1180_v24, %v1179_v23  ;;  %v2129_v23 = vpack.c.bf16 %v1002_v17, %v1001_v16  ;;  %v1412_v16 = vld [vmem:[%s3687_s9 + $0xd0] sm:$0xff]  ;;  %v1413_v17 = vld [vmem:[%s3687_s9 + $0xd8] sm:$0xff] }
 0x224   :  { %2152 = vmatprep.subr.bf16.mxu0 %v2151_v35  ;;  %v992_v35 = vld [vmem:[%s3684_s8 + $0x138] sm:$0xff] }
 0x225   :  { %v2114_v46 = vpack.c.bf16 %v992_v35, %v991_v33 }
 0x226   :  { %2095 = vmatpush3.bf16.msra.mxu1 %v2094_v48  ;;  %v994_v48 = vld [vmem:[%s3684_s8 + $0x148] sm:$0xff] }
 0x227   :  { %2154 = vmatpush3.bf16.msra.mxu0 %v2153_v49  ;;  %2097 = vmatprep.subr.bf16.mxu1 %v2096_v50  ;;  %v2173_v49 = vpack.c.bf16 %v1184_v42, %v1183_v41  ;;  %v1185_v50 = vld [vmem:[%s3685_s7 + $0x140] sm:$0xff]  ;;  %v2117_v52 = vpack.c.bf16 %v994_v48, %v993_v47  ;;  %v1389_v41 = vld [vmem:[%s3687_s9 + $0x18] sm:$0xff]  ;;  %v1407_v47 = vld [vmem:[%s3687_s9 + $0xa8] sm:$0xff] }
 0x228   :  { %2156 = vmatprep.subr.bf16.mxu0 %v2155_v54  ;;  %v996_v54 = vld [vmem:[%s3684_s8 + $0x158] sm:$0xff]  ;;  %v2176_v55 = vpack.c.bf16 %v1186_v51, %v1185_v50  ;;  %v1420_v48 = vld [vmem:[%s3687_s9 + $0x110] sm:$0xff] }
 0x229   :  { %v2120_v60 = vpack.c.bf16 %v996_v54, %v995_v53  ;;  %v1409_v54 = vld [vmem:[%s3687_s9 + $0xb8] sm:$0xff] }
 0x22a   :  { %2099 = vmatpush3.bf16.msra.mxu1 %v2098_v63  ;;  %v998_v63 = vld [vmem:[%s3684_s8 + $0x168] sm:$0xff] }
 0x22b   :  { %2158 = vmatpush3.bf16.msra.mxu0 %v2157_v2  ;;  %2101 = vmatprep.subr.bf16.mxu1 %v2100_v3  ;;  %v2179_v2 = vpack.c.bf16 %v1188_v59, %v1187_v56  ;;  %v1189_v3 = vld [vmem:[%s3685_s7 + $0x160] sm:$0xff]  ;;  %v2123_v6 = vpack.c.bf16 %v998_v63, %v997_v61  ;;  %v1423_v56 = vld [vmem:[%s3687_s9 + $0x128] sm:$0xff]  ;;  %v1392_v61 = vld [vmem:[%s3687_s9 + $0x30] sm:$0xff] }
 0x22c   :  { %2160 = vmatprep.subr.bf16.mxu0 %v2159_v9  ;;  %v999_v9 = vld [vmem:[%s3684_s8 + $0x170] sm:$0xff]  ;;  %v2182_v11 = vpack.c.bf16 %v1190_v4, %v1189_v3  ;;  %v1393_v63 = vld [vmem:[%s3687_s9 + $0x38] sm:$0xff]  ;;  %v1410_v3 = vld [vmem:[%s3687_s9 + $0xc0] sm:$0xff] }
 0x22d   :  { %v2126_v15 = vpack.c.bf16 %v1000_v57, %v999_v9  ;;  %v1411_v4 = vld [vmem:[%s3687_s9 + $0xc8] sm:$0xff]  ;;  %v1425_v9 = vld [vmem:[%s3687_s9 + $0x138] sm:$0xff]  ;;  %v2204_v57 = vpack.c.bf16 %v1393_v63, %v1392_v61 }
 0x22e   :  { %2103 = vmatpush3.bf16.msra.mxu1 %v2102_v5  ;;  %v1191_v5 = vld [vmem:[%s3685_s7 + $0x170] sm:$0xff] }
 0x22f   :  { %2162 = vmatpush3.bf16.msra.mxu0 %v2161_v13  ;;  %2104 = vmatprep.subr.bf16.mxu1 %v2302_v8  ;;  %v1192_v13 = vld [vmem:[%s3685_s7 + $0x178] sm:$0xff] }
 0x230   :  { %2163 = vmatprep.subr.bf16.mxu0 %v2302_v8  ;;  %v2185_v18 = vpack.c.bf16 %v1192_v13, %v1191_v5  ;;  %v1394_v5 = vld [vmem:[%s3687_s9 + $0x40] sm:$0xff]  ;;  %v1395_v13 = vld [vmem:[%s3687_s9 + $0x48] sm:$0xff] }
 0x231   :  { %1068 = vmatmul.mubr.f32.vlgmr.msra.gmra.mrb[10].mxu1 %v3127_v26  ;;  %v989_v26 = vld [vmem:[%s3684_s8 + $0x120] sm:$0xff] }
 0x232   :  { %2106 = vmatpush1.bf16.msra.mxu1 %v2105_v19  ;;  %1628 = vmatprep.mubr.msk.f32.mxu1 %vm702_vm8, %v3130_v27  ;;  %v1181_v27 = vld [vmem:[%s3685_s7 + $0x120] sm:$0xff]  ;;  %v2111_v31 = vpack.c.bf16 %v990_v28, %v989_v26  ;;  %v1387_v26 = vld [vmem:[%s3687_s9 + $0x8] sm:$0xff] }
 0x233   :  { %1272 = vmatmul.mubr.f32.vlgmr.msra.gmra.mrb[14].mxu0 %v3042_v37  ;;  %2107 = vmatprep.subr.bf16.mxu1 %v2302_v8  ;;  %v2170_v36 = vpack.c.bf16 %v1182_v30, %v1181_v27  ;;  %v1402_v19 = vld [vmem:[%s3687_s9 + $0x80] sm:$0xff]  ;;  %v1405_v27 = vld [vmem:[%s3687_s9 + $0x98] sm:$0xff] }
 0x234   :  { %1276 = vmatprep.mubr.f32.mxu0 %v3052_v44  ;;  %2165 = vmatpush1.bf16.msra.mxu0 %v2164_v22  ;;  %v1194_v22 = vld [vmem:[%s3685_s7 + $0x188] sm:$0xff]  ;;  %v2190_v24 = vpack.c.bf16 %v1403_v20, %v1402_v19  ;;  %v1418_v30 = vld [vmem:[%s3687_s9 + $0x100] sm:$0xff]  ;;  %v2208_v20 = vpack.c.bf16 %v1395_v13, %v1394_v5 }
 0x235   :  { %2166 = vmatprep.subr.bf16.mxu0 %v2302_v8  ;;  %v2188_v28 = vpack.c.bf16 %v1194_v22, %v1193_v21  ;;  %v1427_v19 = vld [vmem:[%s3687_s9 + $0x148] sm:$0xff]  ;;  %v2210_v21 = vpack.c.bf16 %v1413_v17, %v1412_v16  ;;  %v1396_v22 = vld [vmem:[%s3687_s9 + $0x50] sm:$0xff] }
 0x236   :  { %2109 = vmatpush1.bf16.msra.mxu1 %v2108_v25  ;;  %v1386_v25 = vld [vmem:[%s3687_s9] sm:$0xff] }
 0x237   :  { %1277 = vmatmul.mubr.f32.gmra.mrb[16].mxu0 %v3046_v39  ;;  %2110 = vmatprep.subr.bf16.mxu1 %v2302_v8  ;;  %v2192_v33 = vpack.c.bf16 %v1387_v26, %v1386_v25  ;;  %v1414_v25 = vld [vmem:[%s3687_s9 + $0xe0] sm:$0xff]  ;;  %v1415_v26 = vld [vmem:[%s3687_s9 + $0xe8] sm:$0xff] }
 0x238   :  { %1281 = vmatprep.mubr.f32.mxu0 %v3072_v7  ;;  %2168 = vmatpush1.bf16.msra.mxu0 %v2167_v29  ;;  %v1404_v29 = vld [vmem:[%s3687_s9 + $0x90] sm:$0xff] }
 0x239   :  { %2169 = vmatprep.subr.bf16.mxu0 %v2302_v8  ;;  %v2194_v35 = vpack.c.bf16 %v1405_v27, %v1404_v29  ;;  %v1429_v29 = vld [vmem:[%s3687_s9 + $0x158] sm:$0xff]  ;;  %v2214_v27 = vpack.c.bf16 %v1415_v26, %v1414_v25 }
 0x23a   :  { %2112 = vmatpush1.bf16.msra.mxu1 %v2111_v31  ;;  %v1419_v31 = vld [vmem:[%s3687_s9 + $0x108] sm:$0xff] }
 0x23b   :  { %1282 = vmatmul.mubr.f32.gmra.mrb[18].mxu0 %v3068_v0  ;;  %2113 = vmatprep.subr.bf16.mxu1 %v2302_v8  ;;  %v3455_v42 = vpack.c.bf16 %v1419_v31, %v1418_v30  ;;  %v1398_v30 = vld [vmem:[%s3687_s9 + $0x60] sm:$0xff]  ;;  %v1399_v31 = vld [vmem:[%s3687_s9 + $0x68] sm:$0xff] }
 0x23c   :  { %1286 = vmatprep.mubr.f32.mxu0 %v3078_v14  ;;  %2171 = vmatpush1.bf16.msra.mxu0 %v2170_v36  ;;  %v1388_v36 = vld [vmem:[%s3687_s9 + $0x10] sm:$0xff] }
 0x23d   :  { %2172 = vmatprep.subr.bf16.mxu0 %v2302_v8  ;;  %v2196_v50 = vpack.c.bf16 %v1389_v41, %v1388_v36  ;;  %v1417_v36 = vld [vmem:[%s3687_s9 + $0xf8] sm:$0xff]  ;;  %v1430_v41 = vld [vmem:[%s3687_s9 + $0x160] sm:$0xff] }
 0x23e   :  { %2115 = vmatpush1.bf16.msra.mxu1 %v2114_v46  ;;  %v1406_v46 = vld [vmem:[%s3687_s9 + $0xa0] sm:$0xff] }
 0x23f   :  { %1287 = vmatmul.mubr.f32.gmra.mrb[20].mxu0 %v3074_v10  ;;  %2116 = vmatprep.subr.bf16.mxu1 %v2302_v8  ;;  %v2198_v51 = vpack.c.bf16 %v1407_v47, %v1406_v46  ;;  %v1431_v46 = vld [vmem:[%s3687_s9 + $0x168] sm:$0xff]  ;;  %v2216_v47 = vpack.c.bf16 %v1399_v31, %v1398_v30 }
 0x240   :  { %2174 = vmatpush1.bf16.msra.mxu0 %v2173_v49  ;;  %1629 = vmatprep.mubr.msk.f32.mxu0 %vm702_vm8, %v3040_v34  ;;  %v1421_v49 = vld [vmem:[%s3687_s9 + $0x118] sm:$0xff] }
 0x241   :  { %2175 = vmatprep.subr.bf16.mxu0 %v2302_v8  ;;  %v3482_v53 = vpack.c.bf16 %v1421_v49, %v1420_v48  ;;  %v1400_v49 = vld [vmem:[%s3687_s9 + $0x70] sm:$0xff] }
 0x242   :  { %2118 = vmatpush1.bf16.msra.mxu1 %v2117_v52  ;;  %v1391_v52 = vld [vmem:[%s3687_s9 + $0x28] sm:$0xff] }
 0x243   :  { %2119 = vmatprep.subr.bf16.mxu1 %v2302_v8 }
 0x244   :  { %2177 = vmatpush1.bf16.msra.mxu0 %v2176_v55  ;;  %v1422_v55 = vld [vmem:[%s3687_s9 + $0x120] sm:$0xff] }
 0x245   :  { %2178 = vmatprep.subr.bf16.mxu0 %v2302_v8 }
 0x246   :  { %2121 = vmatpush1.bf16.msra.mxu1 %v2120_v60 }
 0x247   :  { %2122 = vmatprep.subr.bf16.mxu1 %v2302_v8 }
 0x248   :  { %2180 = vmatpush1.bf16.msra.mxu0 %v2179_v2  ;;  %v3507_v2 = vpack.c.bf16 %v1423_v56, %v1422_v55  ;;  %v1434_v55 = vld [vmem:[%s3687_s9 + $0x180] sm:$0xff]  ;;  %v1435_v56 = vld [vmem:[%s3687_s9 + $0x188] sm:$0xff] }
 0x249   :  { %2181 = vmatprep.subr.bf16.mxu0 %v2302_v8 }
 0x24a   :  { %2124 = vmatpush1.bf16.msra.mxu1 %v2123_v6  ;;  %v1424_v6 = vld [vmem:[%s3687_s9 + $0x130] sm:$0xff] }
 0x24b   :  { %2125 = vmatprep.subr.bf16.mxu1 %v2302_v8 }
 0x24c   :  { %2183 = vmatpush1.bf16.msra.mxu0 %v2182_v11  ;;  %v2206_v11 = vpack.c.bf16 %v1411_v4, %v1410_v3 }
 0x24d   :  { %2184 = vmatprep.subr.bf16.mxu0 %v2302_v8 }
 0x24e   :  { %2127 = vmatpush1.bf16.msra.mxu1 %v2126_v15  ;;  %v3532_v15 = vpack.c.bf16 %v1425_v9, %v1424_v6 }
 0x24f   :  { %2128 = vmatprep.subr.bf16.mxu1 %v2302_v8 }
 0x250   :  { %2186 = vmatpush1.bf16.msra.mxu0 %v2185_v18  ;;  %v1426_v18 = vld [vmem:[%s3687_s9 + $0x140] sm:$0xff] }
 0x251   :  { %2187 = vmatprep.subr.bf16.mxu0 %v2302_v8 }
 0x252   :  { %2130 = vmatpush1.bf16.msra.mxu1 %v2129_v23  ;;  %v1397_v23 = vld [vmem:[%s3687_s9 + $0x58] sm:$0xff] }
 0x253   :  { %2191 = vmatprep.subr.bf16.mxu1 %v2190_v24  ;;  %v2235_v24 = vpack.c.bf16 %v1427_v19, %v1426_v18 }
 0x254   :  { %2189 = vmatpush1.bf16.msra.mxu0 %v2188_v28  ;;  %v1428_v28 = vld [vmem:[%s3687_s9 + $0x150] sm:$0xff] }
 0x255   :  { %1138 = vmatmul.mubr.f32.vlgmr.msra.gmra.mrb[12].mxu1 %v3145_v32  ;;  %2222 = vmatprep.subr.bf16.mxu0 %v2302_v8  ;;  %v1390_v32 = vld [vmem:[%s3687_s9 + $0x20] sm:$0xff] }
 0x256   :  { %2193 = vmatpush3.bf16.msra.mxu1 %v2192_v33  ;;  %1500 = vmatprep.mubr.f32.mxu1 %v3050_v43  ;;  %v1408_v43 = vld [vmem:[%s3687_s9 + $0xb0] sm:$0xff]  ;;  %v2200_v59 = vpack.c.bf16 %v1391_v52, %v1390_v32  ;;  %v2238_v33 = vpack.c.bf16 %v1429_v29, %v1428_v28  ;;  %v1433_v52 = vld [vmem:[%s3687_s9 + $0x178] sm:$0xff] }
 0x257   :  { %1357 = vmatmul.mubr.f32.vlgmr.msra.gmra.mrb[22].mxu0 %v3044_v38  ;;  %2195 = vmatprep.subr.bf16.mxu1 %v2194_v35  ;;  %v2202_v60 = vpack.c.bf16 %v1409_v54, %v1408_v43  ;;  %v1416_v35 = vld [vmem:[%s3687_s9 + $0xf0] sm:$0xff] }
 0x258   :  { %1630 = vmatprep.mubr.msk.f32.mxu0 %vm702_vm8, %v3054_v45  ;;  %2224 = vmatpush1.bf16.msra.mxu0 %v3455_v42  ;;  %v2218_v48 = vpack.c.bf16 %v1417_v36, %v1416_v35  ;;  %v1432_v32 = vld [vmem:[%s3687_s9 + $0x170] sm:$0xff] }
 0x259   :  { %2225 = vmatprep.subr.bf16.mxu0 %v2302_v8  ;;  %v2244_v54 = vpack.c.bf16 %v1433_v52, %v1432_v32 }
 0x25a   :  { %2197 = vmatpush3.bf16.msra.mxu1 %v2196_v50  ;;  %v1401_v50 = vld [vmem:[%s3687_s9 + $0x78] sm:$0xff] }
 0x25b   :  { %1362 = vmatmul.mubr.f32.gmra.mrb[24].mxu0 %v3048_v40  ;;  %2199 = vmatprep.subr.bf16.mxu1 %v2198_v51  ;;  %v2241_v51 = vpack.c.bf16 %v1431_v46, %v1430_v41  ;;  %v2220_v43 = vpack.c.bf16 %v1401_v50, %v1400_v49 }
 0x25c   :  { %1631 = vmatprep.mubr.msk.f32.mxu0 %vm702_vm8, %v3066_v62  ;;  %2227 = vmatpush1.bf16.msra.mxu0 %v3482_v53 }
 0x25d   :  { %2228 = vmatprep.subr.bf16.mxu0 %v2302_v8 }
 0x25e   :  { %2201 = vmatpush3.bf16.msra.mxu1 %v2200_v59  ;;  %v2247_v59 = vpack.c.bf16 %v1435_v56, %v1434_v55 }
 0x25f   :  { %1367 = vmatmul.mubr.f32.gmra.mrb[26].mxu0 %v3070_v1  ;;  %2203 = vmatprep.subr.bf16.mxu1 %v2202_v60 }
 0x260   :  { %1632 = vmatprep.mubr.msk.f32.mxu0 %vm702_vm8, %v3080_v12  ;;  %2230 = vmatpush1.bf16.msra.mxu0 %v3507_v2 }
 0x261   :  { %2231 = vmatprep.subr.bf16.mxu0 %v2302_v8 }
 0x262   :  { %2205 = vmatpush3.bf16.msra.mxu1 %v2204_v57 }
 0x263   :  { %1372 = vmatmul.mubr.f32.gmra.mrb[28].mxu0 %v3076_v58  ;;  %2207 = vmatprep.subr.bf16.mxu1 %v2206_v11 }
 0x264   :  { %2233 = vmatpush1.bf16.msra.mxu0 %v3532_v15  ;;  %1633 = vmatprep.mubr.msk.f32.mxu0 %vm702_vm8, %v3040_v34  ;;  %v2212_v34 = vpack.c.bf16 %v1397_v23, %v1396_v22 }
 0x265   :  { %2234 = vmatprep.subr.bf16.mxu0 %v2302_v8 }
 0x266   :  { %2209 = vmatpush3.bf16.msra.mxu1 %v2208_v20 }
 0x267   :  { %2211 = vmatprep.subr.bf16.mxu1 %v2210_v21 }
 0x268   :  { %2236 = vmatpush1.bf16.msra.mxu0 %v2235_v24 }
 0x269   :  { %2237 = vmatprep.subr.bf16.mxu0 %v2302_v8 }
 0x26a   :  { %2213 = vmatpush3.bf16.msra.mxu1 %v2212_v34 }
 0x26b   :  { %2215 = vmatprep.subr.bf16.mxu1 %v2214_v27 }
 0x26c   :  { %2239 = vmatpush1.bf16.msra.mxu0 %v2238_v33 }
 0x26d   :  { %2240 = vmatprep.subr.bf16.mxu0 %v2302_v8 }
 0x26e   :  { %2217 = vmatpush3.bf16.msra.mxu1 %v2216_v47 }
 0x26f   :  { %2219 = vmatprep.subr.bf16.mxu1 %v2218_v48 }
 0x270   :  { %2242 = vmatpush1.bf16.msra.mxu0 %v2241_v51 }
 0x271   :  { %2243 = vmatprep.subr.bf16.mxu0 %v2302_v8 }
 0x272   :  { %2221 = vmatpush3.bf16.msra.mxu1 %v2220_v43 }
 0x273   :  { %2249 = vmatprep.subr.bf16.mxu1 %v2302_v8 }
 0x274   :  { %2245 = vmatpush1.bf16.msra.mxu0 %v2244_v54 }
 0x275   :  { %1501 = vmatmul.mubr.f32.vlgmr.msra.gmra.mrb[14].mxu1 %v3042_v37  ;;  %2246 = vmatprep.subr.bf16.mxu0 %v2302_v8 }
 0x276   :  { %1505 = vmatprep.mubr.f32.mxu1 %v3052_v44  ;;  %2258 = vmatpush1.bf16.msra.mxu1 %v3455_v42 }
 0x277   :  { %2250 = vmatprep.subr.bf16.mxu1 %v2302_v8 }
 0x278   :  { %2248 = vmatpush1.bf16.msra.mxu0 %v2247_v59 }
 0x279   :  { %1506 = vmatmul.mubr.f32.gmra.mrb[16].mxu1 %v3046_v39 }
 0x27a   :  { %1510 = vmatprep.mubr.f32.mxu1 %v3072_v7  ;;  %2259 = vmatpush1.bf16.msra.mxu1 %v3482_v53 }
 0x27b   :  { %1586 = vmatmul.mubr.f32.vlgmr.msra.gmra.mrb[30].mxu0 %v3044_v38  ;;  %2251 = vmatprep.subr.bf16.mxu1 %v2302_v8 }
 0x27d   :  { %1511 = vmatmul.mubr.f32.gmra.mrb[18].mxu1 %v3068_v0 }
 0x27e   :  { %1515 = vmatprep.mubr.f32.mxu1 %v3078_v14  ;;  %2260 = vmatpush1.bf16.msra.mxu1 %v3507_v2 }
 0x27f   :  { %2252 = vmatprep.subr.bf16.mxu1 %v2302_v8 }
 0x281   :  { %1516 = vmatmul.mubr.f32.gmra.mrb[20].mxu1 %v3074_v10 }
 0x282   :  { %2261 = vmatpush1.bf16.msra.mxu1 %v3532_v15  ;;  %1634 = vmatprep.mubr.msk.f32.mxu1 %vm702_vm8, %v3054_v45 }
 0x283   :  { %2253 = vmatprep.subr.bf16.mxu1 %v2302_v8 }
 0x286   :  { %2262 = vmatpush1.bf16.msra.mxu1 %v2235_v24 }
 0x287   :  { %2254 = vmatprep.subr.bf16.mxu1 %v2302_v8 }
 0x28a   :  { %2263 = vmatpush1.bf16.msra.mxu1 %v2238_v33 }
 0x28b   :  { %2255 = vmatprep.subr.bf16.mxu1 %v2302_v8 }
 0x28e   :  { %2264 = vmatpush1.bf16.msra.mxu1 %v2241_v51 }
 0x28f   :  { %2256 = vmatprep.subr.bf16.mxu1 %v2302_v8 }
 0x292   :  { %2265 = vmatpush1.bf16.msra.mxu1 %v2244_v54 }
 0x293   :  { %2257 = vmatprep.subr.bf16.mxu1 %v2302_v8 }
 0x296   :  { %2266 = vmatpush1.bf16.msra.mxu1 %v2247_v59 }
 0x299   :  { %1591 = vmatmul.mubr.f32.vlgmr.msra.gmra.mrb[22].mxu1 %v3048_v40 }
 0x29a   :  { %1635 = vmatprep.mubr.msk.f32.mxu1 %vm702_vm8, %v3066_v62 }
 0x29d   :  { %1596 = vmatmul.mubr.f32.gmra.mrb[24].mxu1 %v3070_v1 }
 0x29e   :  { %1636 = vmatprep.mubr.msk.f32.mxu1 %vm702_vm8, %v3080_v12 }
 0x2a1   :  { %1601 = vmatmul.mubr.f32.gmra.mrb[26].mxu1 %v3076_v58 }
 0x2e4   :  { %v1689_v37 = vpop.f32.mrb[8].mxu1 }
 0x2e5   :  { %v1690_v38 = vpop.f32.mrb[9].mxu1  ;;  %v946_v39 = vpop.f32.mrb[12].mxu0 }
 0x2e6   :  { %v1691_v44 = vadd.f32 %v1690_v38, %v1689_v37  ;;  %v948_v45 = vpop.f32.mrb[13].mxu0 }
 0x2e8   :  { %v947_v0 = vadd.f32 %v1691_v44, %v946_v39 }
 0x2ea   :  { %v950_v8 = vmul.f32 0.00390625, %v947_v0 }
 0x2ec   :  { %952 = vst.msk [vmem:[%s3688_s10] sm:$0x3] %vm951_vm10, %v950_v8 }
 0x304   :  { %v1724_v40 = vpop.f32.mrb[10].mxu1 }
 0x305   :  { %v1725_v62 = vpop.f32.mrb[11].mxu1 }
 0x306   :  { %v1726_v1 = vadd.f32 %v1725_v62, %v1724_v40  ;;  %v1759_v7 = vpop.f32.mrb[14].mxu0 }
 0x307   :  { %v1760_v10 = vpop.f32.mrb[15].mxu0 }
 0x308   :  { %v1761_v14 = vadd.f32 %v1760_v10, %v1759_v7 }
 0x30a   :  { %v1762_v12 = vpop.f32.mrb[16].mxu0 }
 0x30b   :  { %v1763_v58 = vpop.f32.mrb[17].mxu0 }
 0x30c   :  { %v1764_v42 = vadd.f32 %v1763_v58, %v1762_v12 }
 0x30e   :  { %v1765_v53 = vpop.f32.mrb[18].mxu0 }
 0x30f   :  { %v1766_v60 = vpop.f32.mrb[19].mxu0 }
 0x310   :  { %v1767_v61 = vadd.f32 %v1766_v60, %v1765_v53 }
 0x312   :  { %v1768_v63 = vpop.f32.mrb[20].mxu0 }
 0x313   :  { %v1769_v2 = vpop.f32.mrb[21].mxu0 }
 0x314   :  { %v1770_v3 = vadd.f32 %v1769_v2, %v1768_v63 }
 0x328   :  { %v1139_v4 = vpop.f32.mrb[12].mxu1 }
 0x329   :  { %v1140_v6 = vadd.f32 %v1726_v1, %v1139_v4  ;;  %v1141_v9 = vpop.f32.mrb[13].mxu1 }
 0x32a   :  { %v1358_v57 = vpop.f32.mrb[22].mxu0 }
 0x32b   :  { %v1143_v11 = vmul.f32 0.0625, %v1140_v6  ;;  %v1359_v5 = vadd.f32 %v1761_v14, %v1358_v57  ;;  %v1360_v13 = vpop.f32.mrb[23].mxu0 }
 0x32d   :  { %1144 = vst [vmem:[%s3689_s12] sm:$0x3] %v1143_v11  ;;  %v1377_v15 = vmul.f32 0.0625, %v1359_v5 }
 0x32e   :  { %v1363_v16 = vpop.f32.mrb[24].mxu0 }
 0x32f   :  { %1382 = vst.msk [vmem:[%s3690_s11] sm:$0xff] %vm1381_vm11, %v1377_v15  ;;  %v1364_v17 = vadd.f32 %v1764_v42, %v1363_v16  ;;  %v1365_v18 = vpop.f32.mrb[25].mxu0 }
 0x331   :  { %v1378_v19 = vmul.f32 0.0625, %v1364_v17 }
 0x332   :  { %v1368_v20 = vpop.f32.mrb[26].mxu0 }
 0x333   :  { %1383 = vst.msk [vmem:[%s3690_s11 + $0x8] sm:$0xff] %vm1381_vm11, %v1378_v19  ;;  %v1369_v21 = vadd.f32 %v1767_v61, %v1368_v20  ;;  %v1370_v22 = vpop.f32.mrb[27].mxu0 }
 0x335   :  { %v1379_v23 = vmul.f32 0.0625, %v1369_v21 }
 0x336   :  { %v1373_v24 = vpop.f32.mrb[28].mxu0 }
 0x337   :  { %1384 = vst.msk [vmem:[%s3690_s11 + $0x10] sm:$0xff] %vm1381_vm11, %v1379_v23  ;;  %v1374_v25 = vadd.f32 %v1770_v3, %v1373_v24  ;;  %v1375_v26 = vpop.f32.mrb[29].mxu0 }
 0x339   :  { %v1380_v28 = vmul.f32 0.0625, %v1374_v25 }
 0x33b   :  { %1385 = vst.msk [vmem:[%s3690_s11 + $0x18] sm:$0xff] %vm1381_vm11, %v1380_v28 }
 0x348   :  { %v1803_v29 = vpop.f32.mrb[14].mxu1 }
 0x349   :  { %v1804_v34 = vpop.f32.mrb[15].mxu1 }
 0x34a   :  { %v1805_v27 = vadd.f32 %v1804_v34, %v1803_v29 }
 0x34c   :  { %v1806_v30 = vpop.f32.mrb[16].mxu1 }
 0x34d   :  { %v1807_v31 = vpop.f32.mrb[17].mxu1 }
 0x34e   :  { %v1808_v33 = vadd.f32 %v1807_v31, %v1806_v30  ;;  %v1587_v35 = vpop.f32.mrb[30].mxu0 }
 0x34f   :  { %v1588_v36 = vadd.f32 %v1805_v27, %v1587_v35  ;;  %v1589_v41 = vpop.f32.mrb[31].mxu0 }
 0x350   :  { %v1809_v46 = vpop.f32.mrb[18].mxu1 }
 0x351   :  { %1606 = vst.msk [vmem:[%s3691_s13] sm:$0xff] %vm702_vm8, %v1588_v36  ;;  %v1810_v47 = vpop.f32.mrb[19].mxu1 }
 0x352   :  { %v1811_v48 = vadd.f32 %v1810_v47, %v1809_v46 }
 0x354   :  { %v1812_v49 = vpop.f32.mrb[20].mxu1 }
 0x355   :  { %v1813_v50 = vpop.f32.mrb[21].mxu1 }
 0x356   :  { %v1814_v51 = vadd.f32 %v1813_v50, %v1812_v49 }
 0x36c   :  { %v1592_v32 = vpop.f32.mrb[22].mxu1 }
 0x36d   :  { %v1593_v52 = vadd.f32 %v1808_v33, %v1592_v32  ;;  %v1594_v43 = vpop.f32.mrb[23].mxu1 }
 0x36f   :  { %1607 = vst.msk [vmem:[%s3691_s13 + $0x8] sm:$0xff] %vm702_vm8, %v1593_v52 }
 0x370   :  { %v1597_v54 = vpop.f32.mrb[24].mxu1 }
 0x371   :  { %v1598_v55 = vadd.f32 %v1811_v48, %v1597_v54  ;;  %v1599_v56 = vpop.f32.mrb[25].mxu1 }
 0x373   :  { %1608 = vst.msk [vmem:[%s3691_s13 + $0x10] sm:$0xff] %vm702_vm8, %v1598_v55 }
 0x374   :  { %v1602_v59 = vpop.f32.mrb[26].mxu1 }
 0x375   :  { %v1603_v37 = vadd.f32 %v1814_v51, %v1602_v59  ;;  %v1604_v38 = vpop.f32.mrb[27].mxu1 }
 0x377   :  { %1609 = vst.msk [vmem:[%s3691_s13 + $0x18] sm:$0xff] %vm702_vm8, %v1603_v37 }

// kernel: labs_injected_encoder_forward.9
= control target key start
LH: loop header
LB: loop body
LE: loop exit
PB: predicated region body
PF: predicated region fallthrough
CT: control target
= control target key end

     0   :  { %v1474_v56 = vmov 1983009808   ;;  %v202_v58 = vlaneseq  ;;  %s2083_s0 = inlined_call_operand.vmem [shape: f32[2,520], index: 0, kind: input, shape index: {}]   ;;  %s2084_s1 = inlined_call_operand.vmem [shape: f32[520,64], index: 1, kind: input, shape index: {}]   ;;  %s2085_s2 = inlined_call_operand.vmem [shape: f32[1,64], index: 2, kind: input, shape index: {}]   ;;  %s2086_s3 = inlined_call_operand.vmem [shape: f32[64,32], index: 3, kind: input, shape index: {}]   ;;  %s2087_s4 = inlined_call_operand.vmem [shape: f32[1,32], index: 4, kind: input, shape index: {}]   ;;  %s2088_s5 = inlined_call_operand.vmem [shape: f32[520,32], index: 5, kind: input, shape index: {}]   ;;  %s2089_s6 = inlined_call_operand.vmem [shape: f32[32,32], index: 6, kind: input, shape index: {}]   ;;  %s2090_s7 = inlined_call_operand.vmem [shape: f32[1,32], index: 7, kind: input, shape index: {}]   ;;  %s2091_s8 = inlined_call_operand.vmem [shape: f32[32,32], index: 8, kind: input, shape index: {}]   ;;  %s2092_s9 = inlined_call_operand.vmem [shape: f32[1,32], index: 9, kind: input, shape index: {}]   ;;  %s2093_s10 = inlined_call_operand.vmem [shape: f32[32,32], index: 10, kind: input, shape index: {}]   ;;  %s2094_s11 = inlined_call_operand.vmem [shape: f32[1,32], index: 11, kind: input, shape index: {}]   ;;  %s2095_s12 = inlined_call_operand.hbm [shape: f32[2,32], index: 12, kind: output, shape index: {}]  }
   0x1   :  { %v60_v0 = vld [vmem:[%s2084_s1 + $0x80] sm:$0xff]  ;;  %v61_v1 = vld [vmem:[%s2084_s1 + $0x88] sm:$0xff]  ;;  %v62_v11 = vld [vmem:[%s2084_s1 + $0x90] sm:$0xff]  ;;  %v200_v57 = vunpack.c.l.s4 %v1474_v56 }
   0x2   :  { %v44_v2 = vld [vmem:[%s2084_s1] sm:$0xff]  ;;  %v1281_v3 = vpack.c.bf16 %v61_v1, %v60_v0  ;;  %v45_v4 = vld [vmem:[%s2084_s1 + $0x8] sm:$0xff]  ;;  %v63_v13 = vld [vmem:[%s2084_s1 + $0x98] sm:$0xff] }
   0x3   :  { %v92_v5 = vld [vmem:[%s2084_s1 + $0x180] sm:$0xff]  ;;  %v93_v6 = vld [vmem:[%s2084_s1 + $0x188] sm:$0xff]  ;;  %v1283_v7 = vpack.c.bf16 %v45_v4, %v44_v2  ;;  %v46_v14 = vld [vmem:[%s2084_s1 + $0x10] sm:$0xff]  ;;  %v1285_v16 = vpack.c.bf16 %v63_v13, %v62_v11 }
   0x4   :  { %v1313_v8 = vpack.c.bf16 %v93_v6, %v92_v5  ;;  %v76_v9 = vld [vmem:[%s2084_s1 + $0x100] sm:$0xff]  ;;  %v77_v10 = vld [vmem:[%s2084_s1 + $0x108] sm:$0xff]  ;;  %1282 = vmatprep.subr.bf16.mxu0 %v1281_v3  ;;  %v47_v15 = vld [vmem:[%s2084_s1 + $0x18] sm:$0xff] }
   0x5   :  { %v1315_v12 = vpack.c.bf16 %v77_v10, %v76_v9  ;;  %1284 = vmatpush3.bf16.msra.mxu0 %v1283_v7  ;;  %v1287_v17 = vpack.c.bf16 %v47_v15, %v46_v14  ;;  %v94_v18 = vld [vmem:[%s2084_s1 + $0x190] sm:$0xff]  ;;  %v95_v19 = vld [vmem:[%s2084_s1 + $0x198] sm:$0xff]  ;;  %v64_v23 = vld [vmem:[%s2084_s1 + $0xa0] sm:$0xff]  ;;  %v201_v7 = vunpack.c.0.s8 %v200_v57 }
   0x6   :  { %1314 = vmatprep.subr.bf16.mxu1 %v1313_v8  ;;  %v78_v20 = vld [vmem:[%s2084_s1 + $0x110] sm:$0xff]  ;;  %v1317_v21 = vpack.c.bf16 %v95_v19, %v94_v18  ;;  %v79_v22 = vld [vmem:[%s2084_s1 + $0x118] sm:$0xff]  ;;  %v65_v24 = vld [vmem:[%s2084_s1 + $0xa8] sm:$0xff]  ;;  %1286 = vmatprep.subr.bf16.mxu0 %v1285_v16  ;;  %v203_v8 = vshrl.u32 %v202_v58, 7 }
   0x7   :  { %1316 = vmatpush3.bf16.msra.mxu1 %v1315_v12  ;;  %v1319_v25 = vpack.c.bf16 %v79_v22, %v78_v20  ;;  %v1289_v26 = vpack.c.bf16 %v65_v24, %v64_v23  ;;  %v48_v27 = vld [vmem:[%s2084_s1 + $0x20] sm:$0xff]  ;;  %v49_v28 = vld [vmem:[%s2084_s1 + $0x28] sm:$0xff]  ;;  %v66_v35 = vld [vmem:[%s2084_s1 + $0xb0] sm:$0xff] }
   0x8   :  { %v96_v29 = vld [vmem:[%s2084_s1 + $0x1a0] sm:$0xff]  ;;  %1318 = vmatprep.subr.bf16.mxu1 %v1317_v21  ;;  %v97_v30 = vld [vmem:[%s2084_s1 + $0x1a8] sm:$0xff]  ;;  %v1291_v33 = vpack.c.bf16 %v49_v28, %v48_v27  ;;  %v67_v36 = vld [vmem:[%s2084_s1 + $0xb8] sm:$0xff]  ;;  %v1717_v23 = vsub.s32 %v201_v7, %v203_v8 }
   0x9   :  { %v80_v31 = vld [vmem:[%s2084_s1 + $0x120] sm:$0xff]  ;;  %v81_v32 = vld [vmem:[%s2084_s1 + $0x128] sm:$0xff]  ;;  %1288 = vmatpush3.bf16.msra.mxu0 %v1287_v17  ;;  %v1321_v34 = vpack.c.bf16 %v97_v30, %v96_v29  ;;  %v50_v37 = vld [vmem:[%s2084_s1 + $0x30] sm:$0xff]  ;;  %v1293_v39 = vpack.c.bf16 %v67_v36, %v66_v35 }
   0xa   :  { %1290 = vmatprep.subr.bf16.mxu0 %v1289_v26  ;;  %v1323_v38 = vpack.c.bf16 %v81_v32, %v80_v31  ;;  %v51_v40 = vld [vmem:[%s2084_s1 + $0x38] sm:$0xff]  ;;  %v98_v41 = vld [vmem:[%s2084_s1 + $0x1b0] sm:$0xff]  ;;  %v68_v46 = vld [vmem:[%s2084_s1 + $0xc0] sm:$0xff] }
   0xb   :  { %1320 = vmatpush3.bf16.msra.mxu1 %v1319_v25  ;;  %v99_v42 = vld [vmem:[%s2084_s1 + $0x1b8] sm:$0xff]  ;;  %v82_v44 = vld [vmem:[%s2084_s1 + $0x130] sm:$0xff]  ;;  %v69_v47 = vld [vmem:[%s2084_s1 + $0xc8] sm:$0xff]  ;;  %v1295_v48 = vpack.c.bf16 %v51_v40, %v50_v37 }
   0xc   :  { %1322 = vmatprep.subr.bf16.mxu1 %v1321_v34  ;;  %v1325_v43 = vpack.c.bf16 %v99_v42, %v98_v41  ;;  %v83_v45 = vld [vmem:[%s2084_s1 + $0x138] sm:$0xff]  ;;  %v100_v49 = vld [vmem:[%s2084_s1 + $0x1c0] sm:$0xff]  ;;  %v101_v50 = vld [vmem:[%s2084_s1 + $0x1c8] sm:$0xff]  ;;  %v1297_v52 = vpack.c.bf16 %v69_v47, %v68_v46 }
   0xd   :  { %1292 = vmatpush3.bf16.msra.mxu0 %v1291_v33  ;;  %v1327_v51 = vpack.c.bf16 %v83_v45, %v82_v44  ;;  %v52_v53 = vld [vmem:[%s2084_s1 + $0x40] sm:$0xff]  ;;  %v53_v54 = vld [vmem:[%s2084_s1 + $0x48] sm:$0xff]  ;;  %v1329_v59 = vpack.c.bf16 %v101_v50, %v100_v49  ;;  %v70_v61 = vld [vmem:[%s2084_s1 + $0xd0] sm:$0xff] }
   0xe   :  { %1294 = vmatprep.subr.bf16.mxu0 %v1293_v39  ;;  %v84_v55 = vld [vmem:[%s2084_s1 + $0x140] sm:$0xff]  ;;  %v85_v60 = vld [vmem:[%s2084_s1 + $0x148] sm:$0xff]  ;;  %v71_v62 = vld [vmem:[%s2084_s1 + $0xd8] sm:$0xff]  ;;  %v1299_v1 = vpack.c.bf16 %v53_v54, %v52_v53 }
   0xf   :  { %1324 = vmatpush3.bf16.msra.mxu1 %v1323_v38  ;;  %v102_v63 = vld [vmem:[%s2084_s1 + $0x1d0] sm:$0xff]  ;;  %v103_v0 = vld [vmem:[%s2084_s1 + $0x1d8] sm:$0xff]  ;;  %v1331_v2 = vpack.c.bf16 %v85_v60, %v84_v55  ;;  %v1301_v3 = vpack.c.bf16 %v71_v62, %v70_v61  ;;  %v72_v11 = vld [vmem:[%s2084_s1 + $0xe0] sm:$0xff] }
  0x10   :  { %1326 = vmatprep.subr.bf16.mxu1 %v1325_v43  ;;  %v54_v4 = vld [vmem:[%s2084_s1 + $0x50] sm:$0xff]  ;;  %v55_v5 = vld [vmem:[%s2084_s1 + $0x58] sm:$0xff]  ;;  %v1333_v9 = vpack.c.bf16 %v103_v0, %v102_v63  ;;  %v73_v12 = vld [vmem:[%s2084_s1 + $0xe8] sm:$0xff] }
  0x11   :  { %1296 = vmatpush3.bf16.msra.mxu0 %v1295_v48  ;;  %v86_v6 = vld [vmem:[%s2084_s1 + $0x150] sm:$0xff]  ;;  %v87_v10 = vld [vmem:[%s2084_s1 + $0x158] sm:$0xff]  ;;  %v104_v13 = vld [vmem:[%s2084_s1 + $0x1e0] sm:$0xff]  ;;  %v1303_v15 = vpack.c.bf16 %v55_v5, %v54_v4  ;;  %v1305_v19 = vpack.c.bf16 %v73_v12, %v72_v11 }
  0x12   :  { %1298 = vmatprep.subr.bf16.mxu0 %v1297_v52  ;;  %v105_v14 = vld [vmem:[%s2084_s1 + $0x1e8] sm:$0xff]  ;;  %v56_v16 = vld [vmem:[%s2084_s1 + $0x60] sm:$0xff]  ;;  %v1335_v18 = vpack.c.bf16 %v87_v10, %v86_v6  ;;  %v74_v25 = vld [vmem:[%s2084_s1 + $0xf0] sm:$0xff] }
  0x13   :  { %1328 = vmatpush3.bf16.msra.mxu1 %v1327_v51  ;;  %v57_v17 = vld [vmem:[%s2084_s1 + $0x68] sm:$0xff]  ;;  %v88_v20 = vld [vmem:[%s2084_s1 + $0x160] sm:$0xff]  ;;  %v1337_v24 = vpack.c.bf16 %v105_v14, %v104_v13  ;;  %v75_v26 = vld [vmem:[%s2084_s1 + $0xf8] sm:$0xff] }
  0x14   :  { %1330 = vmatprep.subr.bf16.mxu1 %v1329_v59  ;;  %v89_v21 = vld [vmem:[%s2084_s1 + $0x168] sm:$0xff]  ;;  %v1715_v22 = vld [vmem:[%s2083_s0] sm:$0xff]  ;;  %v106_v28 = vld [vmem:[%s2084_s1 + $0x1f0] sm:$0xff] }
  0x15   :  { %1300 = vmatpush3.bf16.msra.mxu0 %v1299_v1  ;;  %vm184_vm0 = vcmp.ge.f32.partialorder %v1715_v22, 0.0  ;;  %v186_v27 = vmul.f32 0.2, %v1715_v22  ;;  %v107_v29 = vld [vmem:[%s2084_s1 + $0x1f8] sm:$0xff] }
  0x16   :  { %1302 = vmatprep.subr.bf16.mxu0 %v1301_v3 }
  0x17   :  { %1332 = vmatpush3.bf16.msra.mxu1 %v1331_v2 }
  0x18   :  { %1334 = vmatprep.subr.bf16.mxu1 %v1333_v9 }
  0x19   :  { %17 = vsyncpa [#allocation3], 0  ;;  %1304 = vmatpush3.bf16.msra.mxu0 %v1303_v15  ;;  %v1307_v30 = vpack.c.bf16 %v57_v17, %v56_v16  ;;  %v1339_v31 = vpack.c.bf16 %v89_v21, %v88_v20  ;;  %v188_v32 = vsel %vm184_vm0, %v1715_v22, %v186_v27  ;;  %v1309_v33 = vpack.c.bf16 %v75_v26, %v74_v25  ;;  %v58_v34 = vld [vmem:[%s2084_s1 + $0x70] sm:$0xff]  ;;  %v59_v35 = vld [vmem:[%s2084_s1 + $0x78] sm:$0xff]  ;;  %s1478_s13 = smov [#allocation2]  }
  0x1a   :  { %1306 = vmatprep.subr.bf16.mxu0 %v1305_v19  ;;  %v205_v36 = vrot.slane %v188_v32, %v1717_v23  ;;  %v198_v37 = vcombine.high %v188_v32, %v188_v32  ;;  %v1341_v38 = vpack.c.bf16 %v107_v29, %v106_v28  ;;  %v90_v39 = vld [vmem:[%s2084_s1 + $0x170] sm:$0xff]  ;;  %v91_v40 = vld [vmem:[%s2084_s1 + $0x178] sm:$0xff]  ;;  %v1750_v41 = vld [vmem:[%s2083_s0 + $0x8] sm:$0x3]  ;;  %v1311_v44 = vpack.c.bf16 %v59_v35, %v58_v34 }
  0x1b   :  { %1336 = vmatpush3.bf16.msra.mxu1 %v1335_v18  ;;  %v1343_v45 = vpack.c.bf16 %v91_v40, %v90_v39  ;;  %v187_v47 = vmul.f32 0.2, %v1750_v41  ;;  %vm185_vm1 = vcmp.ge.f32.partialorder %v1750_v41, 0.0  ;;  %v1475_v49 = vmov 0.0   ;;  %v108_v50 = vld [vmem:[%s2084_s1 + $0x200] sm:$0xff]  ;;  %v111_v52 = vld [vmem:[%s2086_s3 + $0x8] sm:$0xff] }
  0x1c   :  { %1338 = vmatprep.subr.bf16.mxu1 %v1337_v24  ;;  %v213_v42 = vcombine.high %v205_v36, %v205_v36  ;;  %v212_v43 = vrot.slane %v198_v37, %v1717_v23  ;;  %v110_v51 = vld [vmem:[%s2086_s3] sm:$0xff]  ;;  %vm1476_vm2 = vmmov 0   ;;  %vm226_vm3 = vcmask 64512   ;;  %v112_v56 = vld [vmem:[%s2086_s3 + $0x10] sm:$0xff]  ;;  %v113_v57 = vld [vmem:[%s2086_s3 + $0x18] sm:$0xff] }
  0x1d   :  { %1308 = vmatpush3.bf16.msra.mxu0 %v1307_v30  ;;  %v189_v48 = vsel %vm185_vm1, %v1750_v41, %v187_v47  ;;  %v1346_v54 = vpack.c.bf16 %v111_v52, %v110_v51  ;;  %v1477_v55 = vmov 0.0|0.0   ;;  %v1349_v58 = vpack.c.bf16 %v113_v57, %v112_v56  ;;  %v114_v59 = vld [vmem:[%s2086_s3 + $0x20] sm:$0xff]  ;;  %v115_v60 = vld [vmem:[%s2086_s3 + $0x28] sm:$0xff]  ;;  %v116_v62 = vld [vmem:[%s2086_s3 + $0x30] sm:$0xff] }
  0x1e   :  { %1310 = vmatprep.subr.bf16.mxu0 %v1309_v33  ;;  %v214_v46 = vcombine.high %v212_v43, %v212_v43  ;;  %293 = vmatprep.mubr.f32.mxu0 %v213_v42  ;;  %v221_v53 = vrot.slane %v189_v48, %v1717_v23  ;;  %v1352_v61 = vpack.c.bf16 %v115_v60, %v114_v59  ;;  %v117_v63 = vld [vmem:[%s2086_s3 + $0x38] sm:$0xff]  ;;  %v135_v0 = vld [vmem:[%s2088_s5 + $0x80] sm:$0xff]  ;;  %v136_v2 = vld [vmem:[%s2088_s5 + $0x88] sm:$0xff]  ;;  %vm448_vm4 = vcmask 523264   ;;  %s1032_s3 = sshll.u32 %s1478_s13, 4  ;;  %s1033_s3 = int_to_ptr.vmem [resolvable:$true] %s1032_s3 }
  0x1f   :  { %1340 = vmatpush3.bf16.msra.mxu1 %v1339_v31  ;;  %v1355_v1 = vpack.c.bf16 %v117_v63, %v116_v62  ;;  %v119_v3 = vld [vmem:[%s2088_s5] sm:$0xff]  ;;  %v120_v4 = vld [vmem:[%s2088_s5 + $0x8] sm:$0xff]  ;;  %v1357_v5 = vpack.c.bf16 %v136_v2, %v135_v0  ;;  %v137_v10 = vld [vmem:[%s2088_s5 + $0x90] sm:$0xff]  ;;  %v531_v57 = vrot.slane %v1715_v22, %v1717_v23  ;;  %vm783_vm7 = vcmask 261120   ;;  %p1455_p1 = scmp.lt.s32.totalorder %s1033_s3, %s1033_s3 }
  0x20   :  { %1342 = vmatprep.subr.bf16.mxu1 %v1341_v38  ;;  %363 = vmatprep.mubr.f32.mxu1 %v214_v46  ;;  %v1359_v6 = vpack.c.bf16 %v120_v4, %v119_v3  ;;  %v167_v7 = vld [vmem:[%s2088_s5 + $0x180] sm:$0xff]  ;;  %v168_v8 = vld [vmem:[%s2088_s5 + $0x188] sm:$0xff]  ;;  %v138_v11 = vld [vmem:[%s2088_s5 + $0x98] sm:$0xff]  ;;  %vm1024_vm9 = vcmask 254976  }
  0x21   :  { %1312 = vmatpush3.bf16.msra.mxu0 %v1311_v44  ;;  %v1389_v9 = vpack.c.bf16 %v168_v8, %v167_v7  ;;  %v1361_v12 = vpack.c.bf16 %v138_v11, %v137_v10  ;;  %v121_v13 = vld [vmem:[%s2088_s5 + $0x10] sm:$0xff]  ;;  %v122_v14 = vld [vmem:[%s2088_s5 + $0x18] sm:$0xff]  ;;  %v139_v16 = vld [vmem:[%s2088_s5 + $0xa0] sm:$0xff] }
  0x22   :  { %1358 = vmatprep.subr.bf16.mxu0 %v1357_v5  ;;  %v1363_v15 = vpack.c.bf16 %v122_v14, %v121_v13  ;;  %v140_v17 = vld [vmem:[%s2088_s5 + $0xa8] sm:$0xff]  ;;  %v123_v19 = vld [vmem:[%s2088_s5 + $0x20] sm:$0xff]  ;;  %v141_v24 = vld [vmem:[%s2088_s5 + $0xb0] sm:$0xff] }
  0x23   :  { %1344 = vmatpush3.bf16.msra.mxu1 %v1343_v45  ;;  %v1365_v18 = vpack.c.bf16 %v140_v17, %v139_v16  ;;  %v124_v20 = vld [vmem:[%s2088_s5 + $0x28] sm:$0xff]  ;;  %v142_v25 = vld [vmem:[%s2088_s5 + $0xb8] sm:$0xff]  ;;  %v125_v27 = vld [vmem:[%s2088_s5 + $0x30] sm:$0xff] }
  0x24   :  { %1219 = vmatprep.subr.mxu1 %v1475_v49  ;;  %294 = vmatmul.mubr.f32.vlgmr.msra.gmra.mrb[0].mxu0 %v205_v36  ;;  %v1367_v21 = vpack.c.bf16 %v124_v20, %v123_v19  ;;  %v1369_v26 = vpack.c.bf16 %v142_v25, %v141_v24  ;;  %v126_v28 = vld [vmem:[%s2088_s5 + $0x38] sm:$0xff]  ;;  %v143_v30 = vld [vmem:[%s2088_s5 + $0xc0] sm:$0xff]  ;;  %v144_v31 = vld [vmem:[%s2088_s5 + $0xc8] sm:$0xff] }
  0x25   :  { %1360 = vmatpush3.bf16.msra.mxu0 %v1359_v6  ;;  %v1371_v29 = vpack.c.bf16 %v126_v28, %v125_v27  ;;  %v1373_v32 = vpack.c.bf16 %v144_v31, %v143_v30  ;;  %v127_v33 = vld [vmem:[%s2088_s5 + $0x40] sm:$0xff]  ;;  %v128_v34 = vld [vmem:[%s2088_s5 + $0x48] sm:$0xff]  ;;  %v145_v36 = vld [vmem:[%s2088_s5 + $0xd0] sm:$0xff] }
  0x26   :  { %364 = vmatmul.mubr.f32.vlgmr.msra.gmra.mrb[0].mxu1 %v212_v43  ;;  %1362 = vmatprep.subr.bf16.mxu0 %v1361_v12  ;;  %v1375_v35 = vpack.c.bf16 %v128_v34, %v127_v33  ;;  %v146_v37 = vld [vmem:[%s2088_s5 + $0xd8] sm:$0xff]  ;;  %v129_v39 = vld [vmem:[%s2088_s5 + $0x50] sm:$0xff]  ;;  %v147_v43 = vld [vmem:[%s2088_s5 + $0xe0] sm:$0xff] }
  0x27   :  { %1220 = vmatpush3.msra.mxu1 %v108_v50  ;;  %1221 = vmatprep.mubr.msk.f32.mxu1 %vm1476_vm2, %v1475_v49  ;;  %v1377_v38 = vpack.c.bf16 %v146_v37, %v145_v36  ;;  %v130_v40 = vld [vmem:[%s2088_s5 + $0x58] sm:$0xff]  ;;  %v148_v44 = vld [vmem:[%s2088_s5 + $0xe8] sm:$0xff]  ;;  %v131_v46 = vld [vmem:[%s2088_s5 + $0x60] sm:$0xff] }
  0x28   :  { %1345 = vmatprep.subr.bf16.mxu1 %v1477_v55  ;;  %v1379_v42 = vpack.c.bf16 %v130_v40, %v129_v39  ;;  %v1381_v45 = vpack.c.bf16 %v148_v44, %v147_v43  ;;  %v132_v47 = vld [vmem:[%s2088_s5 + $0x68] sm:$0xff]  ;;  %v149_v50 = vld [vmem:[%s2088_s5 + $0xf0] sm:$0xff]  ;;  %v150_v51 = vld [vmem:[%s2088_s5 + $0xf8] sm:$0xff] }
  0x29   :  { %1364 = vmatpush3.bf16.msra.mxu0 %v1363_v15  ;;  %v1383_v48 = vpack.c.bf16 %v132_v47, %v131_v46  ;;  %v1385_v52 = vpack.c.bf16 %v150_v51, %v149_v50  ;;  %v1040_v60 = vld [vmem:[%s2085_s2] ss:$0 sm:$0xff]  ;;  %v170_v11 = vld [vmem:[%s2088_s5 + $0x198] sm:$0xff]  ;;  %v153_v16 = vld [vmem:[%s2088_s5 + $0x110] sm:$0xff] }
  0x2a   :  { %1222 = vmatmul.mubr.msk.f32.vlgmr.msra.gmra.mrb[2].mxu1 %vm226_vm3, %v221_v53  ;;  %1366 = vmatprep.subr.bf16.mxu0 %v1365_v18  ;;  %v133_v53 = vld [vmem:[%s2088_s5 + $0x70] sm:$0xff]  ;;  %v151_v8 = vld [vmem:[%s2088_s5 + $0x100] sm:$0xff]  ;;  %v154_v17 = vld [vmem:[%s2088_s5 + $0x118] sm:$0xff] }
  0x2b   :  { %1347 = vmatpush3.bf16.msra.mxu1 %v1346_v54  ;;  %1240 = vmatprep.mubr.msk.f32.mxu1 %vm1476_vm2, %v1475_v49  ;;  %v134_v54 = vld [vmem:[%s2088_s5 + $0x78] sm:$0xff]  ;;  %v171_v19 = vld [vmem:[%s2088_s5 + $0x1a0] sm:$0xff]  ;;  %v172_v20 = vld [vmem:[%s2088_s5 + $0x1a8] sm:$0xff] }
  0x2c   :  { %1348 = vmatprep.subr.bf16.mxu1 %v1477_v55  ;;  %v1387_v56 = vpack.c.bf16 %v134_v54, %v133_v53  ;;  %v1397_v24 = vpack.c.bf16 %v172_v20, %v171_v19  ;;  %v155_v25 = vld [vmem:[%s2088_s5 + $0x120] sm:$0xff]  ;;  %v173_v27 = vld [vmem:[%s2088_s5 + $0x1b0] sm:$0xff]  ;;  %v174_v28 = vld [vmem:[%s2088_s5 + $0x1b8] sm:$0xff] }
  0x2d   :  { %1368 = vmatpush3.bf16.msra.mxu0 %v1367_v21  ;;  %v1395_v21 = vpack.c.bf16 %v154_v17, %v153_v16  ;;  %v1401_v30 = vpack.c.bf16 %v174_v28, %v173_v27  ;;  %v157_v31 = vld [vmem:[%s2088_s5 + $0x130] sm:$0xff]  ;;  %v175_v33 = vld [vmem:[%s2088_s5 + $0x1c0] sm:$0xff]  ;;  %v176_v34 = vld [vmem:[%s2088_s5 + $0x1c8] sm:$0xff] }
  0x2e   :  { %1370 = vmatprep.subr.bf16.mxu0 %v1369_v26  ;;  %v156_v26 = vld [vmem:[%s2088_s5 + $0x128] sm:$0xff]  ;;  %v1405_v36 = vpack.c.bf16 %v176_v34, %v175_v33  ;;  %v159_v37 = vld [vmem:[%s2088_s5 + $0x140] sm:$0xff]  ;;  %v177_v39 = vld [vmem:[%s2088_s5 + $0x1d0] sm:$0xff] }
  0x2f   :  { %1350 = vmatpush3.bf16.msra.mxu1 %v1349_v58  ;;  %v539_v58 = vcombine.high %v531_v57, %v531_v57  ;;  %v178_v40 = vld [vmem:[%s2088_s5 + $0x1d8] sm:$0xff]  ;;  %v161_v44 = vld [vmem:[%s2088_s5 + $0x150] sm:$0xff]  ;;  %v179_v46 = vld [vmem:[%s2088_s5 + $0x1e0] sm:$0xff] }
  0x30   :  { %1351 = vmatprep.subr.bf16.mxu1 %v1477_v55  ;;  %v1409_v43 = vpack.c.bf16 %v178_v40, %v177_v39  ;;  %v180_v47 = vld [vmem:[%s2088_s5 + $0x1e8] sm:$0xff]  ;;  %v163_v51 = vld [vmem:[%s2088_s5 + $0x160] sm:$0xff]  ;;  %v181_v53 = vld [vmem:[%s2088_s5 + $0x1f0] sm:$0xff] }
  0x31   :  { %1372 = vmatpush3.bf16.msra.mxu0 %v1371_v29  ;;  %618 = vmatprep.mubr.f32.mxu0 %v539_v58  ;;  %v1399_v29 = vpack.c.bf16 %v156_v26, %v155_v25  ;;  %v1413_v50 = vpack.c.bf16 %v180_v47, %v179_v46  ;;  %v182_v54 = vld [vmem:[%s2088_s5 + $0x1f8] sm:$0xff]  ;;  %v165_v58 = vld [vmem:[%s2088_s5 + $0x170] sm:$0xff]  ;;  %v940_v26 = vld [vmem:[%s2093_s10] sm:$0xff] }
  0x32   :  { %1374 = vmatprep.subr.bf16.mxu0 %v1373_v32  ;;  %v158_v32 = vld [vmem:[%s2088_s5 + $0x138] sm:$0xff]  ;;  %v771_v19 = vld [vmem:[%s2091_s8 + $0x10] sm:$0xff]  ;;  %v941_v27 = vld [vmem:[%s2093_s10 + $0x8] sm:$0xff] }
  0x33   :  { %1353 = vmatpush3.bf16.msra.mxu1 %v1352_v61  ;;  %v772_v20 = vld [vmem:[%s2091_s8 + $0x18] sm:$0xff]  ;;  %v942_v33 = vld [vmem:[%s2093_s10 + $0x10] sm:$0xff] }
  0x34   :  { %1354 = vmatprep.subr.bf16.mxu1 %v1477_v55  ;;  %v943_v34 = vld [vmem:[%s2093_s10 + $0x18] sm:$0xff]  ;;  %s1450_s10 = scalar_lea.vmem %s1033_s3, 32 }
  0x35   :  { %1376 = vmatpush3.bf16.msra.mxu0 %v1375_v35  ;;  %v1403_v35 = vpack.c.bf16 %v158_v32, %v157_v31  ;;  %v1434_v31 = vpack.c.bf16 %v941_v27, %v940_v26  ;;  %p1451_p0 = scmp.ne.s32.totalorder %s1033_s3, %s1450_s10  ;;  %p1456_p2 = scmp.lt.s32.totalorder %s1450_s10, %s1450_s10 }
  0x36   :  { %1378 = vmatprep.subr.bf16.mxu0 %v1377_v38  ;;  %v160_v38 = vld [vmem:[%s2088_s5 + $0x148] sm:$0xff] }
  0x37   :  { %1356 = vmatpush3.bf16.msra.mxu1 %v1355_v1  ;;  %v524_v1 = vcombine.high %v1715_v22, %v1715_v22  ;;  %v169_v22 = vld [vmem:[%s2088_s5 + $0x190] sm:$0xff]  ;;  %p1457_p3 = por %p1456_p2, %p1455_p1 }
  0x38   :  { %1390 = vmatprep.subr.bf16.mxu1 %v1389_v9  ;;  %v152_v9 = vld [vmem:[%s2088_s5 + $0x108] sm:$0xff]  ;;  %v1393_v15 = vpack.c.bf16 %v170_v11, %v169_v22 }
  0x39   :  { %1380 = vmatpush3.bf16.msra.mxu0 %v1379_v42  ;;  %v1907_v7 = vrot.slane %v524_v1, %v1717_v23  ;;  %v1391_v13 = vpack.c.bf16 %v152_v9, %v151_v8  ;;  %v1407_v42 = vpack.c.bf16 %v160_v38, %v159_v37  ;;  %p1458_p4 = pnand %p1457_p3, %p1451_p0 }
  0x3a   :  { %1382 = vmatprep.subr.bf16.mxu0 %v1381_v45  ;;  %v162_v45 = vld [vmem:[%s2088_s5 + $0x158] sm:$0xff] }
  0x3b   :  { %v540_v14 = vcombine.high %v1907_v7, %v1907_v7 }
  0x3d   :  { %1384 = vmatpush3.bf16.msra.mxu0 %v1383_v48  ;;  %v1411_v48 = vpack.c.bf16 %v162_v45, %v161_v44 }
  0x3e   :  { %1386 = vmatprep.subr.bf16.mxu0 %v1385_v52  ;;  %v164_v52 = vld [vmem:[%s2088_s5 + $0x168] sm:$0xff] }
  0x41   :  { %1388 = vmatpush3.bf16.msra.mxu0 %v1387_v56  ;;  %v1415_v56 = vpack.c.bf16 %v164_v52, %v163_v51 }
  0x42   :  { %1421 = vmatprep.subr.bf16.mxu0 %v1477_v55 }
  0x44   :  { %619 = vmatmul.mubr.f32.vlgmr.msra.gmra.mrb[2].mxu0 %v531_v57  ;;  %v1417_v57 = vpack.c.bf16 %v182_v54, %v181_v53 }
  0x45   :  { %1256 = vmatprep.mubr.msk.f32.mxu0 %vm1476_vm2, %v1475_v49 }
  0xf7   :  { %v1083_v59 = vpop.f32.mrb[0].mxu0 }
  0xf8   :  { %v1084_v61 = vpop.f32.mrb[1].mxu0 }
  0xf9   :  { %v1118_v62 = vpop.f32.mrb[0].mxu1  ;;  %v1085_v63 = vadd.f32 %v1084_v61, %v1083_v59  ;;  %v166_v59 = vld [vmem:[%s2088_s5 + $0x178] sm:$0xff]  ;;  %v183_v61 = vld [vmem:[%s2088_s5 + $0x200] sm:$0xff] }
  0xfa   :  { %v1119_v0 = vpop.f32.mrb[1].mxu1 }
  0xfb   :  { %v1120_v2 = vadd.f32 %v1119_v0, %v1118_v62  ;;  %v296_v3 = vadd.f32 %v1085_v63, %v1040_v60  ;;  %v1419_v60 = vpack.c.bf16 %v166_v59, %v165_v58  ;;  %v547_v62 = vrot.slane %v1750_v41, %v1717_v23  ;;  %v766_v23 = vld [vmem:[%s2089_s6 + $0x10] sm:$0xff]  ;;  %v767_v41 = vld [vmem:[%s2089_s6 + $0x18] sm:$0xff] }
  0xfd   :  { %v435_v4 = vpop.f32.mrb[2].mxu1  ;;  %v366_v5 = vadd.f32 %v1120_v2, %v296_v3  ;;  %v764_v2 = vld [vmem:[%s2089_s6] sm:$0xff]  ;;  %v765_v3 = vld [vmem:[%s2089_s6 + $0x8] sm:$0xff] }
  0xfe   :  { %v1223_v6 = vpop.f32.mrb[3].mxu1 }
  0xff   :  { %v436_v10 = vadd.f32 %v435_v4, %v366_v5  ;;  %v1422_v4 = vpack.c.bf16 %v765_v3, %v764_v2  ;;  %v1425_v5 = vpack.c.bf16 %v767_v41, %v766_v23  ;;  %v1042_v6 = vld [vmem:[%s2087_s4] ss:$0 sm:$0xff] }
 0x101   :  { %vm439_vm5 = vcmp.ge.f32.partialorder %v436_v10, 0.0  ;;  %v440_v12 = vmul.f32 0.2, %v436_v10  ;;  %1423 = vmatpush3.bf16.msra.mxu0 %v1422_v4 }
 0x102   :  { %1424 = vmatprep.subr.bf16.mxu0 %v1477_v55 }
 0x103   :  { %v441_v18 = vsel %vm439_vm5, %v436_v10, %v440_v12 }
 0x104   :  { %1241 = vmatmul.mubr.msk.f32.vlgmr.msra.gmra.mrb[4].mxu1 %vm448_vm4, %v441_v18 }
 0x105   :  { %1392 = vmatpush3.bf16.msra.mxu1 %v1391_v13  ;;  %688 = vmatprep.mubr.f32.mxu1 %v540_v14  ;;  %v769_v13 = vld [vmem:[%s2091_s8] sm:$0xff]  ;;  %v770_v14 = vld [vmem:[%s2091_s8 + $0x8] sm:$0xff] }
 0x106   :  { %1394 = vmatprep.subr.bf16.mxu1 %v1393_v15  ;;  %1426 = vmatpush3.bf16.msra.mxu0 %v1425_v5  ;;  %v1428_v17 = vpack.c.bf16 %v770_v14, %v769_v13 }
 0x107   :  { %1427 = vmatprep.subr.bf16.mxu0 %v1477_v55 }
 0x109   :  { %1396 = vmatpush3.bf16.msra.mxu1 %v1395_v21  ;;  %v1431_v21 = vpack.c.bf16 %v772_v20, %v771_v19 }
 0x10a   :  { %1398 = vmatprep.subr.bf16.mxu1 %v1397_v24  ;;  %v1045_v24 = vld [vmem:[%s2090_s7] ss:$0 sm:$0xff] }
 0x10d   :  { %1400 = vmatpush3.bf16.msra.mxu1 %v1399_v29 }
 0x10e   :  { %1402 = vmatprep.subr.bf16.mxu1 %v1401_v30 }
 0x111   :  { %1404 = vmatpush3.bf16.msra.mxu1 %v1403_v35  ;;  %v1437_v35 = vpack.c.bf16 %v943_v34, %v942_v33 }
 0x112   :  { %1406 = vmatprep.subr.bf16.mxu1 %v1405_v36  ;;  %v1047_v36 = vld [vmem:[%s2092_s9] ss:$0 sm:$0xff] }
 0x115   :  { %1408 = vmatpush3.bf16.msra.mxu1 %v1407_v42 }
 0x116   :  { %1410 = vmatprep.subr.bf16.mxu1 %v1409_v43 }
 0x117   :  { %v1164_v63 = vpop.f32.mrb[2].mxu0 }
 0x118   :  { %v1165_v0 = vpop.f32.mrb[3].mxu0 }
 0x119   :  { %1412 = vmatpush3.bf16.msra.mxu1 %v1411_v48  ;;  %v1166_v1 = vadd.f32 %v1165_v0, %v1164_v63 }
 0x11a   :  { %1414 = vmatprep.subr.bf16.mxu1 %v1413_v50 }
 0x11d   :  { %1416 = vmatpush3.bf16.msra.mxu1 %v1415_v56 }
 0x11e   :  { %1418 = vmatprep.subr.bf16.mxu1 %v1417_v57 }
 0x121   :  { %1420 = vmatpush3.bf16.msra.mxu1 %v1419_v60 }
 0x122   :  { %1243 = vmatprep.subr.mxu1 %v1475_v49 }
 0x124   :  { %689 = vmatmul.mubr.f32.vlgmr.msra.gmra.mrb[6].mxu1 %v1907_v7  ;;  %v1439_v7 = vadd.f32 %v1166_v1, %v1042_v6 }
 0x125   :  { %1244 = vmatpush3.msra.mxu1 %v183_v61  ;;  %1245 = vmatprep.mubr.msk.f32.mxu1 %vm1476_vm2, %v1475_v49 }
 0x128   :  { %1246 = vmatmul.mubr.msk.f32.vlgmr.msra.gmra.mrb[4].mxu1 %vm226_vm3, %v547_v62 }
 0x1f7   :  { %v1199_v8 = vpop.f32.mrb[6].mxu1 }
 0x1f8   :  { %v1200_v9 = vpop.f32.mrb[7].mxu1 }
 0x1f9   :  { %v1201_v10 = vadd.f32 %v1200_v9, %v1199_v8 }
 0x1fb   :  { %v760_v22 = vpop.f32.mrb[4].mxu1  ;;  %v1440_v11 = vadd.f32 %v1439_v7, %v1201_v10 }
 0x1fc   :  { %v1247_v12 = vpop.f32.mrb[5].mxu1 }
 0x1fd   :  { %v1441_v15 = vadd.f32 %v1440_v11, %v760_v22 }
 0x1ff   :  { %v775_v16 = vmul.f32 0.2, %v1441_v15  ;;  %vm774_vm6 = vcmp.ge.f32.partialorder %v1441_v15, 0.0 }
 0x201   :  { %v776_v18 = vsel %vm774_vm6, %v1441_v15, %v775_v16 }
 0x202   :  { %1257 = vmatmul.mubr.msk.f32.vlgmr.msra.gmra.mrb[4].mxu0 %vm783_vm7, %v776_v18 }
 0x203   :  { %1429 = vmatpush3.bf16.msra.mxu0 %v1428_v17  ;;  %1267 = vmatprep.mubr.msk.f32.mxu0 %vm1476_vm2, %v1475_v49 }
 0x204   :  { %1430 = vmatprep.subr.bf16.mxu0 %v1477_v55 }
 0x207   :  { %1432 = vmatpush3.bf16.msra.mxu0 %v1431_v21 }
 0x208   :  { %1433 = vmatprep.subr.bf16.mxu0 %v1477_v55 }
 0x2d5   :  { %v853_v25 = vpop.f32.mrb[4].mxu0 }
 0x2d6   :  { %v854_v28 = vadd.f32 %v1045_v24, %v853_v25  ;;  %v1258_v29 = vpop.f32.mrb[5].mxu0 }
 0x2d8   :  { %vm857_vm8 = vcmp.ge.f32.partialorder %v854_v28, 0.0  ;;  %v858_v30 = vmul.f32 0.2, %v854_v28 }
 0x2da   :  { %v859_v32 = vsel %vm857_vm8, %v854_v28, %v858_v30 }
 0x2db   :  { %1268 = vmatmul.mubr.msk.f32.vlgmr.msra.gmra.mrb[6].mxu0 %vm783_vm7, %v859_v32 }
 0x2dc   :  { %1435 = vmatpush3.bf16.msra.mxu0 %v1434_v31  ;;  %1278 = vmatprep.mubr.msk.f32.mxu0 %vm1476_vm2, %v1475_v49 }
 0x2dd   :  { %1436 = vmatprep.subr.bf16.mxu0 %v1477_v55  ;;  %v1049_v55 = vld [vmem:[%s2094_s11] ss:$0 sm:$0xff] }
 0x2e0   :  { %1438 = vmatpush3.bf16.msra.mxu0 %v1437_v35 }
 0x3ae   :  { %v935_v37 = vpop.f32.mrb[6].mxu0 }
 0x3af   :  { %v936_v38 = vadd.f32 %v1047_v36, %v935_v37  ;;  %v1269_v39 = vpop.f32.mrb[7].mxu0 }
 0x3b1   :  { %v939_v49 = vadd.f32 %v1441_v15, %v936_v38 }
 0x3b3   :  { %1279 = vmatmul.mubr.msk.f32.vlgmr.msra.gmra.mrb[8].mxu0 %vm783_vm7, %v939_v49 }
 0x486   :  { %v1020_v40 = vpop.f32.mrb[8].mxu0 }
 0x487   :  { %v1021_v42 = vadd.f32 %v1049_v55, %v1020_v40  ;;  %v1280_v43 = vpop.f32.mrb[9].mxu0 }
 0x489   :  { %1025 = vst.msk [vmem:[#allocation2] sm:$0x3] %vm1024_vm9, %v1021_v42 }
 0x48a   :  { %1461 = shalt.err (!%p1458_p4)
}
 0x48b   :  { %s1462_s1 = scalar_lea.hbm %s2095_s12, 32 }
 0x48c   :  { %p1463_p5 = scmp.ne.s32.totalorder %s2095_s12, %s1462_s1  ;;  %p1466_p6 = scmp.lt.u32.totalorder %s1462_s1, %s2095_s12 }
 0x48e   :  { %p1468_p7 = pnand %p1466_p6, %p1463_p5 }
 0x490   :  { %1471 = shalt.err (!%p1468_p7)
}
 0x491   :  { %1035 = dma.vmem_to_hbm [thread:$0]  %s1033_s3, 32, %s2095_s12, [#allocation3]  }
 0x492   :  { %1472 = dma.done.wait [#allocation3], 32  }
 0x493   :  { %1473 = vsyncadd [#allocation3], 4294967264 }
 0x494   :  { %1039 = vsyncpa [#allocation3], 1 }

</bundles_post_ra>
